<compile_context>
chip_gen: v7x
topology: tpu7x:2x2x1
jax: 0.10.0
libtpu: 0.0.40
codegen_flags: <defaults>
</compile_context>

<pallas_src>
import functools

import jax
import jax.numpy as jnp
from jax.experimental import pallas as pl
from jax.experimental.pallas import tpu as pltpu

ACT_NONE, ACT_LEAKY, ACT_RELU, ACT_TANH = 0, 1, 2, 3

_VMEM_LIMIT = 32 * 1024 * 1024  # explicit scoped-VMEM budget, safe on v5e/v6e/v7x


# ------------------------------ small helpers ------------------------------ #

def _apply_act(y, act):
    if act == ACT_LEAKY:
        return jnp.where(y > 0, y, 0.2 * y)
    if act == ACT_RELU:
        return jnp.maximum(y, 0.0)
    if act == ACT_TANH:
        return jnp.tanh(y)
    return y


def _pick_tm(m, cap=256):
    """Largest row tile that divides m exactly (no runtime pad / output slice)."""
    if m <= cap:
        return m
    for tm in (256, 128, 64, 32, 16, 8):
        if m % tm == 0:
            return tm
    return m


def _pick_tk(k):
    """Tile K only when large and 512-aligned; else keep full K (one step)."""
    if k > 512 and k % 512 == 0:
        return 512
    return k


# ------------------------------ Pallas kernels ------------------------------ #

def _mm_kernel(a_ref, b_ref, bias_ref, o_ref, acc_ref, *, act):
    """bf16 x bf16 -> f32 MXU matmul tile with K accumulation + fused epilogue."""
    @pl.when(pl.program_id(1) == 0)
    def _init():
        acc_ref[...] = jnp.zeros_like(acc_ref)

    acc_ref[...] += jnp.dot(a_ref[...], b_ref[...],
                            preferred_element_type=jnp.float32)

    @pl.when(pl.program_id(1) == pl.num_programs(1) - 1)
    def _finalize():
        y = acc_ref[...] + bias_ref[...]
        o_ref[...] = _apply_act(y, act)


def matmul_fused(a_bf16, w_bf16, bias_f32, act):
    m, k = a_bf16.shape
    k2, n = w_bf16.shape
    assert k == k2
    tm = _pick_tm(m)
    tk = _pick_tk(k)
    assert m % tm == 0 and k % tk == 0
    return pl.pallas_call(
        functools.partial(_mm_kernel, act=act),
        out_shape=jax.ShapeDtypeStruct((m, n), jnp.float32),
        grid_spec=pltpu.PrefetchScalarGridSpec(
            num_scalar_prefetch=0,
            grid=(m // tm, k // tk),
            in_specs=[
                pl.BlockSpec((tm, tk), lambda i, j: (i, j)),
                pl.BlockSpec((tk, n), lambda i, j: (j, 0)),
                pl.BlockSpec((1, n), lambda i, j: (0, 0)),
            ],
            out_specs=pl.BlockSpec((tm, n), lambda i, j: (i, 0)),
            scratch_shapes=[pltpu.VMEM((tm, n), jnp.float32)],
        ),
        compiler_params=pltpu.CompilerParams(
            dimension_semantics=("parallel", "arbitrary"),
            vmem_limit_bytes=_VMEM_LIMIT,
        ),
    )(a_bf16, w_bf16, bias_f32)


def _bn_stats_kernel(x_ref, o_ref):
    """Accumulate per-channel [sum; sum of squares] over M tiles."""
    @pl.when(pl.program_id(0) == 0)
    def _init():
        o_ref[...] = jnp.zeros_like(o_ref)

    x = x_ref[...]
    s = jnp.sum(x, axis=0, keepdims=True)
    ss = jnp.sum(x * x, axis=0, keepdims=True)
    o_ref[...] += jnp.concatenate([s, ss], axis=0)


def _bn_apply_kernel(x_ref, stats_ref, gb_ref, o_ref, *, count, act):
    """Normalize (batch stats, biased var) + gamma/beta + fused activation."""
    stats = stats_ref[...]
    mean = stats[0:1, :] * (1.0 / count)
    var = stats[1:2, :] * (1.0 / count) - mean * mean
    inv = jax.lax.rsqrt(var + 1e-5)
    y = (x_ref[...] - mean) * (inv * gb_ref[0:1, :]) + gb_ref[1:2, :]
    o_ref[...] = _apply_act(y, act)


def batchnorm_act(x, gb, act):
    """Training-mode BatchNorm2d over NHWC + fused following activation."""
    n, h, w, c = x.shape
    m = n * h * w
    xf = x.reshape(m, c)
    tm = _pick_tm(m)
    assert m % tm == 0
    grid = (m // tm,)
    stats = pl.pallas_call(
        _bn_stats_kernel,
        out_shape=jax.ShapeDtypeStruct((2, c), jnp.float32),
        grid=grid,
        in_specs=[pl.BlockSpec((tm, c), lambda i: (i, 0))],
        out_specs=pl.BlockSpec((2, c), lambda i: (0, 0)),
        compiler_params=pltpu.CompilerParams(
            dimension_semantics=("arbitrary",),
            vmem_limit_bytes=_VMEM_LIMIT,
        ),
    )(xf)
    y = pl.pallas_call(
        functools.partial(_bn_apply_kernel, count=float(m), act=act),
        out_shape=jax.ShapeDtypeStruct((m, c), jnp.float32),
        grid=grid,
        in_specs=[
            pl.BlockSpec((tm, c), lambda i: (i, 0)),
            pl.BlockSpec((2, c), lambda i: (0, 0)),
            pl.BlockSpec((2, c), lambda i: (0, 0)),
        ],
        out_specs=pl.BlockSpec((tm, c), lambda i: (i, 0)),
        compiler_params=pltpu.CompilerParams(
            dimension_semantics=("parallel",),
            vmem_limit_bytes=_VMEM_LIMIT,
        ),
    )(xf, stats, gb)
    return y.reshape(n, h, w, c)


# ------------------------ conv layers on top of matmul ---------------------- #

def conv_down(x, w_mat, act):
    """Conv2d(k=4, s=2, p=1), no bias.  x: NHWC f32, w_mat: (16*Cin, Cout) bf16."""
    n, h, w, c = x.shape
    cout = w_mat.shape[1]
    ho, wo = h // 2, w // 2
    xp = jnp.pad(x, ((0, 0), (1, 1), (1, 1), (0, 0))).astype(jnp.bfloat16)
    taps = []
    for ky in range(4):
        for kx in range(4):
            taps.append(xp[:, ky:ky + 2 * ho:2, kx:kx + 2 * wo:2, :])
    a = jnp.stack(taps, axis=3).reshape(n * ho * wo, 16 * c)
    bias = jnp.zeros((1, cout), jnp.float32)
    y = matmul_fused(a, w_mat, bias, act)
    return y.reshape(n, ho, wo, cout)


def convT_up(xs, w_mat, bias_packed, cout, act):
    """ConvTranspose2d(k=4, s=2, p=1) via the 4-phase (sub-pixel) decomposition.

    xs: list of NHWC tensors; the channel concat (skip connection) is fused into
    the im2col build.  The preceding uprelu (ReLU) is applied here: it is
    zero-preserving (padded border stays zero) and idempotent on halves whose
    producer already stored a ReLU'd / LeakyReLU'd activation.
    w_mat: phase-packed (9*Cin, 4*Cout) bf16 weight.
    """
    n, h, w, _ = xs[0].shape
    pads = [jnp.pad(jnp.maximum(x, 0.0),
                    ((0, 0), (1, 1), (1, 1), (0, 0))).astype(jnp.bfloat16)
            for x in xs]
    taps = []
    for ty in range(3):
        for tx in range(3):
            sl = [p[:, ty:ty + h, tx:tx + w, :] for p in pads]
            taps.append(sl[0] if len(sl) == 1 else jnp.concatenate(sl, axis=-1))
    cin = taps[0].shape[-1]
    a = jnp.stack(taps, axis=3).reshape(n * h * w, 9 * cin)
    if bias_packed is None:
        bias_packed = jnp.zeros((1, 4 * cout), jnp.float32)
    y = matmul_fused(a, w_mat, bias_packed, act)            # (N*H*W, 4*Cout)
    y = y.reshape(n, h, w, 2, 2, cout)                      # (n,i,j,py,px,co)
    y = jnp.transpose(y, (0, 1, 3, 2, 4, 5)).reshape(n, 2 * h, 2 * w, cout)
    return y


# ----------------------------- weight preparation --------------------------- #

def prep_conv_down_weight(w_pt):
    """PyTorch Conv2d weight (Cout, Cin, 4, 4) -> (16*Cin, Cout) bf16, tap-major."""
    cout, cin = w_pt.shape[0], w_pt.shape[1]
    return jnp.transpose(w_pt, (2, 3, 1, 0)).reshape(16 * cin, cout).astype(jnp.bfloat16)


def prep_convT_weight(w_pt):
    """PyTorch ConvTranspose2d weight (Cin, Cout, 4, 4) -> phase-packed (9*Cin, 4*Cout).

    y[2i+py, 2j+px, co] = sum_{dy,dx,c} xpad[i+py+dy, j+px+dx, c]
                                        * w_pt[c, co, 3-py-2dy, 3-px-2dx]
    packed as Wm[(ty,tx,c), (py,px,co)] with ty=py+dy, tx=px+dx (zero otherwise).
    """
    cin, cout = w_pt.shape[0], w_pt.shape[1]
    wm = jnp.zeros((3, 3, cin, 2, 2, cout), jnp.float32)
    for py in range(2):
        for px in range(2):
            for dy in range(2):
                for dx in range(2):
                    ty, tx = py + dy, px + dx
                    ky, kx = 3 - py - 2 * dy, 3 - px - 2 * dx
                    wm = wm.at[ty, tx, :, py, px, :].set(w_pt[:, :, ky, kx])
    return wm.reshape(9 * cin, 4 * cout).astype(jnp.bfloat16)


# ------------------------------- U-Net structure ----------------------------- #

def build_unet_params(key, input_nc, output_nc, num_downs, ngf):
    keys = iter(jax.random.split(key, 256))

    def nk():
        return next(keys)

    def conv_w(out_c, in_c):
        w = 0.05 * jax.random.normal(nk(), (out_c, in_c, 4, 4), jnp.float32)
        return prep_conv_down_weight(w)

    def convT_w(in_c, out_c):
        w = 0.05 * jax.random.normal(nk(), (in_c, out_c, 4, 4), jnp.float32)
        return prep_convT_weight(w)

    def bn_p(c):
        g = 1.0 + 0.1 * jax.random.normal(nk(), (c,), jnp.float32)
        b = 0.1 * jax.random.normal(nk(), (c,), jnp.float32)
        return jnp.stack([g, b], axis=0)                  # packed (2, C)

    # innermost: UnetSkipConnectionBlock(ngf*8, ngf*8, innermost=True)
    blk = {
        "kind": "innermost",
        "w_down": conv_w(ngf * 8, ngf * 8),
        "w_up": convT_w(ngf * 8, ngf * 8),
        "cout_up": ngf * 8,
        "up_gb": bn_p(ngf * 8),
    }
    for _ in range(num_downs - 5):                        # middle ngf*8 blocks
        blk = {
            "kind": "middle",
            "w_down": conv_w(ngf * 8, ngf * 8),
            "dn_gb": bn_p(ngf * 8),
            "w_up": convT_w(ngf * 8 * 2, ngf * 8),
            "cout_up": ngf * 8,
            "up_gb": bn_p(ngf * 8),
            "sub": blk,
        }
    for outer, inner in ((ngf * 4, ngf * 8), (ngf * 2, ngf * 4), (ngf, ngf * 2)):
        blk = {
            "kind": "middle",
            "w_down": conv_w(inner, outer),
            "dn_gb": bn_p(inner),
            "w_up": convT_w(inner * 2, outer),
            "cout_up": outer,
            "up_gb": bn_p(outer),
            "sub": blk,
        }
    b_up = 0.05 * jax.random.normal(nk(), (output_nc,), jnp.float32)
    blk = {
        "kind": "outermost",
        "w_down": conv_w(ngf, input_nc),
        "w_up": convT_w(ngf * 2, output_nc),
        "cout_up": output_nc,
        "b_up": jnp.tile(b_up, 4).reshape(1, 4 * output_nc),  # phase-packed bias
        "sub": blk,
    }
    return blk


def unet_block_forward(blk, x):
    """Non-outermost blocks return [skip, up] (concat fused into the consumer's
    im2col).  Stored activations carry the producer-side nonlinearity
    (LeakyReLU for down-path tensors, ReLU for up-path tensors); exactness
    follows from relu(leaky_relu(v)) == relu(v) and relu idempotence, since the
    consuming ConvT applies ReLU uniformly and down convs apply none."""
    kind = blk["kind"]
    if kind == "outermost":
        h = conv_down(x, blk["w_down"], act=ACT_LEAKY)          # downconv (+ next LeakyReLU)
        s = unet_block_forward(blk["sub"], h)
        return convT_up(s, blk["w_up"], blk["b_up"], blk["cout_up"], act=ACT_TANH)
    if kind == "innermost":
        d = conv_down(x, blk["w_down"], act=ACT_RELU)           # downconv (+ uprelu)
        u = convT_up([d], blk["w_up"], None, blk["cout_up"], act=ACT_NONE)
        u = batchnorm_act(u, blk["up_gb"], act=ACT_RELU)        # upnorm (+ parent uprelu)
        return [x, u]
    # middle block
    d = conv_down(x, blk["w_down"], act=ACT_NONE)
    d = batchnorm_act(d, blk["dn_gb"], act=ACT_LEAKY)           # downnorm (+ next LeakyReLU)
    s = unet_block_forward(blk["sub"], d)
    u = convT_up(s, blk["w_up"], None, blk["cout_up"], act=ACT_NONE)
    u = batchnorm_act(u, blk["up_gb"], act=ACT_RELU)            # upnorm (+ parent uprelu)
    return [x, u]


def unet_generator_forward(params, x_nchw):
    x = jnp.transpose(x_nchw, (0, 2, 3, 1)).astype(jnp.float32)   # NCHW -> NHWC
    y = unet_block_forward(params, x)
    return jnp.transpose(y, (0, 3, 1, 2))                         # NHWC -> NCHW


# ------------------------------------ main ----------------------------------- #

if __name__ == "__main__":
    key = jax.random.PRNGKey(0)
    pkey, xkey = jax.random.split(key)

    # UnetGenerator(input_nc=3, output_nc=3, num_downs=5, ngf=8, norm_layer=BatchNorm2d)
    input_nc, output_nc, num_downs, ngf = 3, 3, 5, 8
    params = build_unet_params(pkey, input_nc, output_nc, num_downs, ngf)

    # spatial size must be divisible by 2**num_downs = 32
    x = jax.random.normal(xkey, (2, input_nc, 32, 32), jnp.float32)

    fwd = jax.jit(lambda inp: unet_generator_forward(params, inp))
    y = jax.block_until_ready(fwd(x))

    assert y.shape == (2, output_nc, 32, 32), y.shape
    assert bool(jnp.all(jnp.isfinite(y)))
    print("KERNEL_OK")
</pallas_src>

<mosaic_0001>
module attributes {stable_mosaic.version = 11 : i64} {
  func.func @_mm_kernel(%arg0: i32, %arg1: i32, %arg2: memref<256x48xbf16, #tpu.memory_space<vmem>>, %arg3: memref<48x8xbf16, #tpu.memory_space<vmem>>, %arg4: memref<1x8xf32, #tpu.memory_space<vmem>>, %arg5: memref<256x8xf32, #tpu.memory_space<vmem>>, %arg6: memref<256x8xf32, #tpu.memory_space<vmem>>) attributes {dimension_semantics = [#tpu.dimension_semantics<parallel>, #tpu.dimension_semantics<arbitrary>], iteration_bounds = array<i64: 2, 1>, scalar_prefetch = 0 : i64, scratch_operands = 1 : i64, tpu.core_type = #tpu.core_type<tc>, window_params = [{transform_indices = @transform_0, window_bounds = array<i64: 256, 48>}, {transform_indices = @transform_1, window_bounds = array<i64: 48, 8>}, {pipeline_mode = #tpu.pipeline_mode<synchronous>, transform_indices = @transform_2, window_bounds = array<i64: 1, 8>}, {transform_indices = @transform_3, window_bounds = array<i64: 256, 8>}]} {
    %c0_i32 = arith.constant 0 : i32
    %0 = arith.cmpi eq, %arg1, %c0_i32 : i32
    %1 = arith.extui %0 : i1 to i32
    %c0_i32_0 = arith.constant 0 : i32
    %2 = arith.cmpi ne, %1, %c0_i32_0 : i32
    scf.if %2 {
      %cst_10 = arith.constant 0.000000e+00 : f32
      %12 = vector.broadcast %cst_10 : f32 to vector<256x8xf32>
      %c0_11 = arith.constant 0 : index
      %c0_12 = arith.constant 0 : index
      %13 = vector.load %arg6[%c0_11, %c0_12] : memref<256x8xf32, #tpu.memory_space<vmem>>, vector<256x8xf32>
      tpu.vector_store %arg6[%c0_11, %c0_12], %12 {strides = array<i32>} : memref<256x8xf32, #tpu.memory_space<vmem>>, vector<256x8xf32>,
    } else {
    }
    %c0 = arith.constant 0 : index
    %c0_1 = arith.constant 0 : index
    %3 = vector.load %arg6[%c0, %c0_1] : memref<256x8xf32, #tpu.memory_space<vmem>>, vector<256x8xf32>
    %c0_2 = arith.constant 0 : index
    %c0_3 = arith.constant 0 : index
    %4 = vector.load %arg2[%c0_2, %c0_3] : memref<256x48xbf16, #tpu.memory_space<vmem>>, vector<256x48xbf16>
    %c0_4 = arith.constant 0 : index
    %c0_5 = arith.constant 0 : index
    %5 = vector.load %arg3[%c0_4, %c0_5] : memref<48x8xbf16, #tpu.memory_space<vmem>>, vector<48x8xbf16>
    %cst = arith.constant dense<0.000000e+00> : vector<256x8xf32>
    %6 = tpu.matmul %4, %5, %cst {dimension_numbers = #tpu.dot_dimension_numbers<[1], [0], [0], [1], [0, 0, 1, 1], [], []>} : vector<256x48xbf16>, vector<48x8xbf16>, vector<256x8xf32> -> vector<256x8xf32>
    %7 = arith.addf %3, %6 : vector<256x8xf32>
    %c0_6 = arith.constant 0 : index
    %c0_7 = arith.constant 0 : index
    %8 = vector.load %arg6[%c0_6, %c0_7] : memref<256x8xf32, #tpu.memory_space<vmem>>, vector<256x8xf32>
    tpu.vector_store %arg6[%c0_6, %c0_7], %7 {strides = array<i32>} : memref<256x8xf32, #tpu.memory_space<vmem>>, vector<256x8xf32>,
    %c0_i32_8 = arith.constant 0 : i32
    %9 = arith.cmpi eq, %arg1, %c0_i32_8 : i32
    %10 = arith.extui %9 : i1 to i32
    %c0_i32_9 = arith.constant 0 : i32
    %11 = arith.cmpi ne, %10, %c0_i32_9 : i32
    scf.if %11 {
      %c0_10 = arith.constant 0 : index
      %c0_11 = arith.constant 0 : index
      %12 = vector.load %arg6[%c0_10, %c0_11] : memref<256x8xf32, #tpu.memory_space<vmem>>, vector<256x8xf32>
      %c0_12 = arith.constant 0 : index
      %c0_13 = arith.constant 0 : index
      %13 = vector.load %arg4[%c0_12, %c0_13] : memref<1x8xf32, #tpu.memory_space<vmem>>, vector<1x8xf32>
      %14 = vector.broadcast %13 : vector<1x8xf32> to vector<256x8xf32>
      %15 = arith.addf %12, %14 : vector<256x8xf32>
      %cst_14 = arith.constant 0.000000e+00 : f32
      %16 = vector.broadcast %cst_14 : f32 to vector<256x8xf32>
      %17 = arith.cmpf ogt, %15, %16 : vector<256x8xf32>
      %cst_15 = arith.constant 2.000000e-01 : f32
      %18 = vector.broadcast %cst_15 : f32 to vector<256x8xf32>
      %19 = arith.mulf %18, %15 : vector<256x8xf32>
      %20 = arith.select %17, %15, %19 : vector<256x8xi1>, vector<256x8xf32>
      %c0_16 = arith.constant 0 : index
      %c0_17 = arith.constant 0 : index
      %21 = vector.load %arg5[%c0_16, %c0_17] : memref<256x8xf32, #tpu.memory_space<vmem>>, vector<256x8xf32>
      tpu.vector_store %arg5[%c0_16, %c0_17], %20 {strides = array<i32>} : memref<256x8xf32, #tpu.memory_space<vmem>>, vector<256x8xf32>,
    } else {
    }
    return
  }
  func.func @transform_0(%arg0: i32, %arg1: i32) -> (i32, i32) {
    %c0_i32 = arith.constant 0 : i32
    return %arg0, %arg1 : i32, i32
  }
  func.func @transform_1(%arg0: i32, %arg1: i32) -> (i32, i32) {
    %c0_i32 = arith.constant 0 : i32
    %c0_i32_0 = arith.constant 0 : i32
    return %arg1, %c0_i32 : i32, i32
  }
  func.func @transform_2(%arg0: i32, %arg1: i32) -> (i32, i32) {
    %c0_i32 = arith.constant 0 : i32
    %c0_i32_0 = arith.constant 0 : i32
    %c0_i32_1 = arith.constant 0 : i32
    return %c0_i32, %c0_i32_0 : i32, i32
  }
  func.func @transform_3(%arg0: i32, %arg1: i32) -> (i32, i32) {
    %c0_i32 = arith.constant 0 : i32
    %c0_i32_0 = arith.constant 0 : i32
    return %arg0, %c0_i32 : i32, i32
  }
}

module attributes {stable_mosaic.version = 11 : i64} {
  func.func @_mm_kernel(%arg0: i32, %arg1: i32, %arg2: memref<128x128xbf16, #tpu.memory_space<vmem>>, %arg3: memref<128x16xbf16, #tpu.memory_space<vmem>>, %arg4: memref<1x16xf32, #tpu.memory_space<vmem>>, %arg5: memref<128x16xf32, #tpu.memory_space<vmem>>, %arg6: memref<128x16xf32, #tpu.memory_space<vmem>>) attributes {dimension_semantics = [#tpu.dimension_semantics<parallel>, #tpu.dimension_semantics<arbitrary>], iteration_bounds = array<i64: 1, 1>, scalar_prefetch = 0 : i64, scratch_operands = 1 : i64, tpu.core_type = #tpu.core_type<tc>, window_params = [{transform_indices = @transform_0, window_bounds = array<i64: 128, 128>}, {transform_indices = @transform_1, window_bounds = array<i64: 128, 16>}, {pipeline_mode = #tpu.pipeline_mode<synchronous>, transform_indices = @transform_2, window_bounds = array<i64: 1, 16>}, {transform_indices = @transform_3, window_bounds = array<i64: 128, 16>}]} {
    %c0_i32 = arith.constant 0 : i32
    %0 = arith.cmpi eq, %arg1, %c0_i32 : i32
    %1 = arith.extui %0 : i1 to i32
    %c0_i32_0 = arith.constant 0 : i32
    %2 = arith.cmpi ne, %1, %c0_i32_0 : i32
    scf.if %2 {
      %cst_10 = arith.constant 0.000000e+00 : f32
      %12 = vector.broadcast %cst_10 : f32 to vector<128x16xf32>
      %c0_11 = arith.constant 0 : index
      %c0_12 = arith.constant 0 : index
      %13 = vector.load %arg6[%c0_11, %c0_12] : memref<128x16xf32, #tpu.memory_space<vmem>>, vector<128x16xf32>
      tpu.vector_store %arg6[%c0_11, %c0_12], %12 {strides = array<i32>} : memref<128x16xf32, #tpu.memory_space<vmem>>, vector<128x16xf32>,
    } else {
    }
    %c0 = arith.constant 0 : index
    %c0_1 = arith.constant 0 : index
    %3 = vector.load %arg6[%c0, %c0_1] : memref<128x16xf32, #tpu.memory_space<vmem>>, vector<128x16xf32>
    %c0_2 = arith.constant 0 : index
    %c0_3 = arith.constant 0 : index
    %4 = vector.load %arg2[%c0_2, %c0_3] : memref<128x128xbf16, #tpu.memory_space<vmem>>, vector<128x128xbf16>
    %c0_4 = arith.constant 0 : index
    %c0_5 = arith.constant 0 : index
    %5 = vector.load %arg3[%c0_4, %c0_5] : memref<128x16xbf16, #tpu.memory_space<vmem>>, vector<128x16xbf16>
    %cst = arith.constant dense<0.000000e+00> : vector<128x16xf32>
    %6 = tpu.matmul %4, %5, %cst {dimension_numbers = #tpu.dot_dimension_numbers<[1], [0], [0], [1], [0, 0, 1, 1], [], []>} : vector<128x128xbf16>, vector<128x16xbf16>, vector<128x16xf32> -> vector<128x16xf32>
    %7 = arith.addf %3, %6 : vector<128x16xf32>
    %c0_6 = arith.constant 0 : index
    %c0_7 = arith.constant 0 : index
    %8 = vector.load %arg6[%c0_6, %c0_7] : memref<128x16xf32, #tpu.memory_space<vmem>>, vector<128x16xf32>
    tpu.vector_store %arg6[%c0_6, %c0_7], %7 {strides = array<i32>} : memref<128x16xf32, #tpu.memory_space<vmem>>, vector<128x16xf32>,
    %c0_i32_8 = arith.constant 0 : i32
    %9 = arith.cmpi eq, %arg1, %c0_i32_8 : i32
    %10 = arith.extui %9 : i1 to i32
    %c0_i32_9 = arith.constant 0 : i32
    %11 = arith.cmpi ne, %10, %c0_i32_9 : i32
    scf.if %11 {
      %c0_10 = arith.constant 0 : index
      %c0_11 = arith.constant 0 : index
      %12 = vector.load %arg6[%c0_10, %c0_11] : memref<128x16xf32, #tpu.memory_space<vmem>>, vector<128x16xf32>
      %c0_12 = arith.constant 0 : index
      %c0_13 = arith.constant 0 : index
      %13 = vector.load %arg4[%c0_12, %c0_13] : memref<1x16xf32, #tpu.memory_space<vmem>>, vector<1x16xf32>
      %14 = vector.broadcast %13 : vector<1x16xf32> to vector<128x16xf32>
      %15 = arith.addf %12, %14 : vector<128x16xf32>
      %c0_14 = arith.constant 0 : index
      %c0_15 = arith.constant 0 : index
      %16 = vector.load %arg5[%c0_14, %c0_15] : memref<128x16xf32, #tpu.memory_space<vmem>>, vector<128x16xf32>
      tpu.vector_store %arg5[%c0_14, %c0_15], %15 {strides = array<i32>} : memref<128x16xf32, #tpu.memory_space<vmem>>, vector<128x16xf32>,
    } else {
    }
    return
  }
  func.func @transform_0(%arg0: i32, %arg1: i32) -> (i32, i32) {
    %c0_i32 = arith.constant 0 : i32
    return %arg0, %arg1 : i32, i32
  }
  func.func @transform_1(%arg0: i32, %arg1: i32) -> (i32, i32) {
    %c0_i32 = arith.constant 0 : i32
    %c0_i32_0 = arith.constant 0 : i32
    return %arg1, %c0_i32 : i32, i32
  }
  func.func @transform_2(%arg0: i32, %arg1: i32) -> (i32, i32) {
    %c0_i32 = arith.constant 0 : i32
    %c0_i32_0 = arith.constant 0 : i32
    %c0_i32_1 = arith.constant 0 : i32
    return %c0_i32, %c0_i32_0 : i32, i32
  }
  func.func @transform_3(%arg0: i32, %arg1: i32) -> (i32, i32) {
    %c0_i32 = arith.constant 0 : i32
    %c0_i32_0 = arith.constant 0 : i32
    return %arg0, %c0_i32 : i32, i32
  }
}

module attributes {stable_mosaic.version = 11 : i64} {
  func.func @_bn_stats_kernel(%arg0: i32, %arg1: memref<128x16xf32, #tpu.memory_space<vmem>>, %arg2: memref<2x16xf32, #tpu.memory_space<vmem>>) attributes {dimension_semantics = [#tpu.dimension_semantics<arbitrary>], iteration_bounds = array<i64: 1>, scalar_prefetch = 0 : i64, scratch_operands = 0 : i64, tpu.core_type = #tpu.core_type<tc>, window_params = [{transform_indices = @transform_0, window_bounds = array<i64: 128, 16>}, {pipeline_mode = #tpu.pipeline_mode<synchronous>, transform_indices = @transform_1, window_bounds = array<i64: 2, 16>}]} {
    %c0_i32 = arith.constant 0 : i32
    %0 = arith.cmpi eq, %arg0, %c0_i32 : i32
    %1 = arith.extui %0 : i1 to i32
    %c0_i32_0 = arith.constant 0 : i32
    %2 = arith.cmpi ne, %1, %c0_i32_0 : i32
    scf.if %2 {
      %cst_7 = arith.constant 0.000000e+00 : f32
      %13 = vector.broadcast %cst_7 : f32 to vector<2x16xf32>
      %c0_8 = arith.constant 0 : index
      %c0_9 = arith.constant 0 : index
      %14 = vector.load %arg2[%c0_8, %c0_9] : memref<2x16xf32, #tpu.memory_space<vmem>>, vector<2x16xf32>
      tpu.vector_store %arg2[%c0_8, %c0_9], %13 {strides = array<i32>} : memref<2x16xf32, #tpu.memory_space<vmem>>, vector<2x16xf32>,
    } else {
    }
    %c0 = arith.constant 0 : index
    %c0_1 = arith.constant 0 : index
    %3 = vector.load %arg1[%c0, %c0_1] : memref<128x16xf32, #tpu.memory_space<vmem>>, vector<128x16xf32>
    %cst = arith.constant dense<0.000000e+00> : vector<16xf32>
    %4 = vector.multi_reduction <add>, %3, %cst [0] : vector<128x16xf32> to vector<16xf32>
    %5 = vector.shape_cast %4 : vector<16xf32> to vector<1x16xf32>
    %6 = arith.mulf %3, %3 : vector<128x16xf32>
    %cst_2 = arith.constant dense<0.000000e+00> : vector<16xf32>
    %7 = vector.multi_reduction <add>, %6, %cst_2 [0] : vector<128x16xf32> to vector<16xf32>
    %8 = vector.shape_cast %7 : vector<16xf32> to vector<1x16xf32>
    %c0_3 = arith.constant 0 : index
    %c0_4 = arith.constant 0 : index
    %9 = vector.load %arg2[%c0_3, %c0_4] : memref<2x16xf32, #tpu.memory_space<vmem>>, vector<2x16xf32>
    %10 = tpu.concatenate %5, %8 in 0 : vector<1x16xf32>, vector<1x16xf32> -> vector<2x16xf32>
    %11 = arith.addf %9, %10 : vector<2x16xf32>
    %c0_5 = arith.constant 0 : index
    %c0_6 = arith.constant 0 : index
    %12 = vector.load %arg2[%c0_5, %c0_6] : memref<2x16xf32, #tpu.memory_space<vmem>>, vector<2x16xf32>
    tpu.vector_store %arg2[%c0_5, %c0_6], %11 {strides = array<i32>} : memref<2x16xf32, #tpu.memory_space<vmem>>, vector<2x16xf32>,
    return
  }
  func.func @transform_0(%arg0: i32) -> (i32, i32) {
    %c0_i32 = arith.constant 0 : i32
    %c0_i32_0 = arith.constant 0 : i32
    return %arg0, %c0_i32 : i32, i32
  }
  func.func @transform_1(%arg0: i32) -> (i32, i32) {
    %c0_i32 = arith.constant 0 : i32
    %c0_i32_0 = arith.constant 0 : i32
    %c0_i32_1 = arith.constant 0 : i32
    return %c0_i32, %c0_i32_0 : i32, i32
  }
}

module attributes {stable_mosaic.version = 11 : i64} {
  func.func @_bn_apply_kernel(%arg0: i32, %arg1: memref<128x16xf32, #tpu.memory_space<vmem>>, %arg2: memref<2x16xf32, #tpu.memory_space<vmem>>, %arg3: memref<2x16xf32, #tpu.memory_space<vmem>>, %arg4: memref<128x16xf32, #tpu.memory_space<vmem>>) attributes {dimension_semantics = [#tpu.dimension_semantics<parallel>], iteration_bounds = array<i64: 1>, scalar_prefetch = 0 : i64, scratch_operands = 0 : i64, tpu.core_type = #tpu.core_type<tc>, window_params = [{transform_indices = @transform_0, window_bounds = array<i64: 128, 16>}, {pipeline_mode = #tpu.pipeline_mode<synchronous>, transform_indices = @transform_1, window_bounds = array<i64: 2, 16>}, {pipeline_mode = #tpu.pipeline_mode<synchronous>, transform_indices = @transform_2, window_bounds = array<i64: 2, 16>}, {transform_indices = @transform_3, window_bounds = array<i64: 128, 16>}]} {
    %c0 = arith.constant 0 : index
    %c0_0 = arith.constant 0 : index
    %0 = vector.load %arg2[%c0, %c0_0] : memref<2x16xf32, #tpu.memory_space<vmem>>, vector<2x16xf32>
    %1 = vector.extract_strided_slice %0 {offsets = [0, 0], sizes = [1, 16], strides = [1, 1]} : vector<2x16xf32> to vector<1x16xf32>
    %cst = arith.constant 7.812500e-03 : f32
    %2 = vector.broadcast %cst : f32 to vector<1x16xf32>
    %3 = arith.mulf %1, %2 : vector<1x16xf32>
    %4 = vector.extract_strided_slice %0 {offsets = [1, 0], sizes = [1, 16], strides = [1, 1]} : vector<2x16xf32> to vector<1x16xf32>
    %cst_1 = arith.constant 7.812500e-03 : f32
    %5 = vector.broadcast %cst_1 : f32 to vector<1x16xf32>
    %6 = arith.mulf %4, %5 : vector<1x16xf32>
    %7 = arith.mulf %3, %3 : vector<1x16xf32>
    %8 = arith.subf %6, %7 : vector<1x16xf32>
    %cst_2 = arith.constant 9.99999974E-6 : f32
    %9 = vector.broadcast %cst_2 : f32 to vector<1x16xf32>
    %10 = arith.addf %8, %9 : vector<1x16xf32>
    %11 = math.rsqrt %10 : vector<1x16xf32>
    %c0_3 = arith.constant 0 : index
    %c0_4 = arith.constant 0 : index
    %12 = vector.load %arg1[%c0_3, %c0_4] : memref<128x16xf32, #tpu.memory_space<vmem>>, vector<128x16xf32>
    %13 = vector.broadcast %3 : vector<1x16xf32> to vector<128x16xf32>
    %14 = arith.subf %12, %13 : vector<128x16xf32>
    %c0_5 = arith.constant 0 : index
    %c0_6 = arith.constant 0 : index
    %15 = vector.load %arg3[%c0_5, %c0_6] : memref<2x16xf32, #tpu.memory_space<vmem>>, vector<1x16xf32>
    %16 = arith.mulf %11, %15 : vector<1x16xf32>
    %17 = vector.broadcast %16 : vector<1x16xf32> to vector<128x16xf32>
    %18 = arith.mulf %14, %17 : vector<128x16xf32>
    %c1 = arith.constant 1 : index
    %c0_7 = arith.constant 0 : index
    %19 = vector.load %arg3[%c1, %c0_7] : memref<2x16xf32, #tpu.memory_space<vmem>>, vector<1x16xf32>
    %20 = vector.broadcast %19 : vector<1x16xf32> to vector<128x16xf32>
    %21 = arith.addf %18, %20 : vector<128x16xf32>
    %cst_8 = arith.constant 0.000000e+00 : f32
    %22 = vector.broadcast %cst_8 : f32 to vector<128x16xf32>
    %23 = arith.cmpf ogt, %21, %22 : vector<128x16xf32>
    %cst_9 = arith.constant 2.000000e-01 : f32
    %24 = vector.broadcast %cst_9 : f32 to vector<128x16xf32>
    %25 = arith.mulf %24, %21 : vector<128x16xf32>
    %26 = arith.select %23, %21, %25 : vector<128x16xi1>, vector<128x16xf32>
    %c0_10 = arith.constant 0 : index
    %c0_11 = arith.constant 0 : index
    %27 = vector.load %arg4[%c0_10, %c0_11] : memref<128x16xf32, #tpu.memory_space<vmem>>, vector<128x16xf32>
    tpu.vector_store %arg4[%c0_10, %c0_11], %26 {strides = array<i32>} : memref<128x16xf32, #tpu.memory_space<vmem>>, vector<128x16xf32>,
    return
  }
  func.func @transform_0(%arg0: i32) -> (i32, i32) {
    %c0_i32 = arith.constant 0 : i32
    %c0_i32_0 = arith.constant 0 : i32
    return %arg0, %c0_i32 : i32, i32
  }
  func.func @transform_1(%arg0: i32) -> (i32, i32) {
    %c0_i32 = arith.constant 0 : i32
    %c0_i32_0 = arith.constant 0 : i32
    %c0_i32_1 = arith.constant 0 : i32
    return %c0_i32, %c0_i32_0 : i32, i32
  }
  func.func @transform_2(%arg0: i32) -> (i32, i32) {
    %c0_i32 = arith.constant 0 : i32
    %c0_i32_0 = arith.constant 0 : i32
    %c0_i32_1 = arith.constant 0 : i32
    return %c0_i32, %c0_i32_0 : i32, i32
  }
  func.func @transform_3(%arg0: i32) -> (i32, i32) {
    %c0_i32 = arith.constant 0 : i32
    %c0_i32_0 = arith.constant 0 : i32
    return %arg0, %c0_i32 : i32, i32
  }
}

module attributes {stable_mosaic.version = 11 : i64} {
  func.func @_mm_kernel(%arg0: i32, %arg1: i32, %arg2: memref<32x256xbf16, #tpu.memory_space<vmem>>, %arg3: memref<256x32xbf16, #tpu.memory_space<vmem>>, %arg4: memref<1x32xf32, #tpu.memory_space<vmem>>, %arg5: memref<32x32xf32, #tpu.memory_space<vmem>>, %arg6: memref<32x32xf32, #tpu.memory_space<vmem>>) attributes {dimension_semantics = [#tpu.dimension_semantics<parallel>, #tpu.dimension_semantics<arbitrary>], iteration_bounds = array<i64: 1, 1>, scalar_prefetch = 0 : i64, scratch_operands = 1 : i64, tpu.core_type = #tpu.core_type<tc>, window_params = [{transform_indices = @transform_0, window_bounds = array<i64: 32, 256>}, {transform_indices = @transform_1, window_bounds = array<i64: 256, 32>}, {pipeline_mode = #tpu.pipeline_mode<synchronous>, transform_indices = @transform_2, window_bounds = array<i64: 1, 32>}, {transform_indices = @transform_3, window_bounds = array<i64: 32, 32>}]} {
    %c0_i32 = arith.constant 0 : i32
    %0 = arith.cmpi eq, %arg1, %c0_i32 : i32
    %1 = arith.extui %0 : i1 to i32
    %c0_i32_0 = arith.constant 0 : i32
    %2 = arith.cmpi ne, %1, %c0_i32_0 : i32
    scf.if %2 {
      %cst_10 = arith.constant 0.000000e+00 : f32
      %12 = vector.broadcast %cst_10 : f32 to vector<32x32xf32>
      %c0_11 = arith.constant 0 : index
      %c0_12 = arith.constant 0 : index
      %13 = vector.load %arg6[%c0_11, %c0_12] : memref<32x32xf32, #tpu.memory_space<vmem>>, vector<32x32xf32>
      tpu.vector_store %arg6[%c0_11, %c0_12], %12 {strides = array<i32>} : memref<32x32xf32, #tpu.memory_space<vmem>>, vector<32x32xf32>,
    } else {
    }
    %c0 = arith.constant 0 : index
    %c0_1 = arith.constant 0 : index
    %3 = vector.load %arg6[%c0, %c0_1] : memref<32x32xf32, #tpu.memory_space<vmem>>, vector<32x32xf32>
    %c0_2 = arith.constant 0 : index
    %c0_3 = arith.constant 0 : index
    %4 = vector.load %arg2[%c0_2, %c0_3] : memref<32x256xbf16, #tpu.memory_space<vmem>>, vector<32x256xbf16>
    %c0_4 = arith.constant 0 : index
    %c0_5 = arith.constant 0 : index
    %5 = vector.load %arg3[%c0_4, %c0_5] : memref<256x32xbf16, #tpu.memory_space<vmem>>, vector<256x32xbf16>
    %cst = arith.constant dense<0.000000e+00> : vector<32x32xf32>
    %6 = tpu.matmul %4, %5, %cst {dimension_numbers = #tpu.dot_dimension_numbers<[1], [0], [0], [1], [0, 0, 1, 1], [], []>} : vector<32x256xbf16>, vector<256x32xbf16>, vector<32x32xf32> -> vector<32x32xf32>
    %7 = arith.addf %3, %6 : vector<32x32xf32>
    %c0_6 = arith.constant 0 : index
    %c0_7 = arith.constant 0 : index
    %8 = vector.load %arg6[%c0_6, %c0_7] : memref<32x32xf32, #tpu.memory_space<vmem>>, vector<32x32xf32>
    tpu.vector_store %arg6[%c0_6, %c0_7], %7 {strides = array<i32>} : memref<32x32xf32, #tpu.memory_space<vmem>>, vector<32x32xf32>,
    %c0_i32_8 = arith.constant 0 : i32
    %9 = arith.cmpi eq, %arg1, %c0_i32_8 : i32
    %10 = arith.extui %9 : i1 to i32
    %c0_i32_9 = arith.constant 0 : i32
    %11 = arith.cmpi ne, %10, %c0_i32_9 : i32
    scf.if %11 {
      %c0_10 = arith.constant 0 : index
      %c0_11 = arith.constant 0 : index
      %12 = vector.load %arg6[%c0_10, %c0_11] : memref<32x32xf32, #tpu.memory_space<vmem>>, vector<32x32xf32>
      %c0_12 = arith.constant 0 : index
      %c0_13 = arith.constant 0 : index
      %13 = vector.load %arg4[%c0_12, %c0_13] : memref<1x32xf32, #tpu.memory_space<vmem>>, vector<1x32xf32>
      %14 = vector.broadcast %13 : vector<1x32xf32> to vector<32x32xf32>
      %15 = arith.addf %12, %14 : vector<32x32xf32>
      %c0_14 = arith.constant 0 : index
      %c0_15 = arith.constant 0 : index
      %16 = vector.load %arg5[%c0_14, %c0_15] : memref<32x32xf32, #tpu.memory_space<vmem>>, vector<32x32xf32>
      tpu.vector_store %arg5[%c0_14, %c0_15], %15 {strides = array<i32>} : memref<32x32xf32, #tpu.memory_space<vmem>>, vector<32x32xf32>,
    } else {
    }
    return
  }
  func.func @transform_0(%arg0: i32, %arg1: i32) -> (i32, i32) {
    %c0_i32 = arith.constant 0 : i32
    return %arg0, %arg1 : i32, i32
  }
  func.func @transform_1(%arg0: i32, %arg1: i32) -> (i32, i32) {
    %c0_i32 = arith.constant 0 : i32
    %c0_i32_0 = arith.constant 0 : i32
    return %arg1, %c0_i32 : i32, i32
  }
  func.func @transform_2(%arg0: i32, %arg1: i32) -> (i32, i32) {
    %c0_i32 = arith.constant 0 : i32
    %c0_i32_0 = arith.constant 0 : i32
    %c0_i32_1 = arith.constant 0 : i32
    return %c0_i32, %c0_i32_0 : i32, i32
  }
  func.func @transform_3(%arg0: i32, %arg1: i32) -> (i32, i32) {
    %c0_i32 = arith.constant 0 : i32
    %c0_i32_0 = arith.constant 0 : i32
    return %arg0, %c0_i32 : i32, i32
  }
}

module attributes {stable_mosaic.version = 11 : i64} {
  func.func @_bn_stats_kernel(%arg0: i32, %arg1: memref<32x32xf32, #tpu.memory_space<vmem>>, %arg2: memref<2x32xf32, #tpu.memory_space<vmem>>) attributes {dimension_semantics = [#tpu.dimension_semantics<arbitrary>], iteration_bounds = array<i64: 1>, scalar_prefetch = 0 : i64, scratch_operands = 0 : i64, tpu.core_type = #tpu.core_type<tc>, window_params = [{transform_indices = @transform_0, window_bounds = array<i64: 32, 32>}, {pipeline_mode = #tpu.pipeline_mode<synchronous>, transform_indices = @transform_1, window_bounds = array<i64: 2, 32>}]} {
    %c0_i32 = arith.constant 0 : i32
    %0 = arith.cmpi eq, %arg0, %c0_i32 : i32
    %1 = arith.extui %0 : i1 to i32
    %c0_i32_0 = arith.constant 0 : i32
    %2 = arith.cmpi ne, %1, %c0_i32_0 : i32
    scf.if %2 {
      %cst_7 = arith.constant 0.000000e+00 : f32
      %13 = vector.broadcast %cst_7 : f32 to vector<2x32xf32>
      %c0_8 = arith.constant 0 : index
      %c0_9 = arith.constant 0 : index
      %14 = vector.load %arg2[%c0_8, %c0_9] : memref<2x32xf32, #tpu.memory_space<vmem>>, vector<2x32xf32>
      tpu.vector_store %arg2[%c0_8, %c0_9], %13 {strides = array<i32>} : memref<2x32xf32, #tpu.memory_space<vmem>>, vector<2x32xf32>,
    } else {
    }
    %c0 = arith.constant 0 : index
    %c0_1 = arith.constant 0 : index
    %3 = vector.load %arg1[%c0, %c0_1] : memref<32x32xf32, #tpu.memory_space<vmem>>, vector<32x32xf32>
    %cst = arith.constant dense<0.000000e+00> : vector<32xf32>
    %4 = vector.multi_reduction <add>, %3, %cst [0] : vector<32x32xf32> to vector<32xf32>
    %5 = vector.shape_cast %4 : vector<32xf32> to vector<1x32xf32>
    %6 = arith.mulf %3, %3 : vector<32x32xf32>
    %cst_2 = arith.constant dense<0.000000e+00> : vector<32xf32>
    %7 = vector.multi_reduction <add>, %6, %cst_2 [0] : vector<32x32xf32> to vector<32xf32>
    %8 = vector.shape_cast %7 : vector<32xf32> to vector<1x32xf32>
    %c0_3 = arith.constant 0 : index
    %c0_4 = arith.constant 0 : index
    %9 = vector.load %arg2[%c0_3, %c0_4] : memref<2x32xf32, #tpu.memory_space<vmem>>, vector<2x32xf32>
    %10 = tpu.concatenate %5, %8 in 0 : vector<1x32xf32>, vector<1x32xf32> -> vector<2x32xf32>
    %11 = arith.addf %9, %10 : vector<2x32xf32>
    %c0_5 = arith.constant 0 : index
    %c0_6 = arith.constant 0 : index
    %12 = vector.load %arg2[%c0_5, %c0_6] : memref<2x32xf32, #tpu.memory_space<vmem>>, vector<2x32xf32>
    tpu.vector_store %arg2[%c0_5, %c0_6], %11 {strides = array<i32>} : memref<2x32xf32, #tpu.memory_space<vmem>>, vector<2x32xf32>,
    return
  }
  func.func @transform_0(%arg0: i32) -> (i32, i32) {
    %c0_i32 = arith.constant 0 : i32
    %c0_i32_0 = arith.constant 0 : i32
    return %arg0, %c0_i32 : i32, i32
  }
  func.func @transform_1(%arg0: i32) -> (i32, i32) {
    %c0_i32 = arith.constant 0 : i32
    %c0_i32_0 = arith.constant 0 : i32
    %c0_i32_1 = arith.constant 0 : i32
    return %c0_i32, %c0_i32_0 : i32, i32
  }
}

module attributes {stable_mosaic.version = 11 : i64} {
  func.func @_bn_apply_kernel(%arg0: i32, %arg1: memref<32x32xf32, #tpu.memory_space<vmem>>, %arg2: memref<2x32xf32, #tpu.memory_space<vmem>>, %arg3: memref<2x32xf32, #tpu.memory_space<vmem>>, %arg4: memref<32x32xf32, #tpu.memory_space<vmem>>) attributes {dimension_semantics = [#tpu.dimension_semantics<parallel>], iteration_bounds = array<i64: 1>, scalar_prefetch = 0 : i64, scratch_operands = 0 : i64, tpu.core_type = #tpu.core_type<tc>, window_params = [{transform_indices = @transform_0, window_bounds = array<i64: 32, 32>}, {pipeline_mode = #tpu.pipeline_mode<synchronous>, transform_indices = @transform_1, window_bounds = array<i64: 2, 32>}, {pipeline_mode = #tpu.pipeline_mode<synchronous>, transform_indices = @transform_2, window_bounds = array<i64: 2, 32>}, {transform_indices = @transform_3, window_bounds = array<i64: 32, 32>}]} {
    %c0 = arith.constant 0 : index
    %c0_0 = arith.constant 0 : index
    %0 = vector.load %arg2[%c0, %c0_0] : memref<2x32xf32, #tpu.memory_space<vmem>>, vector<2x32xf32>
    %1 = vector.extract_strided_slice %0 {offsets = [0, 0], sizes = [1, 32], strides = [1, 1]} : vector<2x32xf32> to vector<1x32xf32>
    %cst = arith.constant 3.125000e-02 : f32
    %2 = vector.broadcast %cst : f32 to vector<1x32xf32>
    %3 = arith.mulf %1, %2 : vector<1x32xf32>
    %4 = vector.extract_strided_slice %0 {offsets = [1, 0], sizes = [1, 32], strides = [1, 1]} : vector<2x32xf32> to vector<1x32xf32>
    %cst_1 = arith.constant 3.125000e-02 : f32
    %5 = vector.broadcast %cst_1 : f32 to vector<1x32xf32>
    %6 = arith.mulf %4, %5 : vector<1x32xf32>
    %7 = arith.mulf %3, %3 : vector<1x32xf32>
    %8 = arith.subf %6, %7 : vector<1x32xf32>
    %cst_2 = arith.constant 9.99999974E-6 : f32
    %9 = vector.broadcast %cst_2 : f32 to vector<1x32xf32>
    %10 = arith.addf %8, %9 : vector<1x32xf32>
    %11 = math.rsqrt %10 : vector<1x32xf32>
    %c0_3 = arith.constant 0 : index
    %c0_4 = arith.constant 0 : index
    %12 = vector.load %arg1[%c0_3, %c0_4] : memref<32x32xf32, #tpu.memory_space<vmem>>, vector<32x32xf32>
    %13 = vector.broadcast %3 : vector<1x32xf32> to vector<32x32xf32>
    %14 = arith.subf %12, %13 : vector<32x32xf32>
    %c0_5 = arith.constant 0 : index
    %c0_6 = arith.constant 0 : index
    %15 = vector.load %arg3[%c0_5, %c0_6] : memref<2x32xf32, #tpu.memory_space<vmem>>, vector<1x32xf32>
    %16 = arith.mulf %11, %15 : vector<1x32xf32>
    %17 = vector.broadcast %16 : vector<1x32xf32> to vector<32x32xf32>
    %18 = arith.mulf %14, %17 : vector<32x32xf32>
    %c1 = arith.constant 1 : index
    %c0_7 = arith.constant 0 : index
    %19 = vector.load %arg3[%c1, %c0_7] : memref<2x32xf32, #tpu.memory_space<vmem>>, vector<1x32xf32>
    %20 = vector.broadcast %19 : vector<1x32xf32> to vector<32x32xf32>
    %21 = arith.addf %18, %20 : vector<32x32xf32>
    %cst_8 = arith.constant 0.000000e+00 : f32
    %22 = vector.broadcast %cst_8 : f32 to vector<32x32xf32>
    %23 = arith.cmpf ogt, %21, %22 : vector<32x32xf32>
    %cst_9 = arith.constant 2.000000e-01 : f32
    %24 = vector.broadcast %cst_9 : f32 to vector<32x32xf32>
    %25 = arith.mulf %24, %21 : vector<32x32xf32>
    %26 = arith.select %23, %21, %25 : vector<32x32xi1>, vector<32x32xf32>
    %c0_10 = arith.constant 0 : index
    %c0_11 = arith.constant 0 : index
    %27 = vector.load %arg4[%c0_10, %c0_11] : memref<32x32xf32, #tpu.memory_space<vmem>>, vector<32x32xf32>
    tpu.vector_store %arg4[%c0_10, %c0_11], %26 {strides = array<i32>} : memref<32x32xf32, #tpu.memory_space<vmem>>, vector<32x32xf32>,
    return
  }
  func.func @transform_0(%arg0: i32) -> (i32, i32) {
    %c0_i32 = arith.constant 0 : i32
    %c0_i32_0 = arith.constant 0 : i32
    return %arg0, %c0_i32 : i32, i32
  }
  func.func @transform_1(%arg0: i32) -> (i32, i32) {
    %c0_i32 = arith.constant 0 : i32
    %c0_i32_0 = arith.constant 0 : i32
    %c0_i32_1 = arith.constant 0 : i32
    return %c0_i32, %c0_i32_0 : i32, i32
  }
  func.func @transform_2(%arg0: i32) -> (i32, i32) {
    %c0_i32 = arith.constant 0 : i32
    %c0_i32_0 = arith.constant 0 : i32
    %c0_i32_1 = arith.constant 0 : i32
    return %c0_i32, %c0_i32_0 : i32, i32
  }
  func.func @transform_3(%arg0: i32) -> (i32, i32) {
    %c0_i32 = arith.constant 0 : i32
    %c0_i32_0 = arith.constant 0 : i32
    return %arg0, %c0_i32 : i32, i32
  }
}

module attributes {stable_mosaic.version = 11 : i64} {
  func.func @_bn_stats_kernel(%arg0: i32, %arg1: memref<8x64xf32, #tpu.memory_space<vmem>>, %arg2: memref<2x64xf32, #tpu.memory_space<vmem>>) attributes {dimension_semantics = [#tpu.dimension_semantics<arbitrary>], iteration_bounds = array<i64: 1>, scalar_prefetch = 0 : i64, scratch_operands = 0 : i64, tpu.core_type = #tpu.core_type<tc>, window_params = [{transform_indices = @transform_0, window_bounds = array<i64: 8, 64>}, {pipeline_mode = #tpu.pipeline_mode<synchronous>, transform_indices = @transform_1, window_bounds = array<i64: 2, 64>}]} {
    %c0_i32 = arith.constant 0 : i32
    %0 = arith.cmpi eq, %arg0, %c0_i32 : i32
    %1 = arith.extui %0 : i1 to i32
    %c0_i32_0 = arith.constant 0 : i32
    %2 = arith.cmpi ne, %1, %c0_i32_0 : i32
    scf.if %2 {
      %cst_7 = arith.constant 0.000000e+00 : f32
      %13 = vector.broadcast %cst_7 : f32 to vector<2x64xf32>
      %c0_8 = arith.constant 0 : index
      %c0_9 = arith.constant 0 : index
      %14 = vector.load %arg2[%c0_8, %c0_9] : memref<2x64xf32, #tpu.memory_space<vmem>>, vector<2x64xf32>
      tpu.vector_store %arg2[%c0_8, %c0_9], %13 {strides = array<i32>} : memref<2x64xf32, #tpu.memory_space<vmem>>, vector<2x64xf32>,
    } else {
    }
    %c0 = arith.constant 0 : index
    %c0_1 = arith.constant 0 : index
    %3 = vector.load %arg1[%c0, %c0_1] : memref<8x64xf32, #tpu.memory_space<vmem>>, vector<8x64xf32>
    %cst = arith.constant dense<0.000000e+00> : vector<64xf32>
    %4 = vector.multi_reduction <add>, %3, %cst [0] : vector<8x64xf32> to vector<64xf32>
    %5 = vector.shape_cast %4 : vector<64xf32> to vector<1x64xf32>
    %6 = arith.mulf %3, %3 : vector<8x64xf32>
    %cst_2 = arith.constant dense<0.000000e+00> : vector<64xf32>
    %7 = vector.multi_reduction <add>, %6, %cst_2 [0] : vector<8x64xf32> to vector<64xf32>
    %8 = vector.shape_cast %7 : vector<64xf32> to vector<1x64xf32>
    %c0_3 = arith.constant 0 : index
    %c0_4 = arith.constant 0 : index
    %9 = vector.load %arg2[%c0_3, %c0_4] : memref<2x64xf32, #tpu.memory_space<vmem>>, vector<2x64xf32>
    %10 = tpu.concatenate %5, %8 in 0 : vector<1x64xf32>, vector<1x64xf32> -> vector<2x64xf32>
    %11 = arith.addf %9, %10 : vector<2x64xf32>
    %c0_5 = arith.constant 0 : index
    %c0_6 = arith.constant 0 : index
    %12 = vector.load %arg2[%c0_5, %c0_6] : memref<2x64xf32, #tpu.memory_space<vmem>>, vector<2x64xf32>
    tpu.vector_store %arg2[%c0_5, %c0_6], %11 {strides = array<i32>} : memref<2x64xf32, #tpu.memory_space<vmem>>, vector<2x64xf32>,
    return
  }
  func.func @transform_0(%arg0: i32) -> (i32, i32) {
    %c0_i32 = arith.constant 0 : i32
    %c0_i32_0 = arith.constant 0 : i32
    return %arg0, %c0_i32 : i32, i32
  }
  func.func @transform_1(%arg0: i32) -> (i32, i32) {
    %c0_i32 = arith.constant 0 : i32
    %c0_i32_0 = arith.constant 0 : i32
    %c0_i32_1 = arith.constant 0 : i32
    return %c0_i32, %c0_i32_0 : i32, i32
  }
}

module attributes {stable_mosaic.version = 11 : i64} {
  func.func @_mm_kernel(%arg0: i32, %arg1: i32, %arg2: memref<8x512xbf16, #tpu.memory_space<vmem>>, %arg3: memref<512x64xbf16, #tpu.memory_space<vmem>>, %arg4: memref<1x64xf32, #tpu.memory_space<vmem>>, %arg5: memref<8x64xf32, #tpu.memory_space<vmem>>, %arg6: memref<8x64xf32, #tpu.memory_space<vmem>>) attributes {dimension_semantics = [#tpu.dimension_semantics<parallel>, #tpu.dimension_semantics<arbitrary>], iteration_bounds = array<i64: 1, 1>, scalar_prefetch = 0 : i64, scratch_operands = 1 : i64, tpu.core_type = #tpu.core_type<tc>, window_params = [{transform_indices = @transform_0, window_bounds = array<i64: 8, 512>}, {transform_indices = @transform_1, window_bounds = array<i64: 512, 64>}, {pipeline_mode = #tpu.pipeline_mode<synchronous>, transform_indices = @transform_2, window_bounds = array<i64: 1, 64>}, {transform_indices = @transform_3, window_bounds = array<i64: 8, 64>}]} {
    %c0_i32 = arith.constant 0 : i32
    %0 = arith.cmpi eq, %arg1, %c0_i32 : i32
    %1 = arith.extui %0 : i1 to i32
    %c0_i32_0 = arith.constant 0 : i32
    %2 = arith.cmpi ne, %1, %c0_i32_0 : i32
    scf.if %2 {
      %cst_10 = arith.constant 0.000000e+00 : f32
      %12 = vector.broadcast %cst_10 : f32 to vector<8x64xf32>
      %c0_11 = arith.constant 0 : index
      %c0_12 = arith.constant 0 : index
      %13 = vector.load %arg6[%c0_11, %c0_12] : memref<8x64xf32, #tpu.memory_space<vmem>>, vector<8x64xf32>
      tpu.vector_store %arg6[%c0_11, %c0_12], %12 {strides = array<i32>} : memref<8x64xf32, #tpu.memory_space<vmem>>, vector<8x64xf32>,
    } else {
    }
    %c0 = arith.constant 0 : index
    %c0_1 = arith.constant 0 : index
    %3 = vector.load %arg6[%c0, %c0_1] : memref<8x64xf32, #tpu.memory_space<vmem>>, vector<8x64xf32>
    %c0_2 = arith.constant 0 : index
    %c0_3 = arith.constant 0 : index
    %4 = vector.load %arg2[%c0_2, %c0_3] : memref<8x512xbf16, #tpu.memory_space<vmem>>, vector<8x512xbf16>
    %c0_4 = arith.constant 0 : index
    %c0_5 = arith.constant 0 : index
    %5 = vector.load %arg3[%c0_4, %c0_5] : memref<512x64xbf16, #tpu.memory_space<vmem>>, vector<512x64xbf16>
    %cst = arith.constant dense<0.000000e+00> : vector<8x64xf32>
    %6 = tpu.matmul %4, %5, %cst {dimension_numbers = #tpu.dot_dimension_numbers<[1], [0], [0], [1], [0, 0, 1, 1], [], []>} : vector<8x512xbf16>, vector<512x64xbf16>, vector<8x64xf32> -> vector<8x64xf32>
    %7 = arith.addf %3, %6 : vector<8x64xf32>
    %c0_6 = arith.constant 0 : index
    %c0_7 = arith.constant 0 : index
    %8 = vector.load %arg6[%c0_6, %c0_7] : memref<8x64xf32, #tpu.memory_space<vmem>>, vector<8x64xf32>
    tpu.vector_store %arg6[%c0_6, %c0_7], %7 {strides = array<i32>} : memref<8x64xf32, #tpu.memory_space<vmem>>, vector<8x64xf32>,
    %c0_i32_8 = arith.constant 0 : i32
    %9 = arith.cmpi eq, %arg1, %c0_i32_8 : i32
    %10 = arith.extui %9 : i1 to i32
    %c0_i32_9 = arith.constant 0 : i32
    %11 = arith.cmpi ne, %10, %c0_i32_9 : i32
    scf.if %11 {
      %c0_10 = arith.constant 0 : index
      %c0_11 = arith.constant 0 : index
      %12 = vector.load %arg6[%c0_10, %c0_11] : memref<8x64xf32, #tpu.memory_space<vmem>>, vector<8x64xf32>
      %c0_12 = arith.constant 0 : index
      %c0_13 = arith.constant 0 : index
      %13 = vector.load %arg4[%c0_12, %c0_13] : memref<1x64xf32, #tpu.memory_space<vmem>>, vector<1x64xf32>
      %14 = vector.broadcast %13 : vector<1x64xf32> to vector<8x64xf32>
      %15 = arith.addf %12, %14 : vector<8x64xf32>
      %c0_14 = arith.constant 0 : index
      %c0_15 = arith.constant 0 : index
      %16 = vector.load %arg5[%c0_14, %c0_15] : memref<8x64xf32, #tpu.memory_space<vmem>>, vector<8x64xf32>
      tpu.vector_store %arg5[%c0_14, %c0_15], %15 {strides = array<i32>} : memref<8x64xf32, #tpu.memory_space<vmem>>, vector<8x64xf32>,
    } else {
    }
    return
  }
  func.func @transform_0(%arg0: i32, %arg1: i32) -> (i32, i32) {
    %c0_i32 = arith.constant 0 : i32
    return %arg0, %arg1 : i32, i32
  }
  func.func @transform_1(%arg0: i32, %arg1: i32) -> (i32, i32) {
    %c0_i32 = arith.constant 0 : i32
    %c0_i32_0 = arith.constant 0 : i32
    return %arg1, %c0_i32 : i32, i32
  }
  func.func @transform_2(%arg0: i32, %arg1: i32) -> (i32, i32) {
    %c0_i32 = arith.constant 0 : i32
    %c0_i32_0 = arith.constant 0 : i32
    %c0_i32_1 = arith.constant 0 : i32
    return %c0_i32, %c0_i32_0 : i32, i32
  }
  func.func @transform_3(%arg0: i32, %arg1: i32) -> (i32, i32) {
    %c0_i32 = arith.constant 0 : i32
    %c0_i32_0 = arith.constant 0 : i32
    return %arg0, %c0_i32 : i32, i32
  }
}

module attributes {stable_mosaic.version = 11 : i64} {
  func.func @_bn_apply_kernel(%arg0: i32, %arg1: memref<8x64xf32, #tpu.memory_space<vmem>>, %arg2: memref<2x64xf32, #tpu.memory_space<vmem>>, %arg3: memref<2x64xf32, #tpu.memory_space<vmem>>, %arg4: memref<8x64xf32, #tpu.memory_space<vmem>>) attributes {dimension_semantics = [#tpu.dimension_semantics<parallel>], iteration_bounds = array<i64: 1>, scalar_prefetch = 0 : i64, scratch_operands = 0 : i64, tpu.core_type = #tpu.core_type<tc>, window_params = [{transform_indices = @transform_0, window_bounds = array<i64: 8, 64>}, {pipeline_mode = #tpu.pipeline_mode<synchronous>, transform_indices = @transform_1, window_bounds = array<i64: 2, 64>}, {pipeline_mode = #tpu.pipeline_mode<synchronous>, transform_indices = @transform_2, window_bounds = array<i64: 2, 64>}, {transform_indices = @transform_3, window_bounds = array<i64: 8, 64>}]} {
    %c0 = arith.constant 0 : index
    %c0_0 = arith.constant 0 : index
    %0 = vector.load %arg2[%c0, %c0_0] : memref<2x64xf32, #tpu.memory_space<vmem>>, vector<2x64xf32>
    %1 = vector.extract_strided_slice %0 {offsets = [0, 0], sizes = [1, 64], strides = [1, 1]} : vector<2x64xf32> to vector<1x64xf32>
    %cst = arith.constant 1.250000e-01 : f32
    %2 = vector.broadcast %cst : f32 to vector<1x64xf32>
    %3 = arith.mulf %1, %2 : vector<1x64xf32>
    %4 = vector.extract_strided_slice %0 {offsets = [1, 0], sizes = [1, 64], strides = [1, 1]} : vector<2x64xf32> to vector<1x64xf32>
    %cst_1 = arith.constant 1.250000e-01 : f32
    %5 = vector.broadcast %cst_1 : f32 to vector<1x64xf32>
    %6 = arith.mulf %4, %5 : vector<1x64xf32>
    %7 = arith.mulf %3, %3 : vector<1x64xf32>
    %8 = arith.subf %6, %7 : vector<1x64xf32>
    %cst_2 = arith.constant 9.99999974E-6 : f32
    %9 = vector.broadcast %cst_2 : f32 to vector<1x64xf32>
    %10 = arith.addf %8, %9 : vector<1x64xf32>
    %11 = math.rsqrt %10 : vector<1x64xf32>
    %c0_3 = arith.constant 0 : index
    %c0_4 = arith.constant 0 : index
    %12 = vector.load %arg1[%c0_3, %c0_4] : memref<8x64xf32, #tpu.memory_space<vmem>>, vector<8x64xf32>
    %13 = vector.broadcast %3 : vector<1x64xf32> to vector<8x64xf32>
    %14 = arith.subf %12, %13 : vector<8x64xf32>
    %c0_5 = arith.constant 0 : index
    %c0_6 = arith.constant 0 : index
    %15 = vector.load %arg3[%c0_5, %c0_6] : memref<2x64xf32, #tpu.memory_space<vmem>>, vector<1x64xf32>
    %16 = arith.mulf %11, %15 : vector<1x64xf32>
    %17 = vector.broadcast %16 : vector<1x64xf32> to vector<8x64xf32>
    %18 = arith.mulf %14, %17 : vector<8x64xf32>
    %c1 = arith.constant 1 : index
    %c0_7 = arith.constant 0 : index
    %19 = vector.load %arg3[%c1, %c0_7] : memref<2x64xf32, #tpu.memory_space<vmem>>, vector<1x64xf32>
    %20 = vector.broadcast %19 : vector<1x64xf32> to vector<8x64xf32>
    %21 = arith.addf %18, %20 : vector<8x64xf32>
    %cst_8 = arith.constant 0.000000e+00 : f32
    %22 = vector.broadcast %cst_8 : f32 to vector<8x64xf32>
    %23 = arith.cmpf ogt, %21, %22 : vector<8x64xf32>
    %cst_9 = arith.constant 2.000000e-01 : f32
    %24 = vector.broadcast %cst_9 : f32 to vector<8x64xf32>
    %25 = arith.mulf %24, %21 : vector<8x64xf32>
    %26 = arith.select %23, %21, %25 : vector<8x64xi1>, vector<8x64xf32>
    %c0_10 = arith.constant 0 : index
    %c0_11 = arith.constant 0 : index
    %27 = vector.load %arg4[%c0_10, %c0_11] : memref<8x64xf32, #tpu.memory_space<vmem>>, vector<8x64xf32>
    tpu.vector_store %arg4[%c0_10, %c0_11], %26 {strides = array<i32>} : memref<8x64xf32, #tpu.memory_space<vmem>>, vector<8x64xf32>,
    return
  }
  func.func @transform_0(%arg0: i32) -> (i32, i32) {
    %c0_i32 = arith.constant 0 : i32
    %c0_i32_0 = arith.constant 0 : i32
    return %arg0, %c0_i32 : i32, i32
  }
  func.func @transform_1(%arg0: i32) -> (i32, i32) {
    %c0_i32 = arith.constant 0 : i32
    %c0_i32_0 = arith.constant 0 : i32
    %c0_i32_1 = arith.constant 0 : i32
    return %c0_i32, %c0_i32_0 : i32, i32
  }
  func.func @transform_2(%arg0: i32) -> (i32, i32) {
    %c0_i32 = arith.constant 0 : i32
    %c0_i32_0 = arith.constant 0 : i32
    %c0_i32_1 = arith.constant 0 : i32
    return %c0_i32, %c0_i32_0 : i32, i32
  }
  func.func @transform_3(%arg0: i32) -> (i32, i32) {
    %c0_i32 = arith.constant 0 : i32
    %c0_i32_0 = arith.constant 0 : i32
    return %arg0, %c0_i32 : i32, i32
  }
}

module attributes {stable_mosaic.version = 11 : i64} {
  func.func @_mm_kernel(%arg0: i32, %arg1: i32, %arg2: memref<2x512xbf16, #tpu.memory_space<vmem>>, %arg3: memref<512x64xbf16, #tpu.memory_space<vmem>>, %arg4: memref<1x64xf32, #tpu.memory_space<vmem>>, %arg5: memref<2x64xf32, #tpu.memory_space<vmem>>, %arg6: memref<2x64xf32, #tpu.memory_space<vmem>>) attributes {dimension_semantics = [#tpu.dimension_semantics<parallel>, #tpu.dimension_semantics<arbitrary>], iteration_bounds = array<i64: 1, 2>, scalar_prefetch = 0 : i64, scratch_operands = 1 : i64, tpu.core_type = #tpu.core_type<tc>, window_params = [{transform_indices = @transform_0, window_bounds = array<i64: 2, 512>}, {transform_indices = @transform_1, window_bounds = array<i64: 512, 64>}, {pipeline_mode = #tpu.pipeline_mode<synchronous>, transform_indices = @transform_2, window_bounds = array<i64: 1, 64>}, {transform_indices = @transform_3, window_bounds = array<i64: 2, 64>}]} {
    %c0_i32 = arith.constant 0 : i32
    %0 = arith.cmpi eq, %arg1, %c0_i32 : i32
    %1 = arith.extui %0 : i1 to i32
    %c0_i32_0 = arith.constant 0 : i32
    %2 = arith.cmpi ne, %1, %c0_i32_0 : i32
    scf.if %2 {
      %cst_9 = arith.constant 0.000000e+00 : f32
      %12 = vector.broadcast %cst_9 : f32 to vector<2x64xf32>
      %c0_10 = arith.constant 0 : index
      %c0_11 = arith.constant 0 : index
      %13 = vector.load %arg6[%c0_10, %c0_11] : memref<2x64xf32, #tpu.memory_space<vmem>>, vector<2x64xf32>
      tpu.vector_store %arg6[%c0_10, %c0_11], %12 {strides = array<i32>} : memref<2x64xf32, #tpu.memory_space<vmem>>, vector<2x64xf32>,
    } else {
    }
    %c0 = arith.constant 0 : index
    %c0_1 = arith.constant 0 : index
    %3 = vector.load %arg6[%c0, %c0_1] : memref<2x64xf32, #tpu.memory_space<vmem>>, vector<2x64xf32>
    %c0_2 = arith.constant 0 : index
    %c0_3 = arith.constant 0 : index
    %4 = vector.load %arg2[%c0_2, %c0_3] : memref<2x512xbf16, #tpu.memory_space<vmem>>, vector<2x512xbf16>
    %c0_4 = arith.constant 0 : index
    %c0_5 = arith.constant 0 : index
    %5 = vector.load %arg3[%c0_4, %c0_5] : memref<512x64xbf16, #tpu.memory_space<vmem>>, vector<512x64xbf16>
    %cst = arith.constant dense<0.000000e+00> : vector<2x64xf32>
    %6 = tpu.matmul %4, %5, %cst {dimension_numbers = #tpu.dot_dimension_numbers<[1], [0], [0], [1], [0, 0, 1, 1], [], []>} : vector<2x512xbf16>, vector<512x64xbf16>, vector<2x64xf32> -> vector<2x64xf32>
    %7 = arith.addf %3, %6 : vector<2x64xf32>
    %c0_6 = arith.constant 0 : index
    %c0_7 = arith.constant 0 : index
    %8 = vector.load %arg6[%c0_6, %c0_7] : memref<2x64xf32, #tpu.memory_space<vmem>>, vector<2x64xf32>
    tpu.vector_store %arg6[%c0_6, %c0_7], %7 {strides = array<i32>} : memref<2x64xf32, #tpu.memory_space<vmem>>, vector<2x64xf32>,
    %c1_i32 = arith.constant 1 : i32
    %9 = arith.cmpi eq, %arg1, %c1_i32 : i32
    %10 = arith.extui %9 : i1 to i32
    %c0_i32_8 = arith.constant 0 : i32
    %11 = arith.cmpi ne, %10, %c0_i32_8 : i32
    scf.if %11 {
      %c0_9 = arith.constant 0 : index
      %c0_10 = arith.constant 0 : index
      %12 = vector.load %arg6[%c0_9, %c0_10] : memref<2x64xf32, #tpu.memory_space<vmem>>, vector<2x64xf32>
      %c0_11 = arith.constant 0 : index
      %c0_12 = arith.constant 0 : index
      %13 = vector.load %arg4[%c0_11, %c0_12] : memref<1x64xf32, #tpu.memory_space<vmem>>, vector<1x64xf32>
      %14 = vector.broadcast %13 : vector<1x64xf32> to vector<2x64xf32>
      %15 = arith.addf %12, %14 : vector<2x64xf32>
      %cst_13 = arith.constant 0.000000e+00 : f32
      %16 = vector.broadcast %cst_13 : f32 to vector<2x64xf32>
      %17 = arith.maximumf %15, %16 : vector<2x64xf32>
      %c0_14 = arith.constant 0 : index
      %c0_15 = arith.constant 0 : index
      %18 = vector.load %arg5[%c0_14, %c0_15] : memref<2x64xf32, #tpu.memory_space<vmem>>, vector<2x64xf32>
      tpu.vector_store %arg5[%c0_14, %c0_15], %17 {strides = array<i32>} : memref<2x64xf32, #tpu.memory_space<vmem>>, vector<2x64xf32>,
    } else {
    }
    return
  }
  func.func @transform_0(%arg0: i32, %arg1: i32) -> (i32, i32) {
    %c0_i32 = arith.constant 0 : i32
    return %arg0, %arg1 : i32, i32
  }
  func.func @transform_1(%arg0: i32, %arg1: i32) -> (i32, i32) {
    %c0_i32 = arith.constant 0 : i32
    %c0_i32_0 = arith.constant 0 : i32
    return %arg1, %c0_i32 : i32, i32
  }
  func.func @transform_2(%arg0: i32, %arg1: i32) -> (i32, i32) {
    %c0_i32 = arith.constant 0 : i32
    %c0_i32_0 = arith.constant 0 : i32
    %c0_i32_1 = arith.constant 0 : i32
    return %c0_i32, %c0_i32_0 : i32, i32
  }
  func.func @transform_3(%arg0: i32, %arg1: i32) -> (i32, i32) {
    %c0_i32 = arith.constant 0 : i32
    %c0_i32_0 = arith.constant 0 : i32
    return %arg0, %c0_i32 : i32, i32
  }
}

module attributes {stable_mosaic.version = 11 : i64} {
  func.func @_mm_kernel(%arg0: i32, %arg1: i32, %arg2: memref<2x576xbf16, #tpu.memory_space<vmem>>, %arg3: memref<576x256xbf16, #tpu.memory_space<vmem>>, %arg4: memref<1x256xf32, #tpu.memory_space<vmem>>, %arg5: memref<2x256xf32, #tpu.memory_space<vmem>>, %arg6: memref<2x256xf32, #tpu.memory_space<vmem>>) attributes {dimension_semantics = [#tpu.dimension_semantics<parallel>, #tpu.dimension_semantics<arbitrary>], iteration_bounds = array<i64: 1, 1>, scalar_prefetch = 0 : i64, scratch_operands = 1 : i64, tpu.core_type = #tpu.core_type<tc>, window_params = [{transform_indices = @transform_0, window_bounds = array<i64: 2, 576>}, {transform_indices = @transform_1, window_bounds = array<i64: 576, 256>}, {pipeline_mode = #tpu.pipeline_mode<synchronous>, transform_indices = @transform_2, window_bounds = array<i64: 1, 256>}, {transform_indices = @transform_3, window_bounds = array<i64: 2, 256>}]} {
    %c0_i32 = arith.constant 0 : i32
    %0 = arith.cmpi eq, %arg1, %c0_i32 : i32
    %1 = arith.extui %0 : i1 to i32
    %c0_i32_0 = arith.constant 0 : i32
    %2 = arith.cmpi ne, %1, %c0_i32_0 : i32
    scf.if %2 {
      %cst_10 = arith.constant 0.000000e+00 : f32
      %12 = vector.broadcast %cst_10 : f32 to vector<2x256xf32>
      %c0_11 = arith.constant 0 : index
      %c0_12 = arith.constant 0 : index
      %13 = vector.load %arg6[%c0_11, %c0_12] : memref<2x256xf32, #tpu.memory_space<vmem>>, vector<2x256xf32>
      tpu.vector_store %arg6[%c0_11, %c0_12], %12 {strides = array<i32>} : memref<2x256xf32, #tpu.memory_space<vmem>>, vector<2x256xf32>,
    } else {
    }
    %c0 = arith.constant 0 : index
    %c0_1 = arith.constant 0 : index
    %3 = vector.load %arg6[%c0, %c0_1] : memref<2x256xf32, #tpu.memory_space<vmem>>, vector<2x256xf32>
    %c0_2 = arith.constant 0 : index
    %c0_3 = arith.constant 0 : index
    %4 = vector.load %arg2[%c0_2, %c0_3] : memref<2x576xbf16, #tpu.memory_space<vmem>>, vector<2x576xbf16>
    %c0_4 = arith.constant 0 : index
    %c0_5 = arith.constant 0 : index
    %5 = vector.load %arg3[%c0_4, %c0_5] : memref<576x256xbf16, #tpu.memory_space<vmem>>, vector<576x256xbf16>
    %cst = arith.constant dense<0.000000e+00> : vector<2x256xf32>
    %6 = tpu.matmul %4, %5, %cst {dimension_numbers = #tpu.dot_dimension_numbers<[1], [0], [0], [1], [0, 0, 1, 1], [], []>} : vector<2x576xbf16>, vector<576x256xbf16>, vector<2x256xf32> -> vector<2x256xf32>
    %7 = arith.addf %3, %6 : vector<2x256xf32>
    %c0_6 = arith.constant 0 : index
    %c0_7 = arith.constant 0 : index
    %8 = vector.load %arg6[%c0_6, %c0_7] : memref<2x256xf32, #tpu.memory_space<vmem>>, vector<2x256xf32>
    tpu.vector_store %arg6[%c0_6, %c0_7], %7 {strides = array<i32>} : memref<2x256xf32, #tpu.memory_space<vmem>>, vector<2x256xf32>,
    %c0_i32_8 = arith.constant 0 : i32
    %9 = arith.cmpi eq, %arg1, %c0_i32_8 : i32
    %10 = arith.extui %9 : i1 to i32
    %c0_i32_9 = arith.constant 0 : i32
    %11 = arith.cmpi ne, %10, %c0_i32_9 : i32
    scf.if %11 {
      %c0_10 = arith.constant 0 : index
      %c0_11 = arith.constant 0 : index
      %12 = vector.load %arg6[%c0_10, %c0_11] : memref<2x256xf32, #tpu.memory_space<vmem>>, vector<2x256xf32>
      %c0_12 = arith.constant 0 : index
      %c0_13 = arith.constant 0 : index
      %13 = vector.load %arg4[%c0_12, %c0_13] : memref<1x256xf32, #tpu.memory_space<vmem>>, vector<1x256xf32>
      %14 = vector.broadcast %13 : vector<1x256xf32> to vector<2x256xf32>
      %15 = arith.addf %12, %14 : vector<2x256xf32>
      %c0_14 = arith.constant 0 : index
      %c0_15 = arith.constant 0 : index
      %16 = vector.load %arg5[%c0_14, %c0_15] : memref<2x256xf32, #tpu.memory_space<vmem>>, vector<2x256xf32>
      tpu.vector_store %arg5[%c0_14, %c0_15], %15 {strides = array<i32>} : memref<2x256xf32, #tpu.memory_space<vmem>>, vector<2x256xf32>,
    } else {
    }
    return
  }
  func.func @transform_0(%arg0: i32, %arg1: i32) -> (i32, i32) {
    %c0_i32 = arith.constant 0 : i32
    return %arg0, %arg1 : i32, i32
  }
  func.func @transform_1(%arg0: i32, %arg1: i32) -> (i32, i32) {
    %c0_i32 = arith.constant 0 : i32
    %c0_i32_0 = arith.constant 0 : i32
    return %arg1, %c0_i32 : i32, i32
  }
  func.func @transform_2(%arg0: i32, %arg1: i32) -> (i32, i32) {
    %c0_i32 = arith.constant 0 : i32
    %c0_i32_0 = arith.constant 0 : i32
    %c0_i32_1 = arith.constant 0 : i32
    return %c0_i32, %c0_i32_0 : i32, i32
  }
  func.func @transform_3(%arg0: i32, %arg1: i32) -> (i32, i32) {
    %c0_i32 = arith.constant 0 : i32
    %c0_i32_0 = arith.constant 0 : i32
    return %arg0, %c0_i32 : i32, i32
  }
}

module attributes {stable_mosaic.version = 11 : i64} {
  func.func @_bn_apply_kernel(%arg0: i32, %arg1: memref<8x64xf32, #tpu.memory_space<vmem>>, %arg2: memref<2x64xf32, #tpu.memory_space<vmem>>, %arg3: memref<2x64xf32, #tpu.memory_space<vmem>>, %arg4: memref<8x64xf32, #tpu.memory_space<vmem>>) attributes {dimension_semantics = [#tpu.dimension_semantics<parallel>], iteration_bounds = array<i64: 1>, scalar_prefetch = 0 : i64, scratch_operands = 0 : i64, tpu.core_type = #tpu.core_type<tc>, window_params = [{transform_indices = @transform_0, window_bounds = array<i64: 8, 64>}, {pipeline_mode = #tpu.pipeline_mode<synchronous>, transform_indices = @transform_1, window_bounds = array<i64: 2, 64>}, {pipeline_mode = #tpu.pipeline_mode<synchronous>, transform_indices = @transform_2, window_bounds = array<i64: 2, 64>}, {transform_indices = @transform_3, window_bounds = array<i64: 8, 64>}]} {
    %c0 = arith.constant 0 : index
    %c0_0 = arith.constant 0 : index
    %0 = vector.load %arg2[%c0, %c0_0] : memref<2x64xf32, #tpu.memory_space<vmem>>, vector<2x64xf32>
    %1 = vector.extract_strided_slice %0 {offsets = [0, 0], sizes = [1, 64], strides = [1, 1]} : vector<2x64xf32> to vector<1x64xf32>
    %cst = arith.constant 1.250000e-01 : f32
    %2 = vector.broadcast %cst : f32 to vector<1x64xf32>
    %3 = arith.mulf %1, %2 : vector<1x64xf32>
    %4 = vector.extract_strided_slice %0 {offsets = [1, 0], sizes = [1, 64], strides = [1, 1]} : vector<2x64xf32> to vector<1x64xf32>
    %cst_1 = arith.constant 1.250000e-01 : f32
    %5 = vector.broadcast %cst_1 : f32 to vector<1x64xf32>
    %6 = arith.mulf %4, %5 : vector<1x64xf32>
    %7 = arith.mulf %3, %3 : vector<1x64xf32>
    %8 = arith.subf %6, %7 : vector<1x64xf32>
    %cst_2 = arith.constant 9.99999974E-6 : f32
    %9 = vector.broadcast %cst_2 : f32 to vector<1x64xf32>
    %10 = arith.addf %8, %9 : vector<1x64xf32>
    %11 = math.rsqrt %10 : vector<1x64xf32>
    %c0_3 = arith.constant 0 : index
    %c0_4 = arith.constant 0 : index
    %12 = vector.load %arg1[%c0_3, %c0_4] : memref<8x64xf32, #tpu.memory_space<vmem>>, vector<8x64xf32>
    %13 = vector.broadcast %3 : vector<1x64xf32> to vector<8x64xf32>
    %14 = arith.subf %12, %13 : vector<8x64xf32>
    %c0_5 = arith.constant 0 : index
    %c0_6 = arith.constant 0 : index
    %15 = vector.load %arg3[%c0_5, %c0_6] : memref<2x64xf32, #tpu.memory_space<vmem>>, vector<1x64xf32>
    %16 = arith.mulf %11, %15 : vector<1x64xf32>
    %17 = vector.broadcast %16 : vector<1x64xf32> to vector<8x64xf32>
    %18 = arith.mulf %14, %17 : vector<8x64xf32>
    %c1 = arith.constant 1 : index
    %c0_7 = arith.constant 0 : index
    %19 = vector.load %arg3[%c1, %c0_7] : memref<2x64xf32, #tpu.memory_space<vmem>>, vector<1x64xf32>
    %20 = vector.broadcast %19 : vector<1x64xf32> to vector<8x64xf32>
    %21 = arith.addf %18, %20 : vector<8x64xf32>
    %cst_8 = arith.constant 0.000000e+00 : f32
    %22 = vector.broadcast %cst_8 : f32 to vector<8x64xf32>
    %23 = arith.maximumf %21, %22 : vector<8x64xf32>
    %c0_9 = arith.constant 0 : index
    %c0_10 = arith.constant 0 : index
    %24 = vector.load %arg4[%c0_9, %c0_10] : memref<8x64xf32, #tpu.memory_space<vmem>>, vector<8x64xf32>
    tpu.vector_store %arg4[%c0_9, %c0_10], %23 {strides = array<i32>} : memref<8x64xf32, #tpu.memory_space<vmem>>, vector<8x64xf32>,
    return
  }
  func.func @transform_0(%arg0: i32) -> (i32, i32) {
    %c0_i32 = arith.constant 0 : i32
    %c0_i32_0 = arith.constant 0 : i32
    return %arg0, %c0_i32 : i32, i32
  }
  func.func @transform_1(%arg0: i32) -> (i32, i32) {
    %c0_i32 = arith.constant 0 : i32
    %c0_i32_0 = arith.constant 0 : i32
    %c0_i32_1 = arith.constant 0 : i32
    return %c0_i32, %c0_i32_0 : i32, i32
  }
  func.func @transform_2(%arg0: i32) -> (i32, i32) {
    %c0_i32 = arith.constant 0 : i32
    %c0_i32_0 = arith.constant 0 : i32
    %c0_i32_1 = arith.constant 0 : i32
    return %c0_i32, %c0_i32_0 : i32, i32
  }
  func.func @transform_3(%arg0: i32) -> (i32, i32) {
    %c0_i32 = arith.constant 0 : i32
    %c0_i32_0 = arith.constant 0 : i32
    return %arg0, %c0_i32 : i32, i32
  }
}

module attributes {stable_mosaic.version = 11 : i64} {
  func.func @_mm_kernel(%arg0: i32, %arg1: i32, %arg2: memref<8x1152xbf16, #tpu.memory_space<vmem>>, %arg3: memref<1152x128xbf16, #tpu.memory_space<vmem>>, %arg4: memref<1x128xf32, #tpu.memory_space<vmem>>, %arg5: memref<8x128xf32, #tpu.memory_space<vmem>>, %arg6: memref<8x128xf32, #tpu.memory_space<vmem>>) attributes {dimension_semantics = [#tpu.dimension_semantics<parallel>, #tpu.dimension_semantics<arbitrary>], iteration_bounds = array<i64: 1, 1>, scalar_prefetch = 0 : i64, scratch_operands = 1 : i64, tpu.core_type = #tpu.core_type<tc>, window_params = [{transform_indices = @transform_0, window_bounds = array<i64: 8, 1152>}, {transform_indices = @transform_1, window_bounds = array<i64: 1152, 128>}, {pipeline_mode = #tpu.pipeline_mode<synchronous>, transform_indices = @transform_2, window_bounds = array<i64: 1, 128>}, {transform_indices = @transform_3, window_bounds = array<i64: 8, 128>}]} {
    %c0_i32 = arith.constant 0 : i32
    %0 = arith.cmpi eq, %arg1, %c0_i32 : i32
    %1 = arith.extui %0 : i1 to i32
    %c0_i32_0 = arith.constant 0 : i32
    %2 = arith.cmpi ne, %1, %c0_i32_0 : i32
    scf.if %2 {
      %cst_10 = arith.constant 0.000000e+00 : f32
      %12 = vector.broadcast %cst_10 : f32 to vector<8x128xf32>
      %c0_11 = arith.constant 0 : index
      %c0_12 = arith.constant 0 : index
      %13 = vector.load %arg6[%c0_11, %c0_12] : memref<8x128xf32, #tpu.memory_space<vmem>>, vector<8x128xf32>
      tpu.vector_store %arg6[%c0_11, %c0_12], %12 {strides = array<i32>} : memref<8x128xf32, #tpu.memory_space<vmem>>, vector<8x128xf32>,
    } else {
    }
    %c0 = arith.constant 0 : index
    %c0_1 = arith.constant 0 : index
    %3 = vector.load %arg6[%c0, %c0_1] : memref<8x128xf32, #tpu.memory_space<vmem>>, vector<8x128xf32>
    %c0_2 = arith.constant 0 : index
    %c0_3 = arith.constant 0 : index
    %4 = vector.load %arg2[%c0_2, %c0_3] : memref<8x1152xbf16, #tpu.memory_space<vmem>>, vector<8x1152xbf16>
    %c0_4 = arith.constant 0 : index
    %c0_5 = arith.constant 0 : index
    %5 = vector.load %arg3[%c0_4, %c0_5] : memref<1152x128xbf16, #tpu.memory_space<vmem>>, vector<1152x128xbf16>
    %cst = arith.constant dense<0.000000e+00> : vector<8x128xf32>
    %6 = tpu.matmul %4, %5, %cst {dimension_numbers = #tpu.dot_dimension_numbers<[1], [0], [0], [1], [0, 0, 1, 1], [], []>} : vector<8x1152xbf16>, vector<1152x128xbf16>, vector<8x128xf32> -> vector<8x128xf32>
    %7 = arith.addf %3, %6 : vector<8x128xf32>
    %c0_6 = arith.constant 0 : index
    %c0_7 = arith.constant 0 : index
    %8 = vector.load %arg6[%c0_6, %c0_7] : memref<8x128xf32, #tpu.memory_space<vmem>>, vector<8x128xf32>
    tpu.vector_store %arg6[%c0_6, %c0_7], %7 {strides = array<i32>} : memref<8x128xf32, #tpu.memory_space<vmem>>, vector<8x128xf32>,
    %c0_i32_8 = arith.constant 0 : i32
    %9 = arith.cmpi eq, %arg1, %c0_i32_8 : i32
    %10 = arith.extui %9 : i1 to i32
    %c0_i32_9 = arith.constant 0 : i32
    %11 = arith.cmpi ne, %10, %c0_i32_9 : i32
    scf.if %11 {
      %c0_10 = arith.constant 0 : index
      %c0_11 = arith.constant 0 : index
      %12 = vector.load %arg6[%c0_10, %c0_11] : memref<8x128xf32, #tpu.memory_space<vmem>>, vector<8x128xf32>
      %c0_12 = arith.constant 0 : index
      %c0_13 = arith.constant 0 : index
      %13 = vector.load %arg4[%c0_12, %c0_13] : memref<1x128xf32, #tpu.memory_space<vmem>>, vector<1x128xf32>
      %14 = vector.broadcast %13 : vector<1x128xf32> to vector<8x128xf32>
      %15 = arith.addf %12, %14 : vector<8x128xf32>
      %c0_14 = arith.constant 0 : index
      %c0_15 = arith.constant 0 : index
      %16 = vector.load %arg5[%c0_14, %c0_15] : memref<8x128xf32, #tpu.memory_space<vmem>>, vector<8x128xf32>
      tpu.vector_store %arg5[%c0_14, %c0_15], %15 {strides = array<i32>} : memref<8x128xf32, #tpu.memory_space<vmem>>, vector<8x128xf32>,
    } else {
    }
    return
  }
  func.func @transform_0(%arg0: i32, %arg1: i32) -> (i32, i32) {
    %c0_i32 = arith.constant 0 : i32
    return %arg0, %arg1 : i32, i32
  }
  func.func @transform_1(%arg0: i32, %arg1: i32) -> (i32, i32) {
    %c0_i32 = arith.constant 0 : i32
    %c0_i32_0 = arith.constant 0 : i32
    return %arg1, %c0_i32 : i32, i32
  }
  func.func @transform_2(%arg0: i32, %arg1: i32) -> (i32, i32) {
    %c0_i32 = arith.constant 0 : i32
    %c0_i32_0 = arith.constant 0 : i32
    %c0_i32_1 = arith.constant 0 : i32
    return %c0_i32, %c0_i32_0 : i32, i32
  }
  func.func @transform_3(%arg0: i32, %arg1: i32) -> (i32, i32) {
    %c0_i32 = arith.constant 0 : i32
    %c0_i32_0 = arith.constant 0 : i32
    return %arg0, %c0_i32 : i32, i32
  }
}

module attributes {stable_mosaic.version = 11 : i64} {
  func.func @_bn_apply_kernel(%arg0: i32, %arg1: memref<32x32xf32, #tpu.memory_space<vmem>>, %arg2: memref<2x32xf32, #tpu.memory_space<vmem>>, %arg3: memref<2x32xf32, #tpu.memory_space<vmem>>, %arg4: memref<32x32xf32, #tpu.memory_space<vmem>>) attributes {dimension_semantics = [#tpu.dimension_semantics<parallel>], iteration_bounds = array<i64: 1>, scalar_prefetch = 0 : i64, scratch_operands = 0 : i64, tpu.core_type = #tpu.core_type<tc>, window_params = [{transform_indices = @transform_0, window_bounds = array<i64: 32, 32>}, {pipeline_mode = #tpu.pipeline_mode<synchronous>, transform_indices = @transform_1, window_bounds = array<i64: 2, 32>}, {pipeline_mode = #tpu.pipeline_mode<synchronous>, transform_indices = @transform_2, window_bounds = array<i64: 2, 32>}, {transform_indices = @transform_3, window_bounds = array<i64: 32, 32>}]} {
    %c0 = arith.constant 0 : index
    %c0_0 = arith.constant 0 : index
    %0 = vector.load %arg2[%c0, %c0_0] : memref<2x32xf32, #tpu.memory_space<vmem>>, vector<2x32xf32>
    %1 = vector.extract_strided_slice %0 {offsets = [0, 0], sizes = [1, 32], strides = [1, 1]} : vector<2x32xf32> to vector<1x32xf32>
    %cst = arith.constant 3.125000e-02 : f32
    %2 = vector.broadcast %cst : f32 to vector<1x32xf32>
    %3 = arith.mulf %1, %2 : vector<1x32xf32>
    %4 = vector.extract_strided_slice %0 {offsets = [1, 0], sizes = [1, 32], strides = [1, 1]} : vector<2x32xf32> to vector<1x32xf32>
    %cst_1 = arith.constant 3.125000e-02 : f32
    %5 = vector.broadcast %cst_1 : f32 to vector<1x32xf32>
    %6 = arith.mulf %4, %5 : vector<1x32xf32>
    %7 = arith.mulf %3, %3 : vector<1x32xf32>
    %8 = arith.subf %6, %7 : vector<1x32xf32>
    %cst_2 = arith.constant 9.99999974E-6 : f32
    %9 = vector.broadcast %cst_2 : f32 to vector<1x32xf32>
    %10 = arith.addf %8, %9 : vector<1x32xf32>
    %11 = math.rsqrt %10 : vector<1x32xf32>
    %c0_3 = arith.constant 0 : index
    %c0_4 = arith.constant 0 : index
    %12 = vector.load %arg1[%c0_3, %c0_4] : memref<32x32xf32, #tpu.memory_space<vmem>>, vector<32x32xf32>
    %13 = vector.broadcast %3 : vector<1x32xf32> to vector<32x32xf32>
    %14 = arith.subf %12, %13 : vector<32x32xf32>
    %c0_5 = arith.constant 0 : index
    %c0_6 = arith.constant 0 : index
    %15 = vector.load %arg3[%c0_5, %c0_6] : memref<2x32xf32, #tpu.memory_space<vmem>>, vector<1x32xf32>
    %16 = arith.mulf %11, %15 : vector<1x32xf32>
    %17 = vector.broadcast %16 : vector<1x32xf32> to vector<32x32xf32>
    %18 = arith.mulf %14, %17 : vector<32x32xf32>
    %c1 = arith.constant 1 : index
    %c0_7 = arith.constant 0 : index
    %19 = vector.load %arg3[%c1, %c0_7] : memref<2x32xf32, #tpu.memory_space<vmem>>, vector<1x32xf32>
    %20 = vector.broadcast %19 : vector<1x32xf32> to vector<32x32xf32>
    %21 = arith.addf %18, %20 : vector<32x32xf32>
    %cst_8 = arith.constant 0.000000e+00 : f32
    %22 = vector.broadcast %cst_8 : f32 to vector<32x32xf32>
    %23 = arith.maximumf %21, %22 : vector<32x32xf32>
    %c0_9 = arith.constant 0 : index
    %c0_10 = arith.constant 0 : index
    %24 = vector.load %arg4[%c0_9, %c0_10] : memref<32x32xf32, #tpu.memory_space<vmem>>, vector<32x32xf32>
    tpu.vector_store %arg4[%c0_9, %c0_10], %23 {strides = array<i32>} : memref<32x32xf32, #tpu.memory_space<vmem>>, vector<32x32xf32>,
    return
  }
  func.func @transform_0(%arg0: i32) -> (i32, i32) {
    %c0_i32 = arith.constant 0 : i32
    %c0_i32_0 = arith.constant 0 : i32
    return %arg0, %c0_i32 : i32, i32
  }
  func.func @transform_1(%arg0: i32) -> (i32, i32) {
    %c0_i32 = arith.constant 0 : i32
    %c0_i32_0 = arith.constant 0 : i32
    %c0_i32_1 = arith.constant 0 : i32
    return %c0_i32, %c0_i32_0 : i32, i32
  }
  func.func @transform_2(%arg0: i32) -> (i32, i32) {
    %c0_i32 = arith.constant 0 : i32
    %c0_i32_0 = arith.constant 0 : i32
    %c0_i32_1 = arith.constant 0 : i32
    return %c0_i32, %c0_i32_0 : i32, i32
  }
  func.func @transform_3(%arg0: i32) -> (i32, i32) {
    %c0_i32 = arith.constant 0 : i32
    %c0_i32_0 = arith.constant 0 : i32
    return %arg0, %c0_i32 : i32, i32
  }
}

module attributes {stable_mosaic.version = 11 : i64} {
  func.func @_mm_kernel(%arg0: i32, %arg1: i32, %arg2: memref<32x576xbf16, #tpu.memory_space<vmem>>, %arg3: memref<576x64xbf16, #tpu.memory_space<vmem>>, %arg4: memref<1x64xf32, #tpu.memory_space<vmem>>, %arg5: memref<32x64xf32, #tpu.memory_space<vmem>>, %arg6: memref<32x64xf32, #tpu.memory_space<vmem>>) attributes {dimension_semantics = [#tpu.dimension_semantics<parallel>, #tpu.dimension_semantics<arbitrary>], iteration_bounds = array<i64: 1, 1>, scalar_prefetch = 0 : i64, scratch_operands = 1 : i64, tpu.core_type = #tpu.core_type<tc>, window_params = [{transform_indices = @transform_0, window_bounds = array<i64: 32, 576>}, {transform_indices = @transform_1, window_bounds = array<i64: 576, 64>}, {pipeline_mode = #tpu.pipeline_mode<synchronous>, transform_indices = @transform_2, window_bounds = array<i64: 1, 64>}, {transform_indices = @transform_3, window_bounds = array<i64: 32, 64>}]} {
    %c0_i32 = arith.constant 0 : i32
    %0 = arith.cmpi eq, %arg1, %c0_i32 : i32
    %1 = arith.extui %0 : i1 to i32
    %c0_i32_0 = arith.constant 0 : i32
    %2 = arith.cmpi ne, %1, %c0_i32_0 : i32
    scf.if %2 {
      %cst_10 = arith.constant 0.000000e+00 : f32
      %12 = vector.broadcast %cst_10 : f32 to vector<32x64xf32>
      %c0_11 = arith.constant 0 : index
      %c0_12 = arith.constant 0 : index
      %13 = vector.load %arg6[%c0_11, %c0_12] : memref<32x64xf32, #tpu.memory_space<vmem>>, vector<32x64xf32>
      tpu.vector_store %arg6[%c0_11, %c0_12], %12 {strides = array<i32>} : memref<32x64xf32, #tpu.memory_space<vmem>>, vector<32x64xf32>,
    } else {
    }
    %c0 = arith.constant 0 : index
    %c0_1 = arith.constant 0 : index
    %3 = vector.load %arg6[%c0, %c0_1] : memref<32x64xf32, #tpu.memory_space<vmem>>, vector<32x64xf32>
    %c0_2 = arith.constant 0 : index
    %c0_3 = arith.constant 0 : index
    %4 = vector.load %arg2[%c0_2, %c0_3] : memref<32x576xbf16, #tpu.memory_space<vmem>>, vector<32x576xbf16>
    %c0_4 = arith.constant 0 : index
    %c0_5 = arith.constant 0 : index
    %5 = vector.load %arg3[%c0_4, %c0_5] : memref<576x64xbf16, #tpu.memory_space<vmem>>, vector<576x64xbf16>
    %cst = arith.constant dense<0.000000e+00> : vector<32x64xf32>
    %6 = tpu.matmul %4, %5, %cst {dimension_numbers = #tpu.dot_dimension_numbers<[1], [0], [0], [1], [0, 0, 1, 1], [], []>} : vector<32x576xbf16>, vector<576x64xbf16>, vector<32x64xf32> -> vector<32x64xf32>
    %7 = arith.addf %3, %6 : vector<32x64xf32>
    %c0_6 = arith.constant 0 : index
    %c0_7 = arith.constant 0 : index
    %8 = vector.load %arg6[%c0_6, %c0_7] : memref<32x64xf32, #tpu.memory_space<vmem>>, vector<32x64xf32>
    tpu.vector_store %arg6[%c0_6, %c0_7], %7 {strides = array<i32>} : memref<32x64xf32, #tpu.memory_space<vmem>>, vector<32x64xf32>,
    %c0_i32_8 = arith.constant 0 : i32
    %9 = arith.cmpi eq, %arg1, %c0_i32_8 : i32
    %10 = arith.extui %9 : i1 to i32
    %c0_i32_9 = arith.constant 0 : i32
    %11 = arith.cmpi ne, %10, %c0_i32_9 : i32
    scf.if %11 {
      %c0_10 = arith.constant 0 : index
      %c0_11 = arith.constant 0 : index
      %12 = vector.load %arg6[%c0_10, %c0_11] : memref<32x64xf32, #tpu.memory_space<vmem>>, vector<32x64xf32>
      %c0_12 = arith.constant 0 : index
      %c0_13 = arith.constant 0 : index
      %13 = vector.load %arg4[%c0_12, %c0_13] : memref<1x64xf32, #tpu.memory_space<vmem>>, vector<1x64xf32>
      %14 = vector.broadcast %13 : vector<1x64xf32> to vector<32x64xf32>
      %15 = arith.addf %12, %14 : vector<32x64xf32>
      %c0_14 = arith.constant 0 : index
      %c0_15 = arith.constant 0 : index
      %16 = vector.load %arg5[%c0_14, %c0_15] : memref<32x64xf32, #tpu.memory_space<vmem>>, vector<32x64xf32>
      tpu.vector_store %arg5[%c0_14, %c0_15], %15 {strides = array<i32>} : memref<32x64xf32, #tpu.memory_space<vmem>>, vector<32x64xf32>,
    } else {
    }
    return
  }
  func.func @transform_0(%arg0: i32, %arg1: i32) -> (i32, i32) {
    %c0_i32 = arith.constant 0 : i32
    return %arg0, %arg1 : i32, i32
  }
  func.func @transform_1(%arg0: i32, %arg1: i32) -> (i32, i32) {
    %c0_i32 = arith.constant 0 : i32
    %c0_i32_0 = arith.constant 0 : i32
    return %arg1, %c0_i32 : i32, i32
  }
  func.func @transform_2(%arg0: i32, %arg1: i32) -> (i32, i32) {
    %c0_i32 = arith.constant 0 : i32
    %c0_i32_0 = arith.constant 0 : i32
    %c0_i32_1 = arith.constant 0 : i32
    return %c0_i32, %c0_i32_0 : i32, i32
  }
  func.func @transform_3(%arg0: i32, %arg1: i32) -> (i32, i32) {
    %c0_i32 = arith.constant 0 : i32
    %c0_i32_0 = arith.constant 0 : i32
    return %arg0, %c0_i32 : i32, i32
  }
}

module attributes {stable_mosaic.version = 11 : i64} {
  func.func @_bn_apply_kernel(%arg0: i32, %arg1: memref<128x16xf32, #tpu.memory_space<vmem>>, %arg2: memref<2x16xf32, #tpu.memory_space<vmem>>, %arg3: memref<2x16xf32, #tpu.memory_space<vmem>>, %arg4: memref<128x16xf32, #tpu.memory_space<vmem>>) attributes {dimension_semantics = [#tpu.dimension_semantics<parallel>], iteration_bounds = array<i64: 1>, scalar_prefetch = 0 : i64, scratch_operands = 0 : i64, tpu.core_type = #tpu.core_type<tc>, window_params = [{transform_indices = @transform_0, window_bounds = array<i64: 128, 16>}, {pipeline_mode = #tpu.pipeline_mode<synchronous>, transform_indices = @transform_1, window_bounds = array<i64: 2, 16>}, {pipeline_mode = #tpu.pipeline_mode<synchronous>, transform_indices = @transform_2, window_bounds = array<i64: 2, 16>}, {transform_indices = @transform_3, window_bounds = array<i64: 128, 16>}]} {
    %c0 = arith.constant 0 : index
    %c0_0 = arith.constant 0 : index
    %0 = vector.load %arg2[%c0, %c0_0] : memref<2x16xf32, #tpu.memory_space<vmem>>, vector<2x16xf32>
    %1 = vector.extract_strided_slice %0 {offsets = [0, 0], sizes = [1, 16], strides = [1, 1]} : vector<2x16xf32> to vector<1x16xf32>
    %cst = arith.constant 7.812500e-03 : f32
    %2 = vector.broadcast %cst : f32 to vector<1x16xf32>
    %3 = arith.mulf %1, %2 : vector<1x16xf32>
    %4 = vector.extract_strided_slice %0 {offsets = [1, 0], sizes = [1, 16], strides = [1, 1]} : vector<2x16xf32> to vector<1x16xf32>
    %cst_1 = arith.constant 7.812500e-03 : f32
    %5 = vector.broadcast %cst_1 : f32 to vector<1x16xf32>
    %6 = arith.mulf %4, %5 : vector<1x16xf32>
    %7 = arith.mulf %3, %3 : vector<1x16xf32>
    %8 = arith.subf %6, %7 : vector<1x16xf32>
    %cst_2 = arith.constant 9.99999974E-6 : f32
    %9 = vector.broadcast %cst_2 : f32 to vector<1x16xf32>
    %10 = arith.addf %8, %9 : vector<1x16xf32>
    %11 = math.rsqrt %10 : vector<1x16xf32>
    %c0_3 = arith.constant 0 : index
    %c0_4 = arith.constant 0 : index
    %12 = vector.load %arg1[%c0_3, %c0_4] : memref<128x16xf32, #tpu.memory_space<vmem>>, vector<128x16xf32>
    %13 = vector.broadcast %3 : vector<1x16xf32> to vector<128x16xf32>
    %14 = arith.subf %12, %13 : vector<128x16xf32>
    %c0_5 = arith.constant 0 : index
    %c0_6 = arith.constant 0 : index
    %15 = vector.load %arg3[%c0_5, %c0_6] : memref<2x16xf32, #tpu.memory_space<vmem>>, vector<1x16xf32>
    %16 = arith.mulf %11, %15 : vector<1x16xf32>
    %17 = vector.broadcast %16 : vector<1x16xf32> to vector<128x16xf32>
    %18 = arith.mulf %14, %17 : vector<128x16xf32>
    %c1 = arith.constant 1 : index
    %c0_7 = arith.constant 0 : index
    %19 = vector.load %arg3[%c1, %c0_7] : memref<2x16xf32, #tpu.memory_space<vmem>>, vector<1x16xf32>
    %20 = vector.broadcast %19 : vector<1x16xf32> to vector<128x16xf32>
    %21 = arith.addf %18, %20 : vector<128x16xf32>
    %cst_8 = arith.constant 0.000000e+00 : f32
    %22 = vector.broadcast %cst_8 : f32 to vector<128x16xf32>
    %23 = arith.maximumf %21, %22 : vector<128x16xf32>
    %c0_9 = arith.constant 0 : index
    %c0_10 = arith.constant 0 : index
    %24 = vector.load %arg4[%c0_9, %c0_10] : memref<128x16xf32, #tpu.memory_space<vmem>>, vector<128x16xf32>
    tpu.vector_store %arg4[%c0_9, %c0_10], %23 {strides = array<i32>} : memref<128x16xf32, #tpu.memory_space<vmem>>, vector<128x16xf32>,
    return
  }
  func.func @transform_0(%arg0: i32) -> (i32, i32) {
    %c0_i32 = arith.constant 0 : i32
    %c0_i32_0 = arith.constant 0 : i32
    return %arg0, %c0_i32 : i32, i32
  }
  func.func @transform_1(%arg0: i32) -> (i32, i32) {
    %c0_i32 = arith.constant 0 : i32
    %c0_i32_0 = arith.constant 0 : i32
    %c0_i32_1 = arith.constant 0 : i32
    return %c0_i32, %c0_i32_0 : i32, i32
  }
  func.func @transform_2(%arg0: i32) -> (i32, i32) {
    %c0_i32 = arith.constant 0 : i32
    %c0_i32_0 = arith.constant 0 : i32
    %c0_i32_1 = arith.constant 0 : i32
    return %c0_i32, %c0_i32_0 : i32, i32
  }
  func.func @transform_3(%arg0: i32) -> (i32, i32) {
    %c0_i32 = arith.constant 0 : i32
    %c0_i32_0 = arith.constant 0 : i32
    return %arg0, %c0_i32 : i32, i32
  }
}

module attributes {stable_mosaic.version = 11 : i64} {
  func.func @_mm_kernel(%arg0: i32, %arg1: i32, %arg2: memref<128x288xbf16, #tpu.memory_space<vmem>>, %arg3: memref<288x32xbf16, #tpu.memory_space<vmem>>, %arg4: memref<1x32xf32, #tpu.memory_space<vmem>>, %arg5: memref<128x32xf32, #tpu.memory_space<vmem>>, %arg6: memref<128x32xf32, #tpu.memory_space<vmem>>) attributes {dimension_semantics = [#tpu.dimension_semantics<parallel>, #tpu.dimension_semantics<arbitrary>], iteration_bounds = array<i64: 1, 1>, scalar_prefetch = 0 : i64, scratch_operands = 1 : i64, tpu.core_type = #tpu.core_type<tc>, window_params = [{transform_indices = @transform_0, window_bounds = array<i64: 128, 288>}, {transform_indices = @transform_1, window_bounds = array<i64: 288, 32>}, {pipeline_mode = #tpu.pipeline_mode<synchronous>, transform_indices = @transform_2, window_bounds = array<i64: 1, 32>}, {transform_indices = @transform_3, window_bounds = array<i64: 128, 32>}]} {
    %c0_i32 = arith.constant 0 : i32
    %0 = arith.cmpi eq, %arg1, %c0_i32 : i32
    %1 = arith.extui %0 : i1 to i32
    %c0_i32_0 = arith.constant 0 : i32
    %2 = arith.cmpi ne, %1, %c0_i32_0 : i32
    scf.if %2 {
      %cst_10 = arith.constant 0.000000e+00 : f32
      %12 = vector.broadcast %cst_10 : f32 to vector<128x32xf32>
      %c0_11 = arith.constant 0 : index
      %c0_12 = arith.constant 0 : index
      %13 = vector.load %arg6[%c0_11, %c0_12] : memref<128x32xf32, #tpu.memory_space<vmem>>, vector<128x32xf32>
      tpu.vector_store %arg6[%c0_11, %c0_12], %12 {strides = array<i32>} : memref<128x32xf32, #tpu.memory_space<vmem>>, vector<128x32xf32>,
    } else {
    }
    %c0 = arith.constant 0 : index
    %c0_1 = arith.constant 0 : index
    %3 = vector.load %arg6[%c0, %c0_1] : memref<128x32xf32, #tpu.memory_space<vmem>>, vector<128x32xf32>
    %c0_2 = arith.constant 0 : index
    %c0_3 = arith.constant 0 : index
    %4 = vector.load %arg2[%c0_2, %c0_3] : memref<128x288xbf16, #tpu.memory_space<vmem>>, vector<128x288xbf16>
    %c0_4 = arith.constant 0 : index
    %c0_5 = arith.constant 0 : index
    %5 = vector.load %arg3[%c0_4, %c0_5] : memref<288x32xbf16, #tpu.memory_space<vmem>>, vector<288x32xbf16>
    %cst = arith.constant dense<0.000000e+00> : vector<128x32xf32>
    %6 = tpu.matmul %4, %5, %cst {dimension_numbers = #tpu.dot_dimension_numbers<[1], [0], [0], [1], [0, 0, 1, 1], [], []>} : vector<128x288xbf16>, vector<288x32xbf16>, vector<128x32xf32> -> vector<128x32xf32>
    %7 = arith.addf %3, %6 : vector<128x32xf32>
    %c0_6 = arith.constant 0 : index
    %c0_7 = arith.constant 0 : index
    %8 = vector.load %arg6[%c0_6, %c0_7] : memref<128x32xf32, #tpu.memory_space<vmem>>, vector<128x32xf32>
    tpu.vector_store %arg6[%c0_6, %c0_7], %7 {strides = array<i32>} : memref<128x32xf32, #tpu.memory_space<vmem>>, vector<128x32xf32>,
    %c0_i32_8 = arith.constant 0 : i32
    %9 = arith.cmpi eq, %arg1, %c0_i32_8 : i32
    %10 = arith.extui %9 : i1 to i32
    %c0_i32_9 = arith.constant 0 : i32
    %11 = arith.cmpi ne, %10, %c0_i32_9 : i32
    scf.if %11 {
      %c0_10 = arith.constant 0 : index
      %c0_11 = arith.constant 0 : index
      %12 = vector.load %arg6[%c0_10, %c0_11] : memref<128x32xf32, #tpu.memory_space<vmem>>, vector<128x32xf32>
      %c0_12 = arith.constant 0 : index
      %c0_13 = arith.constant 0 : index
      %13 = vector.load %arg4[%c0_12, %c0_13] : memref<1x32xf32, #tpu.memory_space<vmem>>, vector<1x32xf32>
      %14 = vector.broadcast %13 : vector<1x32xf32> to vector<128x32xf32>
      %15 = arith.addf %12, %14 : vector<128x32xf32>
      %c0_14 = arith.constant 0 : index
      %c0_15 = arith.constant 0 : index
      %16 = vector.load %arg5[%c0_14, %c0_15] : memref<128x32xf32, #tpu.memory_space<vmem>>, vector<128x32xf32>
      tpu.vector_store %arg5[%c0_14, %c0_15], %15 {strides = array<i32>} : memref<128x32xf32, #tpu.memory_space<vmem>>, vector<128x32xf32>,
    } else {
    }
    return
  }
  func.func @transform_0(%arg0: i32, %arg1: i32) -> (i32, i32) {
    %c0_i32 = arith.constant 0 : i32
    return %arg0, %arg1 : i32, i32
  }
  func.func @transform_1(%arg0: i32, %arg1: i32) -> (i32, i32) {
    %c0_i32 = arith.constant 0 : i32
    %c0_i32_0 = arith.constant 0 : i32
    return %arg1, %c0_i32 : i32, i32
  }
  func.func @transform_2(%arg0: i32, %arg1: i32) -> (i32, i32) {
    %c0_i32 = arith.constant 0 : i32
    %c0_i32_0 = arith.constant 0 : i32
    %c0_i32_1 = arith.constant 0 : i32
    return %c0_i32, %c0_i32_0 : i32, i32
  }
  func.func @transform_3(%arg0: i32, %arg1: i32) -> (i32, i32) {
    %c0_i32 = arith.constant 0 : i32
    %c0_i32_0 = arith.constant 0 : i32
    return %arg0, %c0_i32 : i32, i32
  }
}

module attributes {stable_mosaic.version = 11 : i64} {
  func.func @_bn_stats_kernel(%arg0: i32, %arg1: memref<256x8xf32, #tpu.memory_space<vmem>>, %arg2: memref<2x8xf32, #tpu.memory_space<vmem>>) attributes {dimension_semantics = [#tpu.dimension_semantics<arbitrary>], iteration_bounds = array<i64: 2>, scalar_prefetch = 0 : i64, scratch_operands = 0 : i64, tpu.core_type = #tpu.core_type<tc>, window_params = [{transform_indices = @transform_0, window_bounds = array<i64: 256, 8>}, {pipeline_mode = #tpu.pipeline_mode<synchronous>, transform_indices = @transform_1, window_bounds = array<i64: 2, 8>}]} {
    %c0_i32 = arith.constant 0 : i32
    %0 = arith.cmpi eq, %arg0, %c0_i32 : i32
    %1 = arith.extui %0 : i1 to i32
    %c0_i32_0 = arith.constant 0 : i32
    %2 = arith.cmpi ne, %1, %c0_i32_0 : i32
    scf.if %2 {
      %cst_7 = arith.constant 0.000000e+00 : f32
      %13 = vector.broadcast %cst_7 : f32 to vector<2x8xf32>
      %c0_8 = arith.constant 0 : index
      %c0_9 = arith.constant 0 : index
      %14 = vector.load %arg2[%c0_8, %c0_9] : memref<2x8xf32, #tpu.memory_space<vmem>>, vector<2x8xf32>
      tpu.vector_store %arg2[%c0_8, %c0_9], %13 {strides = array<i32>} : memref<2x8xf32, #tpu.memory_space<vmem>>, vector<2x8xf32>,
    } else {
    }
    %c0 = arith.constant 0 : index
    %c0_1 = arith.constant 0 : index
    %3 = vector.load %arg1[%c0, %c0_1] : memref<256x8xf32, #tpu.memory_space<vmem>>, vector<256x8xf32>
    %cst = arith.constant dense<0.000000e+00> : vector<8xf32>
    %4 = vector.multi_reduction <add>, %3, %cst [0] : vector<256x8xf32> to vector<8xf32>
    %5 = vector.shape_cast %4 : vector<8xf32> to vector<1x8xf32>
    %6 = arith.mulf %3, %3 : vector<256x8xf32>
    %cst_2 = arith.constant dense<0.000000e+00> : vector<8xf32>
    %7 = vector.multi_reduction <add>, %6, %cst_2 [0] : vector<256x8xf32> to vector<8xf32>
    %8 = vector.shape_cast %7 : vector<8xf32> to vector<1x8xf32>
    %c0_3 = arith.constant 0 : index
    %c0_4 = arith.constant 0 : index
    %9 = vector.load %arg2[%c0_3, %c0_4] : memref<2x8xf32, #tpu.memory_space<vmem>>, vector<2x8xf32>
    %10 = tpu.concatenate %5, %8 in 0 : vector<1x8xf32>, vector<1x8xf32> -> vector<2x8xf32>
    %11 = arith.addf %9, %10 : vector<2x8xf32>
    %c0_5 = arith.constant 0 : index
    %c0_6 = arith.constant 0 : index
    %12 = vector.load %arg2[%c0_5, %c0_6] : memref<2x8xf32, #tpu.memory_space<vmem>>, vector<2x8xf32>
    tpu.vector_store %arg2[%c0_5, %c0_6], %11 {strides = array<i32>} : memref<2x8xf32, #tpu.memory_space<vmem>>, vector<2x8xf32>,
    return
  }
  func.func @transform_0(%arg0: i32) -> (i32, i32) {
    %c0_i32 = arith.constant 0 : i32
    %c0_i32_0 = arith.constant 0 : i32
    return %arg0, %c0_i32 : i32, i32
  }
  func.func @transform_1(%arg0: i32) -> (i32, i32) {
    %c0_i32 = arith.constant 0 : i32
    %c0_i32_0 = arith.constant 0 : i32
    %c0_i32_1 = arith.constant 0 : i32
    return %c0_i32, %c0_i32_0 : i32, i32
  }
}

module attributes {stable_mosaic.version = 11 : i64} {
  func.func @_bn_apply_kernel(%arg0: i32, %arg1: memref<256x8xf32, #tpu.memory_space<vmem>>, %arg2: memref<2x8xf32, #tpu.memory_space<vmem>>, %arg3: memref<2x8xf32, #tpu.memory_space<vmem>>, %arg4: memref<256x8xf32, #tpu.memory_space<vmem>>) attributes {dimension_semantics = [#tpu.dimension_semantics<parallel>], iteration_bounds = array<i64: 2>, scalar_prefetch = 0 : i64, scratch_operands = 0 : i64, tpu.core_type = #tpu.core_type<tc>, window_params = [{transform_indices = @transform_0, window_bounds = array<i64: 256, 8>}, {pipeline_mode = #tpu.pipeline_mode<synchronous>, transform_indices = @transform_1, window_bounds = array<i64: 2, 8>}, {pipeline_mode = #tpu.pipeline_mode<synchronous>, transform_indices = @transform_2, window_bounds = array<i64: 2, 8>}, {transform_indices = @transform_3, window_bounds = array<i64: 256, 8>}]} {
    %c0 = arith.constant 0 : index
    %c0_0 = arith.constant 0 : index
    %0 = vector.load %arg2[%c0, %c0_0] : memref<2x8xf32, #tpu.memory_space<vmem>>, vector<2x8xf32>
    %1 = vector.extract_strided_slice %0 {offsets = [0, 0], sizes = [1, 8], strides = [1, 1]} : vector<2x8xf32> to vector<1x8xf32>
    %cst = arith.constant 0.001953125 : f32
    %2 = vector.broadcast %cst : f32 to vector<1x8xf32>
    %3 = arith.mulf %1, %2 : vector<1x8xf32>
    %4 = vector.extract_strided_slice %0 {offsets = [1, 0], sizes = [1, 8], strides = [1, 1]} : vector<2x8xf32> to vector<1x8xf32>
    %cst_1 = arith.constant 0.001953125 : f32
    %5 = vector.broadcast %cst_1 : f32 to vector<1x8xf32>
    %6 = arith.mulf %4, %5 : vector<1x8xf32>
    %7 = arith.mulf %3, %3 : vector<1x8xf32>
    %8 = arith.subf %6, %7 : vector<1x8xf32>
    %cst_2 = arith.constant 9.99999974E-6 : f32
    %9 = vector.broadcast %cst_2 : f32 to vector<1x8xf32>
    %10 = arith.addf %8, %9 : vector<1x8xf32>
    %11 = math.rsqrt %10 : vector<1x8xf32>
    %c0_3 = arith.constant 0 : index
    %c0_4 = arith.constant 0 : index
    %12 = vector.load %arg1[%c0_3, %c0_4] : memref<256x8xf32, #tpu.memory_space<vmem>>, vector<256x8xf32>
    %13 = vector.broadcast %3 : vector<1x8xf32> to vector<256x8xf32>
    %14 = arith.subf %12, %13 : vector<256x8xf32>
    %c0_5 = arith.constant 0 : index
    %c0_6 = arith.constant 0 : index
    %15 = vector.load %arg3[%c0_5, %c0_6] : memref<2x8xf32, #tpu.memory_space<vmem>>, vector<1x8xf32>
    %16 = arith.mulf %11, %15 : vector<1x8xf32>
    %17 = vector.broadcast %16 : vector<1x8xf32> to vector<256x8xf32>
    %18 = arith.mulf %14, %17 : vector<256x8xf32>
    %c1 = arith.constant 1 : index
    %c0_7 = arith.constant 0 : index
    %19 = vector.load %arg3[%c1, %c0_7] : memref<2x8xf32, #tpu.memory_space<vmem>>, vector<1x8xf32>
    %20 = vector.broadcast %19 : vector<1x8xf32> to vector<256x8xf32>
    %21 = arith.addf %18, %20 : vector<256x8xf32>
    %cst_8 = arith.constant 0.000000e+00 : f32
    %22 = vector.broadcast %cst_8 : f32 to vector<256x8xf32>
    %23 = arith.maximumf %21, %22 : vector<256x8xf32>
    %c0_9 = arith.constant 0 : index
    %c0_10 = arith.constant 0 : index
    %24 = vector.load %arg4[%c0_9, %c0_10] : memref<256x8xf32, #tpu.memory_space<vmem>>, vector<256x8xf32>
    tpu.vector_store %arg4[%c0_9, %c0_10], %23 {strides = array<i32>} : memref<256x8xf32, #tpu.memory_space<vmem>>, vector<256x8xf32>,
    return
  }
  func.func @transform_0(%arg0: i32) -> (i32, i32) {
    %c0_i32 = arith.constant 0 : i32
    %c0_i32_0 = arith.constant 0 : i32
    return %arg0, %c0_i32 : i32, i32
  }
  func.func @transform_1(%arg0: i32) -> (i32, i32) {
    %c0_i32 = arith.constant 0 : i32
    %c0_i32_0 = arith.constant 0 : i32
    %c0_i32_1 = arith.constant 0 : i32
    return %c0_i32, %c0_i32_0 : i32, i32
  }
  func.func @transform_2(%arg0: i32) -> (i32, i32) {
    %c0_i32 = arith.constant 0 : i32
    %c0_i32_0 = arith.constant 0 : i32
    %c0_i32_1 = arith.constant 0 : i32
    return %c0_i32, %c0_i32_0 : i32, i32
  }
  func.func @transform_3(%arg0: i32) -> (i32, i32) {
    %c0_i32 = arith.constant 0 : i32
    %c0_i32_0 = arith.constant 0 : i32
    return %arg0, %c0_i32 : i32, i32
  }
}

module attributes {stable_mosaic.version = 11 : i64} {
  func.func @_mm_kernel(%arg0: i32, %arg1: i32, %arg2: memref<256x144xbf16, #tpu.memory_space<vmem>>, %arg3: memref<144x12xbf16, #tpu.memory_space<vmem>>, %arg4: memref<1x12xf32, #tpu.memory_space<vmem>>, %arg5: memref<256x12xf32, #tpu.memory_space<vmem>>, %arg6: memref<256x12xf32, #tpu.memory_space<vmem>>) attributes {dimension_semantics = [#tpu.dimension_semantics<parallel>, #tpu.dimension_semantics<arbitrary>], iteration_bounds = array<i64: 2, 1>, scalar_prefetch = 0 : i64, scratch_operands = 1 : i64, tpu.core_type = #tpu.core_type<tc>, window_params = [{transform_indices = @transform_0, window_bounds = array<i64: 256, 144>}, {transform_indices = @transform_1, window_bounds = array<i64: 144, 12>}, {pipeline_mode = #tpu.pipeline_mode<synchronous>, transform_indices = @transform_2, window_bounds = array<i64: 1, 12>}, {transform_indices = @transform_3, window_bounds = array<i64: 256, 12>}]} {
    %c0_i32 = arith.constant 0 : i32
    %0 = arith.cmpi eq, %arg1, %c0_i32 : i32
    %1 = arith.extui %0 : i1 to i32
    %c0_i32_0 = arith.constant 0 : i32
    %2 = arith.cmpi ne, %1, %c0_i32_0 : i32
    scf.if %2 {
      %cst_10 = arith.constant 0.000000e+00 : f32
      %12 = vector.broadcast %cst_10 : f32 to vector<256x12xf32>
      %c0_11 = arith.constant 0 : index
      %c0_12 = arith.constant 0 : index
      %13 = vector.load %arg6[%c0_11, %c0_12] : memref<256x12xf32, #tpu.memory_space<vmem>>, vector<256x12xf32>
      tpu.vector_store %arg6[%c0_11, %c0_12], %12 {strides = array<i32>} : memref<256x12xf32, #tpu.memory_space<vmem>>, vector<256x12xf32>,
    } else {
    }
    %c0 = arith.constant 0 : index
    %c0_1 = arith.constant 0 : index
    %3 = vector.load %arg6[%c0, %c0_1] : memref<256x12xf32, #tpu.memory_space<vmem>>, vector<256x12xf32>
    %c0_2 = arith.constant 0 : index
    %c0_3 = arith.constant 0 : index
    %4 = vector.load %arg2[%c0_2, %c0_3] : memref<256x144xbf16, #tpu.memory_space<vmem>>, vector<256x144xbf16>
    %c0_4 = arith.constant 0 : index
    %c0_5 = arith.constant 0 : index
    %5 = vector.load %arg3[%c0_4, %c0_5] : memref<144x12xbf16, #tpu.memory_space<vmem>>, vector<144x12xbf16>
    %cst = arith.constant dense<0.000000e+00> : vector<256x12xf32>
    %6 = tpu.matmul %4, %5, %cst {dimension_numbers = #tpu.dot_dimension_numbers<[1], [0], [0], [1], [0, 0, 1, 1], [], []>} : vector<256x144xbf16>, vector<144x12xbf16>, vector<256x12xf32> -> vector<256x12xf32>
    %7 = arith.addf %3, %6 : vector<256x12xf32>
    %c0_6 = arith.constant 0 : index
    %c0_7 = arith.constant 0 : index
    %8 = vector.load %arg6[%c0_6, %c0_7] : memref<256x12xf32, #tpu.memory_space<vmem>>, vector<256x12xf32>
    tpu.vector_store %arg6[%c0_6, %c0_7], %7 {strides = array<i32>} : memref<256x12xf32, #tpu.memory_space<vmem>>, vector<256x12xf32>,
    %c0_i32_8 = arith.constant 0 : i32
    %9 = arith.cmpi eq, %arg1, %c0_i32_8 : i32
    %10 = arith.extui %9 : i1 to i32
    %c0_i32_9 = arith.constant 0 : i32
    %11 = arith.cmpi ne, %10, %c0_i32_9 : i32
    scf.if %11 {
      %c0_10 = arith.constant 0 : index
      %c0_11 = arith.constant 0 : index
      %12 = vector.load %arg6[%c0_10, %c0_11] : memref<256x12xf32, #tpu.memory_space<vmem>>, vector<256x12xf32>
      %c0_12 = arith.constant 0 : index
      %c0_13 = arith.constant 0 : index
      %13 = vector.load %arg4[%c0_12, %c0_13] : memref<1x12xf32, #tpu.memory_space<vmem>>, vector<1x12xf32>
      %14 = vector.broadcast %13 : vector<1x12xf32> to vector<256x12xf32>
      %15 = arith.addf %12, %14 : vector<256x12xf32>
      %16 = math.tanh %15 : vector<256x12xf32>
      %c0_14 = arith.constant 0 : index
      %c0_15 = arith.constant 0 : index
      %17 = vector.load %arg5[%c0_14, %c0_15] : memref<256x12xf32, #tpu.memory_space<vmem>>, vector<256x12xf32>
      tpu.vector_store %arg5[%c0_14, %c0_15], %16 {strides = array<i32>} : memref<256x12xf32, #tpu.memory_space<vmem>>, vector<256x12xf32>,
    } else {
    }
    return
  }
  func.func @transform_0(%arg0: i32, %arg1: i32) -> (i32, i32) {
    %c0_i32 = arith.constant 0 : i32
    return %arg0, %arg1 : i32, i32
  }
  func.func @transform_1(%arg0: i32, %arg1: i32) -> (i32, i32) {
    %c0_i32 = arith.constant 0 : i32
    %c0_i32_0 = arith.constant 0 : i32
    return %arg1, %c0_i32 : i32, i32
  }
  func.func @transform_2(%arg0: i32, %arg1: i32) -> (i32, i32) {
    %c0_i32 = arith.constant 0 : i32
    %c0_i32_0 = arith.constant 0 : i32
    %c0_i32_1 = arith.constant 0 : i32
    return %c0_i32, %c0_i32_0 : i32, i32
  }
  func.func @transform_3(%arg0: i32, %arg1: i32) -> (i32, i32) {
    %c0_i32 = arith.constant 0 : i32
    %c0_i32_0 = arith.constant 0 : i32
    return %arg0, %c0_i32 : i32, i32
  }
}

</mosaic_0001>

<bundles_post_ra>
// kernel: _lambda_.24
= control target key start
LH: loop header
LB: loop body
LE: loop exit
PB: predicated region body
PF: predicated region fallthrough
CT: control target
= control target key end

     0   :  { %s1185_s12 = smov 0   ;;  %s1187_s13 = smov 0   ;;  %s1437_s0 = inlined_call_operand.vmem [shape: bf16[512,48], index: 0, kind: input, shape index: {}]   ;;  %s1438_s1 = inlined_call_operand.vmem [shape: bf16[48,8], index: 1, kind: input, shape index: {}]   ;;  %s1439_s2 = inlined_call_operand.vmem [shape: f32[1,8], index: 2, kind: input, shape index: {}]   ;;  %s1440_s3 = inlined_call_operand.vmem [shape: f32[512,8], index: 3, kind: output, shape index: {}]  }
   0x1   :  { %s1189_s14 = smov 0  }
   0x2 LB: > { %s25_s15 = sadd.s32 1, %s1158_s13  ;;  %p990_p0 = scmp.ge.s32.totalorder %s1162_s14, 1  ;;  %s1162_s14 = sphi %s1189_s14, %s13_s14   ;;  %s1158_s13 = sphi %s1187_s13, %s1442_s13   ;;  %s1154_s12 = sphi %s1185_s12, %s1441_s12  }
   0x3   : > { %p27_p1 = scmp.ge.s32.totalorder %s25_s15, 2  ;;  %p166_p2 = scmp.lt.s32.totalorder %s1162_s14, 3 }
   0x5   : > { %s1444_s15 = smov (%p27_p1, %s25_s15), 0  ;;  %p167_p3 = pnand %p990_p0, %p166_p2 }
   0x6   : > { %v1121_v0 = vld [vmem:[%s1438_s1] sm:$0xff] (!%p167_p3)   ;;  %s991_s18 = sshll.u32 (!%p167_p3), %s1154_s12, 5  ;;  %v1122_v1 = vld [vmem:[%s1438_s1 + $0x8] sm:$0xff] (!%p167_p3)   ;;  %vm224_vm0 = vcmask (!%p167_p3), 64512   ;;  %v1123_v2 = vld [vmem:[%s1438_s1 + $0x10] sm:$0xff] (!%p167_p3)   ;;  %v1164_v3 = vmov (!%p167_p3), 0.0  }
   0x7   : > { %170 = sbr.rel (%p167_p3) target bundleno = 286 (0x11e), region = 32  ;;  %p199_p4 = scmp.lt.s32.totalorder (!%p167_p3), %s991_s18, 63  ;;  %1052 = vmatprep.subr.bf16.mxu0 (!%p167_p3), %v1121_v0  ;;  %1090 = vmatprep.subr.bf16.mxu1 (!%p167_p3), %v1121_v0  ;;  %227 = vst.msk [vmem:[#allocation2 + $0x10] sm:$0xff] (!%p167_p3), %vm224_vm0, %v1164_v3  ;;  %225 = vst.msk [vmem:[#allocation2] sm:$0xff] (!%p167_p3), %vm224_vm0, %v1164_v3  ;;  %vm425_vm1 = vcmask (!%p167_p3), 392192  }
   0x8   : > { %1053 = vmatpush3.bf16.msra.mxu0 (!%p167_p3), %v1121_v0  ;;  %1093 = vmatpush3.bf16.msra.mxu1 (!%p167_p3), %v1121_v0  ;;  %226 = vst.msk [vmem:[#allocation2 + $0x8] sm:$0xff] (!%p167_p3), %vm224_vm0, %v1164_v3  ;;  %228 = vst.msk [vmem:[#allocation2 + $0x18] sm:$0xff] (!%p167_p3), %vm224_vm0, %v1164_v3  ;;  %v1295_v48 = vld [vmem:[%s1439_s2] ss:$0 sm:$0xff] (!%p167_p3) }
   0x9   : > { %1054 = vmatprep.subr.bf16.mxu0 (!%p167_p3), %v1122_v1  ;;  %1091 = vmatprep.subr.bf16.mxu1 (!%p167_p3), %v1122_v1  ;;  %229 = vst.msk [vmem:[#allocation2 + $0x20] sm:$0xff] (!%p167_p3), %vm224_vm0, %v1164_v3  ;;  %230 = vst.msk [vmem:[#allocation2 + $0x28] sm:$0xff] (!%p167_p3), %vm224_vm0, %v1164_v3 }
   0xa   : > { %231 = vst.msk [vmem:[#allocation2 + $0x30] sm:$0xff] (!%p167_p3), %vm224_vm0, %v1164_v3  ;;  %232 = vst.msk [vmem:[#allocation2 + $0x38] sm:$0xff] (!%p167_p3), %vm224_vm0, %v1164_v3 }
   0xb   : > { %233 = vst.msk [vmem:[#allocation2 + $0x40] sm:$0xff] (!%p167_p3), %vm224_vm0, %v1164_v3  ;;  %234 = vst.msk [vmem:[#allocation2 + $0x48] sm:$0xff] (!%p167_p3), %vm224_vm0, %v1164_v3 }
   0xc   : > { %235 = vst.msk [vmem:[#allocation2 + $0x50] sm:$0xff] (!%p167_p3), %vm224_vm0, %v1164_v3  ;;  %236 = vst.msk [vmem:[#allocation2 + $0x58] sm:$0xff] (!%p167_p3), %vm224_vm0, %v1164_v3  ;;  %1055 = vmatpush3.bf16.msra.mxu0 (!%p167_p3), %v1122_v1  ;;  %1094 = vmatpush3.bf16.msra.mxu1 (!%p167_p3), %v1122_v1 }
   0xd   : > { %237 = vst.msk [vmem:[#allocation2 + $0x60] sm:$0xff] (!%p167_p3), %vm224_vm0, %v1164_v3  ;;  %238 = vst.msk [vmem:[#allocation2 + $0x68] sm:$0xff] (!%p167_p3), %vm224_vm0, %v1164_v3  ;;  %1056 = vmatprep.subr.bf16.mxu0 (!%p167_p3), %v1123_v2  ;;  %1092 = vmatprep.subr.bf16.mxu1 (!%p167_p3), %v1123_v2 }
   0xe   : > { %s1446_s18 = smov (!%p199_p4, %s991_s18), 63  ;;  %239 = vst.msk [vmem:[#allocation2 + $0x70] sm:$0xff] %vm224_vm0, %v1164_v3  ;;  %240 = vst.msk [vmem:[#allocation2 + $0x78] sm:$0xff] %vm224_vm0, %v1164_v3  ;;  %v259_v20 = vld [vmem:[#allocation2 + $0x10] sm:$0xff]  ;;  %v257_v22 = vld [vmem:[#allocation2] sm:$0xff] }
   0xf   : > { %241 = vst.msk [vmem:[#allocation2 + $0x80] sm:$0xff] %vm224_vm0, %v1164_v3  ;;  %242 = vst.msk [vmem:[#allocation2 + $0x88] sm:$0xff] %vm224_vm0, %v1164_v3  ;;  %s992_s23 = sshll.u32 %s1446_s18, 2  ;;  %v260_v26 = vld [vmem:[#allocation2 + $0x18] sm:$0xff]  ;;  %v258_v32 = vld [vmem:[#allocation2 + $0x8] sm:$0xff]  ;;  %s994_s29 = sshll.u32 %s1446_s18, 3 }
  0x10   : > { %243 = vst.msk [vmem:[#allocation2 + $0x90] sm:$0xff] %vm224_vm0, %v1164_v3  ;;  %244 = vst.msk [vmem:[#allocation2 + $0x98] sm:$0xff] %vm224_vm0, %v1164_v3  ;;  %s1250_s26 = scalar_lea.vmem %s1437_s0, %s992_s23  ;;  %1057 = vmatpush3.bf16.msra.mxu0 %v1123_v2  ;;  %1095 = vmatpush3.bf16.msra.mxu1 %v1123_v2  ;;  %v261_v46 = vld [vmem:[#allocation2 + $0x20] sm:$0xff]  ;;  %v262_v57 = vld [vmem:[#allocation2 + $0x28] sm:$0xff]  ;;  %s1309_s5 = scalar_lea.vmem %s1440_s3, %s994_s29 }
  0x11   : > { %245 = vst.msk [vmem:[#allocation2 + $0xa0] sm:$0xff] %vm224_vm0, %v1164_v3  ;;  %246 = vst.msk [vmem:[#allocation2 + $0xa8] sm:$0xff] %vm224_vm0, %v1164_v3  ;;  %v1124_v4 = vld [vmem:[%s1250_s26] sm:$0xff]   ;;  %v1126_v6 = vld [vmem:[%s1250_s26 + $0x8] sm:$0xff]  }
  0x12   : > { %247 = vst.msk [vmem:[#allocation2 + $0xb0] sm:$0xff] %vm224_vm0, %v1164_v3  ;;  %248 = vst.msk [vmem:[#allocation2 + $0xb8] sm:$0xff] %vm224_vm0, %v1164_v3  ;;  %v1125_v5 = vld [vmem:[%s1250_s26 + $0x40] sm:$0xff]   ;;  %1058 = vmatprep.mubr.msk.bf16.mxu0 %vm425_vm1, %v1124_v4  ;;  %v1127_v7 = vld [vmem:[%s1250_s26 + $0x48] sm:$0xff]  }
  0x13   : > { %249 = vst.msk [vmem:[#allocation2 + $0xc0] sm:$0xff] %vm224_vm0, %v1164_v3  ;;  %250 = vst.msk [vmem:[#allocation2 + $0xc8] sm:$0xff] %vm224_vm0, %v1164_v3  ;;  %1074 = vmatprep.mubr.msk.bf16.mxu1 %vm425_vm1, %v1125_v5  ;;  %v1128_v8 = vld [vmem:[%s1250_s26 + $0x10] sm:$0xff]   ;;  %1059 = vmatmul.mubr.msk.bf16.vlgmr.msra.gmra.mrb[0].mxu0 %vm425_vm1, %v1126_v6  ;;  %v1130_v10 = vld [vmem:[%s1250_s26 + $0x18] sm:$0xff]  }
  0x14   : > { %251 = vst.msk [vmem:[#allocation2 + $0xd0] sm:$0xff] %vm224_vm0, %v1164_v3  ;;  %252 = vst.msk [vmem:[#allocation2 + $0xd8] sm:$0xff] %vm224_vm0, %v1164_v3  ;;  %v1129_v9 = vld [vmem:[%s1250_s26 + $0x50] sm:$0xff]   ;;  %1075 = vmatmul.mubr.msk.bf16.vlgmr.msra.gmra.mrb[0].mxu1 %vm425_vm1, %v1127_v7  ;;  %1062 = vmatprep.mubr.msk.bf16.mxu0 %vm425_vm1, %v1128_v8  ;;  %v1131_v11 = vld [vmem:[%s1250_s26 + $0x58] sm:$0xff]  }
  0x15   : > { %253 = vst.msk [vmem:[#allocation2 + $0xe0] sm:$0xff] %vm224_vm0, %v1164_v3  ;;  %254 = vst.msk [vmem:[#allocation2 + $0xe8] sm:$0xff] %vm224_vm0, %v1164_v3  ;;  %1078 = vmatprep.mubr.msk.bf16.mxu1 %vm425_vm1, %v1129_v9  ;;  %v1132_v12 = vld [vmem:[%s1250_s26 + $0x20] sm:$0xff]   ;;  %v1134_v14 = vld [vmem:[%s1250_s26 + $0x28] sm:$0xff]  }
  0x16   : > { %255 = vst.msk [vmem:[#allocation2 + $0xf0] sm:$0xff] %vm224_vm0, %v1164_v3  ;;  %256 = vst.msk [vmem:[#allocation2 + $0xf8] sm:$0xff] %vm224_vm0, %v1164_v3  ;;  %v1133_v13 = vld [vmem:[%s1250_s26 + $0x60] sm:$0xff]   ;;  %v1135_v15 = vld [vmem:[%s1250_s26 + $0x68] sm:$0xff]  }
  0x17   : > { %v1136_v16 = vld [vmem:[%s1250_s26 + $0x30] sm:$0xff]   ;;  %v1138_v18 = vld [vmem:[%s1250_s26 + $0x38] sm:$0xff]   ;;  %v273_v23 = vld [vmem:[#allocation2 + $0x80] sm:$0xff] }
  0x18   : > { %v1137_v17 = vld [vmem:[%s1250_s26 + $0x70] sm:$0xff]   ;;  %v1139_v19 = vld [vmem:[%s1250_s26 + $0x78] sm:$0xff]   ;;  %v274_v33 = vld [vmem:[#allocation2 + $0x88] sm:$0xff] }
  0x19   : > { %v275_v21 = vld [vmem:[#allocation2 + $0x90] sm:$0xff]  ;;  %v276_v27 = vld [vmem:[#allocation2 + $0x98] sm:$0xff]  ;;  %v277_v47 = vld [vmem:[#allocation2 + $0xa0] sm:$0xff] }
  0x1a   : > { %v263_v44 = vld [vmem:[#allocation2 + $0x30] sm:$0xff]  ;;  %v264_v51 = vld [vmem:[#allocation2 + $0x38] sm:$0xff]  ;;  %v278_v58 = vld [vmem:[#allocation2 + $0xa8] sm:$0xff] }
  0x1b   : > { %1063 = vmatmul.mubr.msk.bf16.gmra.mrb[4].mxu0 %vm425_vm1, %v1130_v10  ;;  %v279_v45 = vld [vmem:[#allocation2 + $0xb0] sm:$0xff]  ;;  %v280_v52 = vld [vmem:[#allocation2 + $0xb8] sm:$0xff] }
  0x1c   : > { %1079 = vmatmul.mubr.msk.bf16.gmra.mrb[4].mxu1 %vm425_vm1, %v1131_v11  ;;  %1066 = vmatprep.mubr.msk.bf16.mxu0 %vm425_vm1, %v1132_v12 }
  0x1d   : > { %1082 = vmatprep.mubr.msk.bf16.mxu1 %vm425_vm1, %v1133_v13 }
  0x23   : > { %1067 = vmatmul.mubr.msk.bf16.gmra.mrb[8].mxu0 %vm425_vm1, %v1134_v14 }
  0x24   : > { %1083 = vmatmul.mubr.msk.bf16.gmra.mrb[8].mxu1 %vm425_vm1, %v1135_v15  ;;  %1070 = vmatprep.mubr.msk.bf16.mxu0 %vm425_vm1, %v1136_v16 }
  0x25   : > { %1086 = vmatprep.mubr.msk.bf16.mxu1 %vm425_vm1, %v1137_v17 }
  0x2b   : > { %1071 = vmatmul.mubr.msk.bf16.gmra.mrb[12].mxu0 %vm425_vm1, %v1138_v18 }
  0x2c   : > { %1087 = vmatmul.mubr.msk.bf16.gmra.mrb[12].mxu1 %vm425_vm1, %v1139_v19 }
  0xe6   : > { %v1060_v24 = vpop.f32.mrb[0].mxu0 }
  0xe7   : > { %v1076_v25 = vpop.f32.mrb[0].mxu1  ;;  %v637_v28 = vadd.f32 %v1060_v24, %v259_v20  ;;  %v508_v30 = vpop.f32.mrb[1].mxu0 }
  0xe8   : > { %v653_v29 = vadd.f32 %v1076_v25, %v275_v21  ;;  %v572_v31 = vpop.f32.mrb[1].mxu1  ;;  %v635_v34 = vadd.f32 %v508_v30, %v257_v22  ;;  %v1061_v36 = vpop.f32.mrb[2].mxu0 }
  0xe9   : > { %v651_v35 = vadd.f32 %v572_v31, %v273_v23  ;;  %v1077_v37 = vpop.f32.mrb[2].mxu1  ;;  %670 = vst.msk [vmem:[#allocation2 + $0x10] sm:$0xff] %vm224_vm0, %v637_v28  ;;  %v638_v38 = vadd.f32 %v1061_v36, %v260_v26  ;;  %v511_v40 = vpop.f32.mrb[3].mxu0  ;;  %v283_v31 = vld [vmem:[#allocation2 + $0xd0] sm:$0xff] }
  0xea   : > { %686 = vst.msk [vmem:[#allocation2 + $0x90] sm:$0xff] %vm224_vm0, %v653_v29  ;;  %v654_v39 = vadd.f32 %v1077_v37, %v276_v27  ;;  %v575_v41 = vpop.f32.mrb[3].mxu1  ;;  %668 = vst.msk [vmem:[#allocation2] sm:$0xff] %vm224_vm0, %v635_v34  ;;  %v636_v42 = vadd.f32 %v511_v40, %v258_v32  ;;  %v267_v29 = vld [vmem:[#allocation2 + $0x50] sm:$0xff] }
  0xeb   : > { %684 = vst.msk [vmem:[#allocation2 + $0x80] sm:$0xff] %vm224_vm0, %v651_v35  ;;  %v652_v43 = vadd.f32 %v575_v41, %v274_v33  ;;  %671 = vst.msk [vmem:[#allocation2 + $0x18] sm:$0xff] %vm224_vm0, %v638_v38 }
  0xec   : > { %687 = vst.msk [vmem:[#allocation2 + $0x98] sm:$0xff] %vm224_vm0, %v654_v39  ;;  %669 = vst.msk [vmem:[#allocation2 + $0x8] sm:$0xff] %vm224_vm0, %v636_v42 }
  0xed   : > { %685 = vst.msk [vmem:[#allocation2 + $0x88] sm:$0xff] %vm224_vm0, %v652_v43 }
  0xee   : > { %v1064_v49 = vpop.f32.mrb[4].mxu0 }
  0xef   : > { %v1080_v50 = vpop.f32.mrb[4].mxu1  ;;  %v641_v53 = vadd.f32 %v1064_v49, %v263_v44  ;;  %v524_v55 = vpop.f32.mrb[5].mxu0 }
  0xf0   : > { %v657_v54 = vadd.f32 %v1080_v50, %v279_v45  ;;  %v588_v56 = vpop.f32.mrb[5].mxu1  ;;  %v705_v59 = vld [vmem:[#allocation2 + $0x10] sm:$0xff]  ;;  %v639_v61 = vadd.f32 %v524_v55, %v261_v46  ;;  %v1065_v63 = vpop.f32.mrb[6].mxu0 }
  0xf1   : > { %v721_v60 = vld [vmem:[#allocation2 + $0x90] sm:$0xff]  ;;  %v655_v62 = vadd.f32 %v588_v56, %v277_v47  ;;  %v1081_v0 = vpop.f32.mrb[6].mxu1  ;;  %v744_v1 = vadd.f32 %v1295_v48, %v705_v59  ;;  %v703_v3 = vld [vmem:[#allocation2] sm:$0xff]  ;;  %674 = vst.msk [vmem:[#allocation2 + $0x30] sm:$0xff] %vm224_vm0, %v641_v53  ;;  %v642_v5 = vadd.f32 %v1065_v63, %v264_v51  ;;  %v527_v7 = vpop.f32.mrb[7].mxu0 }
  0xf2   : > { %v760_v2 = vadd.f32 %v1295_v48, %v721_v60  ;;  %v719_v4 = vld [vmem:[#allocation2 + $0x80] sm:$0xff]  ;;  %690 = vst.msk [vmem:[#allocation2 + $0xb0] sm:$0xff] %vm224_vm0, %v657_v54  ;;  %v658_v6 = vadd.f32 %v1081_v0, %v280_v52  ;;  %v591_v8 = vpop.f32.mrb[7].mxu1  ;;  %v742_v9 = vadd.f32 %v1295_v48, %v703_v3  ;;  %v706_v11 = vld [vmem:[#allocation2 + $0x18] sm:$0xff]  ;;  %672 = vst.msk [vmem:[#allocation2 + $0x20] sm:$0xff] %vm224_vm0, %v639_v61 }
  0xf3   : > { %v758_v10 = vadd.f32 %v1295_v48, %v719_v4  ;;  %v722_v12 = vld [vmem:[#allocation2 + $0x98] sm:$0xff]  ;;  %688 = vst.msk [vmem:[#allocation2 + $0xa0] sm:$0xff] %vm224_vm0, %v655_v62  ;;  %v640_v13 = vadd.f32 %v527_v7, %v262_v57  ;;  %v656_v14 = vadd.f32 %v591_v8, %v278_v58  ;;  %vm776_vm2 = vcmp.gt.f32.partialorder %v744_v1, 0.0  ;;  %675 = vst.msk [vmem:[#allocation2 + $0x38] sm:$0xff] %vm224_vm0, %v642_v5  ;;  %v704_v23 = vld [vmem:[#allocation2 + $0x8] sm:$0xff] }
  0xf4   : > { %v808_v15 = vmul.f32 0.2, %v744_v1  ;;  %vm792_vm3 = vcmp.gt.f32.partialorder %v760_v2, 0.0  ;;  %v824_v16 = vmul.f32 0.2, %v760_v2  ;;  %691 = vst.msk [vmem:[#allocation2 + $0xb8] sm:$0xff] %vm224_vm0, %v658_v6  ;;  %v745_v21 = vadd.f32 %v1295_v48, %v706_v11 }
  0xf5   : > { %vm774_vm4 = vcmp.gt.f32.partialorder %v742_v9, 0.0  ;;  %v806_v17 = vmul.f32 0.2, %v742_v9  ;;  %vm790_vm5 = vcmp.gt.f32.partialorder %v758_v10, 0.0  ;;  %v822_v18 = vmul.f32 0.2, %v758_v10 }
  0xf6   : > { %673 = vst.msk [vmem:[#allocation2 + $0x28] sm:$0xff] %vm224_vm0, %v640_v13  ;;  %689 = vst.msk [vmem:[#allocation2 + $0xa8] sm:$0xff] %vm224_vm0, %v656_v14  ;;  %v840_v19 = vsel %vm776_vm2, %v744_v1, %v808_v15  ;;  %v856_v20 = vsel %vm792_vm3, %v760_v2, %v824_v16  ;;  %v761_v22 = vadd.f32 %v1295_v48, %v722_v12  ;;  %v720_v24 = vld [vmem:[#allocation2 + $0x88] sm:$0xff]  ;;  %v1068_v30 = vpop.f32.mrb[8].mxu0  ;;  %vm777_vm6 = vcmp.gt.f32.partialorder %v745_v21, 0.0  ;;  %v265_v62 = vld [vmem:[#allocation2 + $0x40] sm:$0xff] }
  0xf7   : > { %872 = vst.msk [vmem:[%s1309_s5 + $0x10] sm:$0xff] %vm224_vm0, %v840_v19  ;;  %888 = vst.msk [vmem:[%s1309_s5 + $0x90] sm:$0xff] %vm224_vm0, %v856_v20  ;;  %v838_v25 = vsel %vm774_vm4, %v742_v9, %v806_v17  ;;  %v854_v26 = vsel %vm790_vm5, %v758_v10, %v822_v18  ;;  %v743_v27 = vadd.f32 %v1295_v48, %v704_v23  ;;  %v1084_v32 = vpop.f32.mrb[8].mxu1  ;;  %v809_v33 = vmul.f32 0.2, %v745_v21  ;;  %v540_v44 = vpop.f32.mrb[9].mxu0 }
  0xf8   : > { %v759_v28 = vadd.f32 %v1295_v48, %v720_v24  ;;  %870 = vst.msk [vmem:[%s1309_s5] sm:$0xff] %vm224_vm0, %v838_v25  ;;  %886 = vst.msk [vmem:[%s1309_s5 + $0x80] sm:$0xff] %vm224_vm0, %v854_v26  ;;  %vm793_vm7 = vcmp.gt.f32.partialorder %v761_v22, 0.0  ;;  %v825_v34 = vmul.f32 0.2, %v761_v22  ;;  %v709_v39 = vld [vmem:[#allocation2 + $0x30] sm:$0xff]  ;;  %v645_v42 = vadd.f32 %v1068_v30, %v267_v29 }
  0xf9   : > { %vm775_vm8 = vcmp.gt.f32.partialorder %v743_v27, 0.0  ;;  %v807_v35 = vmul.f32 0.2, %v743_v27  ;;  %v841_v37 = vsel %vm777_vm6, %v745_v21, %v809_v33  ;;  %v725_v40 = vld [vmem:[#allocation2 + $0xb0] sm:$0xff]  ;;  %v707_v41 = vld [vmem:[#allocation2 + $0x20] sm:$0xff]  ;;  %v661_v43 = vadd.f32 %v1084_v32, %v283_v31  ;;  %v1327_v45 = vpop.f32.mrb[9].mxu1 }
  0xfa   : > { %vm791_vm9 = vcmp.gt.f32.partialorder %v759_v28, 0.0  ;;  %v823_v36 = vmul.f32 0.2, %v759_v28  ;;  %v857_v38 = vsel %vm793_vm7, %v761_v22, %v825_v34  ;;  %873 = vst.msk [vmem:[%s1309_s5 + $0x18] sm:$0xff] %vm224_vm0, %v841_v37  ;;  %v748_v49 = vadd.f32 %v1295_v48, %v709_v39  ;;  %v723_v51 = vld [vmem:[#allocation2 + $0xa0] sm:$0xff]  ;;  %v710_v52 = vld [vmem:[#allocation2 + $0x38] sm:$0xff] }
  0xfb   : > { %889 = vst.msk [vmem:[%s1309_s5 + $0x98] sm:$0xff] %vm224_vm0, %v857_v38  ;;  %v839_v46 = vsel %vm775_vm8, %v743_v27, %v807_v35  ;;  %v764_v50 = vadd.f32 %v1295_v48, %v725_v40  ;;  %v726_v53 = vld [vmem:[#allocation2 + $0xb8] sm:$0xff]  ;;  %v1069_v54 = vpop.f32.mrb[10].mxu0  ;;  %v1085_v55 = vpop.f32.mrb[10].mxu1  ;;  %v746_v56 = vadd.f32 %v1295_v48, %v707_v41  ;;  %v762_v57 = vadd.f32 %v1295_v48, %v723_v51  ;;  %v281_v3 = vld [vmem:[#allocation2 + $0xc0] sm:$0xff]  ;;  %v266_v11 = vld [vmem:[#allocation2 + $0x48] sm:$0xff] }
  0xfc   : > { %v855_v47 = vsel %vm791_vm9, %v759_v28, %v823_v36  ;;  %871 = vst.msk [vmem:[%s1309_s5 + $0x8] sm:$0xff] %vm224_vm0, %v839_v46  ;;  %v749_v58 = vadd.f32 %v1295_v48, %v710_v52  ;;  %v765_v59 = vadd.f32 %v1295_v48, %v726_v53  ;;  %678 = vst.msk [vmem:[#allocation2 + $0x50] sm:$0xff] %vm224_vm0, %v645_v42  ;;  %v543_v63 = vpop.f32.mrb[11].mxu0  ;;  %v607_v0 = vpop.f32.mrb[11].mxu1  ;;  %vm780_vm10 = vcmp.gt.f32.partialorder %v748_v49, 0.0  ;;  %v268_v4 = vld [vmem:[#allocation2 + $0x58] sm:$0xff] }
  0xfd   : > { %887 = vst.msk [vmem:[%s1309_s5 + $0x88] sm:$0xff] %vm224_vm0, %v855_v47  ;;  %v708_v60 = vld [vmem:[#allocation2 + $0x28] sm:$0xff]  ;;  %694 = vst.msk [vmem:[#allocation2 + $0xd0] sm:$0xff] %vm224_vm0, %v661_v43  ;;  %v812_v1 = vmul.f32 0.2, %v748_v49  ;;  %vm796_vm11 = vcmp.gt.f32.partialorder %v764_v50, 0.0  ;;  %v643_v23 = vadd.f32 %v540_v44, %v265_v62  ;;  %v659_v30 = vadd.f32 %v1327_v45, %v281_v3 }
  0xfe   : > { %v724_v61 = vld [vmem:[#allocation2 + $0xa8] sm:$0xff]  ;;  %v828_v2 = vmul.f32 0.2, %v764_v50  ;;  %v284_v5 = vld [vmem:[#allocation2 + $0xd8] sm:$0xff]  ;;  %vm778_vm12 = vcmp.gt.f32.partialorder %v746_v56, 0.0  ;;  %vm794_vm13 = vcmp.gt.f32.partialorder %v762_v57, 0.0  ;;  %v747_v21 = vadd.f32 %v1295_v48, %v708_v60 }
  0xff   : > { %v810_v6 = vmul.f32 0.2, %v746_v56  ;;  %v826_v7 = vmul.f32 0.2, %v762_v57  ;;  %v844_v8 = vsel %vm780_vm10, %v748_v49, %v812_v1  ;;  %vm781_vm14 = vcmp.gt.f32.partialorder %v749_v58, 0.0  ;;  %v1072_v12 = vpop.f32.mrb[12].mxu0 }
 0x100   : > { %v860_v9 = vsel %vm796_vm11, %v764_v50, %v828_v2  ;;  %v813_v10 = vmul.f32 0.2, %v749_v58  ;;  %v1088_v13 = vpop.f32.mrb[12].mxu1  ;;  %876 = vst.msk [vmem:[%s1309_s5 + $0x30] sm:$0xff] %vm224_vm0, %v844_v8  ;;  %vm797_vm15 = vcmp.gt.f32.partialorder %v765_v59, 0.0  ;;  %v282_v17 = vld [vmem:[#allocation2 + $0xc8] sm:$0xff]  ;;  %v763_v22 = vadd.f32 %v1295_v48, %v724_v61 }
 0x101   : > { %892 = vst.msk [vmem:[%s1309_s5 + $0xb0] sm:$0xff] %vm224_vm0, %v860_v9  ;;  %v842_v14 = vsel %vm778_vm12, %v746_v56, %v810_v6  ;;  %v858_v15 = vsel %vm794_vm13, %v762_v57, %v826_v7  ;;  %v829_v16 = vmul.f32 0.2, %v765_v59  ;;  %v556_v18 = vpop.f32.mrb[13].mxu0  ;;  %v620_v19 = vpop.f32.mrb[13].mxu1  ;;  %v271_v24 = vld [vmem:[#allocation2 + $0x70] sm:$0xff]  ;;  %v646_v31 = vadd.f32 %v1069_v54, %v268_v4 }
 0x102   : > { %874 = vst.msk [vmem:[%s1309_s5 + $0x20] sm:$0xff] %vm224_vm0, %v842_v14  ;;  %890 = vst.msk [vmem:[%s1309_s5 + $0xa0] sm:$0xff] %vm224_vm0, %v858_v15  ;;  %v845_v20 = vsel %vm781_vm14, %v749_v58, %v813_v10  ;;  %v287_v25 = vld [vmem:[#allocation2 + $0xf0] sm:$0xff]  ;;  %v269_v26 = vld [vmem:[#allocation2 + $0x60] sm:$0xff]  ;;  %v1073_v27 = vpop.f32.mrb[14].mxu0  ;;  %v1089_v28 = vpop.f32.mrb[14].mxu1  ;;  %v662_v32 = vadd.f32 %v1085_v55, %v284_v5  ;;  %v644_v42 = vadd.f32 %v543_v63, %v266_v11 }
 0x103   : > { %877 = vst.msk [vmem:[%s1309_s5 + $0x38] sm:$0xff] %vm224_vm0, %v845_v20  ;;  %v861_v29 = vsel %vm797_vm15, %v765_v59, %v829_v16  ;;  %v285_v33 = vld [vmem:[#allocation2 + $0xe0] sm:$0xff]  ;;  %v272_v34 = vld [vmem:[#allocation2 + $0x78] sm:$0xff]  ;;  %v559_v36 = vpop.f32.mrb[15].mxu0  ;;  %v623_v37 = vpop.f32.mrb[15].mxu1  ;;  %vm779_vm1 = vcmp.gt.f32.partialorder %v747_v21, 0.0  ;;  %v660_v43 = vadd.f32 %v607_v0, %v282_v17  ;;  %v649_v44 = vadd.f32 %v1072_v12, %v271_v24 }
 0x104   : > { %v288_v35 = vld [vmem:[#allocation2 + $0xf8] sm:$0xff]  ;;  %893 = vst.msk [vmem:[%s1309_s5 + $0xb8] sm:$0xff] %vm224_vm0, %v861_v29  ;;  %v811_v38 = vmul.f32 0.2, %v747_v21  ;;  %vm795_vm2 = vcmp.gt.f32.partialorder %v763_v22, 0.0  ;;  %676 = vst.msk [vmem:[#allocation2 + $0x40] sm:$0xff] %vm224_vm0, %v643_v23  ;;  %v665_v45 = vadd.f32 %v1088_v13, %v287_v25  ;;  %v647_v53 = vadd.f32 %v556_v18, %v269_v26 }
 0x105   : > { %v827_v39 = vmul.f32 0.2, %v763_v22  ;;  %v713_v40 = vld [vmem:[#allocation2 + $0x50] sm:$0xff]  ;;  %692 = vst.msk [vmem:[#allocation2 + $0xc0] sm:$0xff] %vm224_vm0, %v659_v30  ;;  %679 = vst.msk [vmem:[#allocation2 + $0x58] sm:$0xff] %vm224_vm0, %v646_v31  ;;  %v270_v51 = vld [vmem:[#allocation2 + $0x68] sm:$0xff]  ;;  %v663_v54 = vadd.f32 %v620_v19, %v285_v33  ;;  %v650_v55 = vadd.f32 %v1073_v27, %v272_v34  ;;  %v666_v56 = vadd.f32 %v1089_v28, %v288_v35 }
 0x106   : > { %v729_v41 = vld [vmem:[#allocation2 + $0xd0] sm:$0xff]  ;;  %695 = vst.msk [vmem:[#allocation2 + $0xd8] sm:$0xff] %vm224_vm0, %v662_v32  ;;  %v843_v46 = vsel %vm779_vm1, %v747_v21, %v811_v38  ;;  %v752_v49 = vadd.f32 %v1295_v48, %v713_v40  ;;  %v286_v52 = vld [vmem:[#allocation2 + $0xe8] sm:$0xff]  ;;  %677 = vst.msk [vmem:[#allocation2 + $0x48] sm:$0xff] %vm224_vm0, %v644_v42  ;;  %v648_v59 = vadd.f32 %v559_v36, %v270_v51 }
 0x107   : > { %v859_v47 = vsel %vm795_vm2, %v763_v22, %v827_v39  ;;  %v768_v50 = vadd.f32 %v1295_v48, %v729_v41  ;;  %875 = vst.msk [vmem:[%s1309_s5 + $0x28] sm:$0xff] %vm224_vm0, %v843_v46  ;;  %693 = vst.msk [vmem:[#allocation2 + $0xc8] sm:$0xff] %vm224_vm0, %v660_v43  ;;  %v664_v60 = vadd.f32 %v623_v37, %v286_v52 }
 0x108   : > { %891 = vst.msk [vmem:[%s1309_s5 + $0xa8] sm:$0xff] %vm224_vm0, %v859_v47  ;;  %682 = vst.msk [vmem:[#allocation2 + $0x70] sm:$0xff] %vm224_vm0, %v649_v44  ;;  %vm784_vm3 = vcmp.gt.f32.partialorder %v752_v49, 0.0  ;;  %v816_v57 = vmul.f32 0.2, %v752_v49 }
 0x109   : > { %698 = vst.msk [vmem:[#allocation2 + $0xf0] sm:$0xff] %vm224_vm0, %v665_v45  ;;  %vm800_vm4 = vcmp.gt.f32.partialorder %v768_v50, 0.0  ;;  %v832_v58 = vmul.f32 0.2, %v768_v50  ;;  %680 = vst.msk [vmem:[#allocation2 + $0x60] sm:$0xff] %vm224_vm0, %v647_v53 }
 0x10a   : > { %696 = vst.msk [vmem:[#allocation2 + $0xe0] sm:$0xff] %vm224_vm0, %v663_v54  ;;  %683 = vst.msk [vmem:[#allocation2 + $0x78] sm:$0xff] %vm224_vm0, %v650_v55  ;;  %v848_v61 = vsel %vm784_vm3, %v752_v49, %v816_v57 }
 0x10b   : > { %699 = vst.msk [vmem:[#allocation2 + $0xf8] sm:$0xff] %vm224_vm0, %v666_v56  ;;  %v864_v62 = vsel %vm800_vm4, %v768_v50, %v832_v58  ;;  %880 = vst.msk [vmem:[%s1309_s5 + $0x50] sm:$0xff] %vm224_vm0, %v848_v61  ;;  %v711_v63 = vld [vmem:[#allocation2 + $0x40] sm:$0xff] }
 0x10c   : > { %896 = vst.msk [vmem:[%s1309_s5 + $0xd0] sm:$0xff] %vm224_vm0, %v864_v62  ;;  %681 = vst.msk [vmem:[#allocation2 + $0x68] sm:$0xff] %vm224_vm0, %v648_v59  ;;  %v750_v0 = vadd.f32 %v1295_v48, %v711_v63  ;;  %v727_v1 = vld [vmem:[#allocation2 + $0xc0] sm:$0xff]  ;;  %v714_v2 = vld [vmem:[#allocation2 + $0x58] sm:$0xff] }
 0x10d   : > { %697 = vst.msk [vmem:[#allocation2 + $0xe8] sm:$0xff] %vm224_vm0, %v664_v60  ;;  %v730_v3 = vld [vmem:[#allocation2 + $0xd8] sm:$0xff]  ;;  %v766_v4 = vadd.f32 %v1295_v48, %v727_v1  ;;  %v753_v5 = vadd.f32 %v1295_v48, %v714_v2  ;;  %v712_v8 = vld [vmem:[#allocation2 + $0x48] sm:$0xff] }
 0x10e   : > { %v769_v6 = vadd.f32 %v1295_v48, %v730_v3  ;;  %vm782_vm5 = vcmp.gt.f32.partialorder %v750_v0, 0.0  ;;  %v814_v7 = vmul.f32 0.2, %v750_v0  ;;  %v728_v9 = vld [vmem:[#allocation2 + $0xc8] sm:$0xff]  ;;  %v751_v15 = vadd.f32 %v1295_v48, %v712_v8 }
 0x10f   : > { %v717_v10 = vld [vmem:[#allocation2 + $0x70] sm:$0xff]  ;;  %vm798_vm6 = vcmp.gt.f32.partialorder %v766_v4, 0.0  ;;  %v830_v11 = vmul.f32 0.2, %v766_v4  ;;  %vm785_vm7 = vcmp.gt.f32.partialorder %v753_v5, 0.0  ;;  %v767_v19 = vadd.f32 %v1295_v48, %v728_v9 }
 0x110   : > { %v817_v12 = vmul.f32 0.2, %v753_v5  ;;  %v846_v13 = vsel %vm782_vm5, %v750_v0, %v814_v7  ;;  %vm801_vm8 = vcmp.gt.f32.partialorder %v769_v6, 0.0  ;;  %v833_v14 = vmul.f32 0.2, %v769_v6  ;;  %v733_v16 = vld [vmem:[#allocation2 + $0xf0] sm:$0xff] }
 0x111   : > { %878 = vst.msk [vmem:[%s1309_s5 + $0x40] sm:$0xff] %vm224_vm0, %v846_v13  ;;  %v862_v17 = vsel %vm798_vm6, %v766_v4, %v830_v11  ;;  %v756_v20 = vadd.f32 %v1295_v48, %v717_v10  ;;  %v715_v21 = vld [vmem:[#allocation2 + $0x60] sm:$0xff]  ;;  %vm783_vm9 = vcmp.gt.f32.partialorder %v751_v15, 0.0  ;;  %v815_v23 = vmul.f32 0.2, %v751_v15  ;;  %v718_v26 = vld [vmem:[#allocation2 + $0x78] sm:$0xff] }
 0x112   : > { %v849_v18 = vsel %vm785_vm7, %v753_v5, %v817_v12  ;;  %894 = vst.msk [vmem:[%s1309_s5 + $0xc0] sm:$0xff] %vm224_vm0, %v862_v17  ;;  %v865_v22 = vsel %vm801_vm8, %v769_v6, %v833_v14  ;;  %v772_v24 = vadd.f32 %v1295_v48, %v733_v16  ;;  %v731_v25 = vld [vmem:[#allocation2 + $0xe0] sm:$0xff]  ;;  %v734_v27 = vld [vmem:[#allocation2 + $0xf8] sm:$0xff]  ;;  %vm799_vm10 = vcmp.gt.f32.partialorder %v767_v19, 0.0 }
 0x113   : > { %881 = vst.msk [vmem:[%s1309_s5 + $0x58] sm:$0xff] %vm224_vm0, %v849_v18  ;;  %897 = vst.msk [vmem:[%s1309_s5 + $0xd8] sm:$0xff] %vm224_vm0, %v865_v22  ;;  %v831_v28 = vmul.f32 0.2, %v767_v19  ;;  %vm788_vm11 = vcmp.gt.f32.partialorder %v756_v20, 0.0  ;;  %v847_v30 = vsel %vm783_vm9, %v751_v15, %v815_v23  ;;  %v754_v32 = vadd.f32 %v1295_v48, %v715_v21  ;;  %v716_v37 = vld [vmem:[#allocation2 + $0x68] sm:$0xff] }
 0x114   : > { %v820_v29 = vmul.f32 0.2, %v756_v20  ;;  %vm804_vm12 = vcmp.gt.f32.partialorder %v772_v24, 0.0  ;;  %v836_v31 = vmul.f32 0.2, %v772_v24  ;;  %879 = vst.msk [vmem:[%s1309_s5 + $0x48] sm:$0xff] %vm224_vm0, %v847_v30  ;;  %v770_v35 = vadd.f32 %v1295_v48, %v731_v25 }
 0x115   : > { %v863_v33 = vsel %vm799_vm10, %v767_v19, %v831_v28  ;;  %v757_v36 = vadd.f32 %v1295_v48, %v718_v26  ;;  %vm786_vm13 = vcmp.gt.f32.partialorder %v754_v32, 0.0  ;;  %v818_v39 = vmul.f32 0.2, %v754_v32  ;;  %v732_v41 = vld [vmem:[#allocation2 + $0xe8] sm:$0xff] }
 0x116   : > { %v852_v34 = vsel %vm788_vm11, %v756_v20, %v820_v29  ;;  %895 = vst.msk [vmem:[%s1309_s5 + $0xc8] sm:$0xff] %vm224_vm0, %v863_v33  ;;  %v868_v38 = vsel %vm804_vm12, %v772_v24, %v836_v31  ;;  %v773_v40 = vadd.f32 %v1295_v48, %v734_v27  ;;  %vm802_vm14 = vcmp.gt.f32.partialorder %v770_v35, 0.0 }
 0x117   : > { %884 = vst.msk [vmem:[%s1309_s5 + $0x70] sm:$0xff] %vm224_vm0, %v852_v34  ;;  %900 = vst.msk [vmem:[%s1309_s5 + $0xf0] sm:$0xff] %vm224_vm0, %v868_v38  ;;  %v834_v42 = vmul.f32 0.2, %v770_v35  ;;  %vm789_vm15 = vcmp.gt.f32.partialorder %v757_v36, 0.0  ;;  %v850_v44 = vsel %vm786_vm13, %v754_v32, %v818_v39  ;;  %v755_v46 = vadd.f32 %v1295_v48, %v716_v37 }
 0x118   : > { %v821_v43 = vmul.f32 0.2, %v757_v36  ;;  %vm805_vm1 = vcmp.gt.f32.partialorder %v773_v40, 0.0  ;;  %v837_v45 = vmul.f32 0.2, %v773_v40  ;;  %882 = vst.msk [vmem:[%s1309_s5 + $0x60] sm:$0xff] %vm224_vm0, %v850_v44  ;;  %v771_v50 = vadd.f32 %v1295_v48, %v732_v41 }
 0x119   : > { %v866_v47 = vsel %vm802_vm14, %v770_v35, %v834_v42  ;;  %vm787_vm2 = vcmp.gt.f32.partialorder %v755_v46, 0.0  ;;  %v819_v52 = vmul.f32 0.2, %v755_v46 }
 0x11a   : > { %v853_v49 = vsel %vm789_vm15, %v757_v36, %v821_v43  ;;  %898 = vst.msk [vmem:[%s1309_s5 + $0xe0] sm:$0xff] %vm224_vm0, %v866_v47  ;;  %v869_v51 = vsel %vm805_vm1, %v773_v40, %v837_v45  ;;  %vm803_vm3 = vcmp.gt.f32.partialorder %v771_v50, 0.0  ;;  %v835_v53 = vmul.f32 0.2, %v771_v50 }
 0x11b   : > { %885 = vst.msk [vmem:[%s1309_s5 + $0x78] sm:$0xff] %vm224_vm0, %v853_v49  ;;  %901 = vst.msk [vmem:[%s1309_s5 + $0xf8] sm:$0xff] %vm224_vm0, %v869_v51  ;;  %v851_v54 = vsel %vm787_vm2, %v755_v46, %v819_v52 }
 0x11c   : > { %883 = vst.msk [vmem:[%s1309_s5 + $0x68] sm:$0xff] %vm224_vm0, %v851_v54  ;;  %v867_v55 = vsel %vm803_vm3, %v771_v50, %v835_v53 }
 0x11d   : > { %899 = vst.msk [vmem:[%s1309_s5 + $0xe8] sm:$0xff] %vm224_vm0, %v867_v55 }
 0x11e PF: > { %s13_s14 = sadd.s32 1, %s1162_s14   ;;  %s1441_s12 = smov %s1158_s13 }
 0x11f   : > { %p10_p5 = scmp.ge.s32.totalorder %s13_s14, 4   ;;  %s1442_s13 = smov %s1444_s15 }
 0x121   :  { %12 = sbr.rel (!%p10_p5) target bundleno = 2 (0x2), region = 73 }

// kernel: _lambda_.25
= control target key start
LH: loop header
LB: loop body
LE: loop exit
PB: predicated region body
PF: predicated region fallthrough
CT: control target
= control target key end

     0   :  { %vm19_vm0 = vcmask 130048   ;;  %v470_v1 = vmov 0.0   ;;  %s656_s1 = inlined_call_operand.vmem [shape: bf16[128,16], index: 1, kind: input, shape index: {}]   ;;  %s657_s0 = inlined_call_operand.vmem [shape: bf16[128,128], index: 0, kind: input, shape index: {}]   ;;  %s658_s2 = inlined_call_operand.vmem [shape: f32[1,16], index: 2, kind: input, shape index: {}]   ;;  %s659_s3 = inlined_call_operand.vmem [shape: f32[128,16], index: 3, kind: output, shape index: {}]  }
   0x1   :  { %v454_v0 = vld [vmem:[%s656_s1] sm:$0xff]   ;;  %22 = vst.msk [vmem:[#allocation2 + $0x10] sm:$0xff] %vm19_vm0, %v470_v1  ;;  %20 = vst.msk [vmem:[#allocation2] sm:$0xff] %vm19_vm0, %v470_v1  ;;  %v455_v2 = vld [vmem:[%s656_s1 + $0x8] sm:$0xff]  }
   0x2   :  { %21 = vst.msk [vmem:[#allocation2 + $0x8] sm:$0xff] %vm19_vm0, %v470_v1  ;;  %23 = vst.msk [vmem:[#allocation2 + $0x18] sm:$0xff] %vm19_vm0, %v470_v1  ;;  %405 = vmatprep.subr.bf16.mxu0 %v454_v0  ;;  %437 = vmatprep.subr.bf16.mxu1 %v454_v0  ;;  %v456_v3 = vld [vmem:[%s656_s1 + $0x10] sm:$0xff]   ;;  %v457_v4 = vld [vmem:[%s656_s1 + $0x18] sm:$0xff]  }
   0x3   :  { %24 = vst.msk [vmem:[#allocation2 + $0x20] sm:$0xff] %vm19_vm0, %v470_v1  ;;  %25 = vst.msk [vmem:[#allocation2 + $0x28] sm:$0xff] %vm19_vm0, %v470_v1  ;;  %406 = vmatpush3.bf16.msra.mxu0 %v454_v0  ;;  %445 = vmatpush3.bf16.msra.mxu1 %v454_v0  ;;  %v462_v5 = vld [vmem:[%s657_s0] sm:$0xff]   ;;  %v459_v8 = vld [vmem:[%s656_s1 + $0x28] sm:$0xff]  }
   0x4   :  { %26 = vst.msk [vmem:[#allocation2 + $0x30] sm:$0xff] %vm19_vm0, %v470_v1  ;;  %27 = vst.msk [vmem:[#allocation2 + $0x38] sm:$0xff] %vm19_vm0, %v470_v1  ;;  %407 = vmatprep.subr.bf16.mxu0 %v455_v2  ;;  %438 = vmatprep.subr.bf16.mxu1 %v455_v2  ;;  %v463_v6 = vld [vmem:[%s657_s0 + $0x20] sm:$0xff]   ;;  %v460_v9 = vld [vmem:[%s656_s1 + $0x30] sm:$0xff]  }
   0x5   :  { %28 = vst.msk [vmem:[#allocation2 + $0x40] sm:$0xff] %vm19_vm0, %v470_v1  ;;  %29 = vst.msk [vmem:[#allocation2 + $0x48] sm:$0xff] %vm19_vm0, %v470_v1  ;;  %421 = vmatprep.mubr.bf16.mxu0 %v462_v5  ;;  %v458_v7 = vld [vmem:[%s656_s1 + $0x20] sm:$0xff]   ;;  %429 = vmatprep.mubr.bf16.mxu1 %v463_v6  ;;  %v461_v10 = vld [vmem:[%s656_s1 + $0x38] sm:$0xff]  }
   0x6   :  { %30 = vst.msk [vmem:[#allocation2 + $0x50] sm:$0xff] %vm19_vm0, %v470_v1  ;;  %31 = vst.msk [vmem:[#allocation2 + $0x58] sm:$0xff] %vm19_vm0, %v470_v1  ;;  %v464_v11 = vld [vmem:[%s657_s0 + $0x8] sm:$0xff]   ;;  %v466_v13 = vld [vmem:[%s657_s0 + $0x10] sm:$0xff]  }
   0x7   :  { %32 = vst.msk [vmem:[#allocation2 + $0x60] sm:$0xff] %vm19_vm0, %v470_v1  ;;  %33 = vst.msk [vmem:[#allocation2 + $0x68] sm:$0xff] %vm19_vm0, %v470_v1  ;;  %408 = vmatpush3.bf16.msra.mxu0 %v455_v2  ;;  %446 = vmatpush3.bf16.msra.mxu1 %v455_v2  ;;  %v465_v12 = vld [vmem:[%s657_s0 + $0x28] sm:$0xff]   ;;  %v467_v14 = vld [vmem:[%s657_s0 + $0x30] sm:$0xff]  }
   0x8   :  { %34 = vst.msk [vmem:[#allocation2 + $0x70] sm:$0xff] %vm19_vm0, %v470_v1  ;;  %35 = vst.msk [vmem:[#allocation2 + $0x78] sm:$0xff] %vm19_vm0, %v470_v1  ;;  %409 = vmatprep.subr.bf16.mxu0 %v456_v3  ;;  %439 = vmatprep.subr.bf16.mxu1 %v456_v3  ;;  %v468_v15 = vld [vmem:[%s657_s0 + $0x18] sm:$0xff]   ;;  %v38_v17 = vld [vmem:[#allocation2 + $0x10] sm:$0xff] }
   0x9   :  { %v469_v16 = vld [vmem:[%s657_s0 + $0x38] sm:$0xff]   ;;  %v36_v19 = vld [vmem:[#allocation2] sm:$0xff]  ;;  %v37_v29 = vld [vmem:[#allocation2 + $0x8] sm:$0xff] }
   0xa   :  { %v39_v23 = vld [vmem:[#allocation2 + $0x18] sm:$0xff]  ;;  %v40_v43 = vld [vmem:[#allocation2 + $0x20] sm:$0xff]  ;;  %v41_v54 = vld [vmem:[#allocation2 + $0x28] sm:$0xff] }
   0xb   :  { %410 = vmatpush3.bf16.msra.mxu0 %v456_v3  ;;  %447 = vmatpush3.bf16.msra.mxu1 %v456_v3  ;;  %v42_v41 = vld [vmem:[#allocation2 + $0x30] sm:$0xff]  ;;  %v566_v45 = vld [vmem:[%s658_s2] ss:$0 sm:$0xff]  ;;  %v43_v48 = vld [vmem:[#allocation2 + $0x38] sm:$0xff] }
   0xc   :  { %411 = vmatprep.subr.bf16.mxu0 %v457_v4  ;;  %440 = vmatprep.subr.bf16.mxu1 %v457_v4  ;;  %v44_v20 = vld [vmem:[#allocation2 + $0x40] sm:$0xff]  ;;  %v45_v30 = vld [vmem:[#allocation2 + $0x48] sm:$0xff] }
   0xd   :  { %v46_v18 = vld [vmem:[#allocation2 + $0x50] sm:$0xff]  ;;  %v47_v24 = vld [vmem:[#allocation2 + $0x58] sm:$0xff] }
   0xe   :  { %v48_v44 = vld [vmem:[#allocation2 + $0x60] sm:$0xff]  ;;  %v49_v55 = vld [vmem:[#allocation2 + $0x68] sm:$0xff] }
   0xf   :  { %412 = vmatpush3.bf16.msra.mxu0 %v457_v4  ;;  %448 = vmatpush3.bf16.msra.mxu1 %v457_v4  ;;  %v50_v42 = vld [vmem:[#allocation2 + $0x70] sm:$0xff]  ;;  %v51_v49 = vld [vmem:[#allocation2 + $0x78] sm:$0xff] }
  0x10   :  { %413 = vmatprep.subr.bf16.mxu0 %v458_v7  ;;  %441 = vmatprep.subr.bf16.mxu1 %v458_v7 }
  0x13   :  { %414 = vmatpush3.bf16.msra.mxu0 %v458_v7  ;;  %449 = vmatpush3.bf16.msra.mxu1 %v458_v7 }
  0x14   :  { %415 = vmatprep.subr.bf16.mxu0 %v459_v8  ;;  %442 = vmatprep.subr.bf16.mxu1 %v459_v8 }
  0x17   :  { %416 = vmatpush3.bf16.msra.mxu0 %v459_v8  ;;  %450 = vmatpush3.bf16.msra.mxu1 %v459_v8 }
  0x18   :  { %417 = vmatprep.subr.bf16.mxu0 %v460_v9  ;;  %443 = vmatprep.subr.bf16.mxu1 %v460_v9 }
  0x1b   :  { %418 = vmatpush3.bf16.msra.mxu0 %v460_v9  ;;  %451 = vmatpush3.bf16.msra.mxu1 %v460_v9 }
  0x1c   :  { %419 = vmatprep.subr.bf16.mxu0 %v461_v10  ;;  %444 = vmatprep.subr.bf16.mxu1 %v461_v10 }
  0x1f   :  { %420 = vmatpush3.bf16.msra.mxu0 %v461_v10  ;;  %452 = vmatpush3.bf16.msra.mxu1 %v461_v10 }
  0x22   :  { %422 = vmatmul.mubr.bf16.vlgmr.msra.gmra.mrb[0].mxu0 %v464_v11  ;;  %430 = vmatmul.mubr.bf16.vlgmr.msra.gmra.mrb[0].mxu1 %v465_v12 }
  0x23   :  { %425 = vmatprep.mubr.bf16.mxu0 %v466_v13  ;;  %433 = vmatprep.mubr.bf16.mxu1 %v467_v14 }
  0x2a   :  { %426 = vmatmul.mubr.bf16.gmra.mrb[4].mxu0 %v468_v15  ;;  %434 = vmatmul.mubr.bf16.gmra.mrb[4].mxu1 %v469_v16 }
  0xf5   :  { %v423_v21 = vpop.f32.mrb[0].mxu0  ;;  %v431_v22 = vpop.f32.mrb[0].mxu1 }
  0xf6   :  { %v279_v25 = vadd.f32 %v423_v21, %v38_v17  ;;  %v287_v26 = vadd.f32 %v431_v22, %v46_v18  ;;  %v214_v27 = vpop.f32.mrb[1].mxu0  ;;  %v246_v28 = vpop.f32.mrb[1].mxu1 }
  0xf7   :  { %v277_v31 = vadd.f32 %v214_v27, %v36_v19  ;;  %v285_v32 = vadd.f32 %v246_v28, %v44_v20  ;;  %v424_v33 = vpop.f32.mrb[2].mxu0  ;;  %v432_v34 = vpop.f32.mrb[2].mxu1 }
  0xf8   :  { %296 = vst.msk [vmem:[#allocation2 + $0x10] sm:$0xff] %vm19_vm0, %v279_v25  ;;  %304 = vst.msk [vmem:[#allocation2 + $0x50] sm:$0xff] %vm19_vm0, %v287_v26  ;;  %v280_v35 = vadd.f32 %v424_v33, %v39_v23  ;;  %v288_v36 = vadd.f32 %v432_v34, %v47_v24  ;;  %v217_v37 = vpop.f32.mrb[3].mxu0  ;;  %v249_v38 = vpop.f32.mrb[3].mxu1 }
  0xf9   :  { %294 = vst.msk [vmem:[#allocation2] sm:$0xff] %vm19_vm0, %v277_v31  ;;  %302 = vst.msk [vmem:[#allocation2 + $0x40] sm:$0xff] %vm19_vm0, %v285_v32  ;;  %v278_v39 = vadd.f32 %v217_v37, %v37_v29  ;;  %v286_v40 = vadd.f32 %v249_v38, %v45_v30 }
  0xfa   :  { %297 = vst.msk [vmem:[#allocation2 + $0x18] sm:$0xff] %vm19_vm0, %v280_v35  ;;  %305 = vst.msk [vmem:[#allocation2 + $0x58] sm:$0xff] %vm19_vm0, %v288_v36 }
  0xfb   :  { %295 = vst.msk [vmem:[#allocation2 + $0x8] sm:$0xff] %vm19_vm0, %v278_v39  ;;  %303 = vst.msk [vmem:[#allocation2 + $0x48] sm:$0xff] %vm19_vm0, %v286_v40 }
  0xfd   :  { %v427_v46 = vpop.f32.mrb[4].mxu0  ;;  %v435_v47 = vpop.f32.mrb[4].mxu1 }
  0xfe   :  { %v283_v50 = vadd.f32 %v427_v46, %v42_v41  ;;  %v291_v51 = vadd.f32 %v435_v47, %v50_v42  ;;  %v230_v52 = vpop.f32.mrb[5].mxu0  ;;  %v262_v53 = vpop.f32.mrb[5].mxu1 }
  0xff   :  { %v315_v56 = vld [vmem:[#allocation2 + $0x10] sm:$0xff]  ;;  %v281_v58 = vadd.f32 %v230_v52, %v40_v43  ;;  %v289_v59 = vadd.f32 %v262_v53, %v48_v44  ;;  %v428_v60 = vpop.f32.mrb[6].mxu0  ;;  %v436_v61 = vpop.f32.mrb[6].mxu1 }
 0x100   :  { %v323_v57 = vld [vmem:[#allocation2 + $0x50] sm:$0xff]  ;;  %v338_v62 = vadd.f32 %v566_v45, %v315_v56  ;;  %v313_v0 = vld [vmem:[#allocation2] sm:$0xff]  ;;  %300 = vst.msk [vmem:[#allocation2 + $0x30] sm:$0xff] %vm19_vm0, %v283_v50  ;;  %308 = vst.msk [vmem:[#allocation2 + $0x70] sm:$0xff] %vm19_vm0, %v291_v51  ;;  %v284_v2 = vadd.f32 %v428_v60, %v43_v48  ;;  %v292_v3 = vadd.f32 %v436_v61, %v51_v49  ;;  %v233_v4 = vpop.f32.mrb[7].mxu0  ;;  %v265_v5 = vpop.f32.mrb[7].mxu1 }
 0x101   :  { %v346_v63 = vadd.f32 %v566_v45, %v323_v57  ;;  %v321_v1 = vld [vmem:[#allocation2 + $0x40] sm:$0xff]  ;;  %v336_v6 = vadd.f32 %v566_v45, %v313_v0  ;;  %v316_v8 = vld [vmem:[#allocation2 + $0x18] sm:$0xff]  ;;  %298 = vst.msk [vmem:[#allocation2 + $0x20] sm:$0xff] %vm19_vm0, %v281_v58  ;;  %306 = vst.msk [vmem:[#allocation2 + $0x60] sm:$0xff] %vm19_vm0, %v289_v59  ;;  %v282_v10 = vadd.f32 %v233_v4, %v41_v54 }
 0x102   :  { %v344_v7 = vadd.f32 %v566_v45, %v321_v1  ;;  %v324_v9 = vld [vmem:[#allocation2 + $0x58] sm:$0xff]  ;;  %v290_v11 = vadd.f32 %v265_v5, %v49_v55  ;;  %354 = vst.msk [vmem:[%s659_s3 + $0x10] sm:$0xff] %vm19_vm0, %v338_v62  ;;  %v339_v12 = vadd.f32 %v566_v45, %v316_v8  ;;  %v314_v14 = vld [vmem:[#allocation2 + $0x8] sm:$0xff]  ;;  %301 = vst.msk [vmem:[#allocation2 + $0x38] sm:$0xff] %vm19_vm0, %v284_v2 }
 0x103   :  { %362 = vst.msk [vmem:[%s659_s3 + $0x50] sm:$0xff] %vm19_vm0, %v346_v63  ;;  %v347_v13 = vadd.f32 %v566_v45, %v324_v9  ;;  %v322_v15 = vld [vmem:[#allocation2 + $0x48] sm:$0xff]  ;;  %309 = vst.msk [vmem:[#allocation2 + $0x78] sm:$0xff] %vm19_vm0, %v292_v3  ;;  %v337_v16 = vadd.f32 %v566_v45, %v314_v14 }
 0x104   :  { %352 = vst.msk [vmem:[%s659_s3] sm:$0xff] %vm19_vm0, %v336_v6  ;;  %360 = vst.msk [vmem:[%s659_s3 + $0x40] sm:$0xff] %vm19_vm0, %v344_v7  ;;  %v345_v17 = vadd.f32 %v566_v45, %v322_v15 }
 0x105   :  { %299 = vst.msk [vmem:[#allocation2 + $0x28] sm:$0xff] %vm19_vm0, %v282_v10  ;;  %307 = vst.msk [vmem:[#allocation2 + $0x68] sm:$0xff] %vm19_vm0, %v290_v11 }
 0x106   :  { %355 = vst.msk [vmem:[%s659_s3 + $0x18] sm:$0xff] %vm19_vm0, %v339_v12  ;;  %363 = vst.msk [vmem:[%s659_s3 + $0x58] sm:$0xff] %vm19_vm0, %v347_v13 }
 0x107   :  { %353 = vst.msk [vmem:[%s659_s3 + $0x8] sm:$0xff] %vm19_vm0, %v337_v16  ;;  %361 = vst.msk [vmem:[%s659_s3 + $0x48] sm:$0xff] %vm19_vm0, %v345_v17  ;;  %v319_v18 = vld [vmem:[#allocation2 + $0x30] sm:$0xff] }
 0x108   :  { %v327_v19 = vld [vmem:[#allocation2 + $0x70] sm:$0xff]  ;;  %v342_v20 = vadd.f32 %v566_v45, %v319_v18  ;;  %v317_v22 = vld [vmem:[#allocation2 + $0x20] sm:$0xff] }
 0x109   :  { %v350_v21 = vadd.f32 %v566_v45, %v327_v19  ;;  %v325_v23 = vld [vmem:[#allocation2 + $0x60] sm:$0xff]  ;;  %v340_v24 = vadd.f32 %v566_v45, %v317_v22  ;;  %v320_v26 = vld [vmem:[#allocation2 + $0x38] sm:$0xff] }
 0x10a   :  { %v348_v25 = vadd.f32 %v566_v45, %v325_v23  ;;  %v328_v27 = vld [vmem:[#allocation2 + $0x78] sm:$0xff]  ;;  %358 = vst.msk [vmem:[%s659_s3 + $0x30] sm:$0xff] %vm19_vm0, %v342_v20  ;;  %v343_v28 = vadd.f32 %v566_v45, %v320_v26 }
 0x10b   :  { %366 = vst.msk [vmem:[%s659_s3 + $0x70] sm:$0xff] %vm19_vm0, %v350_v21  ;;  %v351_v29 = vadd.f32 %v566_v45, %v328_v27  ;;  %356 = vst.msk [vmem:[%s659_s3 + $0x20] sm:$0xff] %vm19_vm0, %v340_v24 }
 0x10c   :  { %v318_v30 = vld [vmem:[#allocation2 + $0x28] sm:$0xff]  ;;  %364 = vst.msk [vmem:[%s659_s3 + $0x60] sm:$0xff] %vm19_vm0, %v348_v25  ;;  %359 = vst.msk [vmem:[%s659_s3 + $0x38] sm:$0xff] %vm19_vm0, %v343_v28 }
 0x10d   :  { %v326_v31 = vld [vmem:[#allocation2 + $0x68] sm:$0xff]  ;;  %v341_v32 = vadd.f32 %v566_v45, %v318_v30  ;;  %367 = vst.msk [vmem:[%s659_s3 + $0x78] sm:$0xff] %vm19_vm0, %v351_v29 }
 0x10e   :  { %v349_v33 = vadd.f32 %v566_v45, %v326_v31 }
 0x10f   :  { %357 = vst.msk [vmem:[%s659_s3 + $0x28] sm:$0xff] %vm19_vm0, %v341_v32 }
 0x110   :  { %365 = vst.msk [vmem:[%s659_s3 + $0x68] sm:$0xff] %vm19_vm0, %v349_v33 }

// kernel: _lambda_.26
= control target key start
LH: loop header
LB: loop body
LE: loop exit
PB: predicated region body
PF: predicated region fallthrough
CT: control target
= control target key end

     0   :  { %vm12_vm0 = vcmask 123904   ;;  %vm30_vm1 = vcmask 130048   ;;  %v132_v0 = vmov 0.0   ;;  %vm122_vm2 = vcmask 1040384   ;;  %s234_s0 = inlined_call_operand.vmem [shape: f32[128,16], index: 0, kind: input, shape index: {}]   ;;  %s235_s1 = inlined_call_operand.vmem [shape: f32[2,16], index: 1, kind: output, shape index: {}]  }
   0x1   :  { %13 = vst.msk [vmem:[%s235_s1] sm:$0x3] %vm12_vm0, %v132_v0  ;;  %v14_v1 = vld [vmem:[%s234_s0] sm:$0xff]  ;;  %v15_v2 = vld [vmem:[%s234_s0 + $0x8] sm:$0xff]  ;;  %v16_v3 = vld [vmem:[%s234_s0 + $0x10] sm:$0xff] }
   0x2   :  { %v31_v4 = vsel %vm30_vm1, %v14_v1, 0.0  ;;  %v32_v5 = vsel %vm30_vm1, %v15_v2, 0.0  ;;  %v34_v6 = vsel %vm30_vm1, %v16_v3, 0.0  ;;  %v17_v7 = vld [vmem:[%s234_s0 + $0x18] sm:$0xff]  ;;  %v18_v10 = vld [vmem:[%s234_s0 + $0x20] sm:$0xff]  ;;  %v19_v13 = vld [vmem:[%s234_s0 + $0x28] sm:$0xff]  ;;  %v68_v15 = vmul.f32 %v14_v1, %v14_v1 }
   0x3   :  { %v33_v8 = vadd.f32 %v32_v5, %v31_v4  ;;  %v36_v9 = vsel %vm30_vm1, %v17_v7, 0.0  ;;  %v38_v12 = vsel %vm30_vm1, %v18_v10, 0.0  ;;  %v69_v16 = vmul.f32 %v15_v2, %v15_v2  ;;  %v20_v19 = vld [vmem:[%s234_s0 + $0x30] sm:$0xff]  ;;  %v21_v24 = vld [vmem:[%s234_s0 + $0x38] sm:$0xff]  ;;  %v22_v31 = vld [vmem:[%s234_s0 + $0x40] sm:$0xff] }
   0x4   :  { %v70_v17 = vmul.f32 %v16_v3, %v16_v3  ;;  %v40_v18 = vsel %vm30_vm1, %v19_v13, 0.0  ;;  %v71_v21 = vmul.f32 %v17_v7, %v17_v7  ;;  %v42_v22 = vsel %vm30_vm1, %v20_v19, 0.0  ;;  %v23_v37 = vld [vmem:[%s234_s0 + $0x48] sm:$0xff]  ;;  %v24_v43 = vld [vmem:[%s234_s0 + $0x50] sm:$0xff]  ;;  %v25_v49 = vld [vmem:[%s234_s0 + $0x58] sm:$0xff] }
   0x5   :  { %v35_v11 = vadd.f32 %v34_v6, %v33_v8  ;;  %v72_v23 = vmul.f32 %v18_v10, %v18_v10  ;;  %v84_v26 = vsel %vm30_vm1, %v68_v15, 0.0  ;;  %v85_v27 = vsel %vm30_vm1, %v69_v16, 0.0  ;;  %v26_v55 = vld [vmem:[%s234_s0 + $0x60] sm:$0xff]  ;;  %v27_v61 = vld [vmem:[%s234_s0 + $0x68] sm:$0xff]  ;;  %v28_v3 = vld [vmem:[%s234_s0 + $0x70] sm:$0xff] }
   0x6   :  { %v87_v28 = vsel %vm30_vm1, %v70_v17, 0.0  ;;  %v44_v29 = vsel %vm30_vm1, %v21_v24, 0.0  ;;  %v86_v30 = vadd.f32 %v85_v27, %v84_v26  ;;  %v73_v33 = vmul.f32 %v19_v13, %v19_v13 }
   0x7   :  { %v37_v14 = vadd.f32 %v36_v9, %v35_v11  ;;  %v89_v34 = vsel %vm30_vm1, %v71_v21, 0.0  ;;  %v46_v35 = vsel %vm30_vm1, %v22_v31, 0.0  ;;  %v74_v39 = vmul.f32 %v20_v19, %v20_v19  ;;  %v29_v9 = vld [vmem:[%s234_s0 + $0x78] sm:$0xff] }
   0x8   :  { %v88_v36 = vadd.f32 %v87_v28, %v86_v30  ;;  %v91_v40 = vsel %vm30_vm1, %v72_v23, 0.0  ;;  %v48_v41 = vsel %vm30_vm1, %v23_v37, 0.0  ;;  %v75_v45 = vmul.f32 %v21_v24, %v21_v24 }
   0x9   :  { %v39_v20 = vadd.f32 %v38_v12, %v37_v14  ;;  %v93_v46 = vsel %vm30_vm1, %v73_v33, 0.0  ;;  %v50_v47 = vsel %vm30_vm1, %v24_v43, 0.0  ;;  %v76_v51 = vmul.f32 %v22_v31, %v22_v31 }
   0xa   :  { %v90_v42 = vadd.f32 %v89_v34, %v88_v36  ;;  %v95_v52 = vsel %vm30_vm1, %v74_v39, 0.0  ;;  %v52_v53 = vsel %vm30_vm1, %v25_v49, 0.0  ;;  %v77_v57 = vmul.f32 %v23_v37, %v23_v37 }
   0xb   :  { %v41_v25 = vadd.f32 %v40_v18, %v39_v20  ;;  %v97_v58 = vsel %vm30_vm1, %v75_v45, 0.0  ;;  %v54_v59 = vsel %vm30_vm1, %v26_v55, 0.0  ;;  %v78_v63 = vmul.f32 %v24_v43, %v24_v43  ;;  %v121_v43 = vld [vmem:[%s235_s1] sm:$0x3] }
   0xc   :  { %v92_v48 = vadd.f32 %v91_v40, %v90_v42  ;;  %v99_v0 = vsel %vm30_vm1, %v76_v51, 0.0  ;;  %v56_v1 = vsel %vm30_vm1, %v27_v61, 0.0  ;;  %v79_v5 = vmul.f32 %v25_v49, %v25_v49 }
   0xd   :  { %v43_v32 = vadd.f32 %v42_v22, %v41_v25  ;;  %v101_v6 = vsel %vm30_vm1, %v77_v57, 0.0  ;;  %v58_v7 = vsel %vm30_vm1, %v28_v3, 0.0  ;;  %v80_v11 = vmul.f32 %v26_v55, %v26_v55 }
   0xe   :  { %v94_v54 = vadd.f32 %v93_v46, %v92_v48  ;;  %v103_v12 = vsel %vm30_vm1, %v78_v63, 0.0  ;;  %v60_v13 = vsel %vm30_vm1, %v29_v9, 0.0  ;;  %v81_v16 = vmul.f32 %v27_v61, %v27_v61 }
   0xf   :  { %v45_v38 = vadd.f32 %v44_v29, %v43_v32  ;;  %v105_v17 = vsel %vm30_vm1, %v79_v5, 0.0  ;;  %v82_v20 = vmul.f32 %v28_v3, %v28_v3  ;;  %v107_v21 = vsel %vm30_vm1, %v80_v11, 0.0 }
  0x10   :  { %v96_v60 = vadd.f32 %v95_v52, %v94_v54  ;;  %v83_v24 = vmul.f32 %v29_v9, %v29_v9  ;;  %v109_v25 = vsel %vm30_vm1, %v81_v16, 0.0 }
  0x11   :  { %v47_v44 = vadd.f32 %v46_v35, %v45_v38  ;;  %v111_v28 = vsel %vm30_vm1, %v82_v20, 0.0 }
  0x12   :  { %v98_v2 = vadd.f32 %v97_v58, %v96_v60  ;;  %v113_v30 = vsel %vm30_vm1, %v83_v24, 0.0 }
  0x13   :  { %v49_v50 = vadd.f32 %v48_v41, %v47_v44 }
  0x14   :  { %v100_v8 = vadd.f32 %v99_v0, %v98_v2 }
  0x15   :  { %v51_v56 = vadd.f32 %v50_v47, %v49_v50 }
  0x16   :  { %v102_v14 = vadd.f32 %v101_v6, %v100_v8 }
  0x17   :  { %v53_v62 = vadd.f32 %v52_v53, %v51_v56 }
  0x18   :  { %v104_v18 = vadd.f32 %v103_v12, %v102_v14 }
  0x19   :  { %v55_v4 = vadd.f32 %v54_v59, %v53_v62 }
  0x1a   :  { %v106_v22 = vadd.f32 %v105_v17, %v104_v18 }
  0x1b   :  { %v57_v10 = vadd.f32 %v56_v1, %v55_v4 }
  0x1c   :  { %v108_v26 = vadd.f32 %v107_v21, %v106_v22 }
  0x1d   :  { %v59_v15 = vadd.f32 %v58_v7, %v57_v10 }
  0x1e   :  { %v110_v29 = vadd.f32 %v109_v25, %v108_v26 }
  0x1f   :  { %v61_v19 = vadd.f32 %v60_v13, %v59_v15 }
  0x20   :  { %v112_v32 = vadd.f32 %v111_v28, %v110_v29 }
  0x21   :  { %v62_v23 = vrot.slane %v61_v19, 4 }
  0x22   :  { %v114_v33 = vadd.f32 %v113_v30, %v112_v32 }
  0x23   :  { %v63_v27 = vadd.f32 %v62_v23, %v61_v19 }
  0x24   :  { %v115_v35 = vrot.slane %v114_v33, 4 }
  0x25   :  { %v64_v31 = vrot.slane %v63_v27, 2 }
  0x26   :  { %v116_v36 = vadd.f32 %v115_v35, %v114_v33 }
  0x27   :  { %v65_v34 = vadd.f32 %v64_v31, %v63_v27 }
  0x28   :  { %v117_v38 = vrot.slane %v116_v36, 2 }
  0x29   :  { %v66_v37 = vrot.slane %v65_v34, 1 }
  0x2a   :  { %v118_v39 = vadd.f32 %v117_v38, %v116_v36 }
  0x2b   :  { %v67_v40 = vadd.f32 %v66_v37, %v65_v34 }
  0x2c   :  { %v119_v41 = vrot.slane %v118_v39, 1 }
  0x2e   :  { %v120_v42 = vadd.f32 %v119_v41, %v118_v39 }
  0x30   :  { %v123_v44 = vsel %vm122_vm2, %v67_v40, %v120_v42 }
  0x31   :  { %v124_v45 = vadd.f32 %v123_v44, %v121_v43 }
  0x33   :  { %126 = vst.msk [vmem:[%s235_s1] sm:$0x3] %vm12_vm0, %v124_v45 }

// kernel: _lambda_.27
= control target key start
LH: loop header
LB: loop body
LE: loop exit
PB: predicated region body
PF: predicated region fallthrough
CT: control target
= control target key end

     0   :  { %v39_v4 = vlaneseq  ;;  %vm153_vm0 = vcmask 130048   ;;  %s399_s1 = inlined_call_operand.vmem [shape: f32[2,16], index: 1, kind: input, shape index: {}]   ;;  %s400_s2 = inlined_call_operand.vmem [shape: f32[2,16], index: 2, kind: input, shape index: {}]   ;;  %s401_s0 = inlined_call_operand.vmem [shape: f32[128,16], index: 0, kind: input, shape index: {}]   ;;  %s402_s3 = inlined_call_operand.vmem [shape: f32[128,16], index: 3, kind: output, shape index: {}]  }
   0x1   :  { %v14_v0 = vld [vmem:[%s399_s1] sm:$0x3]  ;;  %v24_v13 = vld [vmem:[%s401_s0 + $0x8] sm:$0xff]  ;;  %v25_v14 = vld [vmem:[%s401_s0 + $0x10] sm:$0xff] }
   0x2   :  { %v15_v1 = vmul.f32 0.0078125, %v14_v0  ;;  %v40_v7 = vshrl.u32 %v39_v4, 7  ;;  %v59_v9 = vld [vmem:[%s400_s2] sm:$0x1]  ;;  %v26_v15 = vld [vmem:[%s401_s0 + $0x18] sm:$0xff]  ;;  %v28_v17 = vld [vmem:[%s401_s0 + $0x28] sm:$0xff] }
   0x3   :  { %v23_v10 = vld [vmem:[%s401_s0] sm:$0xff]  ;;  %v61_v12 = vrot.slane %v59_v9, 7  ;;  %v29_v18 = vld [vmem:[%s401_s0 + $0x30] sm:$0xff]  ;;  %v30_v20 = vld [vmem:[%s401_s0 + $0x38] sm:$0xff] }
   0x4   :  { %v16_v2 = vmul.f32 %v15_v1, %v15_v1  ;;  %v41_v8 = vsub.s32 0, %v40_v7  ;;  %v27_v16 = vld [vmem:[%s401_s0 + $0x20] sm:$0xff]  ;;  %v66_v19 = vsub.s32 1, %v40_v7  ;;  %v237_v22 = vld [vmem:[%s401_s0 + $0x48] sm:$0xff]  ;;  %v244_v26 = vld [vmem:[%s401_s0 + $0x50] sm:$0xff] }
   0x5   :  { %v232_v21 = vld [vmem:[%s401_s0 + $0x40] sm:$0xff]  ;;  %v249_v27 = vld [vmem:[%s401_s0 + $0x58] sm:$0xff]  ;;  %v262_v33 = vld [vmem:[%s401_s0 + $0x68] sm:$0xff] }
   0x6   :  { %v18_v3 = vrot.slane %v16_v2, 7  ;;  %v206_v11 = vrot.slane %v15_v1, %v41_v8  ;;  %v254_v28 = vld [vmem:[%s401_s0 + $0x60] sm:$0xff]  ;;  %v267_v34 = vld [vmem:[%s401_s0 + $0x70] sm:$0xff]  ;;  %v272_v35 = vld [vmem:[%s401_s0 + $0x78] sm:$0xff] }
   0x7   :  { %v290_v44 = vld [vmem:[%s400_s2 + $0x1] ss:$0 sm:$0xff] }
   0x8   :  { %v20_v5 = vsub.f32 %v15_v1, %v18_v3  ;;  %v43_v24 = vsub.f32 %v23_v10, %v206_v11  ;;  %v44_v25 = vsub.f32 %v24_v13, %v206_v11  ;;  %v45_v30 = vsub.f32 %v25_v14, %v206_v11 }
   0x9   :  { %v46_v31 = vsub.f32 %v26_v15, %v206_v11  ;;  %v47_v32 = vsub.f32 %v27_v16, %v206_v11  ;;  %v48_v36 = vsub.f32 %v28_v17, %v206_v11  ;;  %v49_v37 = vsub.f32 %v29_v18, %v206_v11 }
   0xa   :  { %v21_v6 = vadd.f32 1e-05, %v20_v5  ;;  %v50_v38 = vsub.f32 %v30_v20, %v206_v11  ;;  %v51_v39 = vsub.f32 %v232_v21, %v206_v11  ;;  %v52_v41 = vsub.f32 %v237_v22, %v206_v11 }
   0xb   :  { %v53_v42 = vsub.f32 %v244_v26, %v206_v11  ;;  %v54_v43 = vsub.f32 %v249_v27, %v206_v11  ;;  %v55_v45 = vsub.f32 %v254_v28, %v206_v11  ;;  %v56_v46 = vsub.f32 %v262_v33, %v206_v11 }
   0xc   :  { %175 = vrsqrt.f32 %v21_v6  ;;  %v57_v47 = vsub.f32 %v267_v34, %v206_v11  ;;  %v58_v48 = vsub.f32 %v272_v35, %v206_v11 }
  0x16   :  { %v176_v23 = vpop.eup %175 }
  0x17   :  { %v63_v29 = vmul.f32 %v176_v23, %v61_v12 }
  0x19   :  { %v279_v40 = vrot.slane %v63_v29, %v66_v19 }
  0x1b   :  { %v68_v49 = vmul.f32 %v279_v40, %v43_v24  ;;  %v69_v50 = vmul.f32 %v279_v40, %v44_v25  ;;  %v70_v51 = vmul.f32 %v279_v40, %v45_v30  ;;  %v71_v52 = vmul.f32 %v279_v40, %v46_v31 }
  0x1c   :  { %v72_v53 = vmul.f32 %v279_v40, %v47_v32  ;;  %v73_v54 = vmul.f32 %v279_v40, %v48_v36  ;;  %v74_v55 = vmul.f32 %v279_v40, %v49_v37  ;;  %v75_v56 = vmul.f32 %v279_v40, %v50_v38 }
  0x1d   :  { %v89_v57 = vadd.f32 %v290_v44, %v68_v49  ;;  %v90_v58 = vadd.f32 %v290_v44, %v69_v50  ;;  %v91_v59 = vadd.f32 %v290_v44, %v70_v51  ;;  %v92_v60 = vadd.f32 %v290_v44, %v71_v52 }
  0x1e   :  { %v93_v61 = vadd.f32 %v290_v44, %v72_v53  ;;  %v94_v62 = vadd.f32 %v290_v44, %v73_v54  ;;  %v95_v63 = vadd.f32 %v290_v44, %v74_v55  ;;  %v96_v0 = vadd.f32 %v290_v44, %v75_v56 }
  0x1f   :  { %vm105_vm1 = vcmp.gt.f32.partialorder %v89_v57, 0.0  ;;  %v121_v1 = vmul.f32 0.2, %v89_v57  ;;  %vm106_vm2 = vcmp.gt.f32.partialorder %v90_v58, 0.0  ;;  %v122_v2 = vmul.f32 0.2, %v90_v58 }
  0x20   :  { %vm107_vm3 = vcmp.gt.f32.partialorder %v91_v59, 0.0  ;;  %v123_v3 = vmul.f32 0.2, %v91_v59  ;;  %vm108_vm4 = vcmp.gt.f32.partialorder %v92_v60, 0.0  ;;  %v124_v4 = vmul.f32 0.2, %v92_v60 }
  0x21   :  { %v137_v5 = vsel %vm105_vm1, %v89_v57, %v121_v1  ;;  %v138_v6 = vsel %vm106_vm2, %v90_v58, %v122_v2  ;;  %vm109_vm5 = vcmp.gt.f32.partialorder %v93_v61, 0.0  ;;  %v125_v7 = vmul.f32 0.2, %v93_v61 }
  0x22   :  { %154 = vst.msk [vmem:[%s402_s3] sm:$0xff] %vm153_vm0, %v137_v5  ;;  %155 = vst.msk [vmem:[%s402_s3 + $0x8] sm:$0xff] %vm153_vm0, %v138_v6  ;;  %v139_v8 = vsel %vm107_vm3, %v91_v59, %v123_v3  ;;  %v140_v9 = vsel %vm108_vm4, %v92_v60, %v124_v4  ;;  %vm110_vm6 = vcmp.gt.f32.partialorder %v94_v62, 0.0  ;;  %v126_v10 = vmul.f32 0.2, %v94_v62 }
  0x23   :  { %156 = vst.msk [vmem:[%s402_s3 + $0x10] sm:$0xff] %vm153_vm0, %v139_v8  ;;  %157 = vst.msk [vmem:[%s402_s3 + $0x18] sm:$0xff] %vm153_vm0, %v140_v9  ;;  %v141_v12 = vsel %vm109_vm5, %v93_v61, %v125_v7  ;;  %vm111_vm7 = vcmp.gt.f32.partialorder %v95_v63, 0.0  ;;  %v127_v13 = vmul.f32 0.2, %v95_v63  ;;  %vm112_vm8 = vcmp.gt.f32.partialorder %v96_v0, 0.0 }
  0x24   :  { %158 = vst.msk [vmem:[%s402_s3 + $0x20] sm:$0xff] %vm153_vm0, %v141_v12  ;;  %v142_v14 = vsel %vm110_vm6, %v94_v62, %v126_v10  ;;  %v128_v15 = vmul.f32 0.2, %v96_v0  ;;  %v76_v16 = vmul.f32 %v279_v40, %v51_v39  ;;  %v77_v17 = vmul.f32 %v279_v40, %v52_v41 }
  0x25   :  { %159 = vst.msk [vmem:[%s402_s3 + $0x28] sm:$0xff] %vm153_vm0, %v142_v14  ;;  %v143_v18 = vsel %vm111_vm7, %v95_v63, %v127_v13  ;;  %v78_v19 = vmul.f32 %v279_v40, %v53_v42  ;;  %v79_v20 = vmul.f32 %v279_v40, %v54_v43  ;;  %v80_v21 = vmul.f32 %v279_v40, %v55_v45 }
  0x26   :  { %160 = vst.msk [vmem:[%s402_s3 + $0x30] sm:$0xff] %vm153_vm0, %v143_v18  ;;  %v144_v22 = vsel %vm112_vm8, %v96_v0, %v128_v15  ;;  %v97_v23 = vadd.f32 %v290_v44, %v76_v16  ;;  %v98_v24 = vadd.f32 %v290_v44, %v77_v17  ;;  %v81_v25 = vmul.f32 %v279_v40, %v56_v46 }
  0x27   :  { %161 = vst.msk [vmem:[%s402_s3 + $0x38] sm:$0xff] %vm153_vm0, %v144_v22  ;;  %v99_v26 = vadd.f32 %v290_v44, %v78_v19  ;;  %v100_v27 = vadd.f32 %v290_v44, %v79_v20  ;;  %v101_v28 = vadd.f32 %v290_v44, %v80_v21  ;;  %v82_v29 = vmul.f32 %v279_v40, %v57_v47 }
  0x28   :  { %vm113_vm9 = vcmp.gt.f32.partialorder %v97_v23, 0.0  ;;  %v129_v30 = vmul.f32 0.2, %v97_v23  ;;  %vm114_vm10 = vcmp.gt.f32.partialorder %v98_v24, 0.0  ;;  %v130_v31 = vmul.f32 0.2, %v98_v24 }
  0x29   :  { %vm115_vm11 = vcmp.gt.f32.partialorder %v99_v26, 0.0  ;;  %v131_v32 = vmul.f32 0.2, %v99_v26  ;;  %vm116_vm12 = vcmp.gt.f32.partialorder %v100_v27, 0.0  ;;  %v132_v33 = vmul.f32 0.2, %v100_v27 }
  0x2a   :  { %v145_v34 = vsel %vm113_vm9, %v97_v23, %v129_v30  ;;  %v146_v36 = vsel %vm114_vm10, %v98_v24, %v130_v31  ;;  %vm117_vm13 = vcmp.gt.f32.partialorder %v101_v28, 0.0  ;;  %v133_v37 = vmul.f32 0.2, %v101_v28 }
  0x2b   :  { %162 = vst.msk [vmem:[%s402_s3 + $0x40] sm:$0xff] %vm153_vm0, %v145_v34  ;;  %163 = vst.msk [vmem:[%s402_s3 + $0x48] sm:$0xff] %vm153_vm0, %v146_v36  ;;  %v147_v38 = vsel %vm115_vm11, %v99_v26, %v131_v32  ;;  %v148_v39 = vsel %vm116_vm12, %v100_v27, %v132_v33  ;;  %v102_v41 = vadd.f32 %v290_v44, %v81_v25 }
  0x2c   :  { %v103_v42 = vadd.f32 %v290_v44, %v82_v29  ;;  %164 = vst.msk [vmem:[%s402_s3 + $0x50] sm:$0xff] %vm153_vm0, %v147_v38  ;;  %165 = vst.msk [vmem:[%s402_s3 + $0x58] sm:$0xff] %vm153_vm0, %v148_v39  ;;  %v149_v43 = vsel %vm117_vm13, %v101_v28, %v133_v37  ;;  %v83_v45 = vmul.f32 %v279_v40, %v58_v48 }
  0x2d   :  { %166 = vst.msk [vmem:[%s402_s3 + $0x60] sm:$0xff] %vm153_vm0, %v149_v43  ;;  %vm118_vm14 = vcmp.gt.f32.partialorder %v102_v41, 0.0  ;;  %v134_v46 = vmul.f32 0.2, %v102_v41 }
  0x2e   :  { %vm119_vm15 = vcmp.gt.f32.partialorder %v103_v42, 0.0  ;;  %v135_v47 = vmul.f32 0.2, %v103_v42  ;;  %v104_v49 = vadd.f32 %v290_v44, %v83_v45 }
  0x2f   :  { %v150_v50 = vsel %vm118_vm14, %v102_v41, %v134_v46 }
  0x30   :  { %v151_v51 = vsel %vm119_vm15, %v103_v42, %v135_v47  ;;  %167 = vst.msk [vmem:[%s402_s3 + $0x68] sm:$0xff] %vm153_vm0, %v150_v50  ;;  %vm120_vm1 = vcmp.gt.f32.partialorder %v104_v49, 0.0  ;;  %v136_v11 = vmul.f32 0.2, %v104_v49 }
  0x31   :  { %168 = vst.msk [vmem:[%s402_s3 + $0x70] sm:$0xff] %vm153_vm0, %v151_v51 }
  0x32   :  { %v152_v35 = vsel %vm120_vm1, %v104_v49, %v136_v11 }
  0x33   :  { %169 = vst.msk [vmem:[%s402_s3 + $0x78] sm:$0xff] %vm153_vm0, %v152_v35 }

// kernel: _lambda_.28
= control target key start
LH: loop header
LB: loop body
LE: loop exit
PB: predicated region body
PF: predicated region fallthrough
CT: control target
= control target key end

     0   :  { %vm19_vm0 = vcmask 261120   ;;  %v352_v20 = vmov 0.0   ;;  %s460_s1 = inlined_call_operand.vmem [shape: bf16[256,32], index: 1, kind: input, shape index: {}]   ;;  %s461_s0 = inlined_call_operand.vmem [shape: bf16[32,256], index: 0, kind: input, shape index: {}]   ;;  %s462_s2 = inlined_call_operand.vmem [shape: f32[1,32], index: 2, kind: input, shape index: {}]   ;;  %s463_s3 = inlined_call_operand.vmem [shape: f32[32,32], index: 3, kind: output, shape index: {}]  }
   0x1   :  { %v330_v0 = vld [vmem:[%s460_s1 + $0x40] sm:$0xff]   ;;  %v332_v2 = vld [vmem:[%s460_s1 + $0x48] sm:$0xff]   ;;  %v334_v4 = vld [vmem:[%s460_s1 + $0x50] sm:$0xff]   ;;  %20 = vst.msk [vmem:[#allocation2] sm:$0xff] %vm19_vm0, %v352_v20 }
   0x2   :  { %v331_v1 = vld [vmem:[%s460_s1] sm:$0xff]   ;;  %285 = vmatprep.subr.bf16.mxu0 %v330_v0  ;;  %313 = vmatprep.subr.bf16.mxu1 %v330_v0  ;;  %v333_v3 = vld [vmem:[%s460_s1 + $0x8] sm:$0xff]   ;;  %v335_v5 = vld [vmem:[%s460_s1 + $0x10] sm:$0xff]   ;;  %21 = vst.msk [vmem:[#allocation2 + $0x8] sm:$0xff] %vm19_vm0, %v352_v20 }
   0x3   :  { %286 = vmatpush3.bf16.msra.mxu0 %v331_v1  ;;  %321 = vmatpush3.bf16.msra.mxu1 %v331_v1  ;;  %v336_v6 = vld [vmem:[%s460_s1 + $0x58] sm:$0xff]   ;;  %v338_v8 = vld [vmem:[%s460_s1 + $0x60] sm:$0xff]   ;;  %v340_v10 = vld [vmem:[%s460_s1 + $0x68] sm:$0xff]   ;;  %22 = vst.msk [vmem:[#allocation2 + $0x10] sm:$0xff] %vm19_vm0, %v352_v20 }
   0x4   :  { %287 = vmatprep.subr.bf16.mxu0 %v332_v2  ;;  %314 = vmatprep.subr.bf16.mxu1 %v332_v2  ;;  %v337_v7 = vld [vmem:[%s460_s1 + $0x18] sm:$0xff]   ;;  %v339_v9 = vld [vmem:[%s460_s1 + $0x20] sm:$0xff]   ;;  %v341_v13 = vld [vmem:[%s460_s1 + $0x28] sm:$0xff]   ;;  %23 = vst.msk [vmem:[#allocation2 + $0x18] sm:$0xff] %vm19_vm0, %v352_v20 }
   0x5   :  { %v348_v11 = vld [vmem:[%s461_s0 + $0x4] ss:$8 sps:$4 sm:$0xff]   ;;  %v351_v12 = vld [vmem:[%s461_s0 + $0x14] ss:$8 sps:$4 sm:$0xff]   ;;  %v346_v18 = vld [vmem:[%s461_s0] ss:$8 sps:$4 sm:$0xff]  }
   0x6   :  { %v342_v14 = vld [vmem:[%s460_s1 + $0x70] sm:$0xff]   ;;  %212 = vmatprep.mubr.bf16.mxu0 %v348_v11  ;;  %220 = vmatprep.mubr.bf16.mxu1 %v351_v12  ;;  %v344_v16 = vld [vmem:[%s460_s1 + $0x78] sm:$0xff]   ;;  %v284_v41 = vld [vmem:[%s462_s2] ss:$0 sm:$0xff] }
   0x7   :  { %288 = vmatpush3.bf16.msra.mxu0 %v333_v3  ;;  %322 = vmatpush3.bf16.msra.mxu1 %v333_v3  ;;  %v343_v15 = vld [vmem:[%s460_s1 + $0x30] sm:$0xff]   ;;  %v345_v17 = vld [vmem:[%s460_s1 + $0x38] sm:$0xff]  }
   0x8   :  { %289 = vmatprep.subr.bf16.mxu0 %v334_v4  ;;  %315 = vmatprep.subr.bf16.mxu1 %v334_v4  ;;  %v349_v19 = vld [vmem:[%s461_s0 + $0x10] ss:$8 sps:$4 sm:$0xff]   ;;  %v24_v23 = vld [vmem:[#allocation2] sm:$0xff] }
   0x9   :  { %v25_v31 = vld [vmem:[#allocation2 + $0x8] sm:$0xff] }
   0xa   :  { %v26_v25 = vld [vmem:[#allocation2 + $0x10] sm:$0xff] }
   0xb   :  { %290 = vmatpush3.bf16.msra.mxu0 %v335_v5  ;;  %323 = vmatpush3.bf16.msra.mxu1 %v335_v5  ;;  %v27_v33 = vld [vmem:[#allocation2 + $0x18] sm:$0xff] }
   0xc   :  { %291 = vmatprep.subr.bf16.mxu0 %v336_v6  ;;  %316 = vmatprep.subr.bf16.mxu1 %v336_v6 }
   0xf   :  { %292 = vmatpush3.bf16.msra.mxu0 %v337_v7  ;;  %324 = vmatpush3.bf16.msra.mxu1 %v337_v7 }
  0x10   :  { %293 = vmatprep.subr.bf16.mxu0 %v338_v8  ;;  %317 = vmatprep.subr.bf16.mxu1 %v338_v8 }
  0x13   :  { %294 = vmatpush3.bf16.msra.mxu0 %v339_v9  ;;  %325 = vmatpush3.bf16.msra.mxu1 %v339_v9 }
  0x14   :  { %295 = vmatprep.subr.bf16.mxu0 %v340_v10  ;;  %318 = vmatprep.subr.bf16.mxu1 %v340_v10 }
  0x17   :  { %296 = vmatpush3.bf16.msra.mxu0 %v341_v13  ;;  %326 = vmatpush3.bf16.msra.mxu1 %v341_v13 }
  0x18   :  { %297 = vmatprep.subr.bf16.mxu0 %v342_v14  ;;  %319 = vmatprep.subr.bf16.mxu1 %v342_v14 }
  0x1b   :  { %298 = vmatpush3.bf16.msra.mxu0 %v343_v15  ;;  %327 = vmatpush3.bf16.msra.mxu1 %v343_v15 }
  0x1c   :  { %299 = vmatprep.subr.bf16.mxu0 %v344_v16  ;;  %320 = vmatprep.subr.bf16.mxu1 %v344_v16 }
  0x1f   :  { %300 = vmatpush3.bf16.msra.mxu0 %v345_v17  ;;  %328 = vmatpush3.bf16.msra.mxu1 %v345_v17 }
  0x22   :  { %213 = vmatmul.mubr.bf16.vlgmr.msra.gmra.mrb[0].mxu0 %v346_v18  ;;  %221 = vmatmul.mubr.bf16.vlgmr.msra.gmra.mrb[0].mxu1 %v349_v19 }
  0xf5   :  { %v301_v21 = vpop.f32.mrb[0].mxu0  ;;  %v307_v22 = vpop.f32.mrb[0].mxu1 }
  0xf6   :  { %v302_v24 = vpop.f32.mrb[1].mxu0  ;;  %v308_v26 = vpop.f32.mrb[1].mxu1 }
  0xf7   :  { %v303_v27 = vadd.f32 %v302_v24, %v301_v21  ;;  %v309_v28 = vadd.f32 %v308_v26, %v307_v22  ;;  %v304_v29 = vpop.f32.mrb[2].mxu0  ;;  %v310_v30 = vpop.f32.mrb[2].mxu1 }
  0xf8   :  { %v305_v32 = vpop.f32.mrb[3].mxu0  ;;  %v311_v34 = vpop.f32.mrb[3].mxu1 }
  0xf9   :  { %v229_v35 = vadd.f32 %v303_v27, %v24_v23  ;;  %v231_v36 = vadd.f32 %v309_v28, %v26_v25  ;;  %v306_v37 = vadd.f32 %v305_v32, %v304_v29  ;;  %v312_v38 = vadd.f32 %v311_v34, %v310_v30 }
  0xfb   :  { %234 = vst.msk [vmem:[#allocation2] sm:$0xff] %vm19_vm0, %v229_v35  ;;  %236 = vst.msk [vmem:[#allocation2 + $0x10] sm:$0xff] %vm19_vm0, %v231_v36  ;;  %v230_v39 = vadd.f32 %v306_v37, %v25_v31  ;;  %v232_v40 = vadd.f32 %v312_v38, %v27_v33 }
  0xfd   :  { %235 = vst.msk [vmem:[#allocation2 + $0x8] sm:$0xff] %vm19_vm0, %v230_v39  ;;  %237 = vst.msk [vmem:[#allocation2 + $0x18] sm:$0xff] %vm19_vm0, %v232_v40 }
 0x102   :  { %v241_v42 = vld [vmem:[#allocation2] sm:$0xff]  ;;  %v243_v43 = vld [vmem:[#allocation2 + $0x10] sm:$0xff] }
 0x103   :  { %v252_v44 = vadd.f32 %v284_v41, %v241_v42  ;;  %v254_v45 = vadd.f32 %v284_v41, %v243_v43 }
 0x104   :  { %v242_v46 = vld [vmem:[#allocation2 + $0x8] sm:$0xff]  ;;  %v244_v47 = vld [vmem:[#allocation2 + $0x18] sm:$0xff] }
 0x105   :  { %256 = vst.msk [vmem:[%s463_s3] sm:$0xff] %vm19_vm0, %v252_v44  ;;  %258 = vst.msk [vmem:[%s463_s3 + $0x10] sm:$0xff] %vm19_vm0, %v254_v45  ;;  %v253_v48 = vadd.f32 %v284_v41, %v242_v46  ;;  %v255_v49 = vadd.f32 %v284_v41, %v244_v47 }
 0x107   :  { %257 = vst.msk [vmem:[%s463_s3 + $0x8] sm:$0xff] %vm19_vm0, %v253_v48  ;;  %259 = vst.msk [vmem:[%s463_s3 + $0x18] sm:$0xff] %vm19_vm0, %v255_v49 }

// kernel: _lambda_.29
= control target key start
LH: loop header
LB: loop body
LE: loop exit
PB: predicated region body
PF: predicated region fallthrough
CT: control target
= control target key end

     0   :  { %vm12_vm0 = vcmask 254976   ;;  %vm18_vm1 = vcmask 261120   ;;  %v60_v0 = vmov 0.0   ;;  %vm50_vm2 = vcmask 1040384   ;;  %s102_s0 = inlined_call_operand.vmem [shape: f32[32,32], index: 0, kind: input, shape index: {}]   ;;  %s103_s1 = inlined_call_operand.vmem [shape: f32[2,32], index: 1, kind: output, shape index: {}]  }
   0x1   :  { %13 = vst.msk [vmem:[%s103_s1] sm:$0x3] %vm12_vm0, %v60_v0  ;;  %v14_v1 = vld [vmem:[%s102_s0] sm:$0xff]  ;;  %v15_v2 = vld [vmem:[%s102_s0 + $0x8] sm:$0xff]  ;;  %v16_v3 = vld [vmem:[%s102_s0 + $0x10] sm:$0xff] }
   0x2   :  { %v17_v4 = vld [vmem:[%s102_s0 + $0x18] sm:$0xff]  ;;  %v19_v5 = vsel %vm18_vm1, %v14_v1, 0.0  ;;  %v20_v6 = vsel %vm18_vm1, %v15_v2, 0.0  ;;  %v22_v7 = vsel %vm18_vm1, %v16_v3, 0.0  ;;  %v32_v8 = vmul.f32 %v14_v1, %v14_v1 }
   0x3   :  { %v21_v9 = vadd.f32 %v20_v6, %v19_v5  ;;  %v33_v10 = vmul.f32 %v15_v2, %v15_v2  ;;  %v34_v11 = vmul.f32 %v16_v3, %v16_v3  ;;  %v24_v12 = vsel %vm18_vm1, %v17_v4, 0.0 }
   0x4   :  { %v35_v13 = vmul.f32 %v17_v4, %v17_v4  ;;  %v36_v14 = vsel %vm18_vm1, %v32_v8, 0.0 }
   0x5   :  { %v23_v15 = vadd.f32 %v22_v7, %v21_v9  ;;  %v37_v16 = vsel %vm18_vm1, %v33_v10, 0.0  ;;  %v39_v17 = vsel %vm18_vm1, %v34_v11, 0.0 }
   0x6   :  { %v38_v18 = vadd.f32 %v37_v16, %v36_v14  ;;  %v41_v20 = vsel %vm18_vm1, %v35_v13, 0.0 }
   0x7   :  { %v25_v19 = vadd.f32 %v24_v12, %v23_v15 }
   0x8   :  { %v40_v21 = vadd.f32 %v39_v17, %v38_v18  ;;  %v49_v35 = vld [vmem:[%s103_s1] sm:$0x3] }
   0x9   :  { %v26_v22 = vrot.slane %v25_v19, 4 }
   0xa   :  { %v42_v23 = vadd.f32 %v41_v20, %v40_v21 }
   0xb   :  { %v27_v24 = vadd.f32 %v26_v22, %v25_v19 }
   0xc   :  { %v43_v25 = vrot.slane %v42_v23, 4 }
   0xd   :  { %v28_v26 = vrot.slane %v27_v24, 2 }
   0xe   :  { %v44_v27 = vadd.f32 %v43_v25, %v42_v23 }
   0xf   :  { %v29_v28 = vadd.f32 %v28_v26, %v27_v24 }
  0x10   :  { %v45_v29 = vrot.slane %v44_v27, 2 }
  0x11   :  { %v30_v30 = vrot.slane %v29_v28, 1 }
  0x12   :  { %v46_v31 = vadd.f32 %v45_v29, %v44_v27 }
  0x13   :  { %v31_v32 = vadd.f32 %v30_v30, %v29_v28 }
  0x14   :  { %v47_v33 = vrot.slane %v46_v31, 1 }
  0x16   :  { %v48_v34 = vadd.f32 %v47_v33, %v46_v31 }
  0x18   :  { %v51_v36 = vsel %vm50_vm2, %v31_v32, %v48_v34 }
  0x19   :  { %v52_v37 = vadd.f32 %v51_v36, %v49_v35 }
  0x1b   :  { %54 = vst.msk [vmem:[%s103_s1] sm:$0x3] %vm12_vm0, %v52_v37 }

// kernel: _lambda_.30
= control target key start
LH: loop header
LB: loop body
LE: loop exit
PB: predicated region body
PF: predicated region fallthrough
CT: control target
= control target key end

     0   :  { %v27_v4 = vlaneseq  ;;  %vm69_vm0 = vcmask 261120   ;;  %s138_s1 = inlined_call_operand.vmem [shape: f32[2,32], index: 1, kind: input, shape index: {}]   ;;  %s139_s2 = inlined_call_operand.vmem [shape: f32[2,32], index: 2, kind: input, shape index: {}]   ;;  %s140_s0 = inlined_call_operand.vmem [shape: f32[32,32], index: 0, kind: input, shape index: {}]   ;;  %s141_s3 = inlined_call_operand.vmem [shape: f32[32,32], index: 3, kind: output, shape index: {}]  }
   0x1   :  { %v14_v0 = vld [vmem:[%s138_s1] sm:$0x3]  ;;  %v24_v13 = vld [vmem:[%s140_s0 + $0x8] sm:$0xff]  ;;  %v25_v14 = vld [vmem:[%s140_s0 + $0x10] sm:$0xff] }
   0x2   :  { %v15_v1 = vmul.f32 0.03125, %v14_v0  ;;  %v28_v7 = vshrl.u32 %v27_v4, 7  ;;  %v35_v9 = vld [vmem:[%s139_s2] sm:$0x1]  ;;  %v26_v15 = vld [vmem:[%s140_s0 + $0x18] sm:$0xff] }
   0x3   :  { %v23_v11 = vld [vmem:[%s140_s0] sm:$0xff]  ;;  %v37_v12 = vrot.slane %v35_v9, 7 }
   0x4   :  { %v16_v2 = vmul.f32 %v15_v1, %v15_v1  ;;  %v29_v8 = vsub.s32 0, %v28_v7  ;;  %v42_v16 = vsub.s32 1, %v28_v7  ;;  %v78_v24 = vld [vmem:[%s139_s2 + $0x1] ss:$0 sm:$0xff] }
   0x6   :  { %v18_v3 = vrot.slane %v16_v2, 7  ;;  %v30_v10 = vrot.slane %v15_v1, %v29_v8 }
   0x8   :  { %v20_v5 = vsub.f32 %v15_v1, %v18_v3  ;;  %v31_v18 = vsub.f32 %v23_v11, %v30_v10  ;;  %v32_v20 = vsub.f32 %v24_v13, %v30_v10  ;;  %v33_v21 = vsub.f32 %v25_v14, %v30_v10 }
   0x9   :  { %v34_v22 = vsub.f32 %v26_v15, %v30_v10 }
   0xa   :  { %v21_v6 = vadd.f32 1e-05, %v20_v5 }
   0xc   :  { %79 = vrsqrt.f32 %v21_v6 }
  0x16   :  { %v80_v17 = vpop.eup %79 }
  0x17   :  { %v39_v19 = vmul.f32 %v80_v17, %v37_v12 }
  0x19   :  { %v43_v23 = vrot.slane %v39_v19, %v42_v16 }
  0x1b   :  { %v44_v25 = vmul.f32 %v43_v23, %v31_v18  ;;  %v45_v26 = vmul.f32 %v43_v23, %v32_v20  ;;  %v46_v27 = vmul.f32 %v43_v23, %v33_v21  ;;  %v47_v28 = vmul.f32 %v43_v23, %v34_v22 }
  0x1d   :  { %v53_v29 = vadd.f32 %v78_v24, %v44_v25  ;;  %v54_v30 = vadd.f32 %v78_v24, %v45_v26  ;;  %v55_v31 = vadd.f32 %v78_v24, %v46_v27  ;;  %v56_v32 = vadd.f32 %v78_v24, %v47_v28 }
  0x1f   :  { %vm57_vm1 = vcmp.gt.f32.partialorder %v53_v29, 0.0  ;;  %v61_v33 = vmul.f32 0.2, %v53_v29  ;;  %vm58_vm2 = vcmp.gt.f32.partialorder %v54_v30, 0.0  ;;  %v62_v34 = vmul.f32 0.2, %v54_v30 }
  0x20   :  { %vm59_vm3 = vcmp.gt.f32.partialorder %v55_v31, 0.0  ;;  %v63_v35 = vmul.f32 0.2, %v55_v31  ;;  %vm60_vm4 = vcmp.gt.f32.partialorder %v56_v32, 0.0  ;;  %v64_v36 = vmul.f32 0.2, %v56_v32 }
  0x21   :  { %v65_v37 = vsel %vm57_vm1, %v53_v29, %v61_v33  ;;  %v66_v38 = vsel %vm58_vm2, %v54_v30, %v62_v34 }
  0x22   :  { %70 = vst.msk [vmem:[%s141_s3] sm:$0xff] %vm69_vm0, %v65_v37  ;;  %71 = vst.msk [vmem:[%s141_s3 + $0x8] sm:$0xff] %vm69_vm0, %v66_v38  ;;  %v67_v39 = vsel %vm59_vm3, %v55_v31, %v63_v35  ;;  %v68_v40 = vsel %vm60_vm4, %v56_v32, %v64_v36 }
  0x23   :  { %72 = vst.msk [vmem:[%s141_s3 + $0x10] sm:$0xff] %vm69_vm0, %v67_v39  ;;  %73 = vst.msk [vmem:[%s141_s3 + $0x18] sm:$0xff] %vm69_vm0, %v68_v40 }

// kernel: _lambda_.32
= control target key start
LH: loop header
LB: loop body
LE: loop exit
PB: predicated region body
PF: predicated region fallthrough
CT: control target
= control target key end

     0   :  { %vm12_vm0 = vcmask 517120   ;;  %vm15_vm1 = vcmask 523264   ;;  %v42_v0 = vmov 0.0   ;;  %vm32_vm2 = vcmask 1040384   ;;  %s67_s0 = inlined_call_operand.vmem [shape: f32[8,64], index: 0, kind: input, shape index: {}]   ;;  %s68_s1 = inlined_call_operand.vmem [shape: f32[2,64], index: 1, kind: output, shape index: {}]  }
   0x1   :  { %13 = vst.msk [vmem:[%s68_s1] sm:$0x3] %vm12_vm0, %v42_v0  ;;  %v14_v1 = vld [vmem:[%s67_s0] sm:$0xff] }
   0x2   :  { %v16_v2 = vsel %vm15_vm1, %v14_v1, 0.0  ;;  %v23_v3 = vmul.f32 %v14_v1, %v14_v1 }
   0x3   :  { %v17_v4 = vrot.slane %v16_v2, 4 }
   0x4   :  { %v24_v5 = vsel %vm15_vm1, %v23_v3, 0.0 }
   0x5   :  { %v18_v6 = vadd.f32 %v17_v4, %v16_v2  ;;  %v25_v7 = vrot.slane %v24_v5, 4 }
   0x7   :  { %v19_v8 = vrot.slane %v18_v6, 2  ;;  %v26_v9 = vadd.f32 %v25_v7, %v24_v5 }
   0x8   :  { %v31_v17 = vld [vmem:[%s68_s1] sm:$0x3] }
   0x9   :  { %v20_v10 = vadd.f32 %v19_v8, %v18_v6  ;;  %v27_v11 = vrot.slane %v26_v9, 2 }
   0xb   :  { %v21_v12 = vrot.slane %v20_v10, 1  ;;  %v28_v13 = vadd.f32 %v27_v11, %v26_v9 }
   0xd   :  { %v22_v14 = vadd.f32 %v21_v12, %v20_v10  ;;  %v29_v15 = vrot.slane %v28_v13, 1 }
   0xf   :  { %v30_v16 = vadd.f32 %v29_v15, %v28_v13 }
  0x11   :  { %v33_v18 = vsel %vm32_vm2, %v22_v14, %v30_v16 }
  0x12   :  { %v34_v19 = vadd.f32 %v33_v18, %v31_v17 }
  0x14   :  { %36 = vst.msk [vmem:[%s68_s1] sm:$0x3] %vm12_vm0, %v34_v19 }

// kernel: _lambda_.33
= control target key start
LH: loop header
LB: loop body
LE: loop exit
PB: predicated region body
PF: predicated region fallthrough
CT: control target
= control target key end

     0   :  { %v24_v4 = vlaneseq  ;;  %vm48_vm1 = vcmask 523264   ;;  %s92_s1 = inlined_call_operand.vmem [shape: f32[2,64], index: 1, kind: input, shape index: {}]   ;;  %s93_s2 = inlined_call_operand.vmem [shape: f32[2,64], index: 2, kind: input, shape index: {}]   ;;  %s94_s0 = inlined_call_operand.vmem [shape: f32[8,64], index: 0, kind: input, shape index: {}]   ;;  %s95_s3 = inlined_call_operand.vmem [shape: f32[8,64], index: 3, kind: output, shape index: {}]  }
   0x1   :  { %v14_v0 = vld [vmem:[%s92_s1] sm:$0x3] }
   0x2   :  { %v15_v1 = vmul.f32 0.125, %v14_v0  ;;  %v25_v7 = vshrl.u32 %v24_v4, 7  ;;  %v29_v9 = vld [vmem:[%s93_s2] sm:$0x1]  ;;  %v54_v18 = vld [vmem:[%s93_s2 + $0x1] ss:$0 sm:$0xff] }
   0x3   :  { %v31_v11 = vrot.slane %v29_v9, 7  ;;  %v23_v12 = vld [vmem:[%s94_s0] sm:$0xff] }
   0x4   :  { %v16_v2 = vmul.f32 %v15_v1, %v15_v1  ;;  %v26_v8 = vsub.s32 0, %v25_v7  ;;  %v36_v13 = vsub.s32 1, %v25_v7 }
   0x6   :  { %v18_v3 = vrot.slane %v16_v2, 7  ;;  %v27_v10 = vrot.slane %v15_v1, %v26_v8 }
   0x8   :  { %v20_v5 = vsub.f32 %v15_v1, %v18_v3  ;;  %v28_v15 = vsub.f32 %v23_v12, %v27_v10 }
   0xa   :  { %v21_v6 = vadd.f32 1e-05, %v20_v5 }
   0xc   :  { %55 = vrsqrt.f32 %v21_v6 }
  0x16   :  { %v56_v14 = vpop.eup %55 }
  0x17   :  { %v33_v16 = vmul.f32 %v56_v14, %v31_v11 }
  0x19   :  { %v37_v17 = vrot.slane %v33_v16, %v36_v13 }
  0x1b   :  { %v38_v19 = vmul.f32 %v37_v17, %v28_v15 }
  0x1d   :  { %v44_v20 = vadd.f32 %v54_v18, %v38_v19 }
  0x1f   :  { %vm45_vm0 = vcmp.gt.f32.partialorder %v44_v20, 0.0  ;;  %v46_v21 = vmul.f32 0.2, %v44_v20 }
  0x21   :  { %v47_v22 = vsel %vm45_vm0, %v44_v20, %v46_v21 }
  0x22   :  { %49 = vst.msk [vmem:[%s95_s3] sm:$0xff] %vm48_vm1, %v47_v22 }

// kernel: _lambda_.31
= control target key start
LH: loop header
LB: loop body
LE: loop exit
PB: predicated region body
PF: predicated region fallthrough
CT: control target
= control target key end

     0   :  { %vm19_vm0 = vcmask 523264   ;;  %v512_v38 = vmov 0.0   ;;  %s644_s1 = inlined_call_operand.vmem [shape: bf16[512,64], index: 1, kind: input, shape index: {}]   ;;  %s645_s0 = inlined_call_operand.vmem [shape: bf16[8,512], index: 0, kind: input, shape index: {}]   ;;  %s646_s2 = inlined_call_operand.vmem [shape: f32[1,64], index: 2, kind: input, shape index: {}]   ;;  %s647_s3 = inlined_call_operand.vmem [shape: f32[8,64], index: 3, kind: output, shape index: {}]  }
   0x1   :  { %v476_v0 = vld [vmem:[%s644_s1 + $0x40] sm:$0xff]   ;;  %v480_v4 = vld [vmem:[%s644_s1 + $0x48] sm:$0xff]   ;;  %v484_v8 = vld [vmem:[%s644_s1 + $0x50] sm:$0xff]   ;;  %20 = vst.msk [vmem:[#allocation2] sm:$0xff] %vm19_vm0, %v512_v38 }
   0x2   :  { %v477_v1 = vld [vmem:[%s644_s1 + $0xc0] sm:$0xff]   ;;  %431 = vmatprep.subr.bf16.mxu0 %v476_v0  ;;  %v481_v5 = vld [vmem:[%s644_s1 + $0xc8] sm:$0xff]   ;;  %v485_v9 = vld [vmem:[%s644_s1 + $0xd0] sm:$0xff]  }
   0x3   :  { %v478_v2 = vld [vmem:[%s644_s1] sm:$0xff]   ;;  %453 = vmatprep.subr.bf16.mxu1 %v477_v1  ;;  %v482_v6 = vld [vmem:[%s644_s1 + $0x8] sm:$0xff]   ;;  %v486_v10 = vld [vmem:[%s644_s1 + $0x10] sm:$0xff]  }
   0x4   :  { %v479_v3 = vld [vmem:[%s644_s1 + $0x80] sm:$0xff]   ;;  %432 = vmatpush3.bf16.msra.mxu0 %v478_v2  ;;  %v483_v7 = vld [vmem:[%s644_s1 + $0x88] sm:$0xff]   ;;  %v487_v11 = vld [vmem:[%s644_s1 + $0x90] sm:$0xff]  }
   0x5   :  { %454 = vmatpush3.bf16.msra.mxu1 %v479_v3  ;;  %433 = vmatprep.subr.bf16.mxu0 %v480_v4  ;;  %v488_v12 = vld [vmem:[%s644_s1 + $0x58] sm:$0xff]   ;;  %v492_v16 = vld [vmem:[%s644_s1 + $0x60] sm:$0xff]   ;;  %v496_v20 = vld [vmem:[%s644_s1 + $0x68] sm:$0xff]  }
   0x6   :  { %455 = vmatprep.subr.bf16.mxu1 %v481_v5  ;;  %v489_v13 = vld [vmem:[%s644_s1 + $0xd8] sm:$0xff]   ;;  %v493_v17 = vld [vmem:[%s644_s1 + $0xe0] sm:$0xff]   ;;  %v497_v21 = vld [vmem:[%s644_s1 + $0xe8] sm:$0xff]  }
   0x7   :  { %v490_v14 = vld [vmem:[%s644_s1 + $0x18] sm:$0xff]   ;;  %v494_v18 = vld [vmem:[%s644_s1 + $0x20] sm:$0xff]   ;;  %v498_v22 = vld [vmem:[%s644_s1 + $0x28] sm:$0xff]  }
   0x8   :  { %434 = vmatpush3.bf16.msra.mxu0 %v482_v6  ;;  %v491_v15 = vld [vmem:[%s644_s1 + $0x98] sm:$0xff]   ;;  %v495_v19 = vld [vmem:[%s644_s1 + $0xa0] sm:$0xff]   ;;  %v499_v23 = vld [vmem:[%s644_s1 + $0xa8] sm:$0xff]  }
   0x9   :  { %456 = vmatpush3.bf16.msra.mxu1 %v483_v7  ;;  %435 = vmatprep.subr.bf16.mxu0 %v484_v8  ;;  %v500_v24 = vld [vmem:[%s644_s1 + $0x70] sm:$0xff]   ;;  %v504_v28 = vld [vmem:[%s644_s1 + $0x78] sm:$0xff]   ;;  %v22_v32 = vld [vmem:[%s645_s0] sm:$0xff] }
   0xa   :  { %457 = vmatprep.subr.bf16.mxu1 %v485_v9  ;;  %v501_v25 = vld [vmem:[%s644_s1 + $0xf0] sm:$0xff]   ;;  %v505_v29 = vld [vmem:[%s644_s1 + $0xf8] sm:$0xff]   ;;  %v23_v33 = vld [vmem:[%s645_s0 + $0x8] sm:$0xff]  ;;  %v394_v34 = vcombine.low %v22_v32, %v22_v32  ;;  %v395_v35 = vcombine.high %v22_v32, %v22_v32 }
   0xb   :  { %v502_v26 = vld [vmem:[%s644_s1 + $0x30] sm:$0xff]   ;;  %v506_v30 = vld [vmem:[%s644_s1 + $0x38] sm:$0xff]   ;;  %v396_v36 = vcombine.low %v23_v33, %v23_v33  ;;  %v397_v37 = vcombine.high %v23_v33, %v23_v33  ;;  %v21_v47 = vld [vmem:[#allocation2] sm:$0xff] }
   0xc   :  { %436 = vmatpush3.bf16.msra.mxu0 %v486_v10  ;;  %v503_v27 = vld [vmem:[%s644_s1 + $0xb0] sm:$0xff]   ;;  %v507_v31 = vld [vmem:[%s644_s1 + $0xb8] sm:$0xff]   ;;  %326 = vmatprep.mubr.bf16.mxu0 %v395_v35  ;;  %v430_v52 = vld [vmem:[%s646_s2] ss:$0 sm:$0xff] }
   0xd   :  { %458 = vmatpush3.bf16.msra.mxu1 %v487_v11  ;;  %437 = vmatprep.subr.bf16.mxu0 %v488_v12 }
   0xe   :  { %459 = vmatprep.subr.bf16.mxu1 %v489_v13  ;;  %366 = vmatprep.mubr.bf16.mxu1 %v397_v37 }
  0x10   :  { %438 = vmatpush3.bf16.msra.mxu0 %v490_v14 }
  0x11   :  { %460 = vmatpush3.bf16.msra.mxu1 %v491_v15  ;;  %439 = vmatprep.subr.bf16.mxu0 %v492_v16 }
  0x12   :  { %461 = vmatprep.subr.bf16.mxu1 %v493_v17 }
  0x14   :  { %440 = vmatpush3.bf16.msra.mxu0 %v494_v18 }
  0x15   :  { %462 = vmatpush3.bf16.msra.mxu1 %v495_v19  ;;  %441 = vmatprep.subr.bf16.mxu0 %v496_v20 }
  0x16   :  { %463 = vmatprep.subr.bf16.mxu1 %v497_v21 }
  0x18   :  { %442 = vmatpush3.bf16.msra.mxu0 %v498_v22 }
  0x19   :  { %464 = vmatpush3.bf16.msra.mxu1 %v499_v23  ;;  %443 = vmatprep.subr.bf16.mxu0 %v500_v24 }
  0x1a   :  { %465 = vmatprep.subr.bf16.mxu1 %v501_v25 }
  0x1c   :  { %444 = vmatpush3.bf16.msra.mxu0 %v502_v26 }
  0x1d   :  { %466 = vmatpush3.bf16.msra.mxu1 %v503_v27  ;;  %445 = vmatprep.subr.bf16.mxu0 %v504_v28 }
  0x1e   :  { %467 = vmatprep.subr.bf16.mxu1 %v505_v29 }
  0x20   :  { %446 = vmatpush3.bf16.msra.mxu0 %v506_v30 }
  0x21   :  { %468 = vmatpush3.bf16.msra.mxu1 %v507_v31 }
  0x23   :  { %327 = vmatmul.mubr.bf16.vlgmr.msra.gmra.mrb[0].mxu0 %v394_v34 }
  0x24   :  { %367 = vmatmul.mubr.bf16.vlgmr.msra.gmra.mrb[0].mxu1 %v396_v36 }
  0xf6   :  { %v447_v39 = vpop.f32.mrb[0].mxu0 }
  0xf7   :  { %v469_v40 = vpop.f32.mrb[0].mxu1  ;;  %v448_v41 = vpop.f32.mrb[1].mxu0 }
  0xf8   :  { %v470_v42 = vpop.f32.mrb[1].mxu1  ;;  %v449_v43 = vadd.f32 %v448_v41, %v447_v39  ;;  %v450_v45 = vpop.f32.mrb[2].mxu0 }
  0xf9   :  { %v471_v44 = vadd.f32 %v470_v42, %v469_v40  ;;  %v472_v46 = vpop.f32.mrb[2].mxu1  ;;  %v451_v48 = vpop.f32.mrb[3].mxu0 }
  0xfa   :  { %v473_v49 = vpop.f32.mrb[3].mxu1 }
  0xfb   :  { %v369_v50 = vadd.f32 %v471_v44, %v449_v43 }
  0xfd   :  { %v374_v51 = vadd.f32 %v369_v50, %v21_v47 }
  0xff   :  { %376 = vst.msk [vmem:[#allocation2] sm:$0xff] %vm19_vm0, %v374_v51 }
 0x106   :  { %v380_v53 = vld [vmem:[#allocation2] sm:$0xff] }
 0x107   :  { %v388_v54 = vadd.f32 %v430_v52, %v380_v53 }
 0x109   :  { %389 = vst.msk [vmem:[%s647_s3] sm:$0xff] %vm19_vm0, %v388_v54 }

// kernel: _lambda_.37
= control target key start
LH: loop header
LB: loop body
LE: loop exit
PB: predicated region body
PF: predicated region fallthrough
CT: control target
= control target key end

     0   :  { %v24_v4 = vlaneseq  ;;  %vm46_vm0 = vcmask 523264   ;;  %s90_s1 = inlined_call_operand.vmem [shape: f32[2,64], index: 1, kind: input, shape index: {}]   ;;  %s91_s2 = inlined_call_operand.vmem [shape: f32[2,64], index: 2, kind: input, shape index: {}]   ;;  %s92_s0 = inlined_call_operand.vmem [shape: f32[8,64], index: 0, kind: input, shape index: {}]   ;;  %s93_s3 = inlined_call_operand.vmem [shape: f32[8,64], index: 3, kind: output, shape index: {}]  }
   0x1   :  { %v14_v0 = vld [vmem:[%s90_s1] sm:$0x3] }
   0x2   :  { %v15_v1 = vmul.f32 0.125, %v14_v0  ;;  %v25_v7 = vshrl.u32 %v24_v4, 7  ;;  %v29_v9 = vld [vmem:[%s91_s2] sm:$0x1]  ;;  %v52_v18 = vld [vmem:[%s91_s2 + $0x1] ss:$0 sm:$0xff] }
   0x3   :  { %v31_v11 = vrot.slane %v29_v9, 7  ;;  %v23_v12 = vld [vmem:[%s92_s0] sm:$0xff] }
   0x4   :  { %v16_v2 = vmul.f32 %v15_v1, %v15_v1  ;;  %v26_v8 = vsub.s32 0, %v25_v7  ;;  %v36_v13 = vsub.s32 1, %v25_v7 }
   0x6   :  { %v18_v3 = vrot.slane %v16_v2, 7  ;;  %v27_v10 = vrot.slane %v15_v1, %v26_v8 }
   0x8   :  { %v20_v5 = vsub.f32 %v15_v1, %v18_v3  ;;  %v28_v15 = vsub.f32 %v23_v12, %v27_v10 }
   0xa   :  { %v21_v6 = vadd.f32 1e-05, %v20_v5 }
   0xc   :  { %53 = vrsqrt.f32 %v21_v6 }
  0x16   :  { %v54_v14 = vpop.eup %53 }
  0x17   :  { %v33_v16 = vmul.f32 %v54_v14, %v31_v11 }
  0x19   :  { %v37_v17 = vrot.slane %v33_v16, %v36_v13 }
  0x1b   :  { %v38_v19 = vmul.f32 %v37_v17, %v28_v15 }
  0x1d   :  { %v44_v20 = vadd.f32 %v52_v18, %v38_v19 }
  0x1f   :  { %v45_v21 = vmax.f32 %v44_v20, 0.0 }
  0x21   :  { %47 = vst.msk [vmem:[%s93_s3] sm:$0xff] %vm46_vm0, %v45_v21 }

// kernel: _lambda_.34
= control target key start
LH: loop header
LB: loop body
LE: loop exit
PB: predicated region body
PF: predicated region fallthrough
CT: control target
= control target key end

     0   :  { %s876_s12 = smov 0   ;;  %s878_s13 = smov 0   ;;  %s963_s0 = inlined_call_operand.vmem [shape: bf16[2,1024], index: 0, kind: input, shape index: {}]   ;;  %s964_s1 = inlined_call_operand.vmem [shape: bf16[1024,64], index: 1, kind: input, shape index: {}]   ;;  %s965_s2 = inlined_call_operand.vmem [shape: f32[1,64], index: 2, kind: input, shape index: {}]   ;;  %s966_s3 = inlined_call_operand.vmem [shape: f32[2,64], index: 3, kind: output, shape index: {}]  }
   0x1   :  { %s880_s14 = smov 0  }
   0x2 LB: > { %s22_s15 = sadd.s32 1, %s848_s13  ;;  %p685_p0 = scmp.ge.s32.totalorder %s852_s14, 1  ;;  %s852_s14 = sphi %s880_s14, %s13_s14   ;;  %s848_s13 = sphi %s878_s13, %s968_s13   ;;  %s844_s12 = sphi %s876_s12, %s967_s12  }
   0x3   : > { %p23_p1 = scmp.ge.s32.totalorder %s22_s15, 2  ;;  %p166_p2 = scmp.lt.s32.totalorder %s852_s14, 3 }
   0x5   : > { %s970_s15 = smov (%p23_p1, %s22_s15), 0  ;;  %p167_p3 = pnand %p685_p0, %p166_p2 }
   0x6   : > { %s686_s16 = sshll.u32 (!%p167_p3), %s844_s12, 2  ;;  %s687_s17 = sshll.u32 (!%p167_p3), %s844_s12, 6 }
   0x7   : > { %170 = sbr.rel (%p167_p3) target bundleno = 290 (0x122), region = 32  ;;  %p200_p4 = scmp.lt.s32.totalorder (!%p167_p3), %s686_s16, 7 }
   0x8   : > { %p207_p5 = scmp.lt.s32.totalorder (!%p167_p3), %s687_s17, 127  ;;  %p689_p6 = scmp.ne.s32.totalorder (!%p167_p3), %s844_s12, 0 }
   0xe   : > { %s972_s16 = smov (!%p200_p4, %s686_s16), 7  ;;  %s974_s17 = smov (!%p207_p5, %s687_s17), 127 }
   0xf   : > { %s204_s20 = scalar_lea.vmem %s963_s0, %s972_s16  ;;  %s688_s21 = sshll.u32 %s974_s17, 2  ;;  %vm221_vm0 = vcmask (!%p689_p6), 517120   ;;  %v854_v0 = vmov (!%p689_p6), 0.0  }
  0x10   : > { %s907_s24 = scalar_lea.vmem %s964_s1, %s688_s21  ;;  %220 = sbr.rel (%p689_p6) target bundleno = 23 (0x17), region = 36  ;;  %222 = vst.msk [vmem:[#allocation2] sm:$0x3] (!%p689_p6), %vm221_vm0, %v854_v0 }
  0x17 PF: > { %v798_v1 = vld [vmem:[%s907_s24 + $0x40] sm:$0xff]   ;;  %v802_v5 = vld [vmem:[%s907_s24 + $0x48] sm:$0xff]   ;;  %v806_v9 = vld [vmem:[%s907_s24 + $0x50] sm:$0xff]   ;;  %v301_v31 = vlaneseq  ;;  %v855_v35 = vmov 1966171168   ;;  %vm591_vm1 = vcmask 517120  }
  0x18   : > { %v799_v2 = vld [vmem:[%s907_s24 + $0xc0] sm:$0xff]   ;;  %728 = vmatprep.subr.bf16.mxu0 %v798_v1  ;;  %v803_v6 = vld [vmem:[%s907_s24 + $0xc8] sm:$0xff]   ;;  %v807_v10 = vld [vmem:[%s907_s24 + $0xd0] sm:$0xff]   ;;  %v299_v36 = vunpack.c.l.s4 %v855_v35  ;;  %p723_p7 = scmp.ne.s32.totalorder %s844_s12, 1 }
  0x19   : > { %v800_v3 = vld [vmem:[%s907_s24] sm:$0xff]   ;;  %750 = vmatprep.subr.bf16.mxu1 %v799_v2  ;;  %v804_v7 = vld [vmem:[%s907_s24 + $0x8] sm:$0xff]   ;;  %v808_v11 = vld [vmem:[%s907_s24 + $0x10] sm:$0xff]   ;;  %v302_v37 = vshrl.u32 %v301_v31, 7 }
  0x1a   : > { %v801_v4 = vld [vmem:[%s907_s24 + $0x80] sm:$0xff]   ;;  %729 = vmatpush3.bf16.msra.mxu0 %v800_v3  ;;  %v805_v8 = vld [vmem:[%s907_s24 + $0x88] sm:$0xff]   ;;  %v809_v12 = vld [vmem:[%s907_s24 + $0x90] sm:$0xff]   ;;  %v300_v39 = vunpack.c.0.s8 %v299_v36 }
  0x1b   : > { %751 = vmatpush3.bf16.msra.mxu1 %v801_v4  ;;  %730 = vmatprep.subr.bf16.mxu0 %v802_v5  ;;  %v810_v13 = vld [vmem:[%s907_s24 + $0x58] sm:$0xff]   ;;  %v814_v17 = vld [vmem:[%s907_s24 + $0x60] sm:$0xff]   ;;  %v818_v21 = vld [vmem:[%s907_s24 + $0x68] sm:$0xff]  }
  0x1c   : > { %752 = vmatprep.subr.bf16.mxu1 %v803_v6  ;;  %v811_v14 = vld [vmem:[%s907_s24 + $0xd8] sm:$0xff]   ;;  %v815_v18 = vld [vmem:[%s907_s24 + $0xe0] sm:$0xff]   ;;  %v819_v22 = vld [vmem:[%s907_s24 + $0xe8] sm:$0xff]   ;;  %v303_v40 = vsub.s32 %v300_v39, %v302_v37 }
  0x1d   : > { %v812_v15 = vld [vmem:[%s907_s24 + $0x18] sm:$0xff]   ;;  %v816_v19 = vld [vmem:[%s907_s24 + $0x20] sm:$0xff]   ;;  %v820_v23 = vld [vmem:[%s907_s24 + $0x28] sm:$0xff]  }
  0x1e   : > { %731 = vmatpush3.bf16.msra.mxu0 %v804_v7  ;;  %v813_v16 = vld [vmem:[%s907_s24 + $0x98] sm:$0xff]   ;;  %v817_v20 = vld [vmem:[%s907_s24 + $0xa0] sm:$0xff]   ;;  %v821_v24 = vld [vmem:[%s907_s24 + $0xa8] sm:$0xff]  }
  0x1f   : > { %753 = vmatpush3.bf16.msra.mxu1 %v805_v8  ;;  %732 = vmatprep.subr.bf16.mxu0 %v806_v9  ;;  %v822_v25 = vld [vmem:[%s907_s24 + $0x70] sm:$0xff]   ;;  %v826_v29 = vld [vmem:[%s907_s24 + $0x78] sm:$0xff]   ;;  %v690_v34 = vld.sshfl [vmem:[%s204_s20] sm:$0x33 pattern:$0x75316420] }
  0x20   : > { %754 = vmatprep.subr.bf16.mxu1 %v807_v10  ;;  %v823_v26 = vld [vmem:[%s907_s24 + $0xf0] sm:$0xff]   ;;  %v827_v30 = vld [vmem:[%s907_s24 + $0xf8] sm:$0xff]   ;;  %v297_v38 = vcombine.high %v690_v34, %v690_v34  ;;  %v304_v42 = vrot.slane %v690_v34, %v303_v40  ;;  %v223_v54 = vld [vmem:[#allocation2] sm:$0x3] }
  0x21   : > { %v824_v27 = vld [vmem:[%s907_s24 + $0x30] sm:$0xff]   ;;  %v828_v32 = vld [vmem:[%s907_s24 + $0x38] sm:$0xff]   ;;  %v724_v59 = vld [vmem:[%s965_s2] ss:$0 sm:$0xff] (!%p723_p7) }
  0x22   : > { %733 = vmatpush3.bf16.msra.mxu0 %v808_v11  ;;  %v825_v28 = vld [vmem:[%s907_s24 + $0xb0] sm:$0xff]   ;;  %v829_v33 = vld [vmem:[%s907_s24 + $0xb8] sm:$0xff]   ;;  %v311_v41 = vrot.slane %v297_v38, %v303_v40  ;;  %v312_v44 = vcombine.high %v304_v42, %v304_v42 }
  0x23   : > { %755 = vmatpush3.bf16.msra.mxu1 %v809_v12  ;;  %734 = vmatprep.subr.bf16.mxu0 %v810_v13 }
  0x24   : > { %756 = vmatprep.subr.bf16.mxu1 %v811_v14  ;;  %542 = vmatprep.mubr.bf16.mxu0 %v311_v41  ;;  %v313_v43 = vcombine.high %v311_v41, %v311_v41 }
  0x26   : > { %735 = vmatpush3.bf16.msra.mxu0 %v812_v15  ;;  %582 = vmatprep.mubr.bf16.mxu1 %v313_v43 }
  0x27   : > { %757 = vmatpush3.bf16.msra.mxu1 %v813_v16  ;;  %736 = vmatprep.subr.bf16.mxu0 %v814_v17 }
  0x28   : > { %758 = vmatprep.subr.bf16.mxu1 %v815_v18 }
  0x2a   : > { %737 = vmatpush3.bf16.msra.mxu0 %v816_v19 }
  0x2b   : > { %759 = vmatpush3.bf16.msra.mxu1 %v817_v20  ;;  %738 = vmatprep.subr.bf16.mxu0 %v818_v21 }
  0x2c   : > { %760 = vmatprep.subr.bf16.mxu1 %v819_v22 }
  0x2e   : > { %739 = vmatpush3.bf16.msra.mxu0 %v820_v23 }
  0x2f   : > { %761 = vmatpush3.bf16.msra.mxu1 %v821_v24  ;;  %740 = vmatprep.subr.bf16.mxu0 %v822_v25 }
  0x30   : > { %762 = vmatprep.subr.bf16.mxu1 %v823_v26 }
  0x32   : > { %741 = vmatpush3.bf16.msra.mxu0 %v824_v27 }
  0x33   : > { %763 = vmatpush3.bf16.msra.mxu1 %v825_v28  ;;  %742 = vmatprep.subr.bf16.mxu0 %v826_v29 }
  0x34   : > { %764 = vmatprep.subr.bf16.mxu1 %v827_v30 }
  0x36   : > { %743 = vmatpush3.bf16.msra.mxu0 %v828_v32 }
  0x37   : > { %765 = vmatpush3.bf16.msra.mxu1 %v829_v33 }
  0x39   : > { %543 = vmatmul.mubr.bf16.vlgmr.msra.gmra.mrb[0].mxu0 %v304_v42 }
  0x3a   : > { %583 = vmatmul.mubr.bf16.vlgmr.msra.gmra.mrb[0].mxu1 %v312_v44 }
 0x10c   : > { %v744_v45 = vpop.f32.mrb[0].mxu0 }
 0x10d   : > { %v745_v46 = vpop.f32.mrb[1].mxu0  ;;  %v766_v47 = vpop.f32.mrb[0].mxu1 }
 0x10e   : > { %v746_v48 = vadd.f32 %v745_v46, %v744_v45  ;;  %v747_v49 = vpop.f32.mrb[2].mxu0  ;;  %v767_v50 = vpop.f32.mrb[1].mxu1 }
 0x10f   : > { %v748_v51 = vpop.f32.mrb[3].mxu0  ;;  %v768_v52 = vadd.f32 %v767_v50, %v766_v47  ;;  %v769_v53 = vpop.f32.mrb[2].mxu1  ;;  %596 = sbr.rel (%p723_p7) target bundleno = 290 (0x122), region = 40 }
 0x110   : > { %v770_v55 = vpop.f32.mrb[3].mxu1 }
 0x111   : > { %v585_v56 = vadd.f32 %v768_v52, %v746_v48 }
 0x113   : > { %v590_v57 = vadd.f32 %v585_v56, %v223_v54 }
 0x115   : > { %592 = vst.msk [vmem:[#allocation2] sm:$0x3] %vm591_vm1, %v590_v57 }
 0x11c   : > { %v597_v58 = vld [vmem:[#allocation2] sm:$0x3] }
 0x11d   : > { %v605_v60 = vadd.f32 %v724_v59, %v597_v58 }
 0x11f   : > { %v606_v61 = vmax.f32 %v605_v60, 0.0 }
 0x121   : > { %607 = vst.msk [vmem:[%s966_s3] sm:$0x3] %vm591_vm1, %v606_v61 }
 0x122 PF: > { %s13_s14 = sadd.s32 1, %s852_s14   ;;  %s967_s12 = smov %s848_s13 }
 0x123   : > { %p10_p8 = scmp.ge.s32.totalorder %s13_s14, 4   ;;  %s968_s13 = smov %s970_s15 }
 0x125   :  { %12 = sbr.rel (!%p10_p8) target bundleno = 2 (0x2), region = 73 }

// kernel: _lambda_.35
= control target key start
LH: loop header
LB: loop body
LE: loop exit
PB: predicated region body
PF: predicated region fallthrough
CT: control target
= control target key end

     0   :  { %v859_v30 = vmov 1966171168   ;;  %v99_v32 = vlaneseq  ;;  %vm498_vm0 = vcmask 523264   ;;  %s1126_s1 = inlined_call_operand.vmem [shape: bf16[576,256], index: 1, kind: input, shape index: {}]   ;;  %s1127_s0 = inlined_call_operand.vmem [shape: bf16[2,576], index: 0, kind: input, shape index: {}]   ;;  %s1128_s2 = inlined_call_operand.vmem [shape: f32[1,256], index: 2, kind: input, shape index: {}]   ;;  %s1129_s3 = inlined_call_operand.vmem [shape: f32[2,256], index: 3, kind: output, shape index: {}]  }
   0x1   :  { %v750_v0 = vld [vmem:[%s1126_s1 + $0x104] ss:$8 sps:$4 sm:$0xff]   ;;  %v752_v1 = vld [vmem:[%s1126_s1 + $0x100] ss:$8 sps:$4 sm:$0xff]   ;;  %v753_v2 = vld [vmem:[%s1126_s1 + $0x114] ss:$8 sps:$4 sm:$0xff]   ;;  %v97_v31 = vunpack.c.l.s4 %v859_v30 }
   0x2   :  { %543 = vmatprep.subr.bf16.mxu0 %v750_v0  ;;  %v755_v3 = vld [vmem:[%s1126_s1 + $0x110] ss:$8 sps:$4 sm:$0xff]   ;;  %v756_v4 = vld [vmem:[%s1126_s1 + $0x124] ss:$8 sps:$4 sm:$0xff]   ;;  %v764_v6 = vld [vmem:[%s1126_s1] ss:$8 sps:$4 sm:$0xff]  }
   0x3   :  { %544 = vmatpush1.bf16.msra.mxu0 %v752_v1  ;;  %v761_v5 = vld [vmem:[%s1126_s1 + $0x4] ss:$8 sps:$4 sm:$0xff]   ;;  %v758_v7 = vld [vmem:[%s1126_s1 + $0x120] ss:$8 sps:$4 sm:$0xff]   ;;  %v759_v8 = vld [vmem:[%s1126_s1 + $0x134] ss:$8 sps:$4 sm:$0xff]   ;;  %v98_v36 = vunpack.c.0.s8 %v97_v31 }
   0x4   :  { %545 = vmatprep.subr.bf16.mxu0 %v753_v2  ;;  %502 = vmatprep.subr.bf16.mxu1 %v761_v5  ;;  %v767_v9 = vld [vmem:[%s1126_s1 + $0x14] ss:$8 sps:$4 sm:$0xff]   ;;  %v770_v10 = vld [vmem:[%s1126_s1 + $0x10] ss:$8 sps:$4 sm:$0xff]   ;;  %v765_v12 = vld [vmem:[%s1126_s1 + $0x144] ss:$8 sps:$4 sm:$0xff]  }
   0x5   :  { %503 = vmatpush1.bf16.msra.mxu1 %v764_v6  ;;  %v763_v11 = vld [vmem:[%s1126_s1 + $0x130] ss:$8 sps:$4 sm:$0xff]   ;;  %v773_v13 = vld [vmem:[%s1126_s1 + $0x24] ss:$8 sps:$4 sm:$0xff]   ;;  %v776_v14 = vld [vmem:[%s1126_s1 + $0x20] ss:$8 sps:$4 sm:$0xff]  }
   0x6   :  { %504 = vmatprep.subr.bf16.mxu1 %v767_v9  ;;  %v779_v15 = vld [vmem:[%s1126_s1 + $0x34] ss:$8 sps:$4 sm:$0xff]   ;;  %v769_v16 = vld [vmem:[%s1126_s1 + $0x140] ss:$8 sps:$4 sm:$0xff]   ;;  %v782_v18 = vld [vmem:[%s1126_s1 + $0x30] ss:$8 sps:$4 sm:$0xff]  }
   0x7   :  { %546 = vmatpush1.bf16.msra.mxu0 %v755_v3  ;;  %v771_v17 = vld [vmem:[%s1126_s1 + $0x154] ss:$8 sps:$4 sm:$0xff]   ;;  %v785_v19 = vld [vmem:[%s1126_s1 + $0x44] ss:$8 sps:$4 sm:$0xff]   ;;  %v775_v20 = vld [vmem:[%s1126_s1 + $0x150] ss:$8 sps:$4 sm:$0xff]  }
   0x8   :  { %547 = vmatprep.subr.bf16.mxu0 %v756_v4  ;;  %v777_v21 = vld [vmem:[%s1126_s1 + $0x164] ss:$8 sps:$4 sm:$0xff]   ;;  %v788_v22 = vld [vmem:[%s1126_s1 + $0x40] ss:$8 sps:$4 sm:$0xff]   ;;  %v791_v23 = vld [vmem:[%s1126_s1 + $0x54] ss:$8 sps:$4 sm:$0xff]  }
   0x9   :  { %505 = vmatpush1.bf16.msra.mxu1 %v770_v10  ;;  %v781_v24 = vld [vmem:[%s1126_s1 + $0x160] ss:$8 sps:$4 sm:$0xff]   ;;  %v783_v25 = vld [vmem:[%s1126_s1 + $0x174] ss:$8 sps:$4 sm:$0xff]   ;;  %v794_v26 = vld [vmem:[%s1126_s1 + $0x50] ss:$8 sps:$4 sm:$0xff]  }
   0xa   :  { %506 = vmatprep.subr.bf16.mxu1 %v773_v13  ;;  %v797_v27 = vld [vmem:[%s1126_s1 + $0x64] ss:$8 sps:$4 sm:$0xff]   ;;  %v787_v28 = vld [vmem:[%s1126_s1 + $0x170] ss:$8 sps:$4 sm:$0xff]   ;;  %v800_v33 = vld [vmem:[%s1126_s1 + $0x60] ss:$8 sps:$4 sm:$0xff]  }
   0xb   :  { %548 = vmatpush1.bf16.msra.mxu0 %v758_v7  ;;  %v789_v29 = vld [vmem:[%s1126_s1 + $0x184] ss:$8 sps:$4 sm:$0xff]   ;;  %v803_v34 = vld [vmem:[%s1126_s1 + $0x74] ss:$8 sps:$4 sm:$0xff]   ;;  %v793_v35 = vld [vmem:[%s1126_s1 + $0x180] ss:$8 sps:$4 sm:$0xff]  }
   0xc   :  { %549 = vmatprep.subr.bf16.mxu0 %v759_v8  ;;  %v982_v37 = vshrl.u32 %v99_v32, 7  ;;  %v795_v38 = vld [vmem:[%s1126_s1 + $0x194] ss:$8 sps:$4 sm:$0xff]   ;;  %v806_v39 = vld [vmem:[%s1126_s1 + $0x70] ss:$8 sps:$4 sm:$0xff]  }
   0xd   :  { %507 = vmatpush1.bf16.msra.mxu1 %v776_v14  ;;  %v809_v40 = vld [vmem:[%s1126_s1 + $0x84] ss:$8 sps:$4 sm:$0xff]   ;;  %v799_v41 = vld [vmem:[%s1126_s1 + $0x190] ss:$8 sps:$4 sm:$0xff]   ;;  %v812_v44 = vld [vmem:[%s1126_s1 + $0x80] ss:$8 sps:$4 sm:$0xff]  }
   0xe   :  { %508 = vmatprep.subr.bf16.mxu1 %v779_v15  ;;  %v801_v42 = vld [vmem:[%s1126_s1 + $0x1a4] ss:$8 sps:$4 sm:$0xff]   ;;  %v1000_v43 = vsub.s32 %v98_v36, %v982_v37  ;;  %v815_v45 = vld [vmem:[%s1126_s1 + $0x94] ss:$8 sps:$4 sm:$0xff]   ;;  %v805_v46 = vld [vmem:[%s1126_s1 + $0x1a0] ss:$8 sps:$4 sm:$0xff]  }
   0xf   :  { %550 = vmatpush1.bf16.msra.mxu0 %v763_v11  ;;  %v1014_v47 = vld [vmem:[%s1127_s0] sm:$0x1f]  ;;  %v807_v48 = vld [vmem:[%s1126_s1 + $0x1b4] ss:$8 sps:$4 sm:$0xff]   ;;  %v818_v50 = vld [vmem:[%s1126_s1 + $0x90] ss:$8 sps:$4 sm:$0xff]  }
  0x10   :  { %551 = vmatprep.subr.bf16.mxu0 %v765_v12  ;;  %v102_v49 = vrot.slane %v1014_v47, %v1000_v43  ;;  %v821_v51 = vld [vmem:[%s1126_s1 + $0xa4] ss:$8 sps:$4 sm:$0xff]   ;;  %v811_v53 = vld [vmem:[%s1126_s1 + $0x1b0] ss:$8 sps:$4 sm:$0xff]   ;;  %v824_v56 = vld [vmem:[%s1126_s1 + $0xa0] ss:$8 sps:$4 sm:$0xff]  }
  0x11   :  { %509 = vmatpush1.bf16.msra.mxu1 %v782_v18  ;;  %v813_v54 = vld [vmem:[%s1126_s1 + $0x1c4] ss:$8 sps:$4 sm:$0xff]   ;;  %v827_v57 = vld [vmem:[%s1126_s1 + $0xb4] ss:$8 sps:$4 sm:$0xff]   ;;  %v817_v59 = vld [vmem:[%s1126_s1 + $0x1c0] ss:$8 sps:$4 sm:$0xff]  }
  0x12   :  { %510 = vmatprep.subr.bf16.mxu1 %v785_v19  ;;  %v110_v52 = vcombine.high %v102_v49, %v102_v49  ;;  %v819_v60 = vld [vmem:[%s1126_s1 + $0x1d4] ss:$8 sps:$4 sm:$0xff]   ;;  %v830_v61 = vld [vmem:[%s1126_s1 + $0xb0] ss:$8 sps:$4 sm:$0xff]   ;;  %v833_v62 = vld [vmem:[%s1126_s1 + $0xc4] ss:$8 sps:$4 sm:$0xff]   ;;  %v117_v7 = vrot.slane %v102_v49, %v1000_v43  ;;  %v95_v19 = vcombine.high %v1014_v47, %v1014_v47 }
  0x13   :  { %552 = vmatpush1.bf16.msra.mxu0 %v769_v16  ;;  %v823_v63 = vld [vmem:[%s1126_s1 + $0x1d0] ss:$8 sps:$4 sm:$0xff]   ;;  %v825_v0 = vld [vmem:[%s1126_s1 + $0x1e4] ss:$8 sps:$4 sm:$0xff]   ;;  %v836_v1 = vld [vmem:[%s1126_s1 + $0xc0] ss:$8 sps:$4 sm:$0xff]  }
  0x14   :  { %553 = vmatprep.subr.bf16.mxu0 %v771_v17  ;;  %v131_v55 = vrot.slane %v110_v52, %v1000_v43  ;;  %v841_v2 = vld [vmem:[%s1126_s1 + $0xd4] ss:$8 sps:$4 sm:$0xff]   ;;  %v829_v3 = vld [vmem:[%s1126_s1 + $0x1e0] ss:$8 sps:$4 sm:$0xff]   ;;  %v843_v5 = vld [vmem:[%s1126_s1 + $0xd0] ss:$8 sps:$4 sm:$0xff]   ;;  %v132_v12 = vcombine.high %v117_v7, %v117_v7 }
  0x15   :  { %511 = vmatpush1.bf16.msra.mxu1 %v788_v22  ;;  %v831_v4 = vld [vmem:[%s1126_s1 + $0x1f4] ss:$8 sps:$4 sm:$0xff]   ;;  %v847_v6 = vld [vmem:[%s1126_s1 + $0xe4] ss:$8 sps:$4 sm:$0xff]   ;;  %v835_v8 = vld [vmem:[%s1126_s1 + $0x1f0] ss:$8 sps:$4 sm:$0xff]   ;;  %v109_v22 = vrot.slane %v95_v19, %v1000_v43 }
  0x16   :  { %512 = vmatprep.subr.bf16.mxu1 %v791_v23  ;;  %v133_v58 = vcombine.high %v131_v55, %v131_v55  ;;  %534 = vmatprep.mubr.bf16.mxu1 %v131_v55  ;;  %v840_v9 = vld [vmem:[%s1126_s1 + $0x204] ss:$8 sps:$4 sm:$0xff]   ;;  %v849_v10 = vld [vmem:[%s1126_s1 + $0xe0] ss:$8 sps:$4 sm:$0xff]   ;;  %v853_v11 = vld [vmem:[%s1126_s1 + $0xf4] ss:$8 sps:$4 sm:$0xff]  }
  0x17   :  { %554 = vmatpush1.bf16.msra.mxu0 %v775_v20  ;;  %v838_v13 = vld [vmem:[%s1126_s1 + $0x200] ss:$8 sps:$4 sm:$0xff]   ;;  %v846_v14 = vld [vmem:[%s1126_s1 + $0x214] ss:$8 sps:$4 sm:$0xff]   ;;  %v855_v15 = vld [vmem:[%s1126_s1 + $0xf0] ss:$8 sps:$4 sm:$0xff]  }
  0x18   :  { %555 = vmatprep.subr.bf16.mxu0 %v777_v21  ;;  %575 = vmatprep.mubr.bf16.mxu0 %v133_v58  ;;  %v844_v16 = vld [vmem:[%s1126_s1 + $0x210] ss:$8 sps:$4 sm:$0xff]   ;;  %v860_v17 = vmov 0   ;;  %v852_v18 = vld [vmem:[%s1126_s1 + $0x224] ss:$8 sps:$4 sm:$0xff]  }
  0x19   :  { %513 = vmatpush1.bf16.msra.mxu1 %v794_v26  ;;  %v850_v20 = vld [vmem:[%s1126_s1 + $0x220] ss:$8 sps:$4 sm:$0xff]   ;;  %v858_v21 = vld [vmem:[%s1126_s1 + $0x234] ss:$8 sps:$4 sm:$0xff]   ;;  %v856_v23 = vld [vmem:[%s1126_s1 + $0x230] ss:$8 sps:$4 sm:$0xff]  }
  0x1a   :  { %514 = vmatprep.subr.bf16.mxu1 %v797_v27  ;;  %v862_v30 = vmov 1983009808  }
  0x1b   :  { %556 = vmatpush1.bf16.msra.mxu0 %v781_v24  ;;  %v124_v24 = vrot.slane %v109_v22, %v1000_v43  ;;  %v629_v31 = vunpack.c.l.s4 %v862_v30 }
  0x1c   :  { %557 = vmatprep.subr.bf16.mxu0 %v783_v25  ;;  %v861_v25 = vmov 0.0  }
  0x1d   :  { %515 = vmatpush1.bf16.msra.mxu1 %v800_v33  ;;  %19 = vst [vmem:[#allocation2] sm:$0xf] %v861_v25  ;;  %v630_v32 = vunpack.c.0.s8 %v629_v31 }
  0x1e   :  { %516 = vmatprep.subr.bf16.mxu1 %v803_v34 }
  0x1f   :  { %558 = vmatpush1.bf16.msra.mxu0 %v787_v28 }
  0x20   :  { %559 = vmatprep.subr.bf16.mxu0 %v789_v29 }
  0x21   :  { %517 = vmatpush1.bf16.msra.mxu1 %v806_v39  ;;  %v646_v39 = vsub.s32 0, %v982_v37 }
  0x22   :  { %518 = vmatprep.subr.bf16.mxu1 %v809_v40  ;;  %v650_v40 = vsub.s32 1, %v982_v37 }
  0x23   :  { %560 = vmatpush1.bf16.msra.mxu0 %v793_v35 }
  0x24   :  { %561 = vmatprep.subr.bf16.mxu0 %v795_v38  ;;  %v633_v38 = vsub.s32 %v630_v32, %v982_v37 }
  0x25   :  { %519 = vmatpush1.bf16.msra.mxu1 %v812_v44 }
  0x26   :  { %520 = vmatprep.subr.bf16.mxu1 %v815_v45  ;;  %v20_v45 = vld [vmem:[#allocation2] sm:$0xf] }
  0x27   :  { %562 = vmatpush1.bf16.msra.mxu0 %v799_v41 }
  0x28   :  { %563 = vmatprep.subr.bf16.mxu0 %v801_v42  ;;  %v642_v42 = vld [vmem:[%s1128_s2] sm:$0x3] }
  0x29   :  { %521 = vmatpush1.bf16.msra.mxu1 %v818_v50  ;;  %v647_v47 = vrot.slane %v642_v42, %v646_v39 }
  0x2a   :  { %522 = vmatprep.subr.bf16.mxu1 %v821_v51 }
  0x2b   :  { %564 = vmatpush1.bf16.msra.mxu0 %v805_v46 }
  0x2c   :  { %565 = vmatprep.subr.bf16.mxu0 %v807_v48  ;;  %v651_v48 = vrot.slane %v642_v42, %v650_v40 }
  0x2d   :  { %523 = vmatpush1.bf16.msra.mxu1 %v824_v56 }
  0x2e   :  { %524 = vmatprep.subr.bf16.mxu1 %v827_v57  ;;  %v652_v50 = vcombine.low %v647_v47, %v651_v48 }
  0x2f   :  { %566 = vmatpush1.bf16.msra.mxu0 %v811_v53 }
  0x30   :  { %567 = vmatprep.subr.bf16.mxu0 %v813_v54  ;;  %v659_v51 = vrot.slane %v652_v50, %v633_v38 }
  0x31   :  { %525 = vmatpush1.bf16.msra.mxu1 %v830_v61 }
  0x32   :  { %526 = vmatprep.subr.bf16.mxu1 %v833_v62 }
  0x33   :  { %568 = vmatpush1.bf16.msra.mxu0 %v817_v59 }
  0x34   :  { %569 = vmatprep.subr.bf16.mxu0 %v819_v60 }
  0x35   :  { %527 = vmatpush1.bf16.msra.mxu1 %v836_v1 }
  0x36   :  { %528 = vmatprep.subr.bf16.mxu1 %v841_v2 }
  0x37   :  { %570 = vmatpush1.bf16.msra.mxu0 %v823_v63 }
  0x38   :  { %571 = vmatprep.subr.bf16.mxu0 %v825_v0 }
  0x39   :  { %529 = vmatpush1.bf16.msra.mxu1 %v843_v5 }
  0x3a   :  { %530 = vmatprep.subr.bf16.mxu1 %v847_v6 }
  0x3b   :  { %572 = vmatpush1.bf16.msra.mxu0 %v829_v3 }
  0x3c   :  { %573 = vmatprep.subr.bf16.mxu0 %v831_v4 }
  0x3d   :  { %531 = vmatpush1.bf16.msra.mxu1 %v849_v10 }
  0x3e   :  { %532 = vmatprep.subr.bf16.mxu1 %v853_v11 }
  0x3f   :  { %574 = vmatpush1.bf16.msra.mxu0 %v835_v8 }
  0x40   :  { %584 = vmatprep.subr.bf16.mxu0 %v840_v9 }
  0x41   :  { %533 = vmatpush1.bf16.msra.mxu1 %v855_v15 }
  0x42   :  { %576 = vmatmul.mubr.bf16.vlgmr.msra.gmra.mrb[0].mxu0 %v132_v12 }
  0x43   :  { %585 = vmatpush1.bf16.msra.mxu0 %v838_v13  ;;  %616 = vmatprep.mubr.bf16.mxu0 %v860_v17 }
  0x44   :  { %586 = vmatprep.subr.bf16.mxu0 %v846_v14  ;;  %535 = vmatmul.mubr.bf16.vlgmr.msra.gmra.mrb[0].mxu1 %v117_v7 }
  0x47   :  { %587 = vmatpush1.bf16.msra.mxu0 %v844_v16 }
  0x48   :  { %588 = vmatprep.subr.bf16.mxu0 %v852_v18 }
  0x4b   :  { %589 = vmatpush1.bf16.msra.mxu0 %v850_v20 }
  0x4c   :  { %590 = vmatprep.subr.bf16.mxu0 %v858_v21 }
  0x4f   :  { %591 = vmatpush1.bf16.msra.mxu0 %v856_v23 }
  0x52   :  { %739 = vmatmul.mubr.msk.bf16.vlgmr.msra.gmra.mrb[0].mxu0 %vm498_vm0, %v124_v24 }
 0x117   :  { %v536_v26 = vpop.f32.mrb[0].mxu1 }
 0x118   :  { %v538_v27 = vpop.f32.mrb[1].mxu1 }
 0x119   :  { %v540_v28 = vpop.f32.mrb[2].mxu1 }
 0x11a   :  { %v541_v29 = vpop.f32.mrb[3].mxu1 }
 0x125   :  { %v618_v33 = vpop.f32.mrb[0].mxu0 }
 0x126   :  { %v740_v34 = vadd.f32 %v618_v33, %v536_v26  ;;  %v620_v35 = vpop.f32.mrb[1].mxu0 }
 0x127   :  { %v741_v36 = vadd.f32 %v620_v35, %v538_v27  ;;  %v622_v41 = vpop.f32.mrb[2].mxu0 }
 0x128   :  { %v623_v43 = vpop.f32.mrb[3].mxu0 }
 0x129   :  { %v627_v44 = vcombine.low %v740_v34, %v741_v36 }
 0x12b   :  { %v634_v46 = vrot.slane %v627_v44, %v633_v38 }
 0x12d   :  { %v636_v49 = vadd.f32 %v634_v46, %v20_v45 }
 0x12f   :  { %637 = vst [vmem:[#allocation2] sm:$0xf] %v636_v49 }
 0x136   :  { %v641_v52 = vld [vmem:[#allocation2] sm:$0xf] }
 0x137   :  { %v661_v53 = vadd.f32 %v659_v51, %v641_v52 }
 0x139   :  { %662 = vst [vmem:[%s1129_s3] sm:$0xf] %v661_v53 }

// kernel: _lambda_.40
= control target key start
LH: loop header
LB: loop body
LE: loop exit
PB: predicated region body
PF: predicated region fallthrough
CT: control target
= control target key end

     0   :  { %v27_v4 = vlaneseq  ;;  %vm61_vm0 = vcmask 261120   ;;  %s126_s1 = inlined_call_operand.vmem [shape: f32[2,32], index: 1, kind: input, shape index: {}]   ;;  %s127_s2 = inlined_call_operand.vmem [shape: f32[2,32], index: 2, kind: input, shape index: {}]   ;;  %s128_s0 = inlined_call_operand.vmem [shape: f32[32,32], index: 0, kind: input, shape index: {}]   ;;  %s129_s3 = inlined_call_operand.vmem [shape: f32[32,32], index: 3, kind: output, shape index: {}]  }
   0x1   :  { %v14_v0 = vld [vmem:[%s126_s1] sm:$0x3]  ;;  %v24_v13 = vld [vmem:[%s128_s0 + $0x8] sm:$0xff]  ;;  %v25_v14 = vld [vmem:[%s128_s0 + $0x10] sm:$0xff] }
   0x2   :  { %v15_v1 = vmul.f32 0.03125, %v14_v0  ;;  %v28_v7 = vshrl.u32 %v27_v4, 7  ;;  %v35_v9 = vld [vmem:[%s127_s2] sm:$0x1]  ;;  %v26_v15 = vld [vmem:[%s128_s0 + $0x18] sm:$0xff] }
   0x3   :  { %v23_v11 = vld [vmem:[%s128_s0] sm:$0xff]  ;;  %v37_v12 = vrot.slane %v35_v9, 7 }
   0x4   :  { %v16_v2 = vmul.f32 %v15_v1, %v15_v1  ;;  %v29_v8 = vsub.s32 0, %v28_v7  ;;  %v42_v16 = vsub.s32 1, %v28_v7  ;;  %v70_v24 = vld [vmem:[%s127_s2 + $0x1] ss:$0 sm:$0xff] }
   0x6   :  { %v18_v3 = vrot.slane %v16_v2, 7  ;;  %v30_v10 = vrot.slane %v15_v1, %v29_v8 }
   0x8   :  { %v20_v5 = vsub.f32 %v15_v1, %v18_v3  ;;  %v31_v18 = vsub.f32 %v23_v11, %v30_v10  ;;  %v32_v20 = vsub.f32 %v24_v13, %v30_v10  ;;  %v33_v21 = vsub.f32 %v25_v14, %v30_v10 }
   0x9   :  { %v34_v22 = vsub.f32 %v26_v15, %v30_v10 }
   0xa   :  { %v21_v6 = vadd.f32 1e-05, %v20_v5 }
   0xc   :  { %71 = vrsqrt.f32 %v21_v6 }
  0x16   :  { %v72_v17 = vpop.eup %71 }
  0x17   :  { %v39_v19 = vmul.f32 %v72_v17, %v37_v12 }
  0x19   :  { %v43_v23 = vrot.slane %v39_v19, %v42_v16 }
  0x1b   :  { %v44_v25 = vmul.f32 %v43_v23, %v31_v18  ;;  %v45_v26 = vmul.f32 %v43_v23, %v32_v20  ;;  %v46_v27 = vmul.f32 %v43_v23, %v33_v21  ;;  %v47_v28 = vmul.f32 %v43_v23, %v34_v22 }
  0x1d   :  { %v53_v29 = vadd.f32 %v70_v24, %v44_v25  ;;  %v54_v30 = vadd.f32 %v70_v24, %v45_v26  ;;  %v55_v31 = vadd.f32 %v70_v24, %v46_v27  ;;  %v56_v32 = vadd.f32 %v70_v24, %v47_v28 }
  0x1f   :  { %v57_v33 = vmax.f32 %v53_v29, 0.0  ;;  %v58_v34 = vmax.f32 %v54_v30, 0.0  ;;  %v59_v35 = vmax.f32 %v55_v31, 0.0  ;;  %v60_v36 = vmax.f32 %v56_v32, 0.0 }
  0x21   :  { %62 = vst.msk [vmem:[%s129_s3] sm:$0xff] %vm61_vm0, %v57_v33  ;;  %63 = vst.msk [vmem:[%s129_s3 + $0x8] sm:$0xff] %vm61_vm0, %v58_v34 }
  0x22   :  { %64 = vst.msk [vmem:[%s129_s3 + $0x10] sm:$0xff] %vm61_vm0, %v59_v35  ;;  %65 = vst.msk [vmem:[%s129_s3 + $0x18] sm:$0xff] %vm61_vm0, %v60_v36 }

// kernel: _lambda_.38
= control target key start
LH: loop header
LB: loop body
LE: loop exit
PB: predicated region body
PF: predicated region fallthrough
CT: control target
= control target key end

     0   :  { %vm1136_vm0 = vmmov 0   ;;  %s1394_s1 = inlined_call_operand.vmem [shape: bf16[1152,128], index: 1, kind: input, shape index: {}]   ;;  %s1395_s0 = inlined_call_operand.vmem [shape: bf16[8,1152], index: 0, kind: input, shape index: {}]   ;;  %s1396_s2 = inlined_call_operand.vmem [shape: f32[1,128], index: 2, kind: input, shape index: {}]   ;;  %s1397_s3 = inlined_call_operand.vmem [shape: f32[8,128], index: 3, kind: output, shape index: {}]  }
   0x1   :  { %v1054_v0 = vld [vmem:[%s1394_s1 + $0x40] sm:$0xff]   ;;  %v1058_v4 = vld [vmem:[%s1394_s1 + $0x48] sm:$0xff]   ;;  %v1062_v8 = vld [vmem:[%s1394_s1 + $0x50] sm:$0xff]  }
   0x2   :  { %v1055_v1 = vld [vmem:[%s1394_s1 + $0xc0] sm:$0xff]   ;;  %935 = vmatprep.subr.bf16.mxu0 %v1054_v0  ;;  %v1059_v5 = vld [vmem:[%s1394_s1 + $0xc8] sm:$0xff]   ;;  %v1063_v9 = vld [vmem:[%s1394_s1 + $0xd0] sm:$0xff]  }
   0x3   :  { %v1056_v2 = vld [vmem:[%s1394_s1] sm:$0xff]   ;;  %957 = vmatprep.subr.bf16.mxu1 %v1055_v1  ;;  %v1060_v6 = vld [vmem:[%s1394_s1 + $0x8] sm:$0xff]   ;;  %v1064_v10 = vld [vmem:[%s1394_s1 + $0x10] sm:$0xff]  }
   0x4   :  { %v1057_v3 = vld [vmem:[%s1394_s1 + $0x80] sm:$0xff]   ;;  %936 = vmatpush3.bf16.msra.mxu0 %v1056_v2  ;;  %v1061_v7 = vld [vmem:[%s1394_s1 + $0x88] sm:$0xff]   ;;  %v1065_v11 = vld [vmem:[%s1394_s1 + $0x90] sm:$0xff]  }
   0x5   :  { %958 = vmatpush3.bf16.msra.mxu1 %v1057_v3  ;;  %937 = vmatprep.subr.bf16.mxu0 %v1058_v4  ;;  %v1066_v12 = vld [vmem:[%s1394_s1 + $0x58] sm:$0xff]   ;;  %v1070_v16 = vld [vmem:[%s1394_s1 + $0x60] sm:$0xff]   ;;  %v1074_v20 = vld [vmem:[%s1394_s1 + $0x68] sm:$0xff]  }
   0x6   :  { %959 = vmatprep.subr.bf16.mxu1 %v1059_v5  ;;  %v1067_v13 = vld [vmem:[%s1394_s1 + $0xd8] sm:$0xff]   ;;  %v1071_v17 = vld [vmem:[%s1394_s1 + $0xe0] sm:$0xff]   ;;  %v1075_v21 = vld [vmem:[%s1394_s1 + $0xe8] sm:$0xff]  }
   0x7   :  { %v1068_v14 = vld [vmem:[%s1394_s1 + $0x18] sm:$0xff]   ;;  %v1072_v18 = vld [vmem:[%s1394_s1 + $0x20] sm:$0xff]   ;;  %v1076_v22 = vld [vmem:[%s1394_s1 + $0x28] sm:$0xff]  }
   0x8   :  { %938 = vmatpush3.bf16.msra.mxu0 %v1060_v6  ;;  %v1069_v15 = vld [vmem:[%s1394_s1 + $0x98] sm:$0xff]   ;;  %v1073_v19 = vld [vmem:[%s1394_s1 + $0xa0] sm:$0xff]   ;;  %v1077_v23 = vld [vmem:[%s1394_s1 + $0xa8] sm:$0xff]  }
   0x9   :  { %960 = vmatpush3.bf16.msra.mxu1 %v1061_v7  ;;  %939 = vmatprep.subr.bf16.mxu0 %v1062_v8  ;;  %v1078_v24 = vld [vmem:[%s1394_s1 + $0x70] sm:$0xff]   ;;  %v1082_v28 = vld [vmem:[%s1394_s1 + $0x78] sm:$0xff]   ;;  %v21_v32 = vld [vmem:[%s1395_s0] sm:$0xff] }
   0xa   :  { %961 = vmatprep.subr.bf16.mxu1 %v1063_v9  ;;  %v1079_v25 = vld [vmem:[%s1394_s1 + $0xf0] sm:$0xff]   ;;  %v1083_v29 = vld [vmem:[%s1394_s1 + $0xf8] sm:$0xff]   ;;  %v22_v33 = vld [vmem:[%s1395_s0 + $0x8] sm:$0xff]  ;;  %v853_v34 = vcombine.low %v21_v32, %v21_v32  ;;  %v854_v35 = vcombine.high %v21_v32, %v21_v32 }
   0xb   :  { %v1080_v26 = vld [vmem:[%s1394_s1 + $0x30] sm:$0xff]   ;;  %v1084_v30 = vld [vmem:[%s1394_s1 + $0x38] sm:$0xff]   ;;  %v855_v36 = vcombine.low %v22_v33, %v22_v33  ;;  %v856_v37 = vcombine.high %v22_v33, %v22_v33  ;;  %v1090_v38 = vld [vmem:[%s1394_s1 + $0x140] sm:$0xff]  }
   0xc   :  { %940 = vmatpush3.bf16.msra.mxu0 %v1064_v10  ;;  %v1081_v27 = vld [vmem:[%s1394_s1 + $0xb0] sm:$0xff]   ;;  %v1085_v31 = vld [vmem:[%s1394_s1 + $0xb8] sm:$0xff]   ;;  %v1091_v39 = vld [vmem:[%s1394_s1 + $0x100] sm:$0xff]   ;;  %666 = vmatprep.mubr.bf16.mxu0 %v854_v35 }
   0xd   :  { %962 = vmatpush3.bf16.msra.mxu1 %v1065_v11  ;;  %941 = vmatprep.subr.bf16.mxu0 %v1066_v12  ;;  %v1092_v40 = vld [vmem:[%s1394_s1 + $0x1c0] sm:$0xff]   ;;  %v1094_v42 = vld [vmem:[%s1394_s1 + $0x148] sm:$0xff]   ;;  %v1098_v46 = vld [vmem:[%s1394_s1 + $0x150] sm:$0xff]  }
   0xe   :  { %963 = vmatprep.subr.bf16.mxu1 %v1067_v13  ;;  %706 = vmatprep.mubr.bf16.mxu1 %v856_v37  ;;  %v1093_v41 = vld [vmem:[%s1394_s1 + $0x180] sm:$0xff]   ;;  %v1095_v43 = vld [vmem:[%s1394_s1 + $0x108] sm:$0xff]   ;;  %v1099_v47 = vld [vmem:[%s1394_s1 + $0x110] sm:$0xff]   ;;  %v1135_v13 = vmov 0.0  }
   0xf   :  { %v1096_v44 = vld [vmem:[%s1394_s1 + $0x1c8] sm:$0xff]   ;;  %v1100_v48 = vld [vmem:[%s1394_s1 + $0x1d0] sm:$0xff]   ;;  %v1102_v50 = vld [vmem:[%s1394_s1 + $0x158] sm:$0xff]  }
  0x10   :  { %942 = vmatpush3.bf16.msra.mxu0 %v1068_v14  ;;  %v1097_v45 = vld [vmem:[%s1394_s1 + $0x188] sm:$0xff]   ;;  %v1101_v49 = vld [vmem:[%s1394_s1 + $0x190] sm:$0xff]   ;;  %v1103_v51 = vld [vmem:[%s1394_s1 + $0x118] sm:$0xff]  }
  0x11   :  { %964 = vmatpush3.bf16.msra.mxu1 %v1069_v15  ;;  %943 = vmatprep.subr.bf16.mxu0 %v1070_v16  ;;  %v1104_v52 = vld [vmem:[%s1394_s1 + $0x1d8] sm:$0xff]   ;;  %v1106_v54 = vld [vmem:[%s1394_s1 + $0x160] sm:$0xff]   ;;  %v1110_v58 = vld [vmem:[%s1394_s1 + $0x168] sm:$0xff]  }
  0x12   :  { %965 = vmatprep.subr.bf16.mxu1 %v1071_v17  ;;  %v1105_v53 = vld [vmem:[%s1394_s1 + $0x198] sm:$0xff]   ;;  %v1107_v55 = vld [vmem:[%s1394_s1 + $0x120] sm:$0xff]   ;;  %v1111_v59 = vld [vmem:[%s1394_s1 + $0x128] sm:$0xff]  }
  0x13   :  { %v1108_v56 = vld [vmem:[%s1394_s1 + $0x1e0] sm:$0xff]   ;;  %v1112_v60 = vld [vmem:[%s1394_s1 + $0x1e8] sm:$0xff]   ;;  %v1114_v62 = vld [vmem:[%s1394_s1 + $0x170] sm:$0xff]  }
  0x14   :  { %944 = vmatpush3.bf16.msra.mxu0 %v1072_v18  ;;  %v1109_v57 = vld [vmem:[%s1394_s1 + $0x1a0] sm:$0xff]   ;;  %v1113_v61 = vld [vmem:[%s1394_s1 + $0x1a8] sm:$0xff]   ;;  %v1115_v63 = vld [vmem:[%s1394_s1 + $0x130] sm:$0xff]  }
  0x15   :  { %966 = vmatpush3.bf16.msra.mxu1 %v1073_v19  ;;  %945 = vmatprep.subr.bf16.mxu0 %v1074_v20  ;;  %v1116_v0 = vld [vmem:[%s1394_s1 + $0x1f0] sm:$0xff]   ;;  %v1118_v2 = vld [vmem:[%s1394_s1 + $0x178] sm:$0xff]   ;;  %v1126_v12 = vld [vmem:[%s1394_s1 + $0x200] sm:$0xff]  }
  0x16   :  { %967 = vmatprep.subr.bf16.mxu1 %v1075_v21  ;;  %v1117_v1 = vld [vmem:[%s1394_s1 + $0x1b0] sm:$0xff]   ;;  %v1119_v3 = vld [vmem:[%s1394_s1 + $0x138] sm:$0xff]   ;;  %v1127_v14 = vld [vmem:[%s1394_s1 + $0x208] sm:$0xff]  }
  0x17   :  { %v1120_v4 = vld [vmem:[%s1394_s1 + $0x1f8] sm:$0xff]   ;;  %v23_v5 = vld [vmem:[%s1395_s0 + $0x10] sm:$0xff]  ;;  %v1130_v17 = vld [vmem:[%s1394_s1 + $0x220] sm:$0xff]  }
  0x18   :  { %946 = vmatpush3.bf16.msra.mxu0 %v1076_v22  ;;  %v858_v6 = vcombine.high %v23_v5, %v23_v5  ;;  %v1123_v7 = vld [vmem:[%s1394_s1 + $0x1b8] sm:$0xff]   ;;  %v857_v8 = vcombine.low %v23_v5, %v23_v5  ;;  %v1128_v15 = vld [vmem:[%s1394_s1 + $0x210] sm:$0xff]   ;;  %v1131_v18 = vld [vmem:[%s1394_s1 + $0x228] sm:$0xff]  }
  0x19   :  { %968 = vmatpush3.bf16.msra.mxu1 %v1077_v23  ;;  %947 = vmatprep.subr.bf16.mxu0 %v1078_v24  ;;  %v24_v9 = vld [vmem:[%s1395_s0 + $0x18] sm:$0xff]  ;;  %v1132_v19 = vld [vmem:[%s1394_s1 + $0x230] sm:$0xff]   ;;  %v1134_v21 = vld [vmem:[%s1395_s0 + $0x20] ss:$0 sps:$4 sm:$0xff]  }
  0x1a   :  { %969 = vmatprep.subr.bf16.mxu1 %v1079_v25  ;;  %v859_v10 = vcombine.low %v24_v9, %v24_v9  ;;  %v860_v11 = vcombine.high %v24_v9, %v24_v9  ;;  %v1129_v16 = vld [vmem:[%s1394_s1 + $0x218] sm:$0xff]  }
  0x1b   :  { %v1133_v20 = vld [vmem:[%s1394_s1 + $0x238] sm:$0xff]  }
  0x1c   :  { %948 = vmatpush3.bf16.msra.mxu0 %v1080_v26 }
  0x1d   :  { %970 = vmatpush3.bf16.msra.mxu1 %v1081_v27  ;;  %949 = vmatprep.subr.bf16.mxu0 %v1082_v28 }
  0x1e   :  { %971 = vmatprep.subr.bf16.mxu1 %v1083_v29 }
  0x20   :  { %950 = vmatpush3.bf16.msra.mxu0 %v1084_v30 }
  0x21   :  { %972 = vmatpush3.bf16.msra.mxu1 %v1085_v31  ;;  %979 = vmatprep.subr.bf16.mxu0 %v1090_v38 }
  0x22   :  { %1001 = vmatprep.subr.bf16.mxu1 %v1092_v40 }
  0x23   :  { %667 = vmatmul.mubr.bf16.vlgmr.msra.gmra.mrb[0].mxu0 %v853_v34 }
  0x24   :  { %707 = vmatmul.mubr.bf16.vlgmr.msra.gmra.mrb[0].mxu1 %v855_v36  ;;  %980 = vmatpush3.bf16.msra.mxu0 %v1091_v39 }
  0x25   :  { %1002 = vmatpush3.bf16.msra.mxu1 %v1093_v41  ;;  %981 = vmatprep.subr.bf16.mxu0 %v1094_v42 }
  0x26   :  { %1003 = vmatprep.subr.bf16.mxu1 %v1096_v44  ;;  %746 = vmatprep.mubr.bf16.mxu0 %v858_v6 }
  0x27   :  { %786 = vmatprep.mubr.bf16.mxu1 %v860_v11 }
  0x28   :  { %982 = vmatpush3.bf16.msra.mxu0 %v1095_v43 }
  0x29   :  { %1004 = vmatpush3.bf16.msra.mxu1 %v1097_v45  ;;  %983 = vmatprep.subr.bf16.mxu0 %v1098_v46  ;;  %v934_v46 = vld [vmem:[%s1396_s2] ss:$0 sm:$0xff] }
  0x2a   :  { %1005 = vmatprep.subr.bf16.mxu1 %v1100_v48 }
  0x2c   :  { %984 = vmatpush3.bf16.msra.mxu0 %v1099_v47 }
  0x2d   :  { %1006 = vmatpush3.bf16.msra.mxu1 %v1101_v49  ;;  %985 = vmatprep.subr.bf16.mxu0 %v1102_v50 }
  0x2e   :  { %1007 = vmatprep.subr.bf16.mxu1 %v1104_v52 }
  0x30   :  { %986 = vmatpush3.bf16.msra.mxu0 %v1103_v51 }
  0x31   :  { %1008 = vmatpush3.bf16.msra.mxu1 %v1105_v53  ;;  %987 = vmatprep.subr.bf16.mxu0 %v1106_v54 }
  0x32   :  { %1009 = vmatprep.subr.bf16.mxu1 %v1108_v56 }
  0x34   :  { %988 = vmatpush3.bf16.msra.mxu0 %v1107_v55 }
  0x35   :  { %1010 = vmatpush3.bf16.msra.mxu1 %v1109_v57  ;;  %989 = vmatprep.subr.bf16.mxu0 %v1110_v58 }
  0x36   :  { %1011 = vmatprep.subr.bf16.mxu1 %v1112_v60 }
  0x38   :  { %990 = vmatpush3.bf16.msra.mxu0 %v1111_v59 }
  0x39   :  { %1012 = vmatpush3.bf16.msra.mxu1 %v1113_v61  ;;  %991 = vmatprep.subr.bf16.mxu0 %v1114_v62 }
  0x3a   :  { %1013 = vmatprep.subr.bf16.mxu1 %v1116_v0 }
  0x3c   :  { %992 = vmatpush3.bf16.msra.mxu0 %v1115_v63 }
  0x3d   :  { %1014 = vmatpush3.bf16.msra.mxu1 %v1117_v1  ;;  %993 = vmatprep.subr.bf16.mxu0 %v1118_v2 }
  0x3e   :  { %1015 = vmatprep.subr.bf16.mxu1 %v1120_v4 }
  0x40   :  { %994 = vmatpush3.bf16.msra.mxu0 %v1119_v3 }
  0x41   :  { %1016 = vmatpush3.bf16.msra.mxu1 %v1123_v7  ;;  %1032 = vmatprep.subr.bf16.mxu0 %v1135_v13 }
  0x43   :  { %747 = vmatmul.mubr.bf16.vlgmr.msra.gmra.mrb[4].mxu0 %v857_v8 }
  0x44   :  { %1033 = vmatpush3.bf16.msra.mxu0 %v1126_v12  ;;  %787 = vmatmul.mubr.bf16.vlgmr.msra.gmra.mrb[4].mxu1 %v859_v10 }
  0x45   :  { %1034 = vmatprep.subr.bf16.mxu0 %v1135_v13  ;;  %1048 = vmatprep.mubr.msk.bf16.mxu0 %vm1136_vm0, %v1135_v13 }
  0x48   :  { %1035 = vmatpush3.bf16.msra.mxu0 %v1127_v14 }
  0x49   :  { %1036 = vmatprep.subr.bf16.mxu0 %v1135_v13 }
  0x4c   :  { %1037 = vmatpush3.bf16.msra.mxu0 %v1128_v15 }
  0x4d   :  { %1038 = vmatprep.subr.bf16.mxu0 %v1135_v13 }
  0x50   :  { %1039 = vmatpush3.bf16.msra.mxu0 %v1129_v16 }
  0x51   :  { %1040 = vmatprep.subr.bf16.mxu0 %v1135_v13 }
  0x54   :  { %1041 = vmatpush3.bf16.msra.mxu0 %v1130_v17 }
  0x55   :  { %1042 = vmatprep.subr.bf16.mxu0 %v1135_v13 }
  0x58   :  { %1043 = vmatpush3.bf16.msra.mxu0 %v1131_v18 }
  0x59   :  { %1044 = vmatprep.subr.bf16.mxu0 %v1135_v13 }
  0x5c   :  { %1045 = vmatpush3.bf16.msra.mxu0 %v1132_v19 }
  0x5d   :  { %1046 = vmatprep.subr.bf16.mxu0 %v1135_v13 }
  0x60   :  { %1047 = vmatpush3.bf16.msra.mxu0 %v1133_v20 }
  0x63   :  { %1049 = vmatmul.mubr.bf16.vlgmr.msra.gmra.mrb[8].mxu0 %v1134_v21 }
  0xf6   :  { %v951_v22 = vpop.f32.mrb[0].mxu0 }
  0xf7   :  { %v973_v23 = vpop.f32.mrb[0].mxu1  ;;  %v952_v24 = vpop.f32.mrb[1].mxu0 }
  0xf8   :  { %v974_v25 = vpop.f32.mrb[1].mxu1  ;;  %v953_v26 = vadd.f32 %v952_v24, %v951_v22  ;;  %v954_v28 = vpop.f32.mrb[2].mxu0 }
  0xf9   :  { %v975_v27 = vadd.f32 %v974_v25, %v973_v23  ;;  %v976_v29 = vpop.f32.mrb[2].mxu1  ;;  %v955_v30 = vpop.f32.mrb[3].mxu0 }
  0xfa   :  { %v977_v31 = vpop.f32.mrb[3].mxu1 }
  0xfb   :  { %v709_v32 = vadd.f32 %v975_v27, %v953_v26 }
 0x116   :  { %v995_v33 = vpop.f32.mrb[4].mxu0 }
 0x117   :  { %v996_v34 = vpop.f32.mrb[5].mxu0  ;;  %v1017_v35 = vpop.f32.mrb[4].mxu1 }
 0x118   :  { %v997_v36 = vadd.f32 %v996_v34, %v995_v33  ;;  %v998_v37 = vpop.f32.mrb[6].mxu0  ;;  %v1018_v38 = vpop.f32.mrb[5].mxu1 }
 0x119   :  { %v999_v39 = vpop.f32.mrb[7].mxu0  ;;  %v1019_v40 = vadd.f32 %v1018_v38, %v1017_v35  ;;  %v1020_v41 = vpop.f32.mrb[6].mxu1 }
 0x11a   :  { %v749_v42 = vadd.f32 %v997_v36, %v709_v32  ;;  %v1021_v43 = vpop.f32.mrb[7].mxu1 }
 0x11c   :  { %v789_v44 = vadd.f32 %v1019_v40, %v749_v42 }
 0x136   :  { %v828_v45 = vpop.f32.mrb[8].mxu0 }
 0x137   :  { %v829_v47 = vadd.f32 %v828_v45, %v789_v44  ;;  %v1050_v48 = vpop.f32.mrb[9].mxu0 }
 0x138   :  { %v831_v49 = vpop.f32.mrb[10].mxu0 }
 0x139   :  { %v847_v50 = vadd.f32 %v934_v46, %v829_v47  ;;  %v1051_v51 = vpop.f32.mrb[11].mxu0 }
 0x13b   :  { %848 = vst [vmem:[%s1397_s3] sm:$0xff] %v847_v50 }

// kernel: _lambda_.41
= control target key start
LH: loop header
LB: loop body
LE: loop exit
PB: predicated region body
PF: predicated region fallthrough
CT: control target
= control target key end

     0   :  { %vm19_vm0 = vcmask 523264   ;;  %v740_v46 = vmov 0.0   ;;  %s928_s1 = inlined_call_operand.vmem [shape: bf16[576,64], index: 1, kind: input, shape index: {}]   ;;  %s929_s0 = inlined_call_operand.vmem [shape: bf16[32,576], index: 0, kind: input, shape index: {}]   ;;  %s930_s2 = inlined_call_operand.vmem [shape: f32[1,64], index: 2, kind: input, shape index: {}]   ;;  %s931_s3 = inlined_call_operand.vmem [shape: f32[32,64], index: 3, kind: output, shape index: {}]  }
   0x1   :  { %v690_v0 = vld [vmem:[%s928_s1 + $0x40] sm:$0xff]   ;;  %v694_v4 = vld [vmem:[%s928_s1 + $0x48] sm:$0xff]   ;;  %v698_v8 = vld [vmem:[%s928_s1 + $0x50] sm:$0xff]   ;;  %22 = vst.msk [vmem:[#allocation2 + $0x10] sm:$0xff] %vm19_vm0, %v740_v46 }
   0x2   :  { %v691_v1 = vld [vmem:[%s928_s1 + $0xc0] sm:$0xff]   ;;  %615 = vmatprep.subr.bf16.mxu0 %v690_v0  ;;  %v695_v5 = vld [vmem:[%s928_s1 + $0xc8] sm:$0xff]   ;;  %v699_v9 = vld [vmem:[%s928_s1 + $0xd0] sm:$0xff]   ;;  %20 = vst.msk [vmem:[#allocation2] sm:$0xff] %vm19_vm0, %v740_v46 }
   0x3   :  { %v692_v2 = vld [vmem:[%s928_s1] sm:$0xff]   ;;  %643 = vmatprep.subr.bf16.mxu1 %v691_v1  ;;  %v696_v6 = vld [vmem:[%s928_s1 + $0x8] sm:$0xff]   ;;  %v700_v10 = vld [vmem:[%s928_s1 + $0x10] sm:$0xff]   ;;  %21 = vst.msk [vmem:[#allocation2 + $0x8] sm:$0xff] %vm19_vm0, %v740_v46 }
   0x4   :  { %v693_v3 = vld [vmem:[%s928_s1 + $0x80] sm:$0xff]   ;;  %616 = vmatpush3.bf16.msra.mxu0 %v692_v2  ;;  %v697_v7 = vld [vmem:[%s928_s1 + $0x88] sm:$0xff]   ;;  %v701_v11 = vld [vmem:[%s928_s1 + $0x90] sm:$0xff]   ;;  %23 = vst.msk [vmem:[#allocation2 + $0x18] sm:$0xff] %vm19_vm0, %v740_v46 }
   0x5   :  { %644 = vmatpush3.bf16.msra.mxu1 %v693_v3  ;;  %617 = vmatprep.subr.bf16.mxu0 %v694_v4  ;;  %v702_v12 = vld [vmem:[%s928_s1 + $0x58] sm:$0xff]   ;;  %v706_v16 = vld [vmem:[%s928_s1 + $0x60] sm:$0xff]   ;;  %v710_v20 = vld [vmem:[%s928_s1 + $0x68] sm:$0xff]  }
   0x6   :  { %645 = vmatprep.subr.bf16.mxu1 %v695_v5  ;;  %v703_v13 = vld [vmem:[%s928_s1 + $0xd8] sm:$0xff]   ;;  %v707_v17 = vld [vmem:[%s928_s1 + $0xe0] sm:$0xff]   ;;  %v711_v21 = vld [vmem:[%s928_s1 + $0xe8] sm:$0xff]  }
   0x7   :  { %v704_v14 = vld [vmem:[%s928_s1 + $0x18] sm:$0xff]   ;;  %v708_v18 = vld [vmem:[%s928_s1 + $0x20] sm:$0xff]   ;;  %v712_v22 = vld [vmem:[%s928_s1 + $0x28] sm:$0xff]  }
   0x8   :  { %618 = vmatpush3.bf16.msra.mxu0 %v696_v6  ;;  %v705_v15 = vld [vmem:[%s928_s1 + $0x98] sm:$0xff]   ;;  %v709_v19 = vld [vmem:[%s928_s1 + $0xa0] sm:$0xff]   ;;  %v713_v23 = vld [vmem:[%s928_s1 + $0xa8] sm:$0xff]  }
   0x9   :  { %646 = vmatpush3.bf16.msra.mxu1 %v697_v7  ;;  %619 = vmatprep.subr.bf16.mxu0 %v698_v8  ;;  %v714_v24 = vld [vmem:[%s928_s1 + $0x70] sm:$0xff]   ;;  %v718_v28 = vld [vmem:[%s928_s1 + $0x78] sm:$0xff]   ;;  %v727_v35 = vld [vmem:[%s929_s0 + $0xc] ss:$20 sps:$4 sm:$0xff]  }
   0xa   :  { %647 = vmatprep.subr.bf16.mxu1 %v699_v9  ;;  %v715_v25 = vld [vmem:[%s928_s1 + $0xf0] sm:$0xff]   ;;  %v719_v29 = vld [vmem:[%s928_s1 + $0xf8] sm:$0xff]   ;;  %v728_v36 = vld [vmem:[%s928_s1 + $0x100] sm:$0xff]   ;;  %466 = vmatprep.mubr.bf16.mxu1 %v727_v35 }
   0xb   :  { %v716_v26 = vld [vmem:[%s928_s1 + $0x30] sm:$0xff]   ;;  %v720_v30 = vld [vmem:[%s928_s1 + $0x38] sm:$0xff]   ;;  %v729_v37 = vld [vmem:[%s928_s1 + $0x108] sm:$0xff]  }
   0xc   :  { %620 = vmatpush3.bf16.msra.mxu0 %v700_v10  ;;  %v717_v27 = vld [vmem:[%s928_s1 + $0xb0] sm:$0xff]   ;;  %v721_v31 = vld [vmem:[%s928_s1 + $0xb8] sm:$0xff]   ;;  %v730_v38 = vld [vmem:[%s929_s0 + $0x2c] ss:$20 sps:$4 sm:$0xff]  }
   0xd   :  { %648 = vmatpush3.bf16.msra.mxu1 %v701_v11  ;;  %621 = vmatprep.subr.bf16.mxu0 %v702_v12  ;;  %v722_v32 = vld [vmem:[%s929_s0] ss:$20 sps:$4 sm:$0xff]   ;;  %v724_v33 = vld [vmem:[%s929_s0 + $0x4] ss:$20 sps:$4 sm:$0xff]   ;;  %v725_v34 = vld [vmem:[%s929_s0 + $0x8] ss:$20 sps:$4 sm:$0xff]  }
   0xe   :  { %649 = vmatprep.subr.bf16.mxu1 %v703_v13  ;;  %417 = vmatprep.mubr.bf16.mxu0 %v724_v33  ;;  %v732_v39 = vld [vmem:[%s929_s0 + $0x34] ss:$20 sps:$4 sm:$0xff]   ;;  %v735_v42 = vld [vmem:[%s929_s0 + $0x30] ss:$20 sps:$4 sm:$0xff]   ;;  %v737_v44 = vld [vmem:[%s928_s1 + $0x118] sm:$0xff]  }
   0xf   :  { %v734_v40 = vld [vmem:[%s929_s0 + $0x28] ss:$20 sps:$4 sm:$0xff]   ;;  %v736_v41 = vld [vmem:[%s928_s1 + $0x110] sm:$0xff]   ;;  %v739_v45 = vld [vmem:[%s929_s0 + $0x38] ss:$20 sps:$4 sm:$0xff]  }
  0x10   :  { %622 = vmatpush3.bf16.msra.mxu0 %v704_v14  ;;  %v738_v43 = vld [vmem:[%s929_s0 + $0x10] ss:$20 sps:$4 sm:$0xff]  }
  0x11   :  { %650 = vmatpush3.bf16.msra.mxu1 %v705_v15  ;;  %623 = vmatprep.subr.bf16.mxu0 %v706_v16  ;;  %v26_v11 = vld [vmem:[#allocation2 + $0x10] sm:$0xff]  ;;  %v24_v14 = vld [vmem:[#allocation2] sm:$0xff] }
  0x12   :  { %651 = vmatprep.subr.bf16.mxu1 %v707_v17  ;;  %v27_v17 = vld [vmem:[#allocation2 + $0x18] sm:$0xff] }
  0x14   :  { %624 = vmatpush3.bf16.msra.mxu0 %v708_v18 }
  0x15   :  { %652 = vmatpush3.bf16.msra.mxu1 %v709_v19  ;;  %625 = vmatprep.subr.bf16.mxu0 %v710_v20 }
  0x16   :  { %653 = vmatprep.subr.bf16.mxu1 %v711_v21  ;;  %v25_v21 = vld [vmem:[#allocation2 + $0x8] sm:$0xff] }
  0x18   :  { %626 = vmatpush3.bf16.msra.mxu0 %v712_v22 }
  0x19   :  { %654 = vmatpush3.bf16.msra.mxu1 %v713_v23  ;;  %627 = vmatprep.subr.bf16.mxu0 %v714_v24 }
  0x1a   :  { %655 = vmatprep.subr.bf16.mxu1 %v715_v25 }
  0x1c   :  { %628 = vmatpush3.bf16.msra.mxu0 %v716_v26 }
  0x1d   :  { %656 = vmatpush3.bf16.msra.mxu1 %v717_v27  ;;  %629 = vmatprep.subr.bf16.mxu0 %v718_v28  ;;  %v614_v27 = vld [vmem:[%s930_s2] ss:$0 sm:$0xff] }
  0x1e   :  { %657 = vmatprep.subr.bf16.mxu1 %v719_v29 }
  0x20   :  { %630 = vmatpush3.bf16.msra.mxu0 %v720_v30 }
  0x21   :  { %658 = vmatpush3.bf16.msra.mxu1 %v721_v31  ;;  %677 = vmatprep.subr.bf16.mxu0 %v728_v36 }
  0x23   :  { %418 = vmatmul.mubr.bf16.vlgmr.msra.gmra.mrb[0].mxu0 %v722_v32 }
  0x24   :  { %467 = vmatmul.mubr.bf16.vlgmr.msra.gmra.mrb[0].mxu1 %v725_v34  ;;  %678 = vmatpush3.bf16.msra.mxu0 %v728_v36 }
  0x25   :  { %679 = vmatprep.subr.bf16.mxu0 %v729_v37  ;;  %425 = vmatprep.mubr.bf16.mxu0 %v730_v38 }
  0x26   :  { %474 = vmatprep.mubr.bf16.mxu1 %v732_v39 }
  0x28   :  { %680 = vmatpush3.bf16.msra.mxu0 %v729_v37 }
  0x29   :  { %681 = vmatprep.subr.bf16.mxu0 %v736_v41 }
  0x2b   :  { %426 = vmatmul.mubr.bf16.gmra.mrb[4].mxu0 %v734_v40 }
  0x2c   :  { %475 = vmatmul.mubr.bf16.gmra.mrb[4].mxu1 %v735_v42  ;;  %685 = vmatprep.mubr.msk.bf16.mxu0 %vm19_vm0, %v738_v43 }
  0x2d   :  { %682 = vmatpush3.bf16.msra.mxu0 %v736_v41 }
  0x2e   :  { %683 = vmatprep.subr.bf16.mxu0 %v737_v44 }
  0x31   :  { %684 = vmatpush3.bf16.msra.mxu0 %v737_v44 }
  0x34   :  { %686 = vmatmul.mubr.msk.bf16.vlgmr.msra.gmra.mrb[8].mxu0 %vm19_vm0, %v739_v45 }
  0xf6   :  { %v631_v47 = vpop.f32.mrb[0].mxu0 }
  0xf7   :  { %v659_v48 = vpop.f32.mrb[0].mxu1  ;;  %v632_v49 = vpop.f32.mrb[1].mxu0 }
  0xf8   :  { %v633_v50 = vadd.f32 %v632_v49, %v631_v47  ;;  %v660_v51 = vpop.f32.mrb[1].mxu1  ;;  %v634_v52 = vpop.f32.mrb[2].mxu0 }
  0xf9   :  { %v661_v53 = vadd.f32 %v660_v51, %v659_v48  ;;  %v662_v54 = vpop.f32.mrb[2].mxu1  ;;  %v635_v55 = vpop.f32.mrb[3].mxu0 }
  0xfa   :  { %v636_v56 = vadd.f32 %v635_v55, %v634_v52  ;;  %v663_v57 = vpop.f32.mrb[3].mxu1 }
  0xfb   :  { %v664_v58 = vadd.f32 %v663_v57, %v662_v54  ;;  %v469_v59 = vadd.f32 %v661_v53, %v633_v50 }
  0xfd   :  { %v472_v60 = vadd.f32 %v664_v58, %v636_v56 }
  0xfe   :  { %v637_v61 = vpop.f32.mrb[4].mxu0 }
  0xff   :  { %v665_v62 = vpop.f32.mrb[4].mxu1  ;;  %v638_v63 = vpop.f32.mrb[5].mxu0 }
 0x100   :  { %v639_v0 = vadd.f32 %v638_v63, %v637_v61  ;;  %v666_v1 = vpop.f32.mrb[5].mxu1  ;;  %v640_v2 = vpop.f32.mrb[6].mxu0 }
 0x101   :  { %v667_v3 = vadd.f32 %v666_v1, %v665_v62  ;;  %v668_v4 = vpop.f32.mrb[6].mxu1  ;;  %v641_v5 = vpop.f32.mrb[7].mxu0 }
 0x102   :  { %v642_v6 = vadd.f32 %v641_v5, %v640_v2  ;;  %v669_v7 = vpop.f32.mrb[7].mxu1 }
 0x103   :  { %v670_v8 = vadd.f32 %v669_v7, %v668_v4  ;;  %v477_v9 = vadd.f32 %v667_v3, %v639_v0 }
 0x105   :  { %v480_v10 = vadd.f32 %v670_v8, %v642_v6 }
 0x107   :  { %v687_v12 = vpop.f32.mrb[8].mxu0 }
 0x108   :  { %v526_v13 = vadd.f32 %v687_v12, %v477_v9  ;;  %v517_v15 = vpop.f32.mrb[9].mxu0 }
 0x109   :  { %v518_v16 = vadd.f32 %v517_v15, %v469_v59  ;;  %v688_v18 = vpop.f32.mrb[10].mxu0 }
 0x10a   :  { %v534_v19 = vadd.f32 %v526_v13, %v26_v11  ;;  %v529_v20 = vadd.f32 %v688_v18, %v480_v10  ;;  %v520_v22 = vpop.f32.mrb[11].mxu0 }
 0x10b   :  { %v532_v23 = vadd.f32 %v518_v16, %v24_v14  ;;  %v521_v24 = vadd.f32 %v520_v22, %v472_v60 }
 0x10c   :  { %538 = vst.msk [vmem:[#allocation2 + $0x10] sm:$0xff] %vm19_vm0, %v534_v19  ;;  %v535_v25 = vadd.f32 %v529_v20, %v27_v17 }
 0x10d   :  { %536 = vst.msk [vmem:[#allocation2] sm:$0xff] %vm19_vm0, %v532_v23  ;;  %v533_v26 = vadd.f32 %v521_v24, %v25_v21 }
 0x10e   :  { %539 = vst.msk [vmem:[#allocation2 + $0x18] sm:$0xff] %vm19_vm0, %v535_v25 }
 0x10f   :  { %537 = vst.msk [vmem:[#allocation2 + $0x8] sm:$0xff] %vm19_vm0, %v533_v26 }
 0x113   :  { %v545_v28 = vld [vmem:[#allocation2 + $0x10] sm:$0xff] }
 0x114   :  { %v556_v29 = vadd.f32 %v614_v27, %v545_v28  ;;  %v543_v30 = vld [vmem:[#allocation2] sm:$0xff] }
 0x115   :  { %v554_v31 = vadd.f32 %v614_v27, %v543_v30  ;;  %v546_v32 = vld [vmem:[#allocation2 + $0x18] sm:$0xff] }
 0x116   :  { %560 = vst.msk [vmem:[%s931_s3 + $0x10] sm:$0xff] %vm19_vm0, %v556_v29  ;;  %v557_v33 = vadd.f32 %v614_v27, %v546_v32  ;;  %v544_v34 = vld [vmem:[#allocation2 + $0x8] sm:$0xff] }
 0x117   :  { %558 = vst.msk [vmem:[%s931_s3] sm:$0xff] %vm19_vm0, %v554_v31  ;;  %v555_v35 = vadd.f32 %v614_v27, %v544_v34 }
 0x118   :  { %561 = vst.msk [vmem:[%s931_s3 + $0x18] sm:$0xff] %vm19_vm0, %v557_v33 }
 0x119   :  { %559 = vst.msk [vmem:[%s931_s3 + $0x8] sm:$0xff] %vm19_vm0, %v555_v35 }

// kernel: _lambda_.43
= control target key start
LH: loop header
LB: loop body
LE: loop exit
PB: predicated region body
PF: predicated region fallthrough
CT: control target
= control target key end

     0   :  { %v39_v4 = vlaneseq  ;;  %vm121_vm0 = vcmask 130048   ;;  %s304_s1 = inlined_call_operand.vmem [shape: f32[2,16], index: 1, kind: input, shape index: {}]   ;;  %s305_s2 = inlined_call_operand.vmem [shape: f32[2,16], index: 2, kind: input, shape index: {}]   ;;  %s306_s0 = inlined_call_operand.vmem [shape: f32[128,16], index: 0, kind: input, shape index: {}]   ;;  %s307_s3 = inlined_call_operand.vmem [shape: f32[128,16], index: 3, kind: output, shape index: {}]  }
   0x1   :  { %v14_v0 = vld [vmem:[%s304_s1] sm:$0x3]  ;;  %v24_v13 = vld [vmem:[%s306_s0 + $0x8] sm:$0xff]  ;;  %v25_v14 = vld [vmem:[%s306_s0 + $0x10] sm:$0xff] }
   0x2   :  { %v15_v1 = vmul.f32 0.0078125, %v14_v0  ;;  %v40_v7 = vshrl.u32 %v39_v4, 7  ;;  %v59_v9 = vld [vmem:[%s305_s2] sm:$0x1]  ;;  %v26_v15 = vld [vmem:[%s306_s0 + $0x18] sm:$0xff]  ;;  %v28_v17 = vld [vmem:[%s306_s0 + $0x28] sm:$0xff] }
   0x3   :  { %v23_v10 = vld [vmem:[%s306_s0] sm:$0xff]  ;;  %v61_v12 = vrot.slane %v59_v9, 7  ;;  %v29_v18 = vld [vmem:[%s306_s0 + $0x30] sm:$0xff]  ;;  %v30_v20 = vld [vmem:[%s306_s0 + $0x38] sm:$0xff] }
   0x4   :  { %v16_v2 = vmul.f32 %v15_v1, %v15_v1  ;;  %v41_v8 = vsub.s32 0, %v40_v7  ;;  %v27_v16 = vld [vmem:[%s306_s0 + $0x20] sm:$0xff]  ;;  %v66_v19 = vsub.s32 1, %v40_v7  ;;  %v32_v22 = vld [vmem:[%s306_s0 + $0x48] sm:$0xff]  ;;  %v33_v26 = vld [vmem:[%s306_s0 + $0x50] sm:$0xff] }
   0x5   :  { %v31_v21 = vld [vmem:[%s306_s0 + $0x40] sm:$0xff]  ;;  %v34_v27 = vld [vmem:[%s306_s0 + $0x58] sm:$0xff]  ;;  %v36_v33 = vld [vmem:[%s306_s0 + $0x68] sm:$0xff] }
   0x6   :  { %v18_v3 = vrot.slane %v16_v2, 7  ;;  %v174_v11 = vrot.slane %v15_v1, %v41_v8  ;;  %v35_v28 = vld [vmem:[%s306_s0 + $0x60] sm:$0xff]  ;;  %v37_v34 = vld [vmem:[%s306_s0 + $0x70] sm:$0xff]  ;;  %v38_v35 = vld [vmem:[%s306_s0 + $0x78] sm:$0xff] }
   0x7   :  { %v142_v44 = vld [vmem:[%s305_s2 + $0x1] ss:$0 sm:$0xff] }
   0x8   :  { %v20_v5 = vsub.f32 %v15_v1, %v18_v3  ;;  %v43_v24 = vsub.f32 %v23_v10, %v174_v11  ;;  %v44_v25 = vsub.f32 %v24_v13, %v174_v11  ;;  %v45_v30 = vsub.f32 %v25_v14, %v174_v11 }
   0x9   :  { %v46_v31 = vsub.f32 %v26_v15, %v174_v11  ;;  %v47_v32 = vsub.f32 %v27_v16, %v174_v11  ;;  %v48_v36 = vsub.f32 %v28_v17, %v174_v11  ;;  %v49_v37 = vsub.f32 %v29_v18, %v174_v11 }
   0xa   :  { %v21_v6 = vadd.f32 1e-05, %v20_v5  ;;  %v50_v38 = vsub.f32 %v30_v20, %v174_v11  ;;  %v51_v39 = vsub.f32 %v31_v21, %v174_v11  ;;  %v52_v41 = vsub.f32 %v32_v22, %v174_v11 }
   0xb   :  { %v53_v42 = vsub.f32 %v33_v26, %v174_v11  ;;  %v54_v43 = vsub.f32 %v34_v27, %v174_v11  ;;  %v55_v45 = vsub.f32 %v35_v28, %v174_v11  ;;  %v56_v46 = vsub.f32 %v36_v33, %v174_v11 }
   0xc   :  { %143 = vrsqrt.f32 %v21_v6  ;;  %v57_v47 = vsub.f32 %v37_v34, %v174_v11  ;;  %v58_v48 = vsub.f32 %v38_v35, %v174_v11 }
  0x16   :  { %v144_v23 = vpop.eup %143 }
  0x17   :  { %v63_v29 = vmul.f32 %v144_v23, %v61_v12 }
  0x19   :  { %v67_v40 = vrot.slane %v63_v29, %v66_v19 }
  0x1b   :  { %v68_v49 = vmul.f32 %v67_v40, %v43_v24  ;;  %v69_v50 = vmul.f32 %v67_v40, %v44_v25  ;;  %v70_v51 = vmul.f32 %v67_v40, %v45_v30  ;;  %v71_v52 = vmul.f32 %v67_v40, %v46_v31 }
  0x1c   :  { %v72_v53 = vmul.f32 %v67_v40, %v47_v32  ;;  %v73_v54 = vmul.f32 %v67_v40, %v48_v36  ;;  %v74_v55 = vmul.f32 %v67_v40, %v49_v37  ;;  %v75_v56 = vmul.f32 %v67_v40, %v50_v38 }
  0x1d   :  { %v89_v57 = vadd.f32 %v142_v44, %v68_v49  ;;  %v90_v58 = vadd.f32 %v142_v44, %v69_v50  ;;  %v91_v59 = vadd.f32 %v142_v44, %v70_v51  ;;  %v92_v60 = vadd.f32 %v142_v44, %v71_v52 }
  0x1e   :  { %v93_v61 = vadd.f32 %v142_v44, %v72_v53  ;;  %v94_v62 = vadd.f32 %v142_v44, %v73_v54  ;;  %v95_v63 = vadd.f32 %v142_v44, %v74_v55  ;;  %v96_v0 = vadd.f32 %v142_v44, %v75_v56 }
  0x1f   :  { %v105_v1 = vmax.f32 %v89_v57, 0.0  ;;  %v106_v2 = vmax.f32 %v90_v58, 0.0  ;;  %v107_v3 = vmax.f32 %v91_v59, 0.0  ;;  %v108_v4 = vmax.f32 %v92_v60, 0.0 }
  0x20   :  { %v109_v5 = vmax.f32 %v93_v61, 0.0  ;;  %v110_v6 = vmax.f32 %v94_v62, 0.0  ;;  %v111_v7 = vmax.f32 %v95_v63, 0.0  ;;  %v112_v8 = vmax.f32 %v96_v0, 0.0 }
  0x21   :  { %122 = vst.msk [vmem:[%s307_s3] sm:$0xff] %vm121_vm0, %v105_v1  ;;  %123 = vst.msk [vmem:[%s307_s3 + $0x8] sm:$0xff] %vm121_vm0, %v106_v2  ;;  %v76_v9 = vmul.f32 %v67_v40, %v51_v39  ;;  %v77_v10 = vmul.f32 %v67_v40, %v52_v41  ;;  %v78_v11 = vmul.f32 %v67_v40, %v53_v42 }
  0x22   :  { %124 = vst.msk [vmem:[%s307_s3 + $0x10] sm:$0xff] %vm121_vm0, %v107_v3  ;;  %125 = vst.msk [vmem:[%s307_s3 + $0x18] sm:$0xff] %vm121_vm0, %v108_v4  ;;  %v79_v12 = vmul.f32 %v67_v40, %v54_v43  ;;  %v80_v13 = vmul.f32 %v67_v40, %v55_v45  ;;  %v81_v14 = vmul.f32 %v67_v40, %v56_v46 }
  0x23   :  { %126 = vst.msk [vmem:[%s307_s3 + $0x20] sm:$0xff] %vm121_vm0, %v109_v5  ;;  %127 = vst.msk [vmem:[%s307_s3 + $0x28] sm:$0xff] %vm121_vm0, %v110_v6  ;;  %v82_v15 = vmul.f32 %v67_v40, %v57_v47  ;;  %v83_v16 = vmul.f32 %v67_v40, %v58_v48  ;;  %v97_v17 = vadd.f32 %v142_v44, %v76_v9 }
  0x24   :  { %128 = vst.msk [vmem:[%s307_s3 + $0x30] sm:$0xff] %vm121_vm0, %v111_v7  ;;  %129 = vst.msk [vmem:[%s307_s3 + $0x38] sm:$0xff] %vm121_vm0, %v112_v8  ;;  %v98_v18 = vadd.f32 %v142_v44, %v77_v10  ;;  %v99_v19 = vadd.f32 %v142_v44, %v78_v11  ;;  %v100_v20 = vadd.f32 %v142_v44, %v79_v12 }
  0x25   :  { %v101_v21 = vadd.f32 %v142_v44, %v80_v13  ;;  %v102_v22 = vadd.f32 %v142_v44, %v81_v14  ;;  %v103_v23 = vadd.f32 %v142_v44, %v82_v15  ;;  %v104_v24 = vadd.f32 %v142_v44, %v83_v16 }
  0x26   :  { %v113_v25 = vmax.f32 %v97_v17, 0.0  ;;  %v114_v26 = vmax.f32 %v98_v18, 0.0  ;;  %v115_v27 = vmax.f32 %v99_v19, 0.0  ;;  %v116_v28 = vmax.f32 %v100_v20, 0.0 }
  0x27   :  { %v117_v29 = vmax.f32 %v101_v21, 0.0  ;;  %v118_v30 = vmax.f32 %v102_v22, 0.0  ;;  %v119_v31 = vmax.f32 %v103_v23, 0.0  ;;  %v120_v32 = vmax.f32 %v104_v24, 0.0 }
  0x28   :  { %130 = vst.msk [vmem:[%s307_s3 + $0x40] sm:$0xff] %vm121_vm0, %v113_v25  ;;  %131 = vst.msk [vmem:[%s307_s3 + $0x48] sm:$0xff] %vm121_vm0, %v114_v26 }
  0x29   :  { %132 = vst.msk [vmem:[%s307_s3 + $0x50] sm:$0xff] %vm121_vm0, %v115_v27  ;;  %133 = vst.msk [vmem:[%s307_s3 + $0x58] sm:$0xff] %vm121_vm0, %v116_v28 }
  0x2a   :  { %134 = vst.msk [vmem:[%s307_s3 + $0x60] sm:$0xff] %vm121_vm0, %v117_v29  ;;  %135 = vst.msk [vmem:[%s307_s3 + $0x68] sm:$0xff] %vm121_vm0, %v118_v30 }
  0x2b   :  { %136 = vst.msk [vmem:[%s307_s3 + $0x70] sm:$0xff] %vm121_vm0, %v119_v31  ;;  %137 = vst.msk [vmem:[%s307_s3 + $0x78] sm:$0xff] %vm121_vm0, %v120_v32 }

// kernel: _lambda_.44
= control target key start
LH: loop header
LB: loop body
LE: loop exit
PB: predicated region body
PF: predicated region fallthrough
CT: control target
= control target key end

     0   :  { %vm19_vm0 = vcmask 261120   ;;  %v873_v42 = vmov 0.0   ;;  %s1157_s1 = inlined_call_operand.vmem [shape: bf16[288,32], index: 1, kind: input, shape index: {}]   ;;  %s1158_s0 = inlined_call_operand.vmem [shape: bf16[128,288], index: 0, kind: input, shape index: {}]   ;;  %s1159_s2 = inlined_call_operand.vmem [shape: f32[1,32], index: 2, kind: input, shape index: {}]   ;;  %s1160_s3 = inlined_call_operand.vmem [shape: f32[128,32], index: 3, kind: output, shape index: {}]  }
   0x1   :  { %v823_v0 = vld [vmem:[%s1157_s1 + $0x40] sm:$0xff]   ;;  %v825_v2 = vld [vmem:[%s1157_s1 + $0x48] sm:$0xff]   ;;  %v827_v4 = vld [vmem:[%s1157_s1 + $0x50] sm:$0xff]   ;;  %22 = vst.msk [vmem:[#allocation2 + $0x10] sm:$0xff] %vm19_vm0, %v873_v42 }
   0x2   :  { %v824_v1 = vld [vmem:[%s1157_s1] sm:$0xff]   ;;  %712 = vmatprep.subr.bf16.mxu0 %v823_v0  ;;  %806 = vmatprep.subr.bf16.mxu1 %v823_v0  ;;  %v826_v3 = vld [vmem:[%s1157_s1 + $0x8] sm:$0xff]   ;;  %v828_v5 = vld [vmem:[%s1157_s1 + $0x10] sm:$0xff]   ;;  %20 = vst.msk [vmem:[#allocation2] sm:$0xff] %vm19_vm0, %v873_v42 }
   0x3   :  { %713 = vmatpush3.bf16.msra.mxu0 %v824_v1  ;;  %814 = vmatpush3.bf16.msra.mxu1 %v824_v1  ;;  %v829_v6 = vld [vmem:[%s1157_s1 + $0x58] sm:$0xff]   ;;  %v831_v8 = vld [vmem:[%s1157_s1 + $0x60] sm:$0xff]   ;;  %v833_v10 = vld [vmem:[%s1157_s1 + $0x68] sm:$0xff]   ;;  %21 = vst.msk [vmem:[#allocation2 + $0x8] sm:$0xff] %vm19_vm0, %v873_v42 }
   0x4   :  { %714 = vmatprep.subr.bf16.mxu0 %v825_v2  ;;  %807 = vmatprep.subr.bf16.mxu1 %v825_v2  ;;  %v830_v7 = vld [vmem:[%s1157_s1 + $0x18] sm:$0xff]   ;;  %v832_v9 = vld [vmem:[%s1157_s1 + $0x20] sm:$0xff]   ;;  %v834_v13 = vld [vmem:[%s1157_s1 + $0x28] sm:$0xff]   ;;  %23 = vst.msk [vmem:[#allocation2 + $0x18] sm:$0xff] %vm19_vm0, %v873_v42 }
   0x5   :  { %v841_v11 = vld [vmem:[%s1158_s0 + $0x4] ss:$12 sps:$4 sm:$0xff]   ;;  %v844_v12 = vld [vmem:[%s1158_s0 + $0x94] ss:$12 sps:$4 sm:$0xff]   ;;  %v837_v16 = vld [vmem:[%s1157_s1 + $0x78] sm:$0xff]   ;;  %24 = vst.msk [vmem:[#allocation2 + $0x20] sm:$0xff] %vm19_vm0, %v873_v42 }
   0x6   :  { %v835_v14 = vld [vmem:[%s1157_s1 + $0x70] sm:$0xff]   ;;  %405 = vmatprep.mubr.bf16.mxu0 %v841_v11  ;;  %453 = vmatprep.mubr.bf16.mxu1 %v844_v12  ;;  %v838_v17 = vld [vmem:[%s1157_s1 + $0x38] sm:$0xff]   ;;  %v839_v18 = vld [vmem:[%s1158_s0] ss:$12 sps:$4 sm:$0xff]   ;;  %25 = vst.msk [vmem:[#allocation2 + $0x28] sm:$0xff] %vm19_vm0, %v873_v42 }
   0x7   :  { %715 = vmatpush3.bf16.msra.mxu0 %v826_v3  ;;  %815 = vmatpush3.bf16.msra.mxu1 %v826_v3  ;;  %v836_v15 = vld [vmem:[%s1157_s1 + $0x30] sm:$0xff]   ;;  %v845_v19 = vld [vmem:[%s1157_s1 + $0x80] sm:$0xff]   ;;  %v846_v21 = vld [vmem:[%s1158_s0 + $0x1c] ss:$12 sps:$4 sm:$0xff]   ;;  %26 = vst.msk [vmem:[#allocation2 + $0x30] sm:$0xff] %vm19_vm0, %v873_v42 }
   0x8   :  { %716 = vmatprep.subr.bf16.mxu0 %v827_v4  ;;  %808 = vmatprep.subr.bf16.mxu1 %v827_v4  ;;  %v842_v20 = vld [vmem:[%s1158_s0 + $0x90] ss:$12 sps:$4 sm:$0xff]   ;;  %v848_v22 = vld [vmem:[%s1158_s0 + $0xac] ss:$12 sps:$4 sm:$0xff]   ;;  %v851_v25 = vld [vmem:[%s1158_s0 + $0xa8] ss:$12 sps:$4 sm:$0xff]  }
   0x9   :  { %v852_v23 = vld [vmem:[%s1157_s1 + $0x88] sm:$0xff]   ;;  %v850_v24 = vld [vmem:[%s1158_s0 + $0x18] ss:$12 sps:$4 sm:$0xff]   ;;  %v853_v26 = vld [vmem:[%s1158_s0 + $0x34] ss:$12 sps:$4 sm:$0xff]   ;;  %27 = vst.msk [vmem:[#allocation2 + $0x38] sm:$0xff] %vm19_vm0, %v873_v42 }
   0xa   :  { %v855_v27 = vld [vmem:[%s1158_s0 + $0x8] ss:$12 sps:$4 sm:$0xff]   ;;  %v856_v28 = vld [vmem:[%s1158_s0 + $0x30] ss:$12 sps:$4 sm:$0xff]   ;;  %v857_v29 = vld [vmem:[%s1158_s0 + $0x20] ss:$12 sps:$4 sm:$0xff]  }
   0xb   :  { %717 = vmatpush3.bf16.msra.mxu0 %v828_v5  ;;  %816 = vmatpush3.bf16.msra.mxu1 %v828_v5  ;;  %v858_v30 = vld [vmem:[%s1158_s0 + $0x4c] ss:$12 sps:$4 sm:$0xff]   ;;  %v861_v32 = vld [vmem:[%s1158_s0 + $0x48] ss:$12 sps:$4 sm:$0xff]   ;;  %v862_v33 = vld [vmem:[%s1158_s0 + $0x50] ss:$12 sps:$4 sm:$0xff]  }
   0xc   :  { %718 = vmatprep.subr.bf16.mxu0 %v829_v6  ;;  %809 = vmatprep.subr.bf16.mxu1 %v829_v6  ;;  %v860_v31 = vld [vmem:[%s1158_s0 + $0x38] ss:$12 sps:$4 sm:$0xff]   ;;  %v865_v35 = vld [vmem:[%s1158_s0 + $0x68] ss:$12 sps:$4 sm:$0xff]   ;;  %v866_v36 = vld [vmem:[%s1158_s0 + $0x60] ss:$12 sps:$4 sm:$0xff]  }
   0xd   :  { %v863_v34 = vld [vmem:[%s1158_s0 + $0x64] ss:$12 sps:$4 sm:$0xff]   ;;  %v867_v37 = vld [vmem:[%s1158_s0 + $0x80] ss:$12 sps:$4 sm:$0xff]   ;;  %v868_v38 = vld [vmem:[%s1158_s0 + $0x7c] ss:$12 sps:$4 sm:$0xff]  }
   0xe   :  { %v870_v39 = vld [vmem:[%s1158_s0 + $0x98] ss:$12 sps:$4 sm:$0xff]   ;;  %v872_v41 = vld [vmem:[%s1158_s0 + $0xb0] ss:$12 sps:$4 sm:$0xff]   ;;  %28 = vst.msk [vmem:[#allocation2 + $0x40] sm:$0xff] %vm19_vm0, %v873_v42  ;;  %29 = vst.msk [vmem:[#allocation2 + $0x48] sm:$0xff] %vm19_vm0, %v873_v42 }
   0xf   :  { %719 = vmatpush3.bf16.msra.mxu0 %v830_v7  ;;  %817 = vmatpush3.bf16.msra.mxu1 %v830_v7  ;;  %v871_v40 = vld [vmem:[%s1158_s0 + $0x78] ss:$12 sps:$4 sm:$0xff]   ;;  %30 = vst.msk [vmem:[#allocation2 + $0x50] sm:$0xff] %vm19_vm0, %v873_v42  ;;  %31 = vst.msk [vmem:[#allocation2 + $0x58] sm:$0xff] %vm19_vm0, %v873_v42  ;;  %v38_v4 = vld [vmem:[#allocation2 + $0x10] sm:$0xff] }
  0x10   :  { %720 = vmatprep.subr.bf16.mxu0 %v831_v8  ;;  %810 = vmatprep.subr.bf16.mxu1 %v831_v8  ;;  %32 = vst.msk [vmem:[#allocation2 + $0x60] sm:$0xff] %vm19_vm0, %v873_v42  ;;  %33 = vst.msk [vmem:[#allocation2 + $0x68] sm:$0xff] %vm19_vm0, %v873_v42  ;;  %v36_v8 = vld [vmem:[#allocation2] sm:$0xff] }
  0x11   :  { %34 = vst.msk [vmem:[#allocation2 + $0x70] sm:$0xff] %vm19_vm0, %v873_v42  ;;  %35 = vst.msk [vmem:[#allocation2 + $0x78] sm:$0xff] %vm19_vm0, %v873_v42 }
  0x13   :  { %721 = vmatpush3.bf16.msra.mxu0 %v832_v9  ;;  %818 = vmatpush3.bf16.msra.mxu1 %v832_v9 }
  0x14   :  { %722 = vmatprep.subr.bf16.mxu0 %v833_v10  ;;  %811 = vmatprep.subr.bf16.mxu1 %v833_v10 }
  0x17   :  { %723 = vmatpush3.bf16.msra.mxu0 %v834_v13  ;;  %819 = vmatpush3.bf16.msra.mxu1 %v834_v13  ;;  %v39_v13 = vld [vmem:[#allocation2 + $0x18] sm:$0xff] }
  0x18   :  { %724 = vmatprep.subr.bf16.mxu0 %v835_v14  ;;  %812 = vmatprep.subr.bf16.mxu1 %v835_v14 }
  0x1b   :  { %725 = vmatpush3.bf16.msra.mxu0 %v836_v15  ;;  %820 = vmatpush3.bf16.msra.mxu1 %v836_v15 }
  0x1c   :  { %726 = vmatprep.subr.bf16.mxu0 %v837_v16  ;;  %813 = vmatprep.subr.bf16.mxu1 %v837_v16 }
  0x1f   :  { %727 = vmatpush3.bf16.msra.mxu0 %v838_v17  ;;  %821 = vmatpush3.bf16.msra.mxu1 %v838_v17 }
  0x20   :  { %786 = vmatprep.subr.bf16.mxu1 %v845_v19 }
  0x22   :  { %406 = vmatmul.mubr.bf16.vlgmr.msra.gmra.mrb[0].mxu0 %v839_v18  ;;  %454 = vmatmul.mubr.bf16.vlgmr.msra.gmra.mrb[0].mxu1 %v842_v20  ;;  %v37_v18 = vld [vmem:[#allocation2 + $0x8] sm:$0xff] }
  0x23   :  { %787 = vmatpush3.bf16.msra.mxu1 %v845_v19  ;;  %413 = vmatprep.mubr.bf16.mxu0 %v846_v21 }
  0x24   :  { %461 = vmatprep.mubr.bf16.mxu1 %v848_v22  ;;  %788 = vmatprep.subr.bf16.mxu1 %v852_v23 }
  0x27   :  { %789 = vmatpush3.bf16.msra.mxu1 %v852_v23 }
  0x2a   :  { %414 = vmatmul.mubr.bf16.gmra.mrb[4].mxu0 %v850_v24  ;;  %462 = vmatmul.mubr.bf16.gmra.mrb[4].mxu1 %v851_v25 }
  0x2b   :  { %421 = vmatprep.mubr.bf16.mxu0 %v853_v26  ;;  %790 = vmatprep.mubr.msk.bf16.mxu1 %vm19_vm0, %v855_v27 }
  0x32   :  { %422 = vmatmul.mubr.bf16.gmra.mrb[8].mxu0 %v856_v28  ;;  %791 = vmatmul.mubr.msk.bf16.vlgmr.msra.gmra.mrb[8].mxu1 %vm19_vm0, %v857_v29  ;;  %v40_v28 = vld [vmem:[#allocation2 + $0x20] sm:$0xff] }
  0x33   :  { %429 = vmatprep.mubr.bf16.mxu0 %v858_v30  ;;  %794 = vmatprep.mubr.msk.bf16.mxu1 %vm19_vm0, %v860_v31  ;;  %v1059_v30 = vld [vmem:[%s1159_s2] ss:$0 sm:$0xff] }
  0x3a   :  { %430 = vmatmul.mubr.bf16.gmra.mrb[12].mxu0 %v861_v32  ;;  %795 = vmatmul.mubr.msk.bf16.gmra.mrb[12].mxu1 %vm19_vm0, %v862_v33 }
  0x3b   :  { %437 = vmatprep.mubr.bf16.mxu0 %v863_v34  ;;  %798 = vmatprep.mubr.msk.bf16.mxu1 %vm19_vm0, %v865_v35  ;;  %v42_v35 = vld [vmem:[#allocation2 + $0x30] sm:$0xff] }
  0x42   :  { %438 = vmatmul.mubr.bf16.gmra.mrb[16].mxu0 %v866_v36  ;;  %799 = vmatmul.mubr.msk.bf16.gmra.mrb[16].mxu1 %vm19_vm0, %v867_v37  ;;  %v41_v37 = vld [vmem:[#allocation2 + $0x28] sm:$0xff] }
  0x43   :  { %445 = vmatprep.mubr.bf16.mxu0 %v868_v38  ;;  %802 = vmatprep.mubr.msk.bf16.mxu1 %vm19_vm0, %v870_v39 }
  0x4a   :  { %446 = vmatmul.mubr.bf16.gmra.mrb[20].mxu0 %v871_v40  ;;  %803 = vmatmul.mubr.msk.bf16.gmra.mrb[20].mxu1 %vm19_vm0, %v872_v41 }
  0xf5   :  { %v728_v43 = vpop.f32.mrb[0].mxu0  ;;  %v764_v44 = vpop.f32.mrb[0].mxu1 }
  0xf6   :  { %v729_v45 = vpop.f32.mrb[1].mxu0  ;;  %v765_v46 = vpop.f32.mrb[1].mxu1 }
  0xf7   :  { %v730_v47 = vadd.f32 %v729_v45, %v728_v43  ;;  %v1044_v48 = vadd.f32 %v765_v46, %v764_v44  ;;  %v731_v49 = vpop.f32.mrb[2].mxu0  ;;  %v767_v50 = vpop.f32.mrb[2].mxu1  ;;  %v43_v46 = vld [vmem:[#allocation2 + $0x38] sm:$0xff] }
  0xf8   :  { %v732_v51 = vpop.f32.mrb[3].mxu0  ;;  %v768_v52 = vpop.f32.mrb[3].mxu1 }
  0xf9   :  { %v733_v53 = vadd.f32 %v732_v51, %v731_v49  ;;  %v1046_v54 = vadd.f32 %v768_v52, %v767_v50 }
  0xfd   :  { %v734_v55 = vpop.f32.mrb[4].mxu0  ;;  %v770_v56 = vpop.f32.mrb[4].mxu1 }
  0xfe   :  { %v735_v57 = vpop.f32.mrb[5].mxu0  ;;  %v771_v58 = vpop.f32.mrb[5].mxu1 }
  0xff   :  { %v736_v59 = vadd.f32 %v735_v57, %v734_v55  ;;  %v1048_v60 = vadd.f32 %v771_v58, %v770_v56  ;;  %v737_v61 = vpop.f32.mrb[6].mxu0  ;;  %v773_v62 = vpop.f32.mrb[6].mxu1 }
 0x100   :  { %v738_v63 = vpop.f32.mrb[7].mxu0  ;;  %v774_v0 = vpop.f32.mrb[7].mxu1 }
 0x101   :  { %v739_v1 = vadd.f32 %v738_v63, %v737_v61  ;;  %v1050_v2 = vadd.f32 %v774_v0, %v773_v62 }
 0x105   :  { %v740_v3 = vpop.f32.mrb[8].mxu0  ;;  %v792_v5 = vpop.f32.mrb[8].mxu1 }
 0x106   :  { %v513_v6 = vadd.f32 %v792_v5, %v736_v59  ;;  %v741_v7 = vpop.f32.mrb[9].mxu0  ;;  %v504_v9 = vpop.f32.mrb[9].mxu1 }
 0x107   :  { %v742_v10 = vadd.f32 %v741_v7, %v740_v3  ;;  %v505_v11 = vadd.f32 %v730_v47, %v504_v9  ;;  %v743_v12 = vpop.f32.mrb[10].mxu0  ;;  %v793_v14 = vpop.f32.mrb[10].mxu1  ;;  %v44_v3 = vld [vmem:[#allocation2 + $0x40] sm:$0xff]  ;;  %v45_v9 = vld [vmem:[#allocation2 + $0x48] sm:$0xff] }
 0x108   :  { %v569_v15 = vadd.f32 %v513_v6, %v38_v4  ;;  %v516_v16 = vadd.f32 %v793_v14, %v739_v1  ;;  %v744_v17 = vpop.f32.mrb[11].mxu0  ;;  %v507_v19 = vpop.f32.mrb[11].mxu1 }
 0x109   :  { %v567_v20 = vadd.f32 %v505_v11, %v36_v8  ;;  %v745_v21 = vadd.f32 %v744_v17, %v743_v12  ;;  %v508_v22 = vadd.f32 %v733_v53, %v507_v19  ;;  %v50_v19 = vld [vmem:[#allocation2 + $0x70] sm:$0xff] }
 0x10a   :  { %585 = vst.msk [vmem:[#allocation2 + $0x10] sm:$0xff] %vm19_vm0, %v569_v15  ;;  %v570_v23 = vadd.f32 %v516_v16, %v39_v13 }
 0x10b   :  { %583 = vst.msk [vmem:[#allocation2] sm:$0xff] %vm19_vm0, %v567_v20  ;;  %v568_v24 = vadd.f32 %v508_v22, %v37_v18 }
 0x10c   :  { %586 = vst.msk [vmem:[#allocation2 + $0x18] sm:$0xff] %vm19_vm0, %v570_v23 }
 0x10d   :  { %584 = vst.msk [vmem:[#allocation2 + $0x8] sm:$0xff] %vm19_vm0, %v568_v24  ;;  %v746_v25 = vpop.f32.mrb[12].mxu0  ;;  %v796_v26 = vpop.f32.mrb[12].mxu1  ;;  %v48_v24 = vld [vmem:[#allocation2 + $0x60] sm:$0xff] }
 0x10e   :  { %v747_v27 = vpop.f32.mrb[13].mxu0  ;;  %v520_v29 = vpop.f32.mrb[13].mxu1 }
 0x10f   :  { %v748_v31 = vadd.f32 %v747_v27, %v746_v25  ;;  %v521_v32 = vadd.f32 %v742_v10, %v520_v29  ;;  %v749_v33 = vpop.f32.mrb[14].mxu0  ;;  %v797_v34 = vpop.f32.mrb[14].mxu1  ;;  %v51_v29 = vld [vmem:[#allocation2 + $0x78] sm:$0xff] }
 0x110   :  { %v750_v36 = vpop.f32.mrb[15].mxu0  ;;  %v523_v38 = vpop.f32.mrb[15].mxu1 }
 0x111   :  { %v604_v39 = vld [vmem:[#allocation2 + $0x10] sm:$0xff]  ;;  %v529_v40 = vadd.f32 %v796_v26, %v748_v31  ;;  %v571_v41 = vadd.f32 %v521_v32, %v40_v28  ;;  %v751_v42 = vadd.f32 %v750_v36, %v749_v33  ;;  %v524_v43 = vadd.f32 %v745_v21, %v523_v38  ;;  %v49_v36 = vld [vmem:[#allocation2 + $0x68] sm:$0xff] }
 0x112   :  { %v627_v44 = vadd.f32 %v1059_v30, %v604_v39  ;;  %v602_v45 = vld [vmem:[#allocation2] sm:$0xff]  ;;  %v46_v33 = vld [vmem:[#allocation2 + $0x50] sm:$0xff] }
 0x113   :  { %v625_v47 = vadd.f32 %v1059_v30, %v602_v45  ;;  %v605_v49 = vld [vmem:[#allocation2 + $0x18] sm:$0xff]  ;;  %v573_v50 = vadd.f32 %v529_v40, %v42_v35  ;;  %587 = vst.msk [vmem:[#allocation2 + $0x20] sm:$0xff] %vm19_vm0, %v571_v41  ;;  %v532_v51 = vadd.f32 %v797_v34, %v751_v42  ;;  %v572_v52 = vadd.f32 %v524_v43, %v41_v37 }
 0x114   :  { %643 = vst.msk [vmem:[%s1160_s3 + $0x10] sm:$0xff] %vm19_vm0, %v627_v44  ;;  %v628_v53 = vadd.f32 %v1059_v30, %v605_v49  ;;  %v603_v55 = vld [vmem:[#allocation2 + $0x8] sm:$0xff]  ;;  %v47_v42 = vld [vmem:[#allocation2 + $0x58] sm:$0xff] }
 0x115   :  { %641 = vst.msk [vmem:[%s1160_s3] sm:$0xff] %vm19_vm0, %v625_v47  ;;  %v626_v56 = vadd.f32 %v1059_v30, %v603_v55  ;;  %589 = vst.msk [vmem:[#allocation2 + $0x30] sm:$0xff] %vm19_vm0, %v573_v50  ;;  %v574_v57 = vadd.f32 %v532_v51, %v43_v46  ;;  %v752_v58 = vpop.f32.mrb[16].mxu0  ;;  %v800_v59 = vpop.f32.mrb[16].mxu1 }
 0x116   :  { %588 = vst.msk [vmem:[#allocation2 + $0x28] sm:$0xff] %vm19_vm0, %v572_v52  ;;  %644 = vst.msk [vmem:[%s1160_s3 + $0x18] sm:$0xff] %vm19_vm0, %v628_v53  ;;  %v753_v61 = vpop.f32.mrb[17].mxu0  ;;  %v536_v62 = vpop.f32.mrb[17].mxu1 }
 0x117   :  { %642 = vst.msk [vmem:[%s1160_s3 + $0x8] sm:$0xff] %vm19_vm0, %v626_v56  ;;  %590 = vst.msk [vmem:[#allocation2 + $0x38] sm:$0xff] %vm19_vm0, %v574_v57  ;;  %v754_v63 = vadd.f32 %v753_v61, %v752_v58  ;;  %v755_v0 = vpop.f32.mrb[18].mxu0  ;;  %v801_v1 = vpop.f32.mrb[18].mxu1 }
 0x118   :  { %v756_v4 = vpop.f32.mrb[19].mxu0  ;;  %v539_v5 = vpop.f32.mrb[19].mxu1 }
 0x119   :  { %v537_v6 = vadd.f32 %v754_v63, %v536_v62  ;;  %v757_v7 = vadd.f32 %v756_v4, %v755_v0 }
 0x11a   :  { %v606_v8 = vld [vmem:[#allocation2 + $0x20] sm:$0xff] }
 0x11b   :  { %v629_v10 = vadd.f32 %v1059_v30, %v606_v8  ;;  %v575_v11 = vadd.f32 %v537_v6, %v44_v3  ;;  %v540_v12 = vadd.f32 %v757_v7, %v539_v5 }
 0x11c   :  { %v608_v13 = vld [vmem:[#allocation2 + $0x30] sm:$0xff] }
 0x11d   :  { %v607_v14 = vld [vmem:[#allocation2 + $0x28] sm:$0xff]  ;;  %v631_v15 = vadd.f32 %v1059_v30, %v608_v13  ;;  %645 = vst.msk [vmem:[%s1160_s3 + $0x20] sm:$0xff] %vm19_vm0, %v629_v10  ;;  %591 = vst.msk [vmem:[#allocation2 + $0x40] sm:$0xff] %vm19_vm0, %v575_v11  ;;  %v576_v17 = vadd.f32 %v540_v12, %v45_v9  ;;  %v758_v18 = vpop.f32.mrb[20].mxu0  ;;  %v804_v20 = vpop.f32.mrb[20].mxu1 }
 0x11e   :  { %v630_v16 = vadd.f32 %v1059_v30, %v607_v14  ;;  %v609_v21 = vld [vmem:[#allocation2 + $0x38] sm:$0xff]  ;;  %v561_v22 = vadd.f32 %v804_v20, %v1048_v60  ;;  %v759_v23 = vpop.f32.mrb[21].mxu0  ;;  %v552_v25 = vpop.f32.mrb[21].mxu1 }
 0x11f   :  { %647 = vst.msk [vmem:[%s1160_s3 + $0x30] sm:$0xff] %vm19_vm0, %v631_v15  ;;  %v632_v26 = vadd.f32 %v1059_v30, %v609_v21  ;;  %592 = vst.msk [vmem:[#allocation2 + $0x48] sm:$0xff] %vm19_vm0, %v576_v17  ;;  %v760_v27 = vadd.f32 %v759_v23, %v758_v18  ;;  %v553_v60 = vadd.f32 %v1044_v48, %v552_v25  ;;  %v761_v28 = vpop.f32.mrb[22].mxu0  ;;  %v805_v31 = vpop.f32.mrb[22].mxu1 }
 0x120   :  { %646 = vst.msk [vmem:[%s1160_s3 + $0x28] sm:$0xff] %vm19_vm0, %v630_v16  ;;  %v581_v32 = vadd.f32 %v561_v22, %v50_v19  ;;  %v564_v34 = vadd.f32 %v805_v31, %v1050_v2  ;;  %v762_v35 = vpop.f32.mrb[23].mxu0  ;;  %v555_v37 = vpop.f32.mrb[23].mxu1 }
 0x121   :  { %648 = vst.msk [vmem:[%s1160_s3 + $0x38] sm:$0xff] %vm19_vm0, %v632_v26  ;;  %v545_v38 = vadd.f32 %v800_v59, %v760_v27  ;;  %v579_v39 = vadd.f32 %v553_v60, %v48_v24  ;;  %v763_v40 = vadd.f32 %v762_v35, %v761_v28  ;;  %v556_v48 = vadd.f32 %v1046_v54, %v555_v37 }
 0x122   :  { %597 = vst.msk [vmem:[#allocation2 + $0x70] sm:$0xff] %vm19_vm0, %v581_v32  ;;  %v582_v41 = vadd.f32 %v564_v34, %v51_v29 }
 0x123   :  { %v577_v43 = vadd.f32 %v545_v38, %v46_v33  ;;  %595 = vst.msk [vmem:[#allocation2 + $0x60] sm:$0xff] %vm19_vm0, %v579_v39  ;;  %v548_v2 = vadd.f32 %v801_v1, %v763_v40  ;;  %v580_v44 = vadd.f32 %v556_v48, %v49_v36 }
 0x124   :  { %v610_v45 = vld [vmem:[#allocation2 + $0x40] sm:$0xff]  ;;  %598 = vst.msk [vmem:[#allocation2 + $0x78] sm:$0xff] %vm19_vm0, %v582_v41 }
 0x125   :  { %v633_v46 = vadd.f32 %v1059_v30, %v610_v45  ;;  %593 = vst.msk [vmem:[#allocation2 + $0x50] sm:$0xff] %vm19_vm0, %v577_v43  ;;  %v578_v47 = vadd.f32 %v548_v2, %v47_v42  ;;  %596 = vst.msk [vmem:[#allocation2 + $0x68] sm:$0xff] %vm19_vm0, %v580_v44 }
 0x126   :  { %v611_v54 = vld [vmem:[#allocation2 + $0x48] sm:$0xff] }
 0x127   :  { %649 = vst.msk [vmem:[%s1160_s3 + $0x40] sm:$0xff] %vm19_vm0, %v633_v46  ;;  %v634_v49 = vadd.f32 %v1059_v30, %v611_v54  ;;  %594 = vst.msk [vmem:[#allocation2 + $0x58] sm:$0xff] %vm19_vm0, %v578_v47 }
 0x129   :  { %650 = vst.msk [vmem:[%s1160_s3 + $0x48] sm:$0xff] %vm19_vm0, %v634_v49  ;;  %v616_v50 = vld [vmem:[#allocation2 + $0x70] sm:$0xff] }
 0x12a   :  { %v639_v51 = vadd.f32 %v1059_v30, %v616_v50  ;;  %v614_v52 = vld [vmem:[#allocation2 + $0x60] sm:$0xff] }
 0x12b   :  { %v637_v53 = vadd.f32 %v1059_v30, %v614_v52  ;;  %v617_v55 = vld [vmem:[#allocation2 + $0x78] sm:$0xff] }
 0x12c   :  { %655 = vst.msk [vmem:[%s1160_s3 + $0x70] sm:$0xff] %vm19_vm0, %v639_v51  ;;  %v612_v56 = vld [vmem:[#allocation2 + $0x50] sm:$0xff]  ;;  %v640_v57 = vadd.f32 %v1059_v30, %v617_v55  ;;  %v615_v58 = vld [vmem:[#allocation2 + $0x68] sm:$0xff] }
 0x12d   :  { %v635_v59 = vadd.f32 %v1059_v30, %v612_v56  ;;  %653 = vst.msk [vmem:[%s1160_s3 + $0x60] sm:$0xff] %vm19_vm0, %v637_v53  ;;  %v638_v61 = vadd.f32 %v1059_v30, %v615_v58 }
 0x12e   :  { %656 = vst.msk [vmem:[%s1160_s3 + $0x78] sm:$0xff] %vm19_vm0, %v640_v57  ;;  %v613_v62 = vld [vmem:[#allocation2 + $0x58] sm:$0xff] }
 0x12f   :  { %651 = vst.msk [vmem:[%s1160_s3 + $0x50] sm:$0xff] %vm19_vm0, %v635_v59  ;;  %v636_v63 = vadd.f32 %v1059_v30, %v613_v62  ;;  %654 = vst.msk [vmem:[%s1160_s3 + $0x68] sm:$0xff] %vm19_vm0, %v638_v61 }
 0x131   :  { %652 = vst.msk [vmem:[%s1160_s3 + $0x58] sm:$0xff] %vm19_vm0, %v636_v63 }

// kernel: _lambda_.45
= control target key start
LH: loop header
LB: loop body
LE: loop exit
PB: predicated region body
PF: predicated region fallthrough
CT: control target
= control target key end

     0   :  { %s384_s6 = smov 0   ;;  %s505_s0 = inlined_call_operand.vmem [shape: f32[512,8], index: 0, kind: input, shape index: {}]   ;;  %s506_s1 = inlined_call_operand.vmem [shape: f32[2,8], index: 1, kind: output, shape index: {}]  }
   0x1 LB: > { %s347_s7 = sadd.s32 4294967295, %s371_s6   ;;  %p350_p0 = scmp.ge.s32.totalorder %s371_s6, 1  ;;  %s371_s6 = sphi %s384_s6, %s11_s6  }
   0x2   : > { %p83_p1 = scmp.lt.s32.totalorder %s371_s6, 3 }
   0x4   : > { %p84_p2 = pnand %p350_p0, %p83_p1 }
   0x5   : > { %s351_s8 = sshll.u32 (!%p84_p2), %s347_s7, 5  ;;  %p353_p4 = scmp.ne.s32.totalorder (!%p84_p2), %s347_s7, 0 }
   0x6   : > { %87 = sbr.rel (%p84_p2) target bundleno = 105 (0x69), region = 24  ;;  %p99_p3 = scmp.lt.s32.totalorder (!%p84_p2), %s351_s8, 63 }
   0xd   : > { %s508_s8 = smov (!%p99_p3, %s351_s8), 63  ;;  %107 = sbr.rel (%p353_p4) target bundleno = 20 (0x14), region = 28 }
   0xe   : > { %s352_s9 = sshll.u32 %s508_s8, 3  ;;  %vm108_vm0 = vcmask (!%p353_p4), 58368   ;;  %v373_v0 = vmov (!%p353_p4), 0.0  }
   0xf   : > { %s395_s12 = scalar_lea.vmem %s505_s0, %s352_s9  ;;  %109 = vst.msk [vmem:[%s506_s1] sm:$0x3] (!%p353_p4), %vm108_vm0, %v373_v0 }
  0x14 PF: > { %v110_v1 = vld [vmem:[%s395_s12] sm:$0xff]  ;;  %v111_v2 = vld [vmem:[%s395_s12 + $0x8] sm:$0xff]  ;;  %v112_v3 = vld [vmem:[%s395_s12 + $0x10] sm:$0xff]  ;;  %vm142_vm1 = vcmask 64512   ;;  %vm314_vm2 = vcmask 1040384   ;;  %vm317_vm3 = vcmask 58368  }
  0x15   : > { %v143_v4 = vsel %vm142_vm1, %v110_v1, 0.0  ;;  %v144_v5 = vsel %vm142_vm1, %v111_v2, 0.0  ;;  %v146_v6 = vsel %vm142_vm1, %v112_v3, 0.0  ;;  %v113_v7 = vld [vmem:[%s395_s12 + $0x18] sm:$0xff]  ;;  %v114_v10 = vld [vmem:[%s395_s12 + $0x20] sm:$0xff]  ;;  %v115_v13 = vld [vmem:[%s395_s12 + $0x28] sm:$0xff]  ;;  %v212_v28 = vmul.f32 %v110_v1, %v110_v1 }
  0x16   : > { %v145_v8 = vadd.f32 %v144_v5, %v143_v4  ;;  %v148_v9 = vsel %vm142_vm1, %v113_v7, 0.0  ;;  %v150_v12 = vsel %vm142_vm1, %v114_v10, 0.0  ;;  %v152_v15 = vsel %vm142_vm1, %v115_v13, 0.0  ;;  %v116_v16 = vld [vmem:[%s395_s12 + $0x30] sm:$0xff]  ;;  %v117_v19 = vld [vmem:[%s395_s12 + $0x38] sm:$0xff]  ;;  %v118_v22 = vld [vmem:[%s395_s12 + $0x40] sm:$0xff] }
  0x17   : > { %v154_v18 = vsel %vm142_vm1, %v116_v16, 0.0  ;;  %v156_v21 = vsel %vm142_vm1, %v117_v19, 0.0  ;;  %v158_v24 = vsel %vm142_vm1, %v118_v22, 0.0  ;;  %v119_v25 = vld [vmem:[%s395_s12 + $0x48] sm:$0xff]  ;;  %v213_v29 = vmul.f32 %v111_v2, %v111_v2  ;;  %v120_v31 = vld [vmem:[%s395_s12 + $0x50] sm:$0xff]  ;;  %v121_v33 = vld [vmem:[%s395_s12 + $0x58] sm:$0xff] }
  0x18   : > { %v147_v11 = vadd.f32 %v146_v6, %v145_v8  ;;  %v160_v27 = vsel %vm142_vm1, %v119_v25, 0.0  ;;  %v214_v30 = vmul.f32 %v112_v3, %v112_v3  ;;  %v162_v34 = vsel %vm142_vm1, %v120_v31, 0.0  ;;  %v122_v42 = vld [vmem:[%s395_s12 + $0x60] sm:$0xff]  ;;  %v123_v48 = vld [vmem:[%s395_s12 + $0x68] sm:$0xff]  ;;  %v124_v54 = vld [vmem:[%s395_s12 + $0x70] sm:$0xff] }
  0x19   : > { %v215_v35 = vmul.f32 %v113_v7, %v113_v7  ;;  %v164_v37 = vsel %vm142_vm1, %v121_v33, 0.0  ;;  %v216_v38 = vmul.f32 %v114_v10, %v114_v10  ;;  %v244_v39 = vsel %vm142_vm1, %v212_v28, 0.0  ;;  %v125_v60 = vld [vmem:[%s395_s12 + $0x78] sm:$0xff]  ;;  %v126_v2 = vld [vmem:[%s395_s12 + $0x80] sm:$0xff]  ;;  %v127_v8 = vld [vmem:[%s395_s12 + $0x88] sm:$0xff] }
  0x1a   : > { %v149_v14 = vadd.f32 %v148_v9, %v147_v11  ;;  %v245_v40 = vsel %vm142_vm1, %v213_v29, 0.0  ;;  %v247_v41 = vsel %vm142_vm1, %v214_v30, 0.0  ;;  %v166_v45 = vsel %vm142_vm1, %v122_v42, 0.0 }
  0x1b   : > { %v246_v44 = vadd.f32 %v245_v40, %v244_v39  ;;  %v217_v46 = vmul.f32 %v115_v13, %v115_v13  ;;  %v249_v47 = vsel %vm142_vm1, %v215_v35, 0.0  ;;  %v168_v51 = vsel %vm142_vm1, %v123_v48, 0.0 }
  0x1c   : > { %v151_v17 = vadd.f32 %v150_v12, %v149_v14  ;;  %v218_v52 = vmul.f32 %v116_v16, %v116_v16  ;;  %v251_v53 = vsel %vm142_vm1, %v216_v38, 0.0  ;;  %v170_v57 = vsel %vm142_vm1, %v124_v54, 0.0  ;;  %v128_v14 = vld [vmem:[%s395_s12 + $0x90] sm:$0xff] }
  0x1d   : > { %v248_v50 = vadd.f32 %v247_v41, %v246_v44  ;;  %v219_v58 = vmul.f32 %v117_v19, %v117_v19  ;;  %v253_v59 = vsel %vm142_vm1, %v217_v46, 0.0  ;;  %v172_v63 = vsel %vm142_vm1, %v125_v60, 0.0  ;;  %v132_v38 = vld [vmem:[%s395_s12 + $0xb0] sm:$0xff]  ;;  %v133_v44 = vld [vmem:[%s395_s12 + $0xb8] sm:$0xff] }
  0x1e   : > { %v153_v20 = vadd.f32 %v152_v15, %v151_v17  ;;  %v220_v0 = vmul.f32 %v118_v22, %v118_v22  ;;  %v255_v1 = vsel %vm142_vm1, %v218_v52, 0.0  ;;  %v174_v5 = vsel %vm142_vm1, %v126_v2, 0.0 }
  0x1f   : > { %v250_v56 = vadd.f32 %v249_v47, %v248_v50  ;;  %v221_v6 = vmul.f32 %v119_v25, %v119_v25  ;;  %v257_v7 = vsel %vm142_vm1, %v219_v58, 0.0  ;;  %v176_v11 = vsel %vm142_vm1, %v127_v8, 0.0  ;;  %v134_v50 = vld [vmem:[%s395_s12 + $0xc0] sm:$0xff] }
  0x20   : > { %v155_v23 = vadd.f32 %v154_v18, %v153_v20  ;;  %v222_v12 = vmul.f32 %v120_v31, %v120_v31  ;;  %v259_v13 = vsel %vm142_vm1, %v220_v0, 0.0  ;;  %v178_v17 = vsel %vm142_vm1, %v128_v14, 0.0  ;;  %v129_v20 = vld [vmem:[%s395_s12 + $0x98] sm:$0xff] }
  0x21   : > { %v252_v62 = vadd.f32 %v251_v53, %v250_v56  ;;  %v223_v18 = vmul.f32 %v121_v33, %v121_v33  ;;  %v261_v19 = vsel %vm142_vm1, %v221_v6, 0.0  ;;  %v225_v30 = vmul.f32 %v123_v48, %v123_v48  ;;  %v135_v56 = vld [vmem:[%s395_s12 + $0xc8] sm:$0xff] }
  0x22   : > { %v157_v26 = vadd.f32 %v156_v21, %v155_v23  ;;  %v180_v23 = vsel %vm142_vm1, %v129_v20, 0.0  ;;  %v263_v25 = vsel %vm142_vm1, %v222_v12, 0.0  ;;  %v186_v41 = vsel %vm142_vm1, %v132_v38, 0.0 }
  0x23   : > { %v254_v4 = vadd.f32 %v253_v59, %v252_v62  ;;  %v265_v31 = vsel %vm142_vm1, %v223_v18, 0.0  ;;  %v188_v47 = vsel %vm142_vm1, %v133_v44, 0.0  ;;  %v228_v48 = vmul.f32 %v126_v2, %v126_v2  ;;  %v136_v62 = vld [vmem:[%s395_s12 + $0xd0] sm:$0xff] }
  0x24   : > { %v159_v32 = vadd.f32 %v158_v24, %v157_v26  ;;  %v224_v24 = vmul.f32 %v122_v42, %v122_v42  ;;  %v130_v26 = vld [vmem:[%s395_s12 + $0xa0] sm:$0xff]  ;;  %v227_v42 = vmul.f32 %v125_v60, %v125_v60  ;;  %v190_v53 = vsel %vm142_vm1, %v134_v50, 0.0 }
  0x25   : > { %v256_v10 = vadd.f32 %v255_v1, %v254_v4  ;;  %v182_v29 = vsel %vm142_vm1, %v130_v26, 0.0  ;;  %v192_v59 = vsel %vm142_vm1, %v135_v56, 0.0  ;;  %v230_v60 = vmul.f32 %v128_v14, %v128_v14  ;;  %v137_v4 = vld [vmem:[%s395_s12 + $0xd8] sm:$0xff] }
  0x26   : > { %v161_v36 = vadd.f32 %v160_v27, %v159_v32  ;;  %v131_v32 = vld [vmem:[%s395_s12 + $0xa8] sm:$0xff]  ;;  %v194_v1 = vsel %vm142_vm1, %v136_v62, 0.0  ;;  %v231_v2 = vmul.f32 %v129_v20, %v129_v20  ;;  %v234_v20 = vmul.f32 %v132_v38, %v132_v38 }
  0x27   : > { %v258_v16 = vadd.f32 %v257_v7, %v256_v10  ;;  %v184_v35 = vsel %vm142_vm1, %v131_v32, 0.0  ;;  %v196_v7 = vsel %vm142_vm1, %v137_v4, 0.0  ;;  %v138_v10 = vld [vmem:[%s395_s12 + $0xe0] sm:$0xff]  ;;  %v233_v14 = vmul.f32 %v131_v32, %v131_v32 }
  0x28   : > { %v163_v43 = vadd.f32 %v162_v34, %v161_v36  ;;  %v226_v36 = vmul.f32 %v124_v54, %v124_v54  ;;  %v229_v54 = vmul.f32 %v127_v8, %v127_v8  ;;  %v232_v8 = vmul.f32 %v130_v26, %v130_v26  ;;  %v140_v26 = vld [vmem:[%s395_s12 + $0xf0] sm:$0xff] }
  0x29   : > { %v260_v22 = vadd.f32 %v259_v13, %v258_v16  ;;  %v198_v13 = vsel %vm142_vm1, %v138_v10, 0.0  ;;  %v139_v16 = vld [vmem:[%s395_s12 + $0xe8] sm:$0xff] }
  0x2a   : > { %v165_v49 = vadd.f32 %v164_v37, %v163_v43  ;;  %v267_v37 = vsel %vm142_vm1, %v224_v24, 0.0  ;;  %v269_v43 = vsel %vm142_vm1, %v225_v30, 0.0  ;;  %v235_v24 = vmul.f32 %v133_v44, %v133_v44 }
  0x2b   : > { %v262_v28 = vadd.f32 %v261_v19, %v260_v22  ;;  %v200_v19 = vsel %vm142_vm1, %v139_v16, 0.0  ;;  %v236_v30 = vmul.f32 %v134_v50, %v134_v50 }
  0x2c   : > { %v167_v55 = vadd.f32 %v166_v45, %v165_v49  ;;  %v271_v49 = vsel %vm142_vm1, %v226_v36, 0.0 }
  0x2d   : > { %v264_v34 = vadd.f32 %v263_v25, %v262_v28  ;;  %v285_v25 = vsel %vm142_vm1, %v233_v14, 0.0 }
  0x2e   : > { %v169_v61 = vadd.f32 %v168_v51, %v167_v55  ;;  %v273_v55 = vsel %vm142_vm1, %v227_v42, 0.0  ;;  %v239_v42 = vmul.f32 %v137_v4, %v137_v4 }
  0x2f   : > { %v266_v40 = vadd.f32 %v265_v31, %v264_v34  ;;  %v287_v31 = vsel %vm142_vm1, %v234_v20, 0.0  ;;  %v289_v34 = vsel %vm142_vm1, %v235_v24, 0.0 }
  0x30   : > { %v171_v3 = vadd.f32 %v170_v57, %v169_v61  ;;  %v275_v61 = vsel %vm142_vm1, %v228_v48, 0.0  ;;  %v297_v50 = vsel %vm142_vm1, %v239_v42, 0.0 }
  0x31   : > { %v268_v46 = vadd.f32 %v267_v37, %v266_v40  ;;  %v291_v40 = vsel %vm142_vm1, %v236_v30, 0.0 }
  0x32   : > { %v173_v9 = vadd.f32 %v172_v63, %v171_v3  ;;  %v277_v3 = vsel %vm142_vm1, %v229_v54, 0.0 }
  0x33   : > { %v270_v52 = vadd.f32 %v269_v43, %v268_v46  ;;  %v240_v46 = vmul.f32 %v138_v10, %v138_v10 }
  0x34   : > { %v175_v15 = vadd.f32 %v174_v5, %v173_v9  ;;  %v279_v9 = vsel %vm142_vm1, %v230_v60, 0.0 }
  0x35   : > { %v272_v58 = vadd.f32 %v271_v49, %v270_v52  ;;  %v241_v49 = vmul.f32 %v139_v16, %v139_v16  ;;  %v299_v54 = vsel %vm142_vm1, %v240_v46, 0.0 }
  0x36   : > { %v177_v21 = vadd.f32 %v176_v11, %v175_v15  ;;  %v281_v15 = vsel %vm142_vm1, %v231_v2, 0.0 }
  0x37   : > { %v274_v0 = vadd.f32 %v273_v55, %v272_v58 }
  0x38   : > { %v179_v27 = vadd.f32 %v178_v17, %v177_v21  ;;  %v283_v21 = vsel %vm142_vm1, %v232_v8, 0.0 }
  0x39   : > { %v276_v6 = vadd.f32 %v275_v61, %v274_v0 }
  0x3a   : > { %v181_v33 = vadd.f32 %v180_v23, %v179_v27 }
  0x3b   : > { %v278_v12 = vadd.f32 %v277_v3, %v276_v6 }
  0x3c   : > { %v183_v39 = vadd.f32 %v182_v29, %v181_v33  ;;  %v202_v29 = vsel %vm142_vm1, %v140_v26, 0.0  ;;  %v237_v33 = vmul.f32 %v135_v56, %v135_v56 }
  0x3d   : > { %v280_v18 = vadd.f32 %v279_v9, %v278_v12 }
  0x3e   : > { %v185_v45 = vadd.f32 %v184_v35, %v183_v39  ;;  %v141_v35 = vld [vmem:[%s395_s12 + $0xf8] sm:$0xff]  ;;  %v238_v39 = vmul.f32 %v136_v62, %v136_v62  ;;  %v293_v43 = vsel %vm142_vm1, %v237_v33, 0.0 }
  0x3f   : > { %v282_v23 = vadd.f32 %v281_v15, %v280_v18  ;;  %v204_v38 = vsel %vm142_vm1, %v141_v35, 0.0  ;;  %v243_v56 = vmul.f32 %v141_v35, %v141_v35 }
  0x40   : > { %v187_v51 = vadd.f32 %v186_v41, %v185_v45 }
  0x41   : > { %v284_v28 = vadd.f32 %v283_v21, %v282_v23  ;;  %v305_v62 = vsel %vm142_vm1, %v243_v56, 0.0 }
  0x42   : > { %v189_v57 = vadd.f32 %v188_v47, %v187_v51  ;;  %v295_v47 = vsel %vm142_vm1, %v238_v39, 0.0 }
  0x43   : > { %v286_v32 = vadd.f32 %v285_v25, %v284_v28 }
  0x44   : > { %v191_v63 = vadd.f32 %v190_v53, %v189_v57  ;;  %v242_v53 = vmul.f32 %v140_v26, %v140_v26  ;;  %v301_v57 = vsel %vm142_vm1, %v241_v49, 0.0 }
  0x45   : > { %v288_v37 = vadd.f32 %v287_v31, %v286_v32 }
  0x46   : > { %v193_v5 = vadd.f32 %v192_v59, %v191_v63  ;;  %v303_v60 = vsel %vm142_vm1, %v242_v53, 0.0 }
  0x47   : > { %v290_v41 = vadd.f32 %v289_v34, %v288_v37 }
  0x48   : > { %v195_v11 = vadd.f32 %v194_v1, %v193_v5 }
  0x49   : > { %v292_v45 = vadd.f32 %v291_v40, %v290_v41 }
  0x4a   : > { %v197_v17 = vadd.f32 %v196_v7, %v195_v11  ;;  %v313_v11 = vld [vmem:[%s506_s1] sm:$0x3] }
  0x4b   : > { %v294_v48 = vadd.f32 %v293_v43, %v292_v45 }
  0x4c   : > { %v199_v22 = vadd.f32 %v198_v13, %v197_v17 }
  0x4d   : > { %v296_v52 = vadd.f32 %v295_v47, %v294_v48 }
  0x4e   : > { %v201_v27 = vadd.f32 %v200_v19, %v199_v22 }
  0x4f   : > { %v298_v55 = vadd.f32 %v297_v50, %v296_v52 }
  0x50   : > { %v203_v36 = vadd.f32 %v202_v29, %v201_v27 }
  0x51   : > { %v300_v59 = vadd.f32 %v299_v54, %v298_v55 }
  0x52   : > { %v205_v44 = vadd.f32 %v204_v38, %v203_v36 }
  0x53   : > { %v302_v61 = vadd.f32 %v301_v57, %v300_v59 }
  0x54   : > { %v206_v51 = vrot.slane %v205_v44, 4 }
  0x55   : > { %v304_v0 = vadd.f32 %v303_v60, %v302_v61 }
  0x56   : > { %v207_v58 = vadd.f32 %v206_v51, %v205_v44 }
  0x57   : > { %v306_v1 = vadd.f32 %v305_v62, %v304_v0 }
  0x58   : > { %v208_v63 = vrot.slane %v207_v58, 2 }
  0x59   : > { %v307_v3 = vrot.slane %v306_v1, 4 }
  0x5a   : > { %v209_v2 = vadd.f32 %v208_v63, %v207_v58 }
  0x5b   : > { %v308_v4 = vadd.f32 %v307_v3, %v306_v1 }
  0x5c   : > { %v210_v5 = vrot.slane %v209_v2, 1 }
  0x5d   : > { %v309_v6 = vrot.slane %v308_v4, 2 }
  0x5e   : > { %v211_v8 = vadd.f32 %v210_v5, %v209_v2 }
  0x5f   : > { %v310_v7 = vadd.f32 %v309_v6, %v308_v4 }
  0x61   : > { %v311_v9 = vrot.slane %v310_v7, 1 }
  0x63   : > { %v312_v10 = vadd.f32 %v311_v9, %v310_v7 }
  0x65   : > { %v315_v12 = vsel %vm314_vm2, %v211_v8, %v312_v10 }
  0x66   : > { %v316_v13 = vadd.f32 %v315_v12, %v313_v11 }
  0x68   : > { %318 = vst.msk [vmem:[%s506_s1] sm:$0x3] %vm317_vm3, %v316_v13 }
  0x69 PF: > { %s11_s6 = sadd.s32 1, %s371_s6  }
  0x6a   : > { %p8_p5 = scmp.ge.s32.totalorder %s11_s6, 4  }
  0x6c   :  { %10 = sbr.rel (!%p8_p5) target bundleno = 1 (0x1), region = 54 }

// kernel: _lambda_.46
= control target key start
LH: loop header
LB: loop body
LE: loop exit
PB: predicated region body
PF: predicated region fallthrough
CT: control target
= control target key end

     0   :  { %s500_s12 = smov 0   ;;  %s907_s0 = inlined_call_operand.vmem [shape: f32[512,8], index: 0, kind: input, shape index: {}]   ;;  %s908_s1 = inlined_call_operand.vmem [shape: f32[2,8], index: 1, kind: input, shape index: {}]   ;;  %s909_s2 = inlined_call_operand.vmem [shape: f32[2,8], index: 2, kind: input, shape index: {}]   ;;  %s910_s3 = inlined_call_operand.vmem [shape: f32[512,8], index: 3, kind: output, shape index: {}]  }
   0x1 LB: > { %s450_s13 = sadd.s32 4294967295, %s478_s12   ;;  %p454_p0 = scmp.ge.s32.totalorder %s478_s12, 1  ;;  %s478_s12 = sphi %s500_s12, %s13_s12  }
   0x2   : > { %p138_p1 = scmp.lt.s32.totalorder %s478_s12, 3 }
   0x4   : > { %p139_p2 = pnand %p454_p0, %p138_p1 }
   0x5   : > { %s455_s14 = sshll.u32 (!%p139_p2), %s450_s13, 5  ;;  %v174_v0 = vld [vmem:[%s908_s1] sm:$0x3] (!%p139_p2)  ;;  %v215_v2 = vlaneseq (!%p139_p2)  ;;  %vm361_vm0 = vcmask (!%p139_p2), 64512  }
   0x6   : > { %142 = sbr.rel (%p139_p2) target bundleno = 63 (0x3f), region = 32  ;;  %p163_p3 = scmp.lt.s32.totalorder (!%p139_p2), %s455_s14, 63  ;;  %v175_v1 = vmul.f32 (!%p139_p2), 0.001953125, %v174_v0  ;;  %v251_v10 = vld [vmem:[%s909_s2] sm:$0x1] (!%p139_p2) }
   0x7   : > { %v513_v5 = vshrl.u32 (!%p139_p2), %v215_v2, 7  ;;  %v253_v26 = vrot.slane (!%p139_p2), %v251_v10, 7 }
   0x8   : > { %v176_v3 = vmul.f32 (!%p139_p2), %v175_v1, %v175_v1 }
   0x9   : > { %v217_v8 = vsub.s32 (!%p139_p2), 0, %v513_v5  ;;  %v258_v27 = vsub.s32 (!%p139_p2), 1, %v513_v5 }
   0xa   : > { %v178_v4 = vrot.slane (!%p139_p2), %v176_v3, 7 }
   0xb   : > { %v533_v12 = vrot.slane (!%p139_p2), %v175_v1, %v217_v8 }
   0xc   : > { %v180_v6 = vsub.f32 (!%p139_p2), %v175_v1, %v178_v4 }
   0xd   : > { %s919_s14 = smov (!%p163_p3, %s455_s14), 63 }
   0xe   : > { %s456_s17 = sshll.u32 %s919_s14, 3  ;;  %v181_v7 = vadd.f32 1e-05, %v180_v6 }
   0xf   : > { %s521_s20 = scalar_lea.vmem %s907_s0, %s456_s17  ;;  %s714_s27 = scalar_lea.vmem %s910_s3, %s456_s17 }
  0x10   : > { %470 = vrsqrt.f32 %v181_v7  ;;  %v525_v9 = vld [vmem:[%s521_s20] sm:$0xff]  ;;  %v531_v11 = vld [vmem:[%s521_s20 + $0x8] sm:$0xff]  ;;  %v536_v13 = vld [vmem:[%s521_s20 + $0x10] sm:$0xff] }
  0x11   : > { %v539_v14 = vld [vmem:[%s521_s20 + $0x18] sm:$0xff]  ;;  %v542_v15 = vld [vmem:[%s521_s20 + $0x20] sm:$0xff]  ;;  %v545_v16 = vld [vmem:[%s521_s20 + $0x28] sm:$0xff]  ;;  %v219_v25 = vsub.f32 %v525_v9, %v533_v12  ;;  %v220_v28 = vsub.f32 %v531_v11, %v533_v12  ;;  %v221_v32 = vsub.f32 %v536_v13, %v533_v12 }
  0x12   : > { %v548_v17 = vld [vmem:[%s521_s20 + $0x30] sm:$0xff]  ;;  %v551_v18 = vld [vmem:[%s521_s20 + $0x38] sm:$0xff]  ;;  %v554_v19 = vld [vmem:[%s521_s20 + $0x40] sm:$0xff]  ;;  %v222_v33 = vsub.f32 %v539_v14, %v533_v12  ;;  %v223_v34 = vsub.f32 %v542_v15, %v533_v12  ;;  %v224_v35 = vsub.f32 %v545_v16, %v533_v12 }
  0x13   : > { %v557_v20 = vld [vmem:[%s521_s20 + $0x48] sm:$0xff]  ;;  %v560_v21 = vld [vmem:[%s521_s20 + $0x50] sm:$0xff]  ;;  %v563_v22 = vld [vmem:[%s521_s20 + $0x58] sm:$0xff]  ;;  %v225_v39 = vsub.f32 %v548_v17, %v533_v12  ;;  %v226_v40 = vsub.f32 %v551_v18, %v533_v12  ;;  %v227_v41 = vsub.f32 %v554_v19, %v533_v12 }
  0x14   : > { %v566_v23 = vld [vmem:[%s521_s20 + $0x60] sm:$0xff]  ;;  %v569_v24 = vld [vmem:[%s521_s20 + $0x68] sm:$0xff]  ;;  %v577_v29 = vld [vmem:[%s521_s20 + $0x70] sm:$0xff]  ;;  %v228_v42 = vsub.f32 %v557_v20, %v533_v12  ;;  %v229_v46 = vsub.f32 %v560_v21, %v533_v12  ;;  %v230_v47 = vsub.f32 %v563_v22, %v533_v12 }
  0x15   : > { %v580_v30 = vld [vmem:[%s521_s20 + $0x78] sm:$0xff]  ;;  %v583_v31 = vld [vmem:[%s521_s20 + $0x80] sm:$0xff]  ;;  %v594_v36 = vld [vmem:[%s521_s20 + $0x88] sm:$0xff]  ;;  %v231_v48 = vsub.f32 %v566_v23, %v533_v12  ;;  %v232_v49 = vsub.f32 %v569_v24, %v533_v12  ;;  %v233_v54 = vsub.f32 %v577_v29, %v533_v12 }
  0x16   : > { %v597_v37 = vld [vmem:[%s521_s20 + $0x90] sm:$0xff]  ;;  %v600_v38 = vld [vmem:[%s521_s20 + $0x98] sm:$0xff]  ;;  %v611_v43 = vld [vmem:[%s521_s20 + $0xa0] sm:$0xff]  ;;  %v234_v55 = vsub.f32 %v580_v30, %v533_v12  ;;  %v235_v56 = vsub.f32 %v583_v31, %v533_v12  ;;  %v236_v57 = vsub.f32 %v594_v36, %v533_v12 }
  0x17   : > { %v614_v44 = vld [vmem:[%s521_s20 + $0xa8] sm:$0xff]  ;;  %v617_v45 = vld [vmem:[%s521_s20 + $0xb0] sm:$0xff]  ;;  %v628_v50 = vld [vmem:[%s521_s20 + $0xb8] sm:$0xff]  ;;  %v237_v62 = vsub.f32 %v597_v37, %v533_v12  ;;  %v238_v63 = vsub.f32 %v600_v38, %v533_v12  ;;  %v239_v0 = vsub.f32 %v611_v43, %v533_v12 }
  0x18   : > { %v631_v51 = vld [vmem:[%s521_s20 + $0xc0] sm:$0xff]  ;;  %v634_v52 = vld [vmem:[%s521_s20 + $0xc8] sm:$0xff]  ;;  %v645_v58 = vld [vmem:[%s521_s20 + $0xd0] sm:$0xff]  ;;  %v240_v4 = vsub.f32 %v614_v44, %v533_v12  ;;  %v241_v5 = vsub.f32 %v617_v45, %v533_v12  ;;  %v242_v6 = vsub.f32 %v628_v50, %v533_v12 }
  0x19   : > { %v648_v59 = vld [vmem:[%s521_s20 + $0xd8] sm:$0xff]  ;;  %v651_v60 = vld [vmem:[%s521_s20 + $0xe0] sm:$0xff]  ;;  %v660_v1 = vld [vmem:[%s521_s20 + $0xe8] sm:$0xff]  ;;  %v243_v7 = vsub.f32 %v631_v51, %v533_v12 }
  0x1a   : > { %v471_v53 = vpop.eup %470  ;;  %v663_v2 = vld [vmem:[%s521_s20 + $0xf0] sm:$0xff]  ;;  %v666_v3 = vld [vmem:[%s521_s20 + $0xf8] sm:$0xff]  ;;  %v687_v13 = vld [vmem:[%s909_s2 + $0x1] ss:$0 sm:$0xff]  ;;  %v914_v51 = vsub.f32 %v651_v60, %v533_v12 }
  0x1b   : > { %v255_v61 = vmul.f32 %v471_v53, %v253_v26 }
  0x1d   : > { %v676_v8 = vrot.slane %v255_v61, %v258_v27 }
  0x1f   : > { %v260_v18 = vmul.f32 %v676_v8, %v219_v25  ;;  %v261_v26 = vmul.f32 %v676_v8, %v220_v28  ;;  %v262_v27 = vmul.f32 %v676_v8, %v221_v32  ;;  %v263_v53 = vmul.f32 %v676_v8, %v222_v33 }
  0x20   : > { %v264_v61 = vmul.f32 %v676_v8, %v223_v34  ;;  %v265_v14 = vmul.f32 %v676_v8, %v224_v35  ;;  %v266_v15 = vmul.f32 %v676_v8, %v225_v39  ;;  %v267_v11 = vmul.f32 %v676_v8, %v226_v40 }
  0x21   : > { %v297_v16 = vadd.f32 %v687_v13, %v260_v18  ;;  %v298_v17 = vadd.f32 %v687_v13, %v261_v26  ;;  %v299_v25 = vadd.f32 %v687_v13, %v262_v27  ;;  %v300_v28 = vadd.f32 %v687_v13, %v263_v53 }
  0x22   : > { %v301_v32 = vadd.f32 %v687_v13, %v264_v61  ;;  %v302_v33 = vadd.f32 %v687_v13, %v265_v14  ;;  %v303_v34 = vadd.f32 %v687_v13, %v266_v15  ;;  %v304_v35 = vadd.f32 %v687_v13, %v267_v11 }
  0x23   : > { %v329_v39 = vmax.f32 %v297_v16, 0.0  ;;  %v330_v40 = vmax.f32 %v298_v17, 0.0  ;;  %v331_v18 = vmax.f32 %v299_v25, 0.0  ;;  %v332_v26 = vmax.f32 %v300_v28, 0.0 }
  0x24   : > { %v333_v27 = vmax.f32 %v301_v32, 0.0  ;;  %v334_v53 = vmax.f32 %v302_v33, 0.0  ;;  %v335_v10 = vmax.f32 %v303_v34, 0.0  ;;  %v336_v9 = vmax.f32 %v304_v35, 0.0 }
  0x25   : > { %362 = vst.msk [vmem:[%s714_s27] sm:$0xff] %vm361_vm0, %v329_v39  ;;  %363 = vst.msk [vmem:[%s714_s27 + $0x8] sm:$0xff] %vm361_vm0, %v330_v40  ;;  %v268_v11 = vmul.f32 %v676_v8, %v227_v41  ;;  %v269_v14 = vmul.f32 %v676_v8, %v228_v42  ;;  %v270_v15 = vmul.f32 %v676_v8, %v229_v46 }
  0x26   : > { %364 = vst.msk [vmem:[%s714_s27 + $0x10] sm:$0xff] %vm361_vm0, %v331_v18  ;;  %365 = vst.msk [vmem:[%s714_s27 + $0x18] sm:$0xff] %vm361_vm0, %v332_v26  ;;  %v271_v16 = vmul.f32 %v676_v8, %v230_v47  ;;  %v272_v19 = vmul.f32 %v676_v8, %v231_v48  ;;  %v273_v20 = vmul.f32 %v676_v8, %v232_v49 }
  0x27   : > { %366 = vst.msk [vmem:[%s714_s27 + $0x20] sm:$0xff] %vm361_vm0, %v333_v27  ;;  %367 = vst.msk [vmem:[%s714_s27 + $0x28] sm:$0xff] %vm361_vm0, %v334_v53  ;;  %v274_v21 = vmul.f32 %v676_v8, %v233_v54  ;;  %v275_v22 = vmul.f32 %v676_v8, %v234_v55  ;;  %v305_v41 = vadd.f32 %v687_v13, %v268_v11 }
  0x28   : > { %368 = vst.msk [vmem:[%s714_s27 + $0x30] sm:$0xff] %vm361_vm0, %v335_v10  ;;  %369 = vst.msk [vmem:[%s714_s27 + $0x38] sm:$0xff] %vm361_vm0, %v336_v9  ;;  %v306_v23 = vadd.f32 %v687_v13, %v269_v14  ;;  %v307_v24 = vadd.f32 %v687_v13, %v270_v15  ;;  %v308_v42 = vadd.f32 %v687_v13, %v271_v16 }
  0x29   : > { %v309_v29 = vadd.f32 %v687_v13, %v272_v19  ;;  %v310_v46 = vadd.f32 %v687_v13, %v273_v20  ;;  %v311_v30 = vadd.f32 %v687_v13, %v274_v21  ;;  %v312_v47 = vadd.f32 %v687_v13, %v275_v22 }
  0x2a   : > { %v337_v48 = vmax.f32 %v305_v41, 0.0  ;;  %v338_v49 = vmax.f32 %v306_v23, 0.0  ;;  %v339_v54 = vmax.f32 %v307_v24, 0.0  ;;  %v340_v55 = vmax.f32 %v308_v42, 0.0 }
  0x2b   : > { %v341_v9 = vmax.f32 %v309_v29, 0.0  ;;  %v342_v10 = vmax.f32 %v310_v46, 0.0  ;;  %v343_v17 = vmax.f32 %v311_v30, 0.0  ;;  %v344_v61 = vmax.f32 %v312_v47, 0.0 }
  0x2c   : > { %370 = vst.msk [vmem:[%s714_s27 + $0x40] sm:$0xff] %vm361_vm0, %v337_v48  ;;  %371 = vst.msk [vmem:[%s714_s27 + $0x48] sm:$0xff] %vm361_vm0, %v338_v49  ;;  %v276_v25 = vmul.f32 %v676_v8, %v235_v56  ;;  %v277_v28 = vmul.f32 %v676_v8, %v236_v57  ;;  %v278_v32 = vmul.f32 %v676_v8, %v237_v62 }
  0x2d   : > { %372 = vst.msk [vmem:[%s714_s27 + $0x50] sm:$0xff] %vm361_vm0, %v339_v54  ;;  %373 = vst.msk [vmem:[%s714_s27 + $0x58] sm:$0xff] %vm361_vm0, %v340_v55  ;;  %v279_v33 = vmul.f32 %v676_v8, %v238_v63  ;;  %v280_v31 = vmul.f32 %v676_v8, %v239_v0  ;;  %v281_v36 = vmul.f32 %v676_v8, %v240_v4 }
  0x2e   : > { %374 = vst.msk [vmem:[%s714_s27 + $0x60] sm:$0xff] %vm361_vm0, %v341_v9  ;;  %375 = vst.msk [vmem:[%s714_s27 + $0x68] sm:$0xff] %vm361_vm0, %v342_v10  ;;  %v282_v37 = vmul.f32 %v676_v8, %v241_v5  ;;  %v283_v38 = vmul.f32 %v676_v8, %v242_v6  ;;  %v313_v56 = vadd.f32 %v687_v13, %v276_v25 }
  0x2f   : > { %376 = vst.msk [vmem:[%s714_s27 + $0x70] sm:$0xff] %vm361_vm0, %v343_v17  ;;  %377 = vst.msk [vmem:[%s714_s27 + $0x78] sm:$0xff] %vm361_vm0, %v344_v61  ;;  %v314_v43 = vadd.f32 %v687_v13, %v277_v28  ;;  %v315_v44 = vadd.f32 %v687_v13, %v278_v32  ;;  %v316_v57 = vadd.f32 %v687_v13, %v279_v33 }
  0x30   : > { %v317_v45 = vadd.f32 %v687_v13, %v280_v31  ;;  %v318_v62 = vadd.f32 %v687_v13, %v281_v36  ;;  %v319_v50 = vadd.f32 %v687_v13, %v282_v37  ;;  %v320_v63 = vadd.f32 %v687_v13, %v283_v38 }
  0x31   : > { %v345_v0 = vmax.f32 %v313_v56, 0.0  ;;  %v346_v4 = vmax.f32 %v314_v43, 0.0  ;;  %v347_v5 = vmax.f32 %v315_v44, 0.0  ;;  %v348_v6 = vmax.f32 %v316_v57, 0.0 }
  0x32   : > { %v349_v34 = vmax.f32 %v317_v45, 0.0  ;;  %v350_v35 = vmax.f32 %v318_v62, 0.0  ;;  %v351_v39 = vmax.f32 %v319_v50, 0.0  ;;  %v352_v40 = vmax.f32 %v320_v63, 0.0 }
  0x33   : > { %378 = vst.msk [vmem:[%s714_s27 + $0x80] sm:$0xff] %vm361_vm0, %v345_v0  ;;  %379 = vst.msk [vmem:[%s714_s27 + $0x88] sm:$0xff] %vm361_vm0, %v346_v4  ;;  %v284_v18 = vmul.f32 %v676_v8, %v243_v7  ;;  %v911_v26 = vsub.f32 %v634_v52, %v533_v12  ;;  %v912_v53 = vsub.f32 %v645_v58, %v533_v12 }
  0x34   : > { %380 = vst.msk [vmem:[%s714_s27 + $0x90] sm:$0xff] %vm361_vm0, %v347_v5  ;;  %381 = vst.msk [vmem:[%s714_s27 + $0x98] sm:$0xff] %vm361_vm0, %v348_v6  ;;  %v913_v14 = vsub.f32 %v648_v59, %v533_v12  ;;  %v288_v52 = vmul.f32 %v676_v8, %v914_v51  ;;  %v915_v58 = vsub.f32 %v660_v1, %v533_v12 }
  0x35   : > { %v285_v27 = vmul.f32 %v676_v8, %v911_v26  ;;  %v286_v11 = vmul.f32 %v676_v8, %v912_v53  ;;  %382 = vst.msk [vmem:[%s714_s27 + $0xa0] sm:$0xff] %vm361_vm0, %v349_v34  ;;  %383 = vst.msk [vmem:[%s714_s27 + $0xa8] sm:$0xff] %vm361_vm0, %v350_v35  ;;  %v916_v7 = vsub.f32 %v663_v2, %v533_v12 }
  0x36   : > { %v287_v15 = vmul.f32 %v676_v8, %v913_v14  ;;  %384 = vst.msk [vmem:[%s714_s27 + $0xb0] sm:$0xff] %vm361_vm0, %v351_v39  ;;  %385 = vst.msk [vmem:[%s714_s27 + $0xb8] sm:$0xff] %vm361_vm0, %v352_v40  ;;  %v289_v59 = vmul.f32 %v676_v8, %v915_v58  ;;  %v917_v19 = vsub.f32 %v666_v3, %v533_v12 }
  0x37   : > { %v290_v16 = vmul.f32 %v676_v8, %v916_v7  ;;  %v321_v21 = vadd.f32 %v687_v13, %v284_v18  ;;  %v322_v60 = vadd.f32 %v687_v13, %v285_v27  ;;  %v323_v1 = vadd.f32 %v687_v13, %v286_v11 }
  0x38   : > { %v291_v20 = vmul.f32 %v676_v8, %v917_v19  ;;  %v324_v22 = vadd.f32 %v687_v13, %v287_v15  ;;  %v325_v2 = vadd.f32 %v687_v13, %v288_v52  ;;  %v326_v41 = vadd.f32 %v687_v13, %v289_v59 }
  0x39   : > { %v327_v12 = vadd.f32 %v687_v13, %v290_v16  ;;  %v353_v8 = vmax.f32 %v321_v21, 0.0  ;;  %v354_v23 = vmax.f32 %v322_v60, 0.0  ;;  %v355_v24 = vmax.f32 %v323_v1, 0.0 }
  0x3a   : > { %v328_v3 = vadd.f32 %v687_v13, %v291_v20  ;;  %v356_v42 = vmax.f32 %v324_v22, 0.0  ;;  %v357_v29 = vmax.f32 %v325_v2, 0.0  ;;  %v358_v46 = vmax.f32 %v326_v41, 0.0 }
  0x3b   : > { %v359_v30 = vmax.f32 %v327_v12, 0.0  ;;  %386 = vst.msk [vmem:[%s714_s27 + $0xc0] sm:$0xff] %vm361_vm0, %v353_v8  ;;  %387 = vst.msk [vmem:[%s714_s27 + $0xc8] sm:$0xff] %vm361_vm0, %v354_v23 }
  0x3c   : > { %v360_v47 = vmax.f32 %v328_v3, 0.0  ;;  %388 = vst.msk [vmem:[%s714_s27 + $0xd0] sm:$0xff] %vm361_vm0, %v355_v24  ;;  %389 = vst.msk [vmem:[%s714_s27 + $0xd8] sm:$0xff] %vm361_vm0, %v356_v42 }
  0x3d   : > { %390 = vst.msk [vmem:[%s714_s27 + $0xe0] sm:$0xff] %vm361_vm0, %v357_v29  ;;  %391 = vst.msk [vmem:[%s714_s27 + $0xe8] sm:$0xff] %vm361_vm0, %v358_v46 }
  0x3e   : > { %392 = vst.msk [vmem:[%s714_s27 + $0xf0] sm:$0xff] %vm361_vm0, %v359_v30  ;;  %393 = vst.msk [vmem:[%s714_s27 + $0xf8] sm:$0xff] %vm361_vm0, %v360_v47 }
  0x3f PF: > { %s13_s12 = sadd.s32 1, %s478_s12  }
  0x40   : > { %p10_p4 = scmp.ge.s32.totalorder %s13_s12, 4  }
  0x42   :  { %12 = sbr.rel (!%p10_p4) target bundleno = 1 (0x1), region = 62 }

// kernel: _lambda_.47
= control target key start
LH: loop header
LB: loop body
LE: loop exit
PB: predicated region body
PF: predicated region fallthrough
CT: control target
= control target key end

     0   :  { %s1327_s12 = smov 0   ;;  %s1329_s13 = smov 0   ;;  %s1629_s0 = inlined_call_operand.vmem [shape: bf16[512,144], index: 0, kind: input, shape index: {}]   ;;  %s1630_s1 = inlined_call_operand.vmem [shape: bf16[144,12], index: 1, kind: input, shape index: {}]   ;;  %s1631_s2 = inlined_call_operand.vmem [shape: f32[1,12], index: 2, kind: input, shape index: {}]   ;;  %s1632_s3 = inlined_call_operand.vmem [shape: f32[512,12], index: 3, kind: output, shape index: {}]  }
   0x1   :  { %s1331_s14 = smov 0  }
   0x2 LB: > { %s25_s15 = sadd.s32 1, %s1299_s13  ;;  %p1049_p0 = scmp.ge.s32.totalorder %s1303_s14, 1  ;;  %s1303_s14 = sphi %s1331_s14, %s13_s14   ;;  %s1299_s13 = sphi %s1329_s13, %s1634_s13   ;;  %s1295_s12 = sphi %s1327_s12, %s1633_s12  }
   0x3   : > { %p27_p1 = scmp.ge.s32.totalorder %s25_s15, 2  ;;  %p169_p2 = scmp.lt.s32.totalorder %s1303_s14, 3 }
   0x5   : > { %s1636_s15 = smov (%p27_p1, %s25_s15), 0  ;;  %p170_p3 = pnand %p1049_p0, %p169_p2 }
   0x6   : > { %v1160_v0 = vld [vmem:[%s1630_s1] sm:$0xff] (!%p170_p3)   ;;  %v1305_v1 = vmov (!%p170_p3), 0   ;;  %s1050_s18 = sshll.u32 (!%p170_p3), %s1295_s12, 5  ;;  %v1161_v2 = vld [vmem:[%s1630_s1 + $0x8] sm:$0xff] (!%p170_p3)   ;;  %vm232_vm0 = vcmask (!%p170_p3), 97280   ;;  %v1162_v3 = vld [vmem:[%s1630_s1 + $0x10] sm:$0xff] (!%p170_p3)  }
   0x7   : > { %173 = sbr.rel (%p170_p3) target bundleno = 339 (0x153), region = 32  ;;  %594 = vmatprep.subr.bf16.mxu0 (!%p170_p3), %v1305_v1  ;;  %1116 = vmatprep.subr.bf16.mxu1 (!%p170_p3), %v1305_v1  ;;  %p205_p4 = scmp.lt.s32.totalorder (!%p170_p3), %s1050_s18, 63  ;;  %v1306_v4 = vmov (!%p170_p3), 0.0   ;;  %v1163_v5 = vld [vmem:[%s1630_s1 + $0x18] sm:$0xff] (!%p170_p3)   ;;  %vm545_vm1 = vcmask (!%p170_p3), 130048   ;;  %v1164_v8 = vld [vmem:[%s1630_s1 + $0x20] sm:$0xff] (!%p170_p3)  }
   0x8   : > { %595 = vmatpush1.bf16.msra.mxu0 (!%p170_p3), %v1160_v0  ;;  %1125 = vmatpush1.bf16.msra.mxu1 (!%p170_p3), %v1160_v0  ;;  %233 = vst.msk [vmem:[#allocation2] sm:$0xff] (!%p170_p3), %vm232_vm0, %v1306_v4  ;;  %234 = vst.msk [vmem:[#allocation2 + $0x8] sm:$0xff] (!%p170_p3), %vm232_vm0, %v1306_v4  ;;  %v1165_v9 = vld [vmem:[%s1630_s1 + $0x28] sm:$0xff] (!%p170_p3)   ;;  %v1166_v10 = vld [vmem:[%s1630_s1 + $0x30] sm:$0xff] (!%p170_p3)  }
   0x9   : > { %596 = vmatprep.subr.bf16.mxu0 (!%p170_p3), %v1305_v1  ;;  %1117 = vmatprep.subr.bf16.mxu1 (!%p170_p3), %v1305_v1  ;;  %235 = vst.msk [vmem:[#allocation2 + $0x10] sm:$0xff] (!%p170_p3), %vm232_vm0, %v1306_v4  ;;  %236 = vst.msk [vmem:[#allocation2 + $0x18] sm:$0xff] (!%p170_p3), %vm232_vm0, %v1306_v4  ;;  %v1167_v11 = vld [vmem:[%s1630_s1 + $0x38] sm:$0xff] (!%p170_p3)   ;;  %v1168_v12 = vld [vmem:[%s1630_s1 + $0x40] sm:$0xff] (!%p170_p3)  }
   0xa   : > { %237 = vst.msk [vmem:[#allocation2 + $0x20] sm:$0xff] (!%p170_p3), %vm232_vm0, %v1306_v4  ;;  %238 = vst.msk [vmem:[#allocation2 + $0x28] sm:$0xff] (!%p170_p3), %vm232_vm0, %v1306_v4  ;;  %v1487_v61 = vld [vmem:[%s1631_s2] ss:$0 sm:$0xff] (!%p170_p3) }
   0xb   : > { %239 = vst.msk [vmem:[#allocation2 + $0x30] sm:$0xff] (!%p170_p3), %vm232_vm0, %v1306_v4  ;;  %240 = vst.msk [vmem:[#allocation2 + $0x38] sm:$0xff] (!%p170_p3), %vm232_vm0, %v1306_v4 }
   0xc   : > { %597 = vmatpush1.bf16.msra.mxu0 (!%p170_p3), %v1161_v2  ;;  %1126 = vmatpush1.bf16.msra.mxu1 (!%p170_p3), %v1161_v2  ;;  %241 = vst.msk [vmem:[#allocation2 + $0x40] sm:$0xff] (!%p170_p3), %vm232_vm0, %v1306_v4  ;;  %242 = vst.msk [vmem:[#allocation2 + $0x48] sm:$0xff] (!%p170_p3), %vm232_vm0, %v1306_v4 }
   0xd   : > { %598 = vmatprep.subr.bf16.mxu0 (!%p170_p3), %v1305_v1  ;;  %1118 = vmatprep.subr.bf16.mxu1 (!%p170_p3), %v1305_v1  ;;  %243 = vst.msk [vmem:[#allocation2 + $0x50] sm:$0xff] (!%p170_p3), %vm232_vm0, %v1306_v4  ;;  %244 = vst.msk [vmem:[#allocation2 + $0x58] sm:$0xff] (!%p170_p3), %vm232_vm0, %v1306_v4 }
   0xe   : > { %s1638_s18 = smov (!%p205_p4, %s1050_s18), 63  ;;  %245 = vst.msk [vmem:[#allocation2 + $0x60] sm:$0xff] %vm232_vm0, %v1306_v4  ;;  %246 = vst.msk [vmem:[#allocation2 + $0x68] sm:$0xff] %vm232_vm0, %v1306_v4 }
   0xf   : > { %s1115_s23 = sshll.u32 %s1638_s18, 3  ;;  %247 = vst.msk [vmem:[#allocation2 + $0x70] sm:$0xff] %vm232_vm0, %v1306_v4  ;;  %248 = vst.msk [vmem:[#allocation2 + $0x78] sm:$0xff] %vm232_vm0, %v1306_v4  ;;  %v265_v43 = vld [vmem:[#allocation2] sm:$0xff]  ;;  %v266_v47 = vld [vmem:[#allocation2 + $0x8] sm:$0xff] }
  0x10   : > { %s1368_s26 = scalar_lea.vmem %s1629_s0, %s1115_s23  ;;  %249 = vst.msk [vmem:[#allocation2 + $0x80] sm:$0xff] %vm232_vm0, %v1306_v4  ;;  %250 = vst.msk [vmem:[#allocation2 + $0x88] sm:$0xff] %vm232_vm0, %v1306_v4  ;;  %599 = vmatpush1.bf16.msra.mxu0 %v1162_v3  ;;  %1127 = vmatpush1.bf16.msra.mxu1 %v1162_v3  ;;  %v267_v59 = vld [vmem:[#allocation2 + $0x10] sm:$0xff]  ;;  %v268_v0 = vld [vmem:[#allocation2 + $0x18] sm:$0xff]  ;;  %s1506_s20 = scalar_lea.vmem %s1632_s3, %s1115_s23 }
  0x11   : > { %251 = vst.msk [vmem:[#allocation2 + $0x90] sm:$0xff] %vm232_vm0, %v1306_v4  ;;  %252 = vst.msk [vmem:[#allocation2 + $0x98] sm:$0xff] %vm232_vm0, %v1306_v4  ;;  %v1171_v6 = vld [vmem:[%s1368_s26 + $0x4] ss:$8 sps:$4 sm:$0xff]   ;;  %600 = vmatprep.subr.bf16.mxu0 %v1305_v1  ;;  %1119 = vmatprep.subr.bf16.mxu1 %v1305_v1  ;;  %v1169_v13 = vld [vmem:[%s1368_s26] ss:$8 sps:$4 sm:$0xff]  }
  0x12   : > { %253 = vst.msk [vmem:[#allocation2 + $0xa0] sm:$0xff] %vm232_vm0, %v1306_v4  ;;  %254 = vst.msk [vmem:[#allocation2 + $0xa8] sm:$0xff] %vm232_vm0, %v1306_v4  ;;  %v1174_v7 = vld [vmem:[%s1368_s26 + $0x84] ss:$8 sps:$4 sm:$0xff]   ;;  %1096 = vmatprep.mubr.msk.bf16.mxu0 %vm545_vm1, %v1171_v6  ;;  %v1172_v14 = vld [vmem:[%s1368_s26 + $0x80] ss:$8 sps:$4 sm:$0xff]  }
  0x13   : > { %255 = vst.msk [vmem:[#allocation2 + $0xb0] sm:$0xff] %vm232_vm0, %v1306_v4  ;;  %256 = vst.msk [vmem:[#allocation2 + $0xb8] sm:$0xff] %vm232_vm0, %v1306_v4  ;;  %1104 = vmatprep.mubr.msk.bf16.mxu1 %vm545_vm1, %v1174_v7  ;;  %v1175_v15 = vld [vmem:[%s1368_s26 + $0x14] ss:$8 sps:$4 sm:$0xff]   ;;  %v1179_v17 = vld [vmem:[%s1368_s26 + $0x10] ss:$8 sps:$4 sm:$0xff]  }
  0x14   : > { %257 = vst.msk [vmem:[#allocation2 + $0xc0] sm:$0xff] %vm232_vm0, %v1306_v4  ;;  %258 = vst.msk [vmem:[#allocation2 + $0xc8] sm:$0xff] %vm232_vm0, %v1306_v4  ;;  %601 = vmatpush1.bf16.msra.mxu0 %v1163_v5  ;;  %1128 = vmatpush1.bf16.msra.mxu1 %v1163_v5  ;;  %v1177_v16 = vld [vmem:[%s1368_s26 + $0x94] ss:$8 sps:$4 sm:$0xff]   ;;  %v1180_v18 = vld [vmem:[%s1368_s26 + $0x90] ss:$8 sps:$4 sm:$0xff]  }
  0x15   : > { %259 = vst.msk [vmem:[#allocation2 + $0xd0] sm:$0xff] %vm232_vm0, %v1306_v4  ;;  %260 = vst.msk [vmem:[#allocation2 + $0xd8] sm:$0xff] %vm232_vm0, %v1306_v4  ;;  %602 = vmatprep.subr.bf16.mxu0 %v1305_v1  ;;  %1120 = vmatprep.subr.bf16.mxu1 %v1305_v1  ;;  %v1181_v19 = vld [vmem:[%s1368_s26 + $0x24] ss:$8 sps:$4 sm:$0xff]   ;;  %v1185_v21 = vld [vmem:[%s1368_s26 + $0x20] ss:$8 sps:$4 sm:$0xff]  }
  0x16   : > { %261 = vst.msk [vmem:[#allocation2 + $0xe0] sm:$0xff] %vm232_vm0, %v1306_v4  ;;  %262 = vst.msk [vmem:[#allocation2 + $0xe8] sm:$0xff] %vm232_vm0, %v1306_v4  ;;  %v1183_v20 = vld [vmem:[%s1368_s26 + $0xa4] ss:$8 sps:$4 sm:$0xff]   ;;  %v1186_v22 = vld [vmem:[%s1368_s26 + $0xa0] ss:$8 sps:$4 sm:$0xff]  }
  0x17   : > { %263 = vst.msk [vmem:[#allocation2 + $0xf0] sm:$0xff] %vm232_vm0, %v1306_v4  ;;  %264 = vst.msk [vmem:[#allocation2 + $0xf8] sm:$0xff] %vm232_vm0, %v1306_v4  ;;  %v1187_v23 = vld [vmem:[%s1368_s26 + $0x34] ss:$8 sps:$4 sm:$0xff]   ;;  %v1191_v25 = vld [vmem:[%s1368_s26 + $0x30] ss:$8 sps:$4 sm:$0xff]  }
  0x18   : > { %603 = vmatpush1.bf16.msra.mxu0 %v1164_v8  ;;  %1129 = vmatpush1.bf16.msra.mxu1 %v1164_v8  ;;  %v1189_v24 = vld [vmem:[%s1368_s26 + $0xb4] ss:$8 sps:$4 sm:$0xff]   ;;  %v1192_v26 = vld [vmem:[%s1368_s26 + $0xb0] ss:$8 sps:$4 sm:$0xff]   ;;  %v1193_v27 = vld [vmem:[%s1368_s26 + $0x44] ss:$8 sps:$4 sm:$0xff]  }
  0x19   : > { %604 = vmatprep.subr.bf16.mxu0 %v1305_v1  ;;  %1121 = vmatprep.subr.bf16.mxu1 %v1305_v1  ;;  %v1195_v28 = vld [vmem:[%s1368_s26 + $0xc4] ss:$8 sps:$4 sm:$0xff]   ;;  %v1197_v29 = vld [vmem:[%s1368_s26 + $0x40] ss:$8 sps:$4 sm:$0xff]   ;;  %v1199_v31 = vld [vmem:[%s1368_s26 + $0x54] ss:$8 sps:$4 sm:$0xff]  }
  0x1a   : > { %v1198_v30 = vld [vmem:[%s1368_s26 + $0xc0] ss:$8 sps:$4 sm:$0xff]   ;;  %v1201_v32 = vld [vmem:[%s1368_s26 + $0xd4] ss:$8 sps:$4 sm:$0xff]   ;;  %v1203_v33 = vld [vmem:[%s1368_s26 + $0x50] ss:$8 sps:$4 sm:$0xff]  }
  0x1b   : > { %v1204_v34 = vld [vmem:[%s1368_s26 + $0xd0] ss:$8 sps:$4 sm:$0xff]   ;;  %v1205_v35 = vld [vmem:[%s1368_s26 + $0x64] ss:$8 sps:$4 sm:$0xff]   ;;  %v1209_v37 = vld [vmem:[%s1368_s26 + $0x60] ss:$8 sps:$4 sm:$0xff]  }
  0x1c   : > { %605 = vmatpush1.bf16.msra.mxu0 %v1165_v9  ;;  %1130 = vmatpush1.bf16.msra.mxu1 %v1165_v9  ;;  %v1207_v36 = vld [vmem:[%s1368_s26 + $0xe4] ss:$8 sps:$4 sm:$0xff]   ;;  %v1210_v38 = vld [vmem:[%s1368_s26 + $0xe0] ss:$8 sps:$4 sm:$0xff]   ;;  %v1211_v39 = vld [vmem:[%s1368_s26 + $0x74] ss:$8 sps:$4 sm:$0xff]  }
  0x1d   : > { %606 = vmatprep.subr.bf16.mxu0 %v1305_v1  ;;  %1122 = vmatprep.subr.bf16.mxu1 %v1305_v1  ;;  %v1213_v40 = vld [vmem:[%s1368_s26 + $0xf4] ss:$8 sps:$4 sm:$0xff]   ;;  %v1215_v41 = vld [vmem:[%s1368_s26 + $0x70] ss:$8 sps:$4 sm:$0xff]   ;;  %v281_v44 = vld [vmem:[#allocation2 + $0x80] sm:$0xff] }
  0x1e   : > { %v1216_v42 = vld [vmem:[%s1368_s26 + $0xf0] ss:$8 sps:$4 sm:$0xff]   ;;  %v282_v48 = vld [vmem:[#allocation2 + $0x88] sm:$0xff] }
  0x1f   : > { %v283_v60 = vld [vmem:[#allocation2 + $0x90] sm:$0xff] }
  0x20   : > { %607 = vmatpush1.bf16.msra.mxu0 %v1166_v10  ;;  %1131 = vmatpush1.bf16.msra.mxu1 %v1166_v10 }
  0x21   : > { %608 = vmatprep.subr.bf16.mxu0 %v1305_v1  ;;  %1123 = vmatprep.subr.bf16.mxu1 %v1305_v1 }
  0x24   : > { %609 = vmatpush1.bf16.msra.mxu0 %v1167_v11  ;;  %1132 = vmatpush1.bf16.msra.mxu1 %v1167_v11 }
  0x25   : > { %610 = vmatprep.subr.bf16.mxu0 %v1305_v1  ;;  %1124 = vmatprep.subr.bf16.mxu1 %v1305_v1  ;;  %v284_v1 = vld [vmem:[#allocation2 + $0x98] sm:$0xff] }
  0x28   : > { %611 = vmatpush1.bf16.msra.mxu0 %v1168_v12  ;;  %1133 = vmatpush1.bf16.msra.mxu1 %v1168_v12 }
  0x2b   : > { %627 = vmatmul.mubr.bf16.vlgmr.msra.gmra.mrb[0].mxu0 %v1169_v13  ;;  %691 = vmatmul.mubr.bf16.vlgmr.msra.gmra.mrb[0].mxu1 %v1172_v14 }
  0x2c   : > { %1097 = vmatprep.mubr.msk.bf16.mxu0 %vm545_vm1, %v1175_v15  ;;  %1105 = vmatprep.mubr.msk.bf16.mxu1 %vm545_vm1, %v1177_v16 }
  0x33   : > { %635 = vmatmul.mubr.bf16.gmra.mrb[4].mxu0 %v1179_v17  ;;  %699 = vmatmul.mubr.bf16.gmra.mrb[4].mxu1 %v1180_v18 }
  0x34   : > { %1098 = vmatprep.mubr.msk.bf16.mxu0 %vm545_vm1, %v1181_v19  ;;  %1106 = vmatprep.mubr.msk.bf16.mxu1 %vm545_vm1, %v1183_v20  ;;  %v269_v20 = vld [vmem:[#allocation2 + $0x20] sm:$0xff] }
  0x3b   : > { %643 = vmatmul.mubr.bf16.gmra.mrb[8].mxu0 %v1185_v21  ;;  %707 = vmatmul.mubr.bf16.gmra.mrb[8].mxu1 %v1186_v22  ;;  %v285_v21 = vld [vmem:[#allocation2 + $0xa0] sm:$0xff] }
  0x3c   : > { %1099 = vmatprep.mubr.msk.bf16.mxu0 %vm545_vm1, %v1187_v23  ;;  %1107 = vmatprep.mubr.msk.bf16.mxu1 %vm545_vm1, %v1189_v24  ;;  %v270_v24 = vld [vmem:[#allocation2 + $0x28] sm:$0xff] }
  0x43   : > { %651 = vmatmul.mubr.bf16.gmra.mrb[12].mxu0 %v1191_v25  ;;  %715 = vmatmul.mubr.bf16.gmra.mrb[12].mxu1 %v1192_v26  ;;  %v286_v25 = vld [vmem:[#allocation2 + $0xa8] sm:$0xff] }
  0x44   : > { %1100 = vmatprep.mubr.msk.bf16.mxu0 %vm545_vm1, %v1193_v27  ;;  %1108 = vmatprep.mubr.msk.bf16.mxu1 %vm545_vm1, %v1195_v28 }
  0x4b   : > { %659 = vmatmul.mubr.bf16.gmra.mrb[16].mxu0 %v1197_v29  ;;  %723 = vmatmul.mubr.bf16.gmra.mrb[16].mxu1 %v1198_v30 }
  0x4c   : > { %1101 = vmatprep.mubr.msk.bf16.mxu0 %vm545_vm1, %v1199_v31  ;;  %1109 = vmatprep.mubr.msk.bf16.mxu1 %vm545_vm1, %v1201_v32 }
  0x53   : > { %667 = vmatmul.mubr.bf16.gmra.mrb[20].mxu0 %v1203_v33  ;;  %731 = vmatmul.mubr.bf16.gmra.mrb[20].mxu1 %v1204_v34 }
  0x54   : > { %1102 = vmatprep.mubr.msk.bf16.mxu0 %vm545_vm1, %v1205_v35  ;;  %1110 = vmatprep.mubr.msk.bf16.mxu1 %vm545_vm1, %v1207_v36 }
  0x5b   : > { %675 = vmatmul.mubr.bf16.gmra.mrb[24].mxu0 %v1209_v37  ;;  %739 = vmatmul.mubr.bf16.gmra.mrb[24].mxu1 %v1210_v38 }
  0x5c   : > { %1103 = vmatprep.mubr.msk.bf16.mxu0 %vm545_vm1, %v1211_v39  ;;  %1111 = vmatprep.mubr.msk.bf16.mxu1 %vm545_vm1, %v1213_v40 }
  0x63   : > { %683 = vmatmul.mubr.bf16.gmra.mrb[28].mxu0 %v1215_v41  ;;  %747 = vmatmul.mubr.bf16.gmra.mrb[28].mxu1 %v1216_v42 }
  0xfe   : > { %v628_v45 = vpop.f32.mrb[0].mxu0  ;;  %v692_v46 = vpop.f32.mrb[0].mxu1 }
  0xff   : > { %v755_v49 = vadd.f32 %v628_v45, %v265_v43  ;;  %v771_v50 = vadd.f32 %v692_v46, %v281_v44  ;;  %v630_v51 = vpop.f32.mrb[1].mxu0  ;;  %v694_v52 = vpop.f32.mrb[1].mxu1  ;;  %v271_v44 = vld [vmem:[#allocation2 + $0x30] sm:$0xff] }
 0x100   : > { %v631_v53 = vpop.f32.mrb[2].mxu0  ;;  %v695_v54 = vpop.f32.mrb[2].mxu1  ;;  %v287_v45 = vld [vmem:[#allocation2 + $0xb0] sm:$0xff]  ;;  %v288_v51 = vld [vmem:[#allocation2 + $0xb8] sm:$0xff] }
 0x101   : > { %788 = vst.msk [vmem:[#allocation2] sm:$0xff] %vm232_vm0, %v755_v49  ;;  %804 = vst.msk [vmem:[#allocation2 + $0x80] sm:$0xff] %vm232_vm0, %v771_v50  ;;  %v756_v55 = vadd.f32 %v631_v53, %v266_v47  ;;  %v772_v56 = vadd.f32 %v695_v54, %v282_v48  ;;  %v633_v57 = vpop.f32.mrb[3].mxu0  ;;  %v697_v58 = vpop.f32.mrb[3].mxu1  ;;  %v272_v50 = vld [vmem:[#allocation2 + $0x38] sm:$0xff] }
 0x103   : > { %789 = vst.msk [vmem:[#allocation2 + $0x8] sm:$0xff] %vm232_vm0, %v756_v55  ;;  %805 = vst.msk [vmem:[#allocation2 + $0x88] sm:$0xff] %vm232_vm0, %v772_v56 }
 0x106   : > { %v636_v62 = vpop.f32.mrb[4].mxu0  ;;  %v700_v63 = vpop.f32.mrb[4].mxu1 }
 0x107   : > { %v757_v2 = vadd.f32 %v636_v62, %v267_v59  ;;  %v773_v3 = vadd.f32 %v700_v63, %v283_v60  ;;  %v638_v4 = vpop.f32.mrb[5].mxu0  ;;  %v702_v5 = vpop.f32.mrb[5].mxu1 }
 0x108   : > { %v823_v6 = vld [vmem:[#allocation2] sm:$0xff]  ;;  %v639_v8 = vpop.f32.mrb[6].mxu0  ;;  %v703_v9 = vpop.f32.mrb[6].mxu1 }
 0x109   : > { %v839_v7 = vld [vmem:[#allocation2 + $0x80] sm:$0xff]  ;;  %v862_v10 = vadd.f32 %v1487_v61, %v823_v6  ;;  %790 = vst.msk [vmem:[#allocation2 + $0x10] sm:$0xff] %vm232_vm0, %v757_v2  ;;  %806 = vst.msk [vmem:[#allocation2 + $0x90] sm:$0xff] %vm232_vm0, %v773_v3  ;;  %v758_v12 = vadd.f32 %v639_v8, %v268_v0  ;;  %v774_v13 = vadd.f32 %v703_v9, %v284_v1  ;;  %v641_v14 = vpop.f32.mrb[7].mxu0  ;;  %v705_v15 = vpop.f32.mrb[7].mxu1 }
 0x10a   : > { %v878_v11 = vadd.f32 %v1487_v61, %v839_v7  ;;  %v824_v16 = vld [vmem:[#allocation2 + $0x8] sm:$0xff]  ;;  %v273_v9 = vld [vmem:[#allocation2 + $0x40] sm:$0xff] }
 0x10b   : > { %v840_v17 = vld [vmem:[#allocation2 + $0x88] sm:$0xff]  ;;  %1217 = vtanh.f32 %v862_v10  ;;  %v863_v18 = vadd.f32 %v1487_v61, %v824_v16  ;;  %791 = vst.msk [vmem:[#allocation2 + $0x18] sm:$0xff] %vm232_vm0, %v758_v12  ;;  %807 = vst.msk [vmem:[#allocation2 + $0x98] sm:$0xff] %vm232_vm0, %v774_v13  ;;  %v289_v10 = vld [vmem:[#allocation2 + $0xc0] sm:$0xff] }
 0x10c   : > { %v879_v19 = vadd.f32 %v1487_v61, %v840_v17  ;;  %1219 = vtanh.f32 %v878_v11  ;;  %v274_v15 = vld [vmem:[#allocation2 + $0x48] sm:$0xff] }
 0x10d   : > { %1221 = vtanh.f32 %v863_v18  ;;  %v290_v16 = vld [vmem:[#allocation2 + $0xc8] sm:$0xff] }
 0x10e   : > { %1223 = vtanh.f32 %v879_v19  ;;  %v644_v22 = vpop.f32.mrb[8].mxu0  ;;  %v708_v23 = vpop.f32.mrb[8].mxu1 }
 0x10f   : > { %v759_v26 = vadd.f32 %v644_v22, %v269_v20  ;;  %v775_v27 = vadd.f32 %v708_v23, %v285_v21  ;;  %v646_v28 = vpop.f32.mrb[9].mxu0  ;;  %v710_v29 = vpop.f32.mrb[9].mxu1 }
 0x110   : > { %v825_v30 = vld [vmem:[#allocation2 + $0x10] sm:$0xff]  ;;  %v647_v32 = vpop.f32.mrb[10].mxu0  ;;  %v711_v33 = vpop.f32.mrb[10].mxu1 }
 0x111   : > { %v841_v31 = vld [vmem:[#allocation2 + $0x90] sm:$0xff]  ;;  %v864_v34 = vadd.f32 %v1487_v61, %v825_v30  ;;  %792 = vst.msk [vmem:[#allocation2 + $0x20] sm:$0xff] %vm232_vm0, %v759_v26  ;;  %808 = vst.msk [vmem:[#allocation2 + $0xa0] sm:$0xff] %vm232_vm0, %v775_v27  ;;  %v760_v36 = vadd.f32 %v647_v32, %v270_v24  ;;  %v776_v37 = vadd.f32 %v711_v33, %v286_v25  ;;  %v649_v38 = vpop.f32.mrb[11].mxu0  ;;  %v713_v39 = vpop.f32.mrb[11].mxu1 }
 0x112   : > { %v880_v35 = vadd.f32 %v1487_v61, %v841_v31  ;;  %v826_v40 = vld [vmem:[#allocation2 + $0x18] sm:$0xff]  ;;  %v291_v38 = vld [vmem:[#allocation2 + $0xd0] sm:$0xff] }
 0x113   : > { %v842_v41 = vld [vmem:[#allocation2 + $0x98] sm:$0xff]  ;;  %1225 = vtanh.f32 %v864_v34  ;;  %v865_v42 = vadd.f32 %v1487_v61, %v826_v40  ;;  %793 = vst.msk [vmem:[#allocation2 + $0x28] sm:$0xff] %vm232_vm0, %v760_v36  ;;  %809 = vst.msk [vmem:[#allocation2 + $0xa8] sm:$0xff] %vm232_vm0, %v776_v37  ;;  %v275_v37 = vld [vmem:[#allocation2 + $0x50] sm:$0xff] }
 0x114   : > { %v881_v43 = vadd.f32 %v1487_v61, %v842_v41  ;;  %1227 = vtanh.f32 %v880_v35 }
 0x115   : > { %v1218_v46 = vpop.eup %1217  ;;  %1229 = vtanh.f32 %v865_v42 }
 0x116   : > { %v1220_v47 = vpop.eup %1219  ;;  %926 = vst.msk [vmem:[%s1506_s20] sm:$0xff] %vm232_vm0, %v1218_v46  ;;  %1231 = vtanh.f32 %v881_v43  ;;  %v652_v48 = vpop.f32.mrb[12].mxu0  ;;  %v276_v43 = vld [vmem:[#allocation2 + $0x58] sm:$0xff] }
 0x117   : > { %v716_v49 = vpop.f32.mrb[12].mxu1  ;;  %v1222_v52 = vpop.eup %1221  ;;  %942 = vst.msk [vmem:[%s1506_s20 + $0x80] sm:$0xff] %vm232_vm0, %v1220_v47  ;;  %v761_v53 = vadd.f32 %v652_v48, %v271_v44  ;;  %v292_v44 = vld [vmem:[#allocation2 + $0xd8] sm:$0xff] }
 0x118   : > { %v777_v54 = vadd.f32 %v716_v49, %v287_v45  ;;  %v654_v55 = vpop.f32.mrb[13].mxu0  ;;  %v718_v56 = vpop.f32.mrb[13].mxu1  ;;  %927 = vst.msk [vmem:[%s1506_s20 + $0x8] sm:$0xff] %vm232_vm0, %v1222_v52  ;;  %v827_v58 = vld [vmem:[#allocation2 + $0x20] sm:$0xff] }
 0x119   : > { %v1224_v57 = vpop.eup %1223  ;;  %v843_v59 = vld [vmem:[#allocation2 + $0xa0] sm:$0xff]  ;;  %v655_v60 = vpop.f32.mrb[14].mxu0  ;;  %v866_v63 = vadd.f32 %v1487_v61, %v827_v58  ;;  %794 = vst.msk [vmem:[#allocation2 + $0x30] sm:$0xff] %vm232_vm0, %v761_v53 }
 0x11a   : > { %v719_v62 = vpop.f32.mrb[14].mxu1  ;;  %943 = vst.msk [vmem:[%s1506_s20 + $0x88] sm:$0xff] %vm232_vm0, %v1224_v57  ;;  %v882_v0 = vadd.f32 %v1487_v61, %v843_v59  ;;  %810 = vst.msk [vmem:[#allocation2 + $0xb0] sm:$0xff] %vm232_vm0, %v777_v54  ;;  %v762_v1 = vadd.f32 %v655_v60, %v272_v50  ;;  %v657_v3 = vpop.f32.mrb[15].mxu0  ;;  %v828_v5 = vld [vmem:[#allocation2 + $0x28] sm:$0xff] }
 0x11b   : > { %v778_v2 = vadd.f32 %v719_v62, %v288_v51  ;;  %v721_v4 = vpop.f32.mrb[15].mxu1  ;;  %v844_v6 = vld [vmem:[#allocation2 + $0xa8] sm:$0xff]  ;;  %1233 = vtanh.f32 %v866_v63  ;;  %v867_v7 = vadd.f32 %v1487_v61, %v828_v5  ;;  %v293_v3 = vld [vmem:[#allocation2 + $0xe0] sm:$0xff] }
 0x11c   : > { %v883_v8 = vadd.f32 %v1487_v61, %v844_v6  ;;  %795 = vst.msk [vmem:[#allocation2 + $0x38] sm:$0xff] %vm232_vm0, %v762_v1  ;;  %1235 = vtanh.f32 %v882_v0 }
 0x11d   : > { %811 = vst.msk [vmem:[#allocation2 + $0xb8] sm:$0xff] %vm232_vm0, %v778_v2  ;;  %v1226_v11 = vpop.eup %1225  ;;  %1237 = vtanh.f32 %v867_v7  ;;  %v277_v2 = vld [vmem:[#allocation2 + $0x60] sm:$0xff] }
 0x11e   : > { %v1228_v12 = vpop.eup %1227  ;;  %928 = vst.msk [vmem:[%s1506_s20 + $0x10] sm:$0xff] %vm232_vm0, %v1226_v11  ;;  %1239 = vtanh.f32 %v883_v8  ;;  %v660_v13 = vpop.f32.mrb[16].mxu0  ;;  %v278_v8 = vld [vmem:[#allocation2 + $0x68] sm:$0xff] }
 0x11f   : > { %v724_v14 = vpop.f32.mrb[16].mxu1  ;;  %v1230_v17 = vpop.eup %1229  ;;  %944 = vst.msk [vmem:[%s1506_s20 + $0x90] sm:$0xff] %vm232_vm0, %v1228_v12  ;;  %v763_v18 = vadd.f32 %v660_v13, %v273_v9  ;;  %v294_v9 = vld [vmem:[#allocation2 + $0xe8] sm:$0xff] }
 0x120   : > { %v779_v19 = vadd.f32 %v724_v14, %v289_v10  ;;  %v662_v20 = vpop.f32.mrb[17].mxu0  ;;  %v726_v21 = vpop.f32.mrb[17].mxu1  ;;  %929 = vst.msk [vmem:[%s1506_s20 + $0x18] sm:$0xff] %vm232_vm0, %v1230_v17  ;;  %v829_v23 = vld [vmem:[#allocation2 + $0x30] sm:$0xff] }
 0x121   : > { %v1232_v22 = vpop.eup %1231  ;;  %v845_v24 = vld [vmem:[#allocation2 + $0xb0] sm:$0xff]  ;;  %v663_v25 = vpop.f32.mrb[18].mxu0  ;;  %v868_v27 = vadd.f32 %v1487_v61, %v829_v23  ;;  %796 = vst.msk [vmem:[#allocation2 + $0x40] sm:$0xff] %vm232_vm0, %v763_v18 }
 0x122   : > { %v727_v26 = vpop.f32.mrb[18].mxu1  ;;  %945 = vst.msk [vmem:[%s1506_s20 + $0x98] sm:$0xff] %vm232_vm0, %v1232_v22  ;;  %v884_v28 = vadd.f32 %v1487_v61, %v845_v24  ;;  %812 = vst.msk [vmem:[#allocation2 + $0xc0] sm:$0xff] %vm232_vm0, %v779_v19  ;;  %v764_v29 = vadd.f32 %v663_v25, %v274_v15  ;;  %v665_v31 = vpop.f32.mrb[19].mxu0 }
 0x123   : > { %v780_v30 = vadd.f32 %v727_v26, %v290_v16  ;;  %v729_v32 = vpop.f32.mrb[19].mxu1  ;;  %v830_v33 = vld [vmem:[#allocation2 + $0x38] sm:$0xff]  ;;  %1241 = vtanh.f32 %v868_v27  ;;  %v295_v31 = vld [vmem:[#allocation2 + $0xf0] sm:$0xff] }
 0x124   : > { %v846_v34 = vld [vmem:[#allocation2 + $0xb8] sm:$0xff]  ;;  %v869_v35 = vadd.f32 %v1487_v61, %v830_v33  ;;  %797 = vst.msk [vmem:[#allocation2 + $0x48] sm:$0xff] %vm232_vm0, %v764_v29  ;;  %1243 = vtanh.f32 %v884_v28 }
 0x125   : > { %v885_v36 = vadd.f32 %v1487_v61, %v846_v34  ;;  %813 = vst.msk [vmem:[#allocation2 + $0xc8] sm:$0xff] %vm232_vm0, %v780_v30  ;;  %v1234_v39 = vpop.eup %1233  ;;  %v279_v30 = vld [vmem:[#allocation2 + $0x70] sm:$0xff] }
 0x126   : > { %1245 = vtanh.f32 %v869_v35  ;;  %v1236_v40 = vpop.eup %1235  ;;  %930 = vst.msk [vmem:[%s1506_s20 + $0x20] sm:$0xff] %vm232_vm0, %v1234_v39  ;;  %v668_v41 = vpop.f32.mrb[20].mxu0 }
 0x127   : > { %1247 = vtanh.f32 %v885_v36  ;;  %v732_v42 = vpop.f32.mrb[20].mxu1  ;;  %v1238_v45 = vpop.eup %1237  ;;  %946 = vst.msk [vmem:[%s1506_s20 + $0xa0] sm:$0xff] %vm232_vm0, %v1236_v40  ;;  %v765_v46 = vadd.f32 %v668_v41, %v275_v37  ;;  %v280_v36 = vld [vmem:[#allocation2 + $0x78] sm:$0xff] }
 0x128   : > { %v781_v47 = vadd.f32 %v732_v42, %v291_v38  ;;  %v670_v48 = vpop.f32.mrb[21].mxu0  ;;  %v734_v49 = vpop.f32.mrb[21].mxu1  ;;  %931 = vst.msk [vmem:[%s1506_s20 + $0x28] sm:$0xff] %vm232_vm0, %v1238_v45  ;;  %v831_v51 = vld [vmem:[#allocation2 + $0x40] sm:$0xff]  ;;  %v296_v37 = vld [vmem:[#allocation2 + $0xf8] sm:$0xff] }
 0x129   : > { %v1240_v50 = vpop.eup %1239  ;;  %v847_v52 = vld [vmem:[#allocation2 + $0xc0] sm:$0xff]  ;;  %v671_v53 = vpop.f32.mrb[22].mxu0  ;;  %v870_v55 = vadd.f32 %v1487_v61, %v831_v51  ;;  %798 = vst.msk [vmem:[#allocation2 + $0x50] sm:$0xff] %vm232_vm0, %v765_v46 }
 0x12a   : > { %v735_v54 = vpop.f32.mrb[22].mxu1  ;;  %947 = vst.msk [vmem:[%s1506_s20 + $0xa8] sm:$0xff] %vm232_vm0, %v1240_v50  ;;  %v886_v56 = vadd.f32 %v1487_v61, %v847_v52  ;;  %814 = vst.msk [vmem:[#allocation2 + $0xd0] sm:$0xff] %vm232_vm0, %v781_v47  ;;  %v766_v57 = vadd.f32 %v671_v53, %v276_v43  ;;  %v673_v59 = vpop.f32.mrb[23].mxu0 }
 0x12b   : > { %v782_v58 = vadd.f32 %v735_v54, %v292_v44  ;;  %v737_v60 = vpop.f32.mrb[23].mxu1  ;;  %v832_v62 = vld [vmem:[#allocation2 + $0x48] sm:$0xff]  ;;  %1249 = vtanh.f32 %v870_v55 }
 0x12c   : > { %v848_v63 = vld [vmem:[#allocation2 + $0xc8] sm:$0xff]  ;;  %v871_v0 = vadd.f32 %v1487_v61, %v832_v62  ;;  %799 = vst.msk [vmem:[#allocation2 + $0x58] sm:$0xff] %vm232_vm0, %v766_v57  ;;  %1251 = vtanh.f32 %v886_v56 }
 0x12d   : > { %v887_v1 = vadd.f32 %v1487_v61, %v848_v63  ;;  %815 = vst.msk [vmem:[#allocation2 + $0xd8] sm:$0xff] %vm232_vm0, %v782_v58  ;;  %v1242_v4 = vpop.eup %1241 }
 0x12e   : > { %1253 = vtanh.f32 %v871_v0  ;;  %v1244_v5 = vpop.eup %1243  ;;  %932 = vst.msk [vmem:[%s1506_s20 + $0x30] sm:$0xff] %vm232_vm0, %v1242_v4  ;;  %v676_v6 = vpop.f32.mrb[24].mxu0 }
 0x12f   : > { %1255 = vtanh.f32 %v887_v1  ;;  %v740_v7 = vpop.f32.mrb[24].mxu1  ;;  %948 = vst.msk [vmem:[%s1506_s20 + $0xb0] sm:$0xff] %vm232_vm0, %v1244_v5  ;;  %v767_v11 = vadd.f32 %v676_v6, %v277_v2  ;;  %v678_v13 = vpop.f32.mrb[25].mxu0 }
 0x130   : > { %v1246_v10 = vpop.eup %1245  ;;  %v783_v12 = vadd.f32 %v740_v7, %v293_v3  ;;  %v742_v14 = vpop.f32.mrb[25].mxu1  ;;  %v833_v16 = vld [vmem:[#allocation2 + $0x50] sm:$0xff] }
 0x131   : > { %v1248_v15 = vpop.eup %1247  ;;  %933 = vst.msk [vmem:[%s1506_s20 + $0x38] sm:$0xff] %vm232_vm0, %v1246_v10  ;;  %v849_v17 = vld [vmem:[#allocation2 + $0xd0] sm:$0xff]  ;;  %v679_v18 = vpop.f32.mrb[26].mxu0  ;;  %v872_v20 = vadd.f32 %v1487_v61, %v833_v16  ;;  %800 = vst.msk [vmem:[#allocation2 + $0x60] sm:$0xff] %vm232_vm0, %v767_v11 }
 0x132   : > { %v743_v19 = vpop.f32.mrb[26].mxu1  ;;  %949 = vst.msk [vmem:[%s1506_s20 + $0xb8] sm:$0xff] %vm232_vm0, %v1248_v15  ;;  %v888_v21 = vadd.f32 %v1487_v61, %v849_v17  ;;  %816 = vst.msk [vmem:[#allocation2 + $0xe0] sm:$0xff] %vm232_vm0, %v783_v12  ;;  %v768_v22 = vadd.f32 %v679_v18, %v278_v8  ;;  %v681_v24 = vpop.f32.mrb[27].mxu0 }
 0x133   : > { %v784_v23 = vadd.f32 %v743_v19, %v294_v9  ;;  %v745_v25 = vpop.f32.mrb[27].mxu1  ;;  %v834_v26 = vld [vmem:[#allocation2 + $0x58] sm:$0xff]  ;;  %1257 = vtanh.f32 %v872_v20 }
 0x134   : > { %v850_v27 = vld [vmem:[#allocation2 + $0xd8] sm:$0xff]  ;;  %v873_v28 = vadd.f32 %v1487_v61, %v834_v26  ;;  %801 = vst.msk [vmem:[#allocation2 + $0x68] sm:$0xff] %vm232_vm0, %v768_v22  ;;  %1259 = vtanh.f32 %v888_v21 }
 0x135   : > { %v889_v29 = vadd.f32 %v1487_v61, %v850_v27  ;;  %817 = vst.msk [vmem:[#allocation2 + $0xe8] sm:$0xff] %vm232_vm0, %v784_v23  ;;  %v1250_v32 = vpop.eup %1249 }
 0x136   : > { %1261 = vtanh.f32 %v873_v28  ;;  %v1252_v33 = vpop.eup %1251  ;;  %934 = vst.msk [vmem:[%s1506_s20 + $0x40] sm:$0xff] %vm232_vm0, %v1250_v32  ;;  %v684_v34 = vpop.f32.mrb[28].mxu0 }
 0x137   : > { %1263 = vtanh.f32 %v889_v29  ;;  %v748_v35 = vpop.f32.mrb[28].mxu1  ;;  %950 = vst.msk [vmem:[%s1506_s20 + $0xc0] sm:$0xff] %vm232_vm0, %v1252_v33  ;;  %v769_v39 = vadd.f32 %v684_v34, %v279_v30  ;;  %v686_v41 = vpop.f32.mrb[29].mxu0 }
 0x138   : > { %v1254_v38 = vpop.eup %1253  ;;  %v785_v40 = vadd.f32 %v748_v35, %v295_v31  ;;  %v750_v42 = vpop.f32.mrb[29].mxu1  ;;  %v835_v44 = vld [vmem:[#allocation2 + $0x60] sm:$0xff] }
 0x139   : > { %v1256_v43 = vpop.eup %1255  ;;  %935 = vst.msk [vmem:[%s1506_s20 + $0x48] sm:$0xff] %vm232_vm0, %v1254_v38  ;;  %v851_v45 = vld [vmem:[#allocation2 + $0xe0] sm:$0xff]  ;;  %v687_v46 = vpop.f32.mrb[30].mxu0  ;;  %v874_v48 = vadd.f32 %v1487_v61, %v835_v44  ;;  %802 = vst.msk [vmem:[#allocation2 + $0x70] sm:$0xff] %vm232_vm0, %v769_v39 }
 0x13a   : > { %v751_v47 = vpop.f32.mrb[30].mxu1  ;;  %951 = vst.msk [vmem:[%s1506_s20 + $0xc8] sm:$0xff] %vm232_vm0, %v1256_v43  ;;  %v890_v49 = vadd.f32 %v1487_v61, %v851_v45  ;;  %818 = vst.msk [vmem:[#allocation2 + $0xf0] sm:$0xff] %vm232_vm0, %v785_v40  ;;  %v770_v50 = vadd.f32 %v687_v46, %v280_v36  ;;  %v689_v52 = vpop.f32.mrb[31].mxu0 }
 0x13b   : > { %v786_v51 = vadd.f32 %v751_v47, %v296_v37  ;;  %v753_v53 = vpop.f32.mrb[31].mxu1  ;;  %v836_v54 = vld [vmem:[#allocation2 + $0x68] sm:$0xff]  ;;  %1265 = vtanh.f32 %v874_v48 }
 0x13c   : > { %v852_v55 = vld [vmem:[#allocation2 + $0xe8] sm:$0xff]  ;;  %v875_v56 = vadd.f32 %v1487_v61, %v836_v54  ;;  %803 = vst.msk [vmem:[#allocation2 + $0x78] sm:$0xff] %vm232_vm0, %v770_v50  ;;  %1267 = vtanh.f32 %v890_v49 }
 0x13d   : > { %v891_v57 = vadd.f32 %v1487_v61, %v852_v55  ;;  %819 = vst.msk [vmem:[#allocation2 + $0xf8] sm:$0xff] %vm232_vm0, %v786_v51  ;;  %v1258_v58 = vpop.eup %1257 }
 0x13e   : > { %1269 = vtanh.f32 %v875_v56  ;;  %v1260_v59 = vpop.eup %1259  ;;  %936 = vst.msk [vmem:[%s1506_s20 + $0x50] sm:$0xff] %vm232_vm0, %v1258_v58 }
 0x13f   : > { %1271 = vtanh.f32 %v891_v57  ;;  %952 = vst.msk [vmem:[%s1506_s20 + $0xd0] sm:$0xff] %vm232_vm0, %v1260_v59 }
 0x140   : > { %v1262_v60 = vpop.eup %1261  ;;  %v837_v63 = vld [vmem:[#allocation2 + $0x70] sm:$0xff] }
 0x141   : > { %v1264_v62 = vpop.eup %1263  ;;  %937 = vst.msk [vmem:[%s1506_s20 + $0x58] sm:$0xff] %vm232_vm0, %v1262_v60  ;;  %v853_v0 = vld [vmem:[#allocation2 + $0xf0] sm:$0xff]  ;;  %v876_v1 = vadd.f32 %v1487_v61, %v837_v63 }
 0x142   : > { %953 = vst.msk [vmem:[%s1506_s20 + $0xd8] sm:$0xff] %vm232_vm0, %v1264_v62  ;;  %v892_v2 = vadd.f32 %v1487_v61, %v853_v0 }
 0x143   : > { %v838_v3 = vld [vmem:[#allocation2 + $0x78] sm:$0xff]  ;;  %1273 = vtanh.f32 %v876_v1 }
 0x144   : > { %v854_v4 = vld [vmem:[#allocation2 + $0xf8] sm:$0xff]  ;;  %v877_v5 = vadd.f32 %v1487_v61, %v838_v3  ;;  %1275 = vtanh.f32 %v892_v2 }
 0x145   : > { %v893_v6 = vadd.f32 %v1487_v61, %v854_v4  ;;  %v1266_v7 = vpop.eup %1265 }
 0x146   : > { %1277 = vtanh.f32 %v877_v5  ;;  %v1268_v8 = vpop.eup %1267  ;;  %938 = vst.msk [vmem:[%s1506_s20 + $0x60] sm:$0xff] %vm232_vm0, %v1266_v7 }
 0x147   : > { %1279 = vtanh.f32 %v893_v6  ;;  %954 = vst.msk [vmem:[%s1506_s20 + $0xe0] sm:$0xff] %vm232_vm0, %v1268_v8 }
 0x148   : > { %v1270_v9 = vpop.eup %1269 }
 0x149   : > { %v1272_v10 = vpop.eup %1271  ;;  %939 = vst.msk [vmem:[%s1506_s20 + $0x68] sm:$0xff] %vm232_vm0, %v1270_v9 }
 0x14a   : > { %955 = vst.msk [vmem:[%s1506_s20 + $0xe8] sm:$0xff] %vm232_vm0, %v1272_v10 }
 0x14d   : > { %v1274_v11 = vpop.eup %1273 }
 0x14e   : > { %v1276_v61 = vpop.eup %1275  ;;  %940 = vst.msk [vmem:[%s1506_s20 + $0x70] sm:$0xff] %vm232_vm0, %v1274_v11 }
 0x14f   : > { %956 = vst.msk [vmem:[%s1506_s20 + $0xf0] sm:$0xff] %vm232_vm0, %v1276_v61 }
 0x150   : > { %v1278_v12 = vpop.eup %1277 }
 0x151   : > { %v1280_v13 = vpop.eup %1279  ;;  %941 = vst.msk [vmem:[%s1506_s20 + $0x78] sm:$0xff] %vm232_vm0, %v1278_v12 }
 0x152   : > { %957 = vst.msk [vmem:[%s1506_s20 + $0xf8] sm:$0xff] %vm232_vm0, %v1280_v13 }
 0x153 PF: > { %s13_s14 = sadd.s32 1, %s1303_s14   ;;  %s1633_s12 = smov %s1299_s13 }
 0x154   : > { %p10_p5 = scmp.ge.s32.totalorder %s13_s14, 4   ;;  %s1634_s13 = smov %s1636_s15 }
 0x156   :  { %12 = sbr.rel (!%p10_p5) target bundleno = 2 (0x2), region = 73 }

</bundles_post_ra>
